<compile_context>
chip_gen: v7x
topology: tpu7x:2x2x1
jax: 0.10.0
libtpu: 0.0.40
codegen_flags: <defaults>
</compile_context>

<pallas_src>
import math

import jax
import jax.numpy as jnp
from jax.experimental import pallas as pl
from jax.experimental.pallas import tpu as pltpu

# ----------------------------- configuration -----------------------------
VOCAB = 100          # toy vocabulary for the BERT stand-in
CL = 32              # language hidden dim
CK = 32              # attention key dim
STRIDES = (2, 4, 8, 16)
CHANNELS = (16, 32, 64, 128)   # c1..c4 (logical widths; padded to CP on-chip)
CD = 32              # decoder hidden dim (logical; padded to CP on-chip)
NUM_CLASSES = 2
CP = 128             # lane-dense padded channel width for all feature maps
CLS_PAD = 128        # lane-dense padded cls-head width
IMG_C = 3
BF16 = jnp.bfloat16
VMEM_LIMIT = 48 * 1024 * 1024


def _cparams(*sem):
    return pltpu.CompilerParams(dimension_semantics=sem,
                                vmem_limit_bytes=VMEM_LIMIT)


def _row_tile(total, row_bytes, budget=4 * 1024 * 1024):
    """Largest divisor of `total` that is a multiple of 8 and keeps one block
    under the VMEM budget (falls back to the full extent)."""
    if total * row_bytes <= budget:
        return total
    cap = min(total, max(8, budget // max(row_bytes, 1)))
    best, t = 0, 8
    while t <= cap:
        if total % t == 0:
            best = t
        t += 8
    return best if best > 0 else total


def _pad2(w, rows, cols):
    return jnp.zeros((rows, cols), w.dtype).at[:w.shape[0], :w.shape[1]].set(w)


def _padv(v, n):
    return jnp.zeros((n,), v.dtype).at[:v.shape[0]].set(v)


# ----------------------------- interpolation helpers -----------------------------
def _interp_matrix(out_size, in_size):
    """Per-axis bilinear interpolation matrix, align_corners=True (PyTorch)."""
    if in_size == 1 or out_size == 1:
        return jnp.zeros((out_size, in_size), jnp.float32).at[:, 0].set(1.0)
    src = jnp.arange(out_size, dtype=jnp.float32) * (in_size - 1) / (out_size - 1)
    i0 = jnp.clip(jnp.floor(src).astype(jnp.int32), 0, in_size - 2)
    w1 = src - i0.astype(jnp.float32)
    w0 = 1.0 - w1
    oh0 = jax.nn.one_hot(i0, in_size, dtype=jnp.float32)
    oh1 = jax.nn.one_hot(i0 + 1, in_size, dtype=jnp.float32)
    return w0[:, None] * oh0 + w1[:, None] * oh1


def patchify(x_nhwc, s):
    B, H, W, C = x_nhwc.shape
    Hp, Wp = H // s, W // s
    p = x_nhwc.reshape(B, Hp, s, Wp, s, C)
    p = jnp.transpose(p, (0, 1, 3, 2, 4, 5)).reshape(B, Hp * Wp, s * s * C)
    return p, (Hp, Wp)


# ----------------------------- fused text MLP (BERT stand-in body) -----------------------------
def pallas_text_mlp(emb, w1, b1, w2, b2):
    """h = relu(emb @ w1 + b1) @ w2 + b2, single pallas_call."""
    M, Cin = emb.shape
    N1, N2 = w1.shape[1], w2.shape[1]
    b1r = b1.reshape(1, N1).astype(jnp.float32)
    b2r = b2.reshape(1, N2).astype(jnp.float32)

    def kernel(e_ref, w1_ref, b1_ref, w2_ref, b2_ref, o_ref):
        h = jnp.dot(e_ref[...], w1_ref[...], preferred_element_type=jnp.float32)
        h = jnp.maximum(h + b1_ref[...], 0.0)
        h = jnp.dot(h.astype(w2_ref.dtype), w2_ref[...],
                    preferred_element_type=jnp.float32) + b2_ref[...]
        o_ref[...] = h.astype(o_ref.dtype)

    return pl.pallas_call(
        kernel,
        out_shape=jax.ShapeDtypeStruct((M, N2), BF16),
        grid=(1,),
        in_specs=[pl.BlockSpec((M, Cin), lambda i: (0, 0)),
                  pl.BlockSpec((Cin, N1), lambda i: (0, 0)),
                  pl.BlockSpec((1, N1), lambda i: (0, 0)),
                  pl.BlockSpec((N1, N2), lambda i: (0, 0)),
                  pl.BlockSpec((1, N2), lambda i: (0, 0))],
        out_specs=pl.BlockSpec((M, N2), lambda i: (0, 0)),
        compiler_params=_cparams("arbitrary"),
    )(emb, w1, b1r, w2, b2r)


# ----------------------------- fused patch-embed + PWAM stage -----------------------------
def pallas_stage(patches, lang, mask_bias, pe_w, pe_b, wq, wkv, wo, head=None):
    """v = relu(patches @ pe_w + pe_b); masked pixel-word cross-attention fusion
    (LAVT PWAM stand-in).  Channels are padded to CP=128 (lane-dense output).
    `head` (stage 4 only) fuses the decoder's f4 1x1-conv+ReLU and the first
    up-projection so f4 never hits HBM.

    patches:[B,N,P] lang:[B,L,CL] mask_bias:[B,1,L] -> [B,N,CP] bf16
    """
    B, N, P = patches.shape
    L, Cl = lang.shape[1], lang.shape[2]
    Cp = pe_w.shape[1]
    Ck = wq.shape[1]
    scale = 1.0 / math.sqrt(Ck)
    with_head = head is not None
    tn = _row_tile(N, 2 * P + 16 * Cp + 1024)

    def kernel(*refs):
        if with_head:
            (p_ref, l_ref, mb_ref, pw_ref, pb_ref, wq_ref, wkv_ref, wo_ref,
             hw1_ref, hb1_ref, hw2_ref, o_ref) = refs
        else:
            (p_ref, l_ref, mb_ref, pw_ref, pb_ref, wq_ref, wkv_ref, wo_ref,
             o_ref) = refs
        # patch embed (f32 accumulation, relu in f32)
        v = jnp.dot(p_ref[0], pw_ref[...], preferred_element_type=jnp.float32)
        v = jnp.maximum(v + pb_ref[...], 0.0)                       # [tn, Cp]
        lf = l_ref[0]                                               # [L, Cl]
        kv = jnp.dot(lf, wkv_ref[...], preferred_element_type=jnp.float32)
        k = kv[:, :Ck].astype(BF16)
        val = kv[:, Ck:].astype(BF16)
        q = jnp.dot(v.astype(BF16), wq_ref[...],
                    preferred_element_type=jnp.float32)             # [tn, Ck]
        s = jax.lax.dot_general(q.astype(BF16), k, (((1,), (1,)), ((), ())),
                                preferred_element_type=jnp.float32) * scale
        s = s + mb_ref[0]                                           # precomputed pad bias
        s = s - jnp.max(s, axis=-1, keepdims=True)
        pr = jnp.exp(s)
        pr = pr * pl.reciprocal(jnp.sum(pr, axis=-1, keepdims=True), approx=True)
        attn = jnp.dot(pr.astype(BF16), val,
                       preferred_element_type=jnp.float32)          # [tn, Cp]
        gate = jnp.tanh(jnp.dot(attn.astype(BF16), wo_ref[...],
                                preferred_element_type=jnp.float32))
        f = v * (1.0 + gate)
        if with_head:
            h = jnp.maximum(jnp.dot(f.astype(BF16), hw1_ref[...],
                                    preferred_element_type=jnp.float32)
                            + hb1_ref[...], 0.0)
            f = jnp.dot(h.astype(BF16), hw2_ref[...],
                        preferred_element_type=jnp.float32)
        o_ref[0] = f.astype(o_ref.dtype)

    in_specs = [pl.BlockSpec((1, tn, P), lambda b, i: (b, i, 0)),
                pl.BlockSpec((1, L, Cl), lambda b, i: (b, 0, 0)),
                pl.BlockSpec((1, 1, L), lambda b, i: (b, 0, 0)),
                pl.BlockSpec((P, Cp), lambda b, i: (0, 0)),
                pl.BlockSpec((1, Cp), lambda b, i: (0, 0)),
                pl.BlockSpec((Cp, Ck), lambda b, i: (0, 0)),
                pl.BlockSpec((Cl, Ck + Cp), lambda b, i: (0, 0)),
                pl.BlockSpec((Cp, Cp), lambda b, i: (0, 0))]
    args = [patches, lang, mask_bias, pe_w, pe_b, wq, wkv, wo]
    if with_head:
        hw1, hb1, hw2 = head
        in_specs += [pl.BlockSpec((Cp, Cp), lambda b, i: (0, 0)),
                     pl.BlockSpec((1, Cp), lambda b, i: (0, 0)),
                     pl.BlockSpec((Cp, Cp), lambda b, i: (0, 0))]
        args += [hw1, hb1, hw2]

    return pl.pallas_call(
        kernel,
        out_shape=jax.ShapeDtypeStruct((B, N, Cp), BF16),
        grid=(B, N // tn),
        in_specs=in_specs,
        out_specs=pl.BlockSpec((1, tn, Cp), lambda b, i: (b, i, 0)),
        compiler_params=_cparams("parallel", "parallel"),
    )(*args)


# ----------------------------- decoder: separable resize + fused conv -----------------------------
def pallas_hresize(y, hw_in, hw_out):
    """H-axis bilinear resize: Ah @ [Hin, Win*CP] slabs (lane-dense matmul)."""
    B, Min, C = y.shape
    Hin, Win = hw_in
    Hout = hw_out[0]
    Ah = _interp_matrix(Hout, Hin).astype(BF16)
    y2 = y.reshape(B, Hin, Win * C)               # free metadata reshape (HBM)
    tho = _row_tile(Hout, Win * C * 6)

    def kernel(y_ref, ah_ref, o_ref):
        o_ref[0] = jnp.dot(ah_ref[...], y_ref[0],
                           preferred_element_type=jnp.float32).astype(o_ref.dtype)

    return pl.pallas_call(
        kernel,
        out_shape=jax.ShapeDtypeStruct((B, Hout, Win * C), BF16),
        grid=(B, Hout // tho),
        in_specs=[pl.BlockSpec((1, Hin, Win * C), lambda b, i: (b, 0, 0)),
                  pl.BlockSpec((tho, Hin), lambda b, i: (i, 0))],
        out_specs=pl.BlockSpec((1, tho, Win * C), lambda b, i: (b, i, 0)),
        compiler_params=_cparams("parallel", "parallel"),
    )(y2, Ah)


def pallas_wfuse(t, skip, hw_in, hw_out, wsk, b2, wnext, bnext, out_f32):
    """W-axis resize (batched dot) + skip 1x1-conv + bias + ReLU, fused with the
    next level's up-projection (or the padded cls head).  Tiled over (B, H)."""
    B = t.shape[0]
    Hin, Win = hw_in
    Hout, Wout = hw_out
    C = t.shape[2] // Win
    Nout = wnext.shape[1]
    Ms = Hout * Wout
    with_bias = bnext is not None
    out_dtype = jnp.float32 if out_f32 else BF16
    Aw = _interp_matrix(Wout, Win).astype(BF16)
    t4 = t.reshape(B, Hout, Win, C)               # free metadata reshape (HBM)
    tho = _row_tile(Hout, Wout * C * 16)
    nht = Hout // tho

    def kernel(*refs):
        if with_bias:
            t_ref, s_ref, aw_ref, wsk_ref, b_ref, wn_ref, bn_ref, o_ref = refs
        else:
            t_ref, s_ref, aw_ref, wsk_ref, b_ref, wn_ref, o_ref = refs
        t3 = t_ref[0]                                               # [tho, Win, C]
        aw_b = jnp.broadcast_to(aw_ref[...].reshape(1, Wout, Win),
                                (tho, Wout, Win))
        up = jax.lax.dot_general(aw_b, t3, (((2,), (1,)), ((0,), (0,))),
                                 preferred_element_type=jnp.float32)  # [tho,Wout,C]
        up = up.reshape(tho * Wout, C)
        skp = jnp.dot(s_ref[0], wsk_ref[...], preferred_element_type=jnp.float32)
        h = jnp.maximum(up + skp + b_ref[...], 0.0)
        y = jnp.dot(h.astype(BF16), wn_ref[...], preferred_element_type=jnp.float32)
        if with_bias:
            y = y + bn_ref[...]
        o_ref[0] = y.astype(o_ref.dtype)

    in_specs = [pl.BlockSpec((1, tho, Win, C), lambda b, i: (b, i, 0, 0)),
                pl.BlockSpec((1, tho * Wout, C), lambda b, i: (b, i, 0)),
                pl.BlockSpec((Wout, Win), lambda b, i: (0, 0)),
                pl.BlockSpec((C, C), lambda b, i: (0, 0)),
                pl.BlockSpec((1, C), lambda b, i: (0, 0)),
                pl.BlockSpec((C, Nout), lambda b, i: (0, 0))]
    args = [t4, skip, Aw, wsk, b2, wnext]
    if with_bias:
        in_specs.append(pl.BlockSpec((1, Nout), lambda b, i: (0, 0)))
        args.append(bnext)

    return pl.pallas_call(
        kernel,
        out_shape=jax.ShapeDtypeStruct((B, Ms, Nout), out_dtype),
        grid=(B, nht),
        in_specs=in_specs,
        out_specs=pl.BlockSpec((1, tho * Wout, Nout), lambda b, i: (b, i, 0)),
        compiler_params=_cparams("parallel", "parallel"),
    )(*args)


def pallas_resize_maps(maps, out_hw):
    """Final align_corners=True bilinear resize, per (batch, class) map:
    Y = Ah @ X @ Aw^T as two small bf16 matmuls, tiled over output rows."""
    M, H1, W1 = maps.shape
    H, W = out_hw
    Ah = _interp_matrix(H, H1).astype(BF16)
    AwT = _interp_matrix(W, W1).T.astype(BF16)
    th = _row_tile(H, 8 * max(W, W1))

    def kernel(x_ref, ah_ref, awt_ref, o_ref):
        xb = x_ref[0].astype(BF16)
        t = jnp.dot(ah_ref[...], xb, preferred_element_type=jnp.float32)
        o_ref[0] = jnp.dot(t.astype(BF16), awt_ref[...],
                           preferred_element_type=jnp.float32)

    return pl.pallas_call(
        kernel,
        out_shape=jax.ShapeDtypeStruct((M, H, W), jnp.float32),
        grid=(M, H // th),
        in_specs=[pl.BlockSpec((1, H1, W1), lambda m, i: (m, 0, 0)),
                  pl.BlockSpec((th, H1), lambda m, i: (i, 0)),
                  pl.BlockSpec((W1, W), lambda m, i: (0, 0))],
        out_specs=pl.BlockSpec((1, th, W), lambda m, i: (m, i, 0)),
        compiler_params=_cparams("parallel", "parallel"),
    )(maps, Ah, AwT)


# ----------------------------- sub-modules -----------------------------
def text_encoder(p, text, l_mask):
    """BERT stand-in: embedding lookup + fused 2-layer MLP -> last_hidden_state."""
    # TODO(synk): the BERT stand-in does not use attention_mask internally; the
    #             mask is only consumed by the PWAM softmax (as in the stub).
    emb = p["embed"][text]                                 # [B, L, CL] gather = glue
    B, L, Cl = emb.shape
    h = pallas_text_mlp(emb.reshape(B * L, Cl).astype(BF16),
                        p["t1_w"].astype(BF16), p["t1_b"],
                        p["t2_w"].astype(BF16), p["t2_b"])
    return h.reshape(B, L, Cl)                             # bf16


def backbone(p, x_nhwc, l_feats_perm, l_mask_u, c4_head=None):
    """LAVT backbone stand-in: fused patch-embed + PWAM per scale, channel-last,
    channels zero-padded to CP=128."""
    lang = jnp.transpose(l_feats_perm, (0, 2, 1)).astype(BF16)            # [B, L, CL]
    mask_bias = (jnp.transpose(l_mask_u, (0, 2, 1)).astype(jnp.float32) - 1.0) * 1e4
    feats = []
    for i, (s, c) in enumerate(zip(STRIDES, CHANNELS)):
        sp = p["stage%d" % (i + 1)]
        patches, hw = patchify(x_nhwc, s)
        pe_w = _pad2(sp["pe_w"], sp["pe_w"].shape[0], CP).astype(BF16)
        pe_b = _padv(sp["pe_b"], CP).reshape(1, CP).astype(jnp.float32)
        wq = _pad2(sp["wq"], CP, CK).astype(BF16)
        wkv = jnp.concatenate([sp["wk"], _pad2(sp["wv"], CL, CP)], axis=1).astype(BF16)
        wo = _pad2(sp["wo"], CP, CP).astype(BF16)
        head = c4_head if i == len(STRIDES) - 1 else None
        f = pallas_stage(patches.astype(BF16), lang, mask_bias,
                         pe_w, pe_b, wq, wkv, wo, head=head)
        feats.append((f, hw))          # [B, Hp*Wp, CP] channel-last bf16
    return feats                        # (c1, c2, c3, c4-projected)


def classifier(p, feats, input_shape):
    """SimpleDecoding stand-in, top-down.  Each level: separable bilinear
    upsample of the (already projected) coarse path + skip 1x1-conv + ReLU,
    fused with the next level's projection (or the padded cls head)."""
    (f1, hw1), (f2, hw2), (f3, hw3), (y, hw4) = feats
    # y = relu(conv(f4)) @ f3_w[:CD]  (fused into the stage-4 kernel)
    levels = [
        (hw4, hw3, f3, p["f3_w"], p["f3_b"], p["f2_w"][:CD], None),
        (hw3, hw2, f2, p["f2_w"], p["f2_b"], p["f1_w"][:CD], None),
        (hw2, hw1, f1, p["f1_w"], p["f1_b"], p["cls_w"], p["cls_b"]),
    ]
    for hw_in, hw_out, skip, w, b, wnext, bnext in levels:
        wsk = _pad2(w[CD:], CP, CP).astype(BF16)
        b2 = _padv(b, CP).reshape(1, CP).astype(jnp.float32)
        t = pallas_hresize(y, hw_in, hw_out)
        if bnext is None:
            wn = _pad2(wnext, CP, CP).astype(BF16)
            y = pallas_wfuse(t, skip, hw_in, hw_out, wsk, b2, wn, None, out_f32=False)
        else:
            wn = _pad2(wnext, CP, CLS_PAD).astype(BF16)
            bn = _padv(bnext, CLS_PAD).reshape(1, CLS_PAD).astype(jnp.float32)
            y = pallas_wfuse(t, skip, hw_in, hw_out, wsk, b2, wn, bn, out_f32=True)

    logits = y[:, :, :NUM_CLASSES]                         # [B, H1*W1, 2] f32
    B = logits.shape[0]
    H1, W1 = hw1
    H, W = int(input_shape[0]), int(input_shape[1])
    maps = jnp.transpose(logits.reshape(B, H1, W1, NUM_CLASSES), (0, 3, 1, 2))
    maps = maps.reshape(B * NUM_CLASSES, H1, W1)
    out = pallas_resize_maps(maps, (H, W))                 # final bilinear resize
    return out.reshape(B, NUM_CLASSES, H, W)               # NCHW


# ----------------------------- forward (matches the PyTorch module) -----------------------------
def lavt_one_forward(params, x, text, l_mask):
    input_shape = x.shape[-2:]
    l_feats = text_encoder(params["text"], text, l_mask)          # [B, L, CL]
    l_feats = jnp.transpose(l_feats, (0, 2, 1))                   # .permute(0, 2, 1)
    l_mask_u = l_mask[..., None]                                  # .unsqueeze(-1)
    x_nhwc = jnp.transpose(x, (0, 2, 3, 1))                       # NCHW -> NHWC once
    pc = params["cls"]
    c4_head = (_pad2(pc["f4_w"], CP, CP).astype(BF16),
               _padv(pc["f4_b"], CP).reshape(1, CP).astype(jnp.float32),
               _pad2(pc["f3_w"][:CD], CP, CP).astype(BF16))
    feats = backbone(params["backbone"], x_nhwc, l_feats, l_mask_u, c4_head=c4_head)
    return classifier(pc, feats, input_shape)                     # incl. final resize


# ----------------------------- parameters -----------------------------
def init_params(key):
    keys = iter(jax.random.split(key, 64))

    def nxt(shape, scale=0.05):
        return scale * jax.random.normal(next(keys), shape, dtype=jnp.float32)

    params = {
        "text": {
            "embed": nxt((VOCAB, CL), 0.1),
            "t1_w": nxt((CL, CL)), "t1_b": jnp.zeros((CL,), jnp.float32),
            "t2_w": nxt((CL, CL)), "t2_b": jnp.zeros((CL,), jnp.float32),
        },
        "backbone": {},
    }
    for i, (s, c) in enumerate(zip(STRIDES, CHANNELS)):
        params["backbone"]["stage%d" % (i + 1)] = {
            "pe_w": nxt((s * s * IMG_C, c)), "pe_b": jnp.zeros((c,), jnp.float32),
            "wq": nxt((c, CK)), "wk": nxt((CL, CK)),
            "wv": nxt((CL, c)), "wo": nxt((c, c)),
        }
    c1, c2, c3, c4 = CHANNELS
    params["cls"] = {
        "f4_w": nxt((c4, CD)), "f4_b": jnp.zeros((CD,), jnp.float32),
        "f3_w": nxt((CD + c3, CD)), "f3_b": jnp.zeros((CD,), jnp.float32),
        "f2_w": nxt((CD + c2, CD)), "f2_b": jnp.zeros((CD,), jnp.float32),
        "f1_w": nxt((CD + c1, CD)), "f1_b": jnp.zeros((CD,), jnp.float32),
        "cls_w": nxt((CD, NUM_CLASSES)), "cls_b": jnp.zeros((NUM_CLASSES,), jnp.float32),
    }
    return params


# ----------------------------- main -----------------------------
if __name__ == "__main__":
    B, H, W, L = 2, 32, 32, 8
    key = jax.random.PRNGKey(0)
    kx, kt = jax.random.split(key)
    x = jax.random.normal(kx, (B, IMG_C, H, W), jnp.float32)
    text = jax.random.randint(kt, (B, L), 0, VOCAB, jnp.int32)
    l_mask = jnp.array([[1, 1, 1, 1, 1, 1, 0, 0],
                        [1, 1, 1, 1, 0, 0, 0, 0]], jnp.float32)

    params = init_params(jax.random.PRNGKey(1))

    fwd = jax.jit(lavt_one_forward)
    out = fwd(params, x, text, l_mask)
    out = jax.block_until_ready(out)

    assert out.shape == (B, NUM_CLASSES, H, W), out.shape
    assert bool(jnp.all(jnp.isfinite(out)))
    print("KERNEL_OK")
</pallas_src>

<mosaic_0001>
module attributes {stable_mosaic.version = 11 : i64} {
  func.func @kernel(%arg0: i32, %arg1: memref<16x32xbf16, #tpu.memory_space<vmem>>, %arg2: memref<32x32xbf16, #tpu.memory_space<vmem>>, %arg3: memref<1x32xf32, #tpu.memory_space<vmem>>, %arg4: memref<32x32xbf16, #tpu.memory_space<vmem>>, %arg5: memref<1x32xf32, #tpu.memory_space<vmem>>, %arg6: memref<16x32xbf16, #tpu.memory_space<vmem>>) attributes {dimension_semantics = [#tpu.dimension_semantics<arbitrary>], iteration_bounds = array<i64: 1>, scalar_prefetch = 0 : i64, scratch_operands = 0 : i64, tpu.core_type = #tpu.core_type<tc>, window_params = [{pipeline_mode = #tpu.pipeline_mode<synchronous>, transform_indices = @transform_0, window_bounds = array<i64: 16, 32>}, {pipeline_mode = #tpu.pipeline_mode<synchronous>, transform_indices = @transform_1, window_bounds = array<i64: 32, 32>}, {pipeline_mode = #tpu.pipeline_mode<synchronous>, transform_indices = @transform_2, window_bounds = array<i64: 1, 32>}, {pipeline_mode = #tpu.pipeline_mode<synchronous>, transform_indices = @transform_3, window_bounds = array<i64: 32, 32>}, {pipeline_mode = #tpu.pipeline_mode<synchronous>, transform_indices = @transform_4, window_bounds = array<i64: 1, 32>}, {pipeline_mode = #tpu.pipeline_mode<synchronous>, transform_indices = @transform_5, window_bounds = array<i64: 16, 32>}]} {
    %c0 = arith.constant 0 : index
    %c0_0 = arith.constant 0 : index
    %0 = vector.load %arg1[%c0, %c0_0] : memref<16x32xbf16, #tpu.memory_space<vmem>>, vector<16x32xbf16>
    %c0_1 = arith.constant 0 : index
    %c0_2 = arith.constant 0 : index
    %1 = vector.load %arg2[%c0_1, %c0_2] : memref<32x32xbf16, #tpu.memory_space<vmem>>, vector<32x32xbf16>
    %cst = arith.constant dense<0.000000e+00> : vector<16x32xf32>
    %2 = tpu.matmul %0, %1, %cst {dimension_numbers = #tpu.dot_dimension_numbers<[1], [0], [0], [1], [0, 0, 1, 1], [], []>} : vector<16x32xbf16>, vector<32x32xbf16>, vector<16x32xf32> -> vector<16x32xf32>
    %c0_3 = arith.constant 0 : index
    %c0_4 = arith.constant 0 : index
    %3 = vector.load %arg3[%c0_3, %c0_4] : memref<1x32xf32, #tpu.memory_space<vmem>>, vector<1x32xf32>
    %4 = vector.broadcast %3 : vector<1x32xf32> to vector<16x32xf32>
    %5 = arith.addf %2, %4 : vector<16x32xf32>
    %cst_5 = arith.constant 0.000000e+00 : f32
    %6 = vector.broadcast %cst_5 : f32 to vector<16x32xf32>
    %7 = arith.maximumf %5, %6 : vector<16x32xf32>
    %8 = arith.truncf %7 : vector<16x32xf32> to vector<16x32xbf16>
    %c0_6 = arith.constant 0 : index
    %c0_7 = arith.constant 0 : index
    %9 = vector.load %arg4[%c0_6, %c0_7] : memref<32x32xbf16, #tpu.memory_space<vmem>>, vector<32x32xbf16>
    %cst_8 = arith.constant dense<0.000000e+00> : vector<16x32xf32>
    %10 = tpu.matmul %8, %9, %cst_8 {dimension_numbers = #tpu.dot_dimension_numbers<[1], [0], [0], [1], [0, 0, 1, 1], [], []>} : vector<16x32xbf16>, vector<32x32xbf16>, vector<16x32xf32> -> vector<16x32xf32>
    %c0_9 = arith.constant 0 : index
    %c0_10 = arith.constant 0 : index
    %11 = vector.load %arg5[%c0_9, %c0_10] : memref<1x32xf32, #tpu.memory_space<vmem>>, vector<1x32xf32>
    %12 = vector.broadcast %11 : vector<1x32xf32> to vector<16x32xf32>
    %13 = arith.addf %10, %12 : vector<16x32xf32>
    %14 = arith.truncf %13 : vector<16x32xf32> to vector<16x32xbf16>
    %c0_11 = arith.constant 0 : index
    %c0_12 = arith.constant 0 : index
    %15 = vector.load %arg6[%c0_11, %c0_12] : memref<16x32xbf16, #tpu.memory_space<vmem>>, vector<16x32xbf16>
    tpu.vector_store %arg6[%c0_11, %c0_12], %14 {strides = array<i32>} : memref<16x32xbf16, #tpu.memory_space<vmem>>, vector<16x32xbf16>,
    return
  }
  func.func @transform_0(%arg0: i32) -> (i32, i32) {
    %c0_i32 = arith.constant 0 : i32
    %c0_i32_0 = arith.constant 0 : i32
    %c0_i32_1 = arith.constant 0 : i32
    return %c0_i32, %c0_i32_0 : i32, i32
  }
  func.func @transform_1(%arg0: i32) -> (i32, i32) {
    %c0_i32 = arith.constant 0 : i32
    %c0_i32_0 = arith.constant 0 : i32
    %c0_i32_1 = arith.constant 0 : i32
    return %c0_i32, %c0_i32_0 : i32, i32
  }
  func.func @transform_2(%arg0: i32) -> (i32, i32) {
    %c0_i32 = arith.constant 0 : i32
    %c0_i32_0 = arith.constant 0 : i32
    %c0_i32_1 = arith.constant 0 : i32
    return %c0_i32, %c0_i32_0 : i32, i32
  }
  func.func @transform_3(%arg0: i32) -> (i32, i32) {
    %c0_i32 = arith.constant 0 : i32
    %c0_i32_0 = arith.constant 0 : i32
    %c0_i32_1 = arith.constant 0 : i32
    return %c0_i32, %c0_i32_0 : i32, i32
  }
  func.func @transform_4(%arg0: i32) -> (i32, i32) {
    %c0_i32 = arith.constant 0 : i32
    %c0_i32_0 = arith.constant 0 : i32
    %c0_i32_1 = arith.constant 0 : i32
    return %c0_i32, %c0_i32_0 : i32, i32
  }
  func.func @transform_5(%arg0: i32) -> (i32, i32) {
    %c0_i32 = arith.constant 0 : i32
    %c0_i32_0 = arith.constant 0 : i32
    %c0_i32_1 = arith.constant 0 : i32
    return %c0_i32, %c0_i32_0 : i32, i32
  }
}

module attributes {stable_mosaic.version = 11 : i64} {
  func.func @kernel(%arg0: i32, %arg1: i32, %arg2: memref<1x4x768xbf16, #tpu.memory_space<vmem>>, %arg3: memref<1x8x32xbf16, #tpu.memory_space<vmem>>, %arg4: memref<1x1x8xf32, #tpu.memory_space<vmem>>, %arg5: memref<768x128xbf16, #tpu.memory_space<vmem>>, %arg6: memref<1x128xf32, #tpu.memory_space<vmem>>, %arg7: memref<128x32xbf16, #tpu.memory_space<vmem>>, %arg8: memref<32x160xbf16, #tpu.memory_space<vmem>>, %arg9: memref<128x128xbf16, #tpu.memory_space<vmem>>, %arg10: memref<128x128xbf16, #tpu.memory_space<vmem>>, %arg11: memref<1x128xf32, #tpu.memory_space<vmem>>, %arg12: memref<128x128xbf16, #tpu.memory_space<vmem>>, %arg13: memref<1x4x128xbf16, #tpu.memory_space<vmem>>) attributes {dimension_semantics = [#tpu.dimension_semantics<parallel>, #tpu.dimension_semantics<parallel>], iteration_bounds = array<i64: 2, 1>, scalar_prefetch = 0 : i64, scratch_operands = 0 : i64, tpu.core_type = #tpu.core_type<tc>, window_params = [{transform_indices = @transform_0, window_bounds = array<i64: 1, 4, 768>}, {transform_indices = @transform_1, window_bounds = array<i64: 1, 8, 32>}, {transform_indices = @transform_2, window_bounds = array<i64: 1, 1, 8>}, {pipeline_mode = #tpu.pipeline_mode<synchronous>, transform_indices = @transform_3, window_bounds = array<i64: 768, 128>}, {pipeline_mode = #tpu.pipeline_mode<synchronous>, transform_indices = @transform_4, window_bounds = array<i64: 1, 128>}, {pipeline_mode = #tpu.pipeline_mode<synchronous>, transform_indices = @transform_5, window_bounds = array<i64: 128, 32>}, {pipeline_mode = #tpu.pipeline_mode<synchronous>, transform_indices = @transform_6, window_bounds = array<i64: 32, 160>}, {pipeline_mode = #tpu.pipeline_mode<synchronous>, transform_indices = @transform_7, window_bounds = array<i64: 128, 128>}, {pipeline_mode = #tpu.pipeline_mode<synchronous>, transform_indices = @transform_8, window_bounds = array<i64: 128, 128>}, {pipeline_mode = #tpu.pipeline_mode<synchronous>, transform_indices = @transform_9, window_bounds = array<i64: 1, 128>}, {pipeline_mode = #tpu.pipeline_mode<synchronous>, transform_indices = @transform_10, window_bounds = array<i64: 128, 128>}, {transform_indices = @transform_11, window_bounds = array<i64: 1, 4, 128>}]} {
    %c0 = arith.constant 0 : index
    %c0_0 = arith.constant 0 : index
    %c0_1 = arith.constant 0 : index
    %0 = vector.load %arg2[%c0, %c0_0, %c0_1] : memref<1x4x768xbf16, #tpu.memory_space<vmem>>, vector<1x4x768xbf16>
    %1 = vector.shape_cast %0 : vector<1x4x768xbf16> to vector<4x768xbf16>
    %c0_2 = arith.constant 0 : index
    %c0_3 = arith.constant 0 : index
    %2 = vector.load %arg5[%c0_2, %c0_3] : memref<768x128xbf16, #tpu.memory_space<vmem>>, vector<768x128xbf16>
    %cst = arith.constant dense<0.000000e+00> : vector<4x128xf32>
    %3 = tpu.matmul %1, %2, %cst {dimension_numbers = #tpu.dot_dimension_numbers<[1], [0], [0], [1], [0, 0, 1, 1], [], []>} : vector<4x768xbf16>, vector<768x128xbf16>, vector<4x128xf32> -> vector<4x128xf32>
    %c0_4 = arith.constant 0 : index
    %c0_5 = arith.constant 0 : index
    %4 = vector.load %arg6[%c0_4, %c0_5] : memref<1x128xf32, #tpu.memory_space<vmem>>, vector<1x128xf32>
    %5 = vector.broadcast %4 : vector<1x128xf32> to vector<4x128xf32>
    %6 = arith.addf %3, %5 : vector<4x128xf32>
    %cst_6 = arith.constant 0.000000e+00 : f32
    %7 = vector.broadcast %cst_6 : f32 to vector<4x128xf32>
    %8 = arith.maximumf %6, %7 : vector<4x128xf32>
    %c0_7 = arith.constant 0 : index
    %c0_8 = arith.constant 0 : index
    %c0_9 = arith.constant 0 : index
    %9 = vector.load %arg3[%c0_7, %c0_8, %c0_9] : memref<1x8x32xbf16, #tpu.memory_space<vmem>>, vector<1x8x32xbf16>
    %10 = vector.shape_cast %9 : vector<1x8x32xbf16> to vector<8x32xbf16>
    %c0_10 = arith.constant 0 : index
    %c0_11 = arith.constant 0 : index
    %11 = vector.load %arg8[%c0_10, %c0_11] : memref<32x160xbf16, #tpu.memory_space<vmem>>, vector<32x160xbf16>
    %cst_12 = arith.constant dense<0.000000e+00> : vector<8x160xf32>
    %12 = tpu.matmul %10, %11, %cst_12 {dimension_numbers = #tpu.dot_dimension_numbers<[1], [0], [0], [1], [0, 0, 1, 1], [], []>} : vector<8x32xbf16>, vector<32x160xbf16>, vector<8x160xf32> -> vector<8x160xf32>
    %13 = vector.extract_strided_slice %12 {offsets = [0, 0], sizes = [8, 32], strides = [1, 1]} : vector<8x160xf32> to vector<8x32xf32>
    %14 = arith.truncf %13 : vector<8x32xf32> to vector<8x32xbf16>
    %15 = vector.extract_strided_slice %12 {offsets = [0, 32], sizes = [8, 128], strides = [1, 1]} : vector<8x160xf32> to vector<8x128xf32>
    %16 = arith.truncf %15 : vector<8x128xf32> to vector<8x128xbf16>
    %17 = arith.truncf %8 : vector<4x128xf32> to vector<4x128xbf16>
    %c0_13 = arith.constant 0 : index
    %c0_14 = arith.constant 0 : index
    %18 = vector.load %arg7[%c0_13, %c0_14] : memref<128x32xbf16, #tpu.memory_space<vmem>>, vector<128x32xbf16>
    %cst_15 = arith.constant dense<0.000000e+00> : vector<4x32xf32>
    %19 = tpu.matmul %17, %18, %cst_15 {dimension_numbers = #tpu.dot_dimension_numbers<[1], [0], [0], [1], [0, 0, 1, 1], [], []>} : vector<4x128xbf16>, vector<128x32xbf16>, vector<4x32xf32> -> vector<4x32xf32>
    %20 = arith.truncf %19 : vector<4x32xf32> to vector<4x32xbf16>
    %cst_16 = arith.constant dense<0.000000e+00> : vector<4x8xf32>
    %21 = tpu.matmul %20, %14, %cst_16 {dimension_numbers = #tpu.dot_dimension_numbers<[1], [1], [0], [0], [0, 0, 1, 0], [], []>} : vector<4x32xbf16>, vector<8x32xbf16>, vector<4x8xf32> -> vector<4x8xf32>
    %cst_17 = arith.constant 0.176776692 : f32
    %22 = vector.broadcast %cst_17 : f32 to vector<4x8xf32>
    %23 = arith.mulf %21, %22 : vector<4x8xf32>
    %c0_18 = arith.constant 0 : index
    %c0_19 = arith.constant 0 : index
    %c0_20 = arith.constant 0 : index
    %24 = vector.load %arg4[%c0_18, %c0_19, %c0_20] : memref<1x1x8xf32, #tpu.memory_space<vmem>>, vector<1x1x8xf32>
    %25 = vector.shape_cast %24 : vector<1x1x8xf32> to vector<1x8xf32>
    %26 = vector.broadcast %25 : vector<1x8xf32> to vector<4x8xf32>
    %27 = arith.addf %23, %26 : vector<4x8xf32>
    %cst_21 = arith.constant dense<0xFF800000> : vector<4xf32>
    %28 = vector.multi_reduction <maximumf>, %27, %cst_21 [1] : vector<4x8xf32> to vector<4xf32>
    %29 = vector.shape_cast %28 : vector<4xf32> to vector<4x1xf32>
    %30 = vector.broadcast %29 : vector<4x1xf32> to vector<4x8xf32>
    %31 = arith.subf %27, %30 : vector<4x8xf32>
    %32 = math.exp %31 : vector<4x8xf32>
    %cst_22 = arith.constant dense<0.000000e+00> : vector<4xf32>
    %33 = vector.multi_reduction <add>, %32, %cst_22 [1] : vector<4x8xf32> to vector<4xf32>
    %34 = vector.shape_cast %33 : vector<4xf32> to vector<4x1xf32>
    %35 = tpu.reciprocal %34 {approx = true} : vector<4x1xf32> -> vector<4x1xf32>
    %36 = vector.broadcast %35 : vector<4x1xf32> to vector<4x8xf32>
    %37 = arith.mulf %32, %36 : vector<4x8xf32>
    %38 = arith.truncf %37 : vector<4x8xf32> to vector<4x8xbf16>
    %cst_23 = arith.constant dense<0.000000e+00> : vector<4x128xf32>
    %39 = tpu.matmul %38, %16, %cst_23 {dimension_numbers = #tpu.dot_dimension_numbers<[1], [0], [0], [1], [0, 0, 1, 1], [], []>} : vector<4x8xbf16>, vector<8x128xbf16>, vector<4x128xf32> -> vector<4x128xf32>
    %40 = arith.truncf %39 : vector<4x128xf32> to vector<4x128xbf16>
    %c0_24 = arith.constant 0 : index
    %c0_25 = arith.constant 0 : index
    %41 = vector.load %arg9[%c0_24, %c0_25] : memref<128x128xbf16, #tpu.memory_space<vmem>>, vector<128x128xbf16>
    %cst_26 = arith.constant dense<0.000000e+00> : vector<4x128xf32>
    %42 = tpu.matmul %40, %41, %cst_26 {dimension_numbers = #tpu.dot_dimension_numbers<[1], [0], [0], [1], [0, 0, 1, 1], [], []>} : vector<4x128xbf16>, vector<128x128xbf16>, vector<4x128xf32> -> vector<4x128xf32>
    %43 = math.tanh %42 : vector<4x128xf32>
    %cst_27 = arith.constant 1.000000e+00 : f32
    %44 = vector.broadcast %cst_27 : f32 to vector<4x128xf32>
    %45 = arith.addf %44, %43 : vector<4x128xf32>
    %46 = arith.mulf %8, %45 : vector<4x128xf32>
    %47 = arith.truncf %46 : vector<4x128xf32> to vector<4x128xbf16>
    %c0_28 = arith.constant 0 : index
    %c0_29 = arith.constant 0 : index
    %48 = vector.load %arg10[%c0_28, %c0_29] : memref<128x128xbf16, #tpu.memory_space<vmem>>, vector<128x128xbf16>
    %cst_30 = arith.constant dense<0.000000e+00> : vector<4x128xf32>
    %49 = tpu.matmul %47, %48, %cst_30 {dimension_numbers = #tpu.dot_dimension_numbers<[1], [0], [0], [1], [0, 0, 1, 1], [], []>} : vector<4x128xbf16>, vector<128x128xbf16>, vector<4x128xf32> -> vector<4x128xf32>
    %c0_31 = arith.constant 0 : index
    %c0_32 = arith.constant 0 : index
    %50 = vector.load %arg11[%c0_31, %c0_32] : memref<1x128xf32, #tpu.memory_space<vmem>>, vector<1x128xf32>
    %51 = vector.broadcast %50 : vector<1x128xf32> to vector<4x128xf32>
    %52 = arith.addf %49, %51 : vector<4x128xf32>
    %cst_33 = arith.constant 0.000000e+00 : f32
    %53 = vector.broadcast %cst_33 : f32 to vector<4x128xf32>
    %54 = arith.maximumf %52, %53 : vector<4x128xf32>
    %55 = arith.truncf %54 : vector<4x128xf32> to vector<4x128xbf16>
    %c0_34 = arith.constant 0 : index
    %c0_35 = arith.constant 0 : index
    %56 = vector.load %arg12[%c0_34, %c0_35] : memref<128x128xbf16, #tpu.memory_space<vmem>>, vector<128x128xbf16>
    %cst_36 = arith.constant dense<0.000000e+00> : vector<4x128xf32>
    %57 = tpu.matmul %55, %56, %cst_36 {dimension_numbers = #tpu.dot_dimension_numbers<[1], [0], [0], [1], [0, 0, 1, 1], [], []>} : vector<4x128xbf16>, vector<128x128xbf16>, vector<4x128xf32> -> vector<4x128xf32>
    %58 = arith.truncf %57 : vector<4x128xf32> to vector<4x128xbf16>
    %c0_37 = arith.constant 0 : index
    %c0_38 = arith.constant 0 : index
    %c0_39 = arith.constant 0 : index
    %59 = vector.load %arg13[%c0_37, %c0_38, %c0_39] : memref<1x4x128xbf16, #tpu.memory_space<vmem>>, vector<1x4x128xbf16>
    %60 = vector.shape_cast %59 : vector<1x4x128xbf16> to vector<4x128xbf16>
    %61 = vector.shape_cast %58 : vector<4x128xbf16> to vector<1x4x128xbf16>
    tpu.vector_store %arg13[%c0_37, %c0_38, %c0_39], %61 {strides = array<i32>} : memref<1x4x128xbf16, #tpu.memory_space<vmem>>, vector<1x4x128xbf16>,
    return
  }
  func.func @transform_0(%arg0: i32, %arg1: i32) -> (i32, i32, i32) {
    %c0_i32 = arith.constant 0 : i32
    %c0_i32_0 = arith.constant 0 : i32
    return %arg0, %arg1, %c0_i32 : i32, i32, i32
  }
  func.func @transform_1(%arg0: i32, %arg1: i32) -> (i32, i32, i32) {
    %c0_i32 = arith.constant 0 : i32
    %c0_i32_0 = arith.constant 0 : i32
    %c0_i32_1 = arith.constant 0 : i32
    return %arg0, %c0_i32, %c0_i32_0 : i32, i32, i32
  }
  func.func @transform_2(%arg0: i32, %arg1: i32) -> (i32, i32, i32) {
    %c0_i32 = arith.constant 0 : i32
    %c0_i32_0 = arith.constant 0 : i32
    %c0_i32_1 = arith.constant 0 : i32
    return %arg0, %c0_i32, %c0_i32_0 : i32, i32, i32
  }
  func.func @transform_3(%arg0: i32, %arg1: i32) -> (i32, i32) {
    %c0_i32 = arith.constant 0 : i32
    %c0_i32_0 = arith.constant 0 : i32
    %c0_i32_1 = arith.constant 0 : i32
    return %c0_i32, %c0_i32_0 : i32, i32
  }
  func.func @transform_4(%arg0: i32, %arg1: i32) -> (i32, i32) {
    %c0_i32 = arith.constant 0 : i32
    %c0_i32_0 = arith.constant 0 : i32
    %c0_i32_1 = arith.constant 0 : i32
    return %c0_i32, %c0_i32_0 : i32, i32
  }
  func.func @transform_5(%arg0: i32, %arg1: i32) -> (i32, i32) {
    %c0_i32 = arith.constant 0 : i32
    %c0_i32_0 = arith.constant 0 : i32
    %c0_i32_1 = arith.constant 0 : i32
    return %c0_i32, %c0_i32_0 : i32, i32
  }
  func.func @transform_6(%arg0: i32, %arg1: i32) -> (i32, i32) {
    %c0_i32 = arith.constant 0 : i32
    %c0_i32_0 = arith.constant 0 : i32
    %c0_i32_1 = arith.constant 0 : i32
    return %c0_i32, %c0_i32_0 : i32, i32
  }
  func.func @transform_7(%arg0: i32, %arg1: i32) -> (i32, i32) {
    %c0_i32 = arith.constant 0 : i32
    %c0_i32_0 = arith.constant 0 : i32
    %c0_i32_1 = arith.constant 0 : i32
    return %c0_i32, %c0_i32_0 : i32, i32
  }
  func.func @transform_8(%arg0: i32, %arg1: i32) -> (i32, i32) {
    %c0_i32 = arith.constant 0 : i32
    %c0_i32_0 = arith.constant 0 : i32
    %c0_i32_1 = arith.constant 0 : i32
    return %c0_i32, %c0_i32_0 : i32, i32
  }
  func.func @transform_9(%arg0: i32, %arg1: i32) -> (i32, i32) {
    %c0_i32 = arith.constant 0 : i32
    %c0_i32_0 = arith.constant 0 : i32
    %c0_i32_1 = arith.constant 0 : i32
    return %c0_i32, %c0_i32_0 : i32, i32
  }
  func.func @transform_10(%arg0: i32, %arg1: i32) -> (i32, i32) {
    %c0_i32 = arith.constant 0 : i32
    %c0_i32_0 = arith.constant 0 : i32
    %c0_i32_1 = arith.constant 0 : i32
    return %c0_i32, %c0_i32_0 : i32, i32
  }
  func.func @transform_11(%arg0: i32, %arg1: i32) -> (i32, i32, i32) {
    %c0_i32 = arith.constant 0 : i32
    %c0_i32_0 = arith.constant 0 : i32
    return %arg0, %arg1, %c0_i32 : i32, i32, i32
  }
}

module attributes {stable_mosaic.version = 11 : i64} {
  func.func @kernel(%arg0: i32, %arg1: i32, %arg2: memref<1x2x256xbf16, #tpu.memory_space<vmem>>, %arg3: memref<4x2xbf16, #tpu.memory_space<vmem>>, %arg4: memref<1x4x256xbf16, #tpu.memory_space<vmem>>) attributes {dimension_semantics = [#tpu.dimension_semantics<parallel>, #tpu.dimension_semantics<parallel>], iteration_bounds = array<i64: 2, 1>, scalar_prefetch = 0 : i64, scratch_operands = 0 : i64, tpu.core_type = #tpu.core_type<tc>, window_params = [{transform_indices = @transform_0, window_bounds = array<i64: 1, 2, 256>}, {transform_indices = @transform_1, window_bounds = array<i64: 4, 2>}, {transform_indices = @transform_2, window_bounds = array<i64: 1, 4, 256>}]} {
    %c0 = arith.constant 0 : index
    %c0_0 = arith.constant 0 : index
    %0 = vector.load %arg3[%c0, %c0_0] : memref<4x2xbf16, #tpu.memory_space<vmem>>, vector<4x2xbf16>
    %c0_1 = arith.constant 0 : index
    %c0_2 = arith.constant 0 : index
    %c0_3 = arith.constant 0 : index
    %1 = vector.load %arg2[%c0_1, %c0_2, %c0_3] : memref<1x2x256xbf16, #tpu.memory_space<vmem>>, vector<1x2x256xbf16>
    %2 = vector.shape_cast %1 : vector<1x2x256xbf16> to vector<2x256xbf16>
    %cst = arith.constant dense<0.000000e+00> : vector<4x256xf32>
    %3 = tpu.matmul %0, %2, %cst {dimension_numbers = #tpu.dot_dimension_numbers<[1], [0], [0], [1], [0, 0, 1, 1], [], []>} : vector<4x2xbf16>, vector<2x256xbf16>, vector<4x256xf32> -> vector<4x256xf32>
    %4 = arith.truncf %3 : vector<4x256xf32> to vector<4x256xbf16>
    %c0_4 = arith.constant 0 : index
    %c0_5 = arith.constant 0 : index
    %c0_6 = arith.constant 0 : index
    %5 = vector.load %arg4[%c0_4, %c0_5, %c0_6] : memref<1x4x256xbf16, #tpu.memory_space<vmem>>, vector<1x4x256xbf16>
    %6 = vector.shape_cast %5 : vector<1x4x256xbf16> to vector<4x256xbf16>
    %7 = vector.shape_cast %4 : vector<4x256xbf16> to vector<1x4x256xbf16>
    tpu.vector_store %arg4[%c0_4, %c0_5, %c0_6], %7 {strides = array<i32>} : memref<1x4x256xbf16, #tpu.memory_space<vmem>>, vector<1x4x256xbf16>,
    return
  }
  func.func @transform_0(%arg0: i32, %arg1: i32) -> (i32, i32, i32) {
    %c0_i32 = arith.constant 0 : i32
    %c0_i32_0 = arith.constant 0 : i32
    %c0_i32_1 = arith.constant 0 : i32
    return %arg0, %c0_i32, %c0_i32_0 : i32, i32, i32
  }
  func.func @transform_1(%arg0: i32, %arg1: i32) -> (i32, i32) {
    %c0_i32 = arith.constant 0 : i32
    %c0_i32_0 = arith.constant 0 : i32
    return %arg1, %c0_i32 : i32, i32
  }
  func.func @transform_2(%arg0: i32, %arg1: i32) -> (i32, i32, i32) {
    %c0_i32 = arith.constant 0 : i32
    %c0_i32_0 = arith.constant 0 : i32
    return %arg0, %arg1, %c0_i32 : i32, i32, i32
  }
}

module attributes {stable_mosaic.version = 11 : i64} {
  func.func @kernel(%arg0: i32, %arg1: i32, %arg2: memref<1x16x192xbf16, #tpu.memory_space<vmem>>, %arg3: memref<1x8x32xbf16, #tpu.memory_space<vmem>>, %arg4: memref<1x1x8xf32, #tpu.memory_space<vmem>>, %arg5: memref<192x128xbf16, #tpu.memory_space<vmem>>, %arg6: memref<1x128xf32, #tpu.memory_space<vmem>>, %arg7: memref<128x32xbf16, #tpu.memory_space<vmem>>, %arg8: memref<32x160xbf16, #tpu.memory_space<vmem>>, %arg9: memref<128x128xbf16, #tpu.memory_space<vmem>>, %arg10: memref<1x16x128xbf16, #tpu.memory_space<vmem>>) attributes {dimension_semantics = [#tpu.dimension_semantics<parallel>, #tpu.dimension_semantics<parallel>], iteration_bounds = array<i64: 2, 1>, scalar_prefetch = 0 : i64, scratch_operands = 0 : i64, tpu.core_type = #tpu.core_type<tc>, window_params = [{transform_indices = @transform_0, window_bounds = array<i64: 1, 16, 192>}, {transform_indices = @transform_1, window_bounds = array<i64: 1, 8, 32>}, {transform_indices = @transform_2, window_bounds = array<i64: 1, 1, 8>}, {pipeline_mode = #tpu.pipeline_mode<synchronous>, transform_indices = @transform_3, window_bounds = array<i64: 192, 128>}, {pipeline_mode = #tpu.pipeline_mode<synchronous>, transform_indices = @transform_4, window_bounds = array<i64: 1, 128>}, {pipeline_mode = #tpu.pipeline_mode<synchronous>, transform_indices = @transform_5, window_bounds = array<i64: 128, 32>}, {pipeline_mode = #tpu.pipeline_mode<synchronous>, transform_indices = @transform_6, window_bounds = array<i64: 32, 160>}, {pipeline_mode = #tpu.pipeline_mode<synchronous>, transform_indices = @transform_7, window_bounds = array<i64: 128, 128>}, {transform_indices = @transform_8, window_bounds = array<i64: 1, 16, 128>}]} {
    %c0 = arith.constant 0 : index
    %c0_0 = arith.constant 0 : index
    %c0_1 = arith.constant 0 : index
    %0 = vector.load %arg2[%c0, %c0_0, %c0_1] : memref<1x16x192xbf16, #tpu.memory_space<vmem>>, vector<1x16x192xbf16>
    %1 = vector.shape_cast %0 : vector<1x16x192xbf16> to vector<16x192xbf16>
    %c0_2 = arith.constant 0 : index
    %c0_3 = arith.constant 0 : index
    %2 = vector.load %arg5[%c0_2, %c0_3] : memref<192x128xbf16, #tpu.memory_space<vmem>>, vector<192x128xbf16>
    %cst = arith.constant dense<0.000000e+00> : vector<16x128xf32>
    %3 = tpu.matmul %1, %2, %cst {dimension_numbers = #tpu.dot_dimension_numbers<[1], [0], [0], [1], [0, 0, 1, 1], [], []>} : vector<16x192xbf16>, vector<192x128xbf16>, vector<16x128xf32> -> vector<16x128xf32>
    %c0_4 = arith.constant 0 : index
    %c0_5 = arith.constant 0 : index
    %4 = vector.load %arg6[%c0_4, %c0_5] : memref<1x128xf32, #tpu.memory_space<vmem>>, vector<1x128xf32>
    %5 = vector.broadcast %4 : vector<1x128xf32> to vector<16x128xf32>
    %6 = arith.addf %3, %5 : vector<16x128xf32>
    %cst_6 = arith.constant 0.000000e+00 : f32
    %7 = vector.broadcast %cst_6 : f32 to vector<16x128xf32>
    %8 = arith.maximumf %6, %7 : vector<16x128xf32>
    %c0_7 = arith.constant 0 : index
    %c0_8 = arith.constant 0 : index
    %c0_9 = arith.constant 0 : index
    %9 = vector.load %arg3[%c0_7, %c0_8, %c0_9] : memref<1x8x32xbf16, #tpu.memory_space<vmem>>, vector<1x8x32xbf16>
    %10 = vector.shape_cast %9 : vector<1x8x32xbf16> to vector<8x32xbf16>
    %c0_10 = arith.constant 0 : index
    %c0_11 = arith.constant 0 : index
    %11 = vector.load %arg8[%c0_10, %c0_11] : memref<32x160xbf16, #tpu.memory_space<vmem>>, vector<32x160xbf16>
    %cst_12 = arith.constant dense<0.000000e+00> : vector<8x160xf32>
    %12 = tpu.matmul %10, %11, %cst_12 {dimension_numbers = #tpu.dot_dimension_numbers<[1], [0], [0], [1], [0, 0, 1, 1], [], []>} : vector<8x32xbf16>, vector<32x160xbf16>, vector<8x160xf32> -> vector<8x160xf32>
    %13 = vector.extract_strided_slice %12 {offsets = [0, 0], sizes = [8, 32], strides = [1, 1]} : vector<8x160xf32> to vector<8x32xf32>
    %14 = arith.truncf %13 : vector<8x32xf32> to vector<8x32xbf16>
    %15 = vector.extract_strided_slice %12 {offsets = [0, 32], sizes = [8, 128], strides = [1, 1]} : vector<8x160xf32> to vector<8x128xf32>
    %16 = arith.truncf %15 : vector<8x128xf32> to vector<8x128xbf16>
    %17 = arith.truncf %8 : vector<16x128xf32> to vector<16x128xbf16>
    %c0_13 = arith.constant 0 : index
    %c0_14 = arith.constant 0 : index
    %18 = vector.load %arg7[%c0_13, %c0_14] : memref<128x32xbf16, #tpu.memory_space<vmem>>, vector<128x32xbf16>
    %cst_15 = arith.constant dense<0.000000e+00> : vector<16x32xf32>
    %19 = tpu.matmul %17, %18, %cst_15 {dimension_numbers = #tpu.dot_dimension_numbers<[1], [0], [0], [1], [0, 0, 1, 1], [], []>} : vector<16x128xbf16>, vector<128x32xbf16>, vector<16x32xf32> -> vector<16x32xf32>
    %20 = arith.truncf %19 : vector<16x32xf32> to vector<16x32xbf16>
    %cst_16 = arith.constant dense<0.000000e+00> : vector<16x8xf32>
    %21 = tpu.matmul %20, %14, %cst_16 {dimension_numbers = #tpu.dot_dimension_numbers<[1], [1], [0], [0], [0, 0, 1, 0], [], []>} : vector<16x32xbf16>, vector<8x32xbf16>, vector<16x8xf32> -> vector<16x8xf32>
    %cst_17 = arith.constant 0.176776692 : f32
    %22 = vector.broadcast %cst_17 : f32 to vector<16x8xf32>
    %23 = arith.mulf %21, %22 : vector<16x8xf32>
    %c0_18 = arith.constant 0 : index
    %c0_19 = arith.constant 0 : index
    %c0_20 = arith.constant 0 : index
    %24 = vector.load %arg4[%c0_18, %c0_19, %c0_20] : memref<1x1x8xf32, #tpu.memory_space<vmem>>, vector<1x1x8xf32>
    %25 = vector.shape_cast %24 : vector<1x1x8xf32> to vector<1x8xf32>
    %26 = vector.broadcast %25 : vector<1x8xf32> to vector<16x8xf32>
    %27 = arith.addf %23, %26 : vector<16x8xf32>
    %cst_21 = arith.constant dense<0xFF800000> : vector<16xf32>
    %28 = vector.multi_reduction <maximumf>, %27, %cst_21 [1] : vector<16x8xf32> to vector<16xf32>
    %29 = vector.shape_cast %28 : vector<16xf32> to vector<16x1xf32>
    %30 = vector.broadcast %29 : vector<16x1xf32> to vector<16x8xf32>
    %31 = arith.subf %27, %30 : vector<16x8xf32>
    %32 = math.exp %31 : vector<16x8xf32>
    %cst_22 = arith.constant dense<0.000000e+00> : vector<16xf32>
    %33 = vector.multi_reduction <add>, %32, %cst_22 [1] : vector<16x8xf32> to vector<16xf32>
    %34 = vector.shape_cast %33 : vector<16xf32> to vector<16x1xf32>
    %35 = tpu.reciprocal %34 {approx = true} : vector<16x1xf32> -> vector<16x1xf32>
    %36 = vector.broadcast %35 : vector<16x1xf32> to vector<16x8xf32>
    %37 = arith.mulf %32, %36 : vector<16x8xf32>
    %38 = arith.truncf %37 : vector<16x8xf32> to vector<16x8xbf16>
    %cst_23 = arith.constant dense<0.000000e+00> : vector<16x128xf32>
    %39 = tpu.matmul %38, %16, %cst_23 {dimension_numbers = #tpu.dot_dimension_numbers<[1], [0], [0], [1], [0, 0, 1, 1], [], []>} : vector<16x8xbf16>, vector<8x128xbf16>, vector<16x128xf32> -> vector<16x128xf32>
    %40 = arith.truncf %39 : vector<16x128xf32> to vector<16x128xbf16>
    %c0_24 = arith.constant 0 : index
    %c0_25 = arith.constant 0 : index
    %41 = vector.load %arg9[%c0_24, %c0_25] : memref<128x128xbf16, #tpu.memory_space<vmem>>, vector<128x128xbf16>
    %cst_26 = arith.constant dense<0.000000e+00> : vector<16x128xf32>
    %42 = tpu.matmul %40, %41, %cst_26 {dimension_numbers = #tpu.dot_dimension_numbers<[1], [0], [0], [1], [0, 0, 1, 1], [], []>} : vector<16x128xbf16>, vector<128x128xbf16>, vector<16x128xf32> -> vector<16x128xf32>
    %43 = math.tanh %42 : vector<16x128xf32>
    %cst_27 = arith.constant 1.000000e+00 : f32
    %44 = vector.broadcast %cst_27 : f32 to vector<16x128xf32>
    %45 = arith.addf %44, %43 : vector<16x128xf32>
    %46 = arith.mulf %8, %45 : vector<16x128xf32>
    %47 = arith.truncf %46 : vector<16x128xf32> to vector<16x128xbf16>
    %c0_28 = arith.constant 0 : index
    %c0_29 = arith.constant 0 : index
    %c0_30 = arith.constant 0 : index
    %48 = vector.load %arg10[%c0_28, %c0_29, %c0_30] : memref<1x16x128xbf16, #tpu.memory_space<vmem>>, vector<1x16x128xbf16>
    %49 = vector.shape_cast %48 : vector<1x16x128xbf16> to vector<16x128xbf16>
    %50 = vector.shape_cast %47 : vector<16x128xbf16> to vector<1x16x128xbf16>
    tpu.vector_store %arg10[%c0_28, %c0_29, %c0_30], %50 {strides = array<i32>} : memref<1x16x128xbf16, #tpu.memory_space<vmem>>, vector<1x16x128xbf16>,
    return
  }
  func.func @transform_0(%arg0: i32, %arg1: i32) -> (i32, i32, i32) {
    %c0_i32 = arith.constant 0 : i32
    %c0_i32_0 = arith.constant 0 : i32
    return %arg0, %arg1, %c0_i32 : i32, i32, i32
  }
  func.func @transform_1(%arg0: i32, %arg1: i32) -> (i32, i32, i32) {
    %c0_i32 = arith.constant 0 : i32
    %c0_i32_0 = arith.constant 0 : i32
    %c0_i32_1 = arith.constant 0 : i32
    return %arg0, %c0_i32, %c0_i32_0 : i32, i32, i32
  }
  func.func @transform_2(%arg0: i32, %arg1: i32) -> (i32, i32, i32) {
    %c0_i32 = arith.constant 0 : i32
    %c0_i32_0 = arith.constant 0 : i32
    %c0_i32_1 = arith.constant 0 : i32
    return %arg0, %c0_i32, %c0_i32_0 : i32, i32, i32
  }
  func.func @transform_3(%arg0: i32, %arg1: i32) -> (i32, i32) {
    %c0_i32 = arith.constant 0 : i32
    %c0_i32_0 = arith.constant 0 : i32
    %c0_i32_1 = arith.constant 0 : i32
    return %c0_i32, %c0_i32_0 : i32, i32
  }
  func.func @transform_4(%arg0: i32, %arg1: i32) -> (i32, i32) {
    %c0_i32 = arith.constant 0 : i32
    %c0_i32_0 = arith.constant 0 : i32
    %c0_i32_1 = arith.constant 0 : i32
    return %c0_i32, %c0_i32_0 : i32, i32
  }
  func.func @transform_5(%arg0: i32, %arg1: i32) -> (i32, i32) {
    %c0_i32 = arith.constant 0 : i32
    %c0_i32_0 = arith.constant 0 : i32
    %c0_i32_1 = arith.constant 0 : i32
    return %c0_i32, %c0_i32_0 : i32, i32
  }
  func.func @transform_6(%arg0: i32, %arg1: i32) -> (i32, i32) {
    %c0_i32 = arith.constant 0 : i32
    %c0_i32_0 = arith.constant 0 : i32
    %c0_i32_1 = arith.constant 0 : i32
    return %c0_i32, %c0_i32_0 : i32, i32
  }
  func.func @transform_7(%arg0: i32, %arg1: i32) -> (i32, i32) {
    %c0_i32 = arith.constant 0 : i32
    %c0_i32_0 = arith.constant 0 : i32
    %c0_i32_1 = arith.constant 0 : i32
    return %c0_i32, %c0_i32_0 : i32, i32
  }
  func.func @transform_8(%arg0: i32, %arg1: i32) -> (i32, i32, i32) {
    %c0_i32 = arith.constant 0 : i32
    %c0_i32_0 = arith.constant 0 : i32
    return %arg0, %arg1, %c0_i32 : i32, i32, i32
  }
}

module attributes {stable_mosaic.version = 11 : i64} {
  func.func @kernel(%arg0: i32, %arg1: i32, %arg2: memref<1x4x2x128xbf16, #tpu.memory_space<vmem>>, %arg3: memref<1x16x128xbf16, #tpu.memory_space<vmem>>, %arg4: memref<4x2xbf16, #tpu.memory_space<vmem>>, %arg5: memref<128x128xbf16, #tpu.memory_space<vmem>>, %arg6: memref<1x128xf32, #tpu.memory_space<vmem>>, %arg7: memref<128x128xbf16, #tpu.memory_space<vmem>>, %arg8: memref<1x16x128xbf16, #tpu.memory_space<vmem>>) attributes {dimension_semantics = [#tpu.dimension_semantics<parallel>, #tpu.dimension_semantics<parallel>], iteration_bounds = array<i64: 2, 1>, scalar_prefetch = 0 : i64, scratch_operands = 0 : i64, tpu.core_type = #tpu.core_type<tc>, window_params = [{transform_indices = @transform_0, window_bounds = array<i64: 1, 4, 2, 128>}, {transform_indices = @transform_1, window_bounds = array<i64: 1, 16, 128>}, {pipeline_mode = #tpu.pipeline_mode<synchronous>, transform_indices = @transform_2, window_bounds = array<i64: 4, 2>}, {pipeline_mode = #tpu.pipeline_mode<synchronous>, transform_indices = @transform_3, window_bounds = array<i64: 128, 128>}, {pipeline_mode = #tpu.pipeline_mode<synchronous>, transform_indices = @transform_4, window_bounds = array<i64: 1, 128>}, {pipeline_mode = #tpu.pipeline_mode<synchronous>, transform_indices = @transform_5, window_bounds = array<i64: 128, 128>}, {transform_indices = @transform_6, window_bounds = array<i64: 1, 16, 128>}]} {
    %c0 = arith.constant 0 : index
    %c0_0 = arith.constant 0 : index
    %c0_1 = arith.constant 0 : index
    %c0_2 = arith.constant 0 : index
    %0 = vector.load %arg2[%c0, %c0_0, %c0_1, %c0_2] : memref<1x4x2x128xbf16, #tpu.memory_space<vmem>>, vector<1x4x2x128xbf16>
    %1 = vector.shape_cast %0 : vector<1x4x2x128xbf16> to vector<4x2x128xbf16>
    %c0_3 = arith.constant 0 : index
    %c0_4 = arith.constant 0 : index
    %2 = vector.load %arg4[%c0_3, %c0_4] : memref<4x2xbf16, #tpu.memory_space<vmem>>, vector<4x2xbf16>
    %3 = vector.shape_cast %2 : vector<4x2xbf16> to vector<1x4x2xbf16>
    %4 = vector.shape_cast %3 : vector<1x4x2xbf16> to vector<1x4x2xbf16>
    %5 = vector.broadcast %4 : vector<1x4x2xbf16> to vector<4x4x2xbf16>
    %cst = arith.constant dense<0.000000e+00> : vector<4x4x128xf32>
    %6 = tpu.matmul %5, %1, %cst {dimension_numbers = #tpu.dot_dimension_numbers<[2], [1], [1], [2], [0, 0, 0, 1, 1, 2], [0], [0]>} : vector<4x4x2xbf16>, vector<4x2x128xbf16>, vector<4x4x128xf32> -> vector<4x4x128xf32>
    %7 = vector.shape_cast %6 : vector<4x4x128xf32> to vector<16x128xf32>
    %c0_5 = arith.constant 0 : index
    %c0_6 = arith.constant 0 : index
    %c0_7 = arith.constant 0 : index
    %8 = vector.load %arg3[%c0_5, %c0_6, %c0_7] : memref<1x16x128xbf16, #tpu.memory_space<vmem>>, vector<1x16x128xbf16>
    %9 = vector.shape_cast %8 : vector<1x16x128xbf16> to vector<16x128xbf16>
    %c0_8 = arith.constant 0 : index
    %c0_9 = arith.constant 0 : index
    %10 = vector.load %arg5[%c0_8, %c0_9] : memref<128x128xbf16, #tpu.memory_space<vmem>>, vector<128x128xbf16>
    %cst_10 = arith.constant dense<0.000000e+00> : vector<16x128xf32>
    %11 = tpu.matmul %9, %10, %cst_10 {dimension_numbers = #tpu.dot_dimension_numbers<[1], [0], [0], [1], [0, 0, 1, 1], [], []>} : vector<16x128xbf16>, vector<128x128xbf16>, vector<16x128xf32> -> vector<16x128xf32>
    %12 = arith.addf %7, %11 : vector<16x128xf32>
    %c0_11 = arith.constant 0 : index
    %c0_12 = arith.constant 0 : index
    %13 = vector.load %arg6[%c0_11, %c0_12] : memref<1x128xf32, #tpu.memory_space<vmem>>, vector<1x128xf32>
    %14 = vector.broadcast %13 : vector<1x128xf32> to vector<16x128xf32>
    %15 = arith.addf %12, %14 : vector<16x128xf32>
    %cst_13 = arith.constant 0.000000e+00 : f32
    %16 = vector.broadcast %cst_13 : f32 to vector<16x128xf32>
    %17 = arith.maximumf %15, %16 : vector<16x128xf32>
    %18 = arith.truncf %17 : vector<16x128xf32> to vector<16x128xbf16>
    %c0_14 = arith.constant 0 : index
    %c0_15 = arith.constant 0 : index
    %19 = vector.load %arg7[%c0_14, %c0_15] : memref<128x128xbf16, #tpu.memory_space<vmem>>, vector<128x128xbf16>
    %cst_16 = arith.constant dense<0.000000e+00> : vector<16x128xf32>
    %20 = tpu.matmul %18, %19, %cst_16 {dimension_numbers = #tpu.dot_dimension_numbers<[1], [0], [0], [1], [0, 0, 1, 1], [], []>} : vector<16x128xbf16>, vector<128x128xbf16>, vector<16x128xf32> -> vector<16x128xf32>
    %21 = arith.truncf %20 : vector<16x128xf32> to vector<16x128xbf16>
    %c0_17 = arith.constant 0 : index
    %c0_18 = arith.constant 0 : index
    %c0_19 = arith.constant 0 : index
    %22 = vector.load %arg8[%c0_17, %c0_18, %c0_19] : memref<1x16x128xbf16, #tpu.memory_space<vmem>>, vector<1x16x128xbf16>
    %23 = vector.shape_cast %22 : vector<1x16x128xbf16> to vector<16x128xbf16>
    %24 = vector.shape_cast %21 : vector<16x128xbf16> to vector<1x16x128xbf16>
    tpu.vector_store %arg8[%c0_17, %c0_18, %c0_19], %24 {strides = array<i32>} : memref<1x16x128xbf16, #tpu.memory_space<vmem>>, vector<1x16x128xbf16>,
    return
  }
  func.func @transform_0(%arg0: i32, %arg1: i32) -> (i32, i32, i32, i32) {
    %c0_i32 = arith.constant 0 : i32
    %c0_i32_0 = arith.constant 0 : i32
    %c0_i32_1 = arith.constant 0 : i32
    return %arg0, %arg1, %c0_i32, %c0_i32_0 : i32, i32, i32, i32
  }
  func.func @transform_1(%arg0: i32, %arg1: i32) -> (i32, i32, i32) {
    %c0_i32 = arith.constant 0 : i32
    %c0_i32_0 = arith.constant 0 : i32
    return %arg0, %arg1, %c0_i32 : i32, i32, i32
  }
  func.func @transform_2(%arg0: i32, %arg1: i32) -> (i32, i32) {
    %c0_i32 = arith.constant 0 : i32
    %c0_i32_0 = arith.constant 0 : i32
    %c0_i32_1 = arith.constant 0 : i32
    return %c0_i32, %c0_i32_0 : i32, i32
  }
  func.func @transform_3(%arg0: i32, %arg1: i32) -> (i32, i32) {
    %c0_i32 = arith.constant 0 : i32
    %c0_i32_0 = arith.constant 0 : i32
    %c0_i32_1 = arith.constant 0 : i32
    return %c0_i32, %c0_i32_0 : i32, i32
  }
  func.func @transform_4(%arg0: i32, %arg1: i32) -> (i32, i32) {
    %c0_i32 = arith.constant 0 : i32
    %c0_i32_0 = arith.constant 0 : i32
    %c0_i32_1 = arith.constant 0 : i32
    return %c0_i32, %c0_i32_0 : i32, i32
  }
  func.func @transform_5(%arg0: i32, %arg1: i32) -> (i32, i32) {
    %c0_i32 = arith.constant 0 : i32
    %c0_i32_0 = arith.constant 0 : i32
    %c0_i32_1 = arith.constant 0 : i32
    return %c0_i32, %c0_i32_0 : i32, i32
  }
  func.func @transform_6(%arg0: i32, %arg1: i32) -> (i32, i32, i32) {
    %c0_i32 = arith.constant 0 : i32
    %c0_i32_0 = arith.constant 0 : i32
    return %arg0, %arg1, %c0_i32 : i32, i32, i32
  }
}

module attributes {stable_mosaic.version = 11 : i64} {
  func.func @kernel(%arg0: i32, %arg1: i32, %arg2: memref<1x4x512xbf16, #tpu.memory_space<vmem>>, %arg3: memref<8x4xbf16, #tpu.memory_space<vmem>>, %arg4: memref<1x8x512xbf16, #tpu.memory_space<vmem>>) attributes {dimension_semantics = [#tpu.dimension_semantics<parallel>, #tpu.dimension_semantics<parallel>], iteration_bounds = array<i64: 2, 1>, scalar_prefetch = 0 : i64, scratch_operands = 0 : i64, tpu.core_type = #tpu.core_type<tc>, window_params = [{transform_indices = @transform_0, window_bounds = array<i64: 1, 4, 512>}, {transform_indices = @transform_1, window_bounds = array<i64: 8, 4>}, {transform_indices = @transform_2, window_bounds = array<i64: 1, 8, 512>}]} {
    %c0 = arith.constant 0 : index
    %c0_0 = arith.constant 0 : index
    %0 = vector.load %arg3[%c0, %c0_0] : memref<8x4xbf16, #tpu.memory_space<vmem>>, vector<8x4xbf16>
    %c0_1 = arith.constant 0 : index
    %c0_2 = arith.constant 0 : index
    %c0_3 = arith.constant 0 : index
    %1 = vector.load %arg2[%c0_1, %c0_2, %c0_3] : memref<1x4x512xbf16, #tpu.memory_space<vmem>>, vector<1x4x512xbf16>
    %2 = vector.shape_cast %1 : vector<1x4x512xbf16> to vector<4x512xbf16>
    %cst = arith.constant dense<0.000000e+00> : vector<8x512xf32>
    %3 = tpu.matmul %0, %2, %cst {dimension_numbers = #tpu.dot_dimension_numbers<[1], [0], [0], [1], [0, 0, 1, 1], [], []>} : vector<8x4xbf16>, vector<4x512xbf16>, vector<8x512xf32> -> vector<8x512xf32>
    %4 = arith.truncf %3 : vector<8x512xf32> to vector<8x512xbf16>
    %c0_4 = arith.constant 0 : index
    %c0_5 = arith.constant 0 : index
    %c0_6 = arith.constant 0 : index
    %5 = vector.load %arg4[%c0_4, %c0_5, %c0_6] : memref<1x8x512xbf16, #tpu.memory_space<vmem>>, vector<1x8x512xbf16>
    %6 = vector.shape_cast %5 : vector<1x8x512xbf16> to vector<8x512xbf16>
    %7 = vector.shape_cast %4 : vector<8x512xbf16> to vector<1x8x512xbf16>
    tpu.vector_store %arg4[%c0_4, %c0_5, %c0_6], %7 {strides = array<i32>} : memref<1x8x512xbf16, #tpu.memory_space<vmem>>, vector<1x8x512xbf16>,
    return
  }
  func.func @transform_0(%arg0: i32, %arg1: i32) -> (i32, i32, i32) {
    %c0_i32 = arith.constant 0 : i32
    %c0_i32_0 = arith.constant 0 : i32
    %c0_i32_1 = arith.constant 0 : i32
    return %arg0, %c0_i32, %c0_i32_0 : i32, i32, i32
  }
  func.func @transform_1(%arg0: i32, %arg1: i32) -> (i32, i32) {
    %c0_i32 = arith.constant 0 : i32
    %c0_i32_0 = arith.constant 0 : i32
    return %arg1, %c0_i32 : i32, i32
  }
  func.func @transform_2(%arg0: i32, %arg1: i32) -> (i32, i32, i32) {
    %c0_i32 = arith.constant 0 : i32
    %c0_i32_0 = arith.constant 0 : i32
    return %arg0, %arg1, %c0_i32 : i32, i32, i32
  }
}

module attributes {stable_mosaic.version = 11 : i64} {
  func.func @kernel(%arg0: i32, %arg1: i32, %arg2: memref<1x64x48xbf16, #tpu.memory_space<vmem>>, %arg3: memref<1x8x32xbf16, #tpu.memory_space<vmem>>, %arg4: memref<1x1x8xf32, #tpu.memory_space<vmem>>, %arg5: memref<48x128xbf16, #tpu.memory_space<vmem>>, %arg6: memref<1x128xf32, #tpu.memory_space<vmem>>, %arg7: memref<128x32xbf16, #tpu.memory_space<vmem>>, %arg8: memref<32x160xbf16, #tpu.memory_space<vmem>>, %arg9: memref<128x128xbf16, #tpu.memory_space<vmem>>, %arg10: memref<1x64x128xbf16, #tpu.memory_space<vmem>>) attributes {dimension_semantics = [#tpu.dimension_semantics<parallel>, #tpu.dimension_semantics<parallel>], iteration_bounds = array<i64: 2, 1>, scalar_prefetch = 0 : i64, scratch_operands = 0 : i64, tpu.core_type = #tpu.core_type<tc>, window_params = [{transform_indices = @transform_0, window_bounds = array<i64: 1, 64, 48>}, {transform_indices = @transform_1, window_bounds = array<i64: 1, 8, 32>}, {transform_indices = @transform_2, window_bounds = array<i64: 1, 1, 8>}, {pipeline_mode = #tpu.pipeline_mode<synchronous>, transform_indices = @transform_3, window_bounds = array<i64: 48, 128>}, {pipeline_mode = #tpu.pipeline_mode<synchronous>, transform_indices = @transform_4, window_bounds = array<i64: 1, 128>}, {pipeline_mode = #tpu.pipeline_mode<synchronous>, transform_indices = @transform_5, window_bounds = array<i64: 128, 32>}, {pipeline_mode = #tpu.pipeline_mode<synchronous>, transform_indices = @transform_6, window_bounds = array<i64: 32, 160>}, {pipeline_mode = #tpu.pipeline_mode<synchronous>, transform_indices = @transform_7, window_bounds = array<i64: 128, 128>}, {transform_indices = @transform_8, window_bounds = array<i64: 1, 64, 128>}]} {
    %c0 = arith.constant 0 : index
    %c0_0 = arith.constant 0 : index
    %c0_1 = arith.constant 0 : index
    %0 = vector.load %arg2[%c0, %c0_0, %c0_1] : memref<1x64x48xbf16, #tpu.memory_space<vmem>>, vector<1x64x48xbf16>
    %1 = vector.shape_cast %0 : vector<1x64x48xbf16> to vector<64x48xbf16>
    %c0_2 = arith.constant 0 : index
    %c0_3 = arith.constant 0 : index
    %2 = vector.load %arg5[%c0_2, %c0_3] : memref<48x128xbf16, #tpu.memory_space<vmem>>, vector<48x128xbf16>
    %cst = arith.constant dense<0.000000e+00> : vector<64x128xf32>
    %3 = tpu.matmul %1, %2, %cst {dimension_numbers = #tpu.dot_dimension_numbers<[1], [0], [0], [1], [0, 0, 1, 1], [], []>} : vector<64x48xbf16>, vector<48x128xbf16>, vector<64x128xf32> -> vector<64x128xf32>
    %c0_4 = arith.constant 0 : index
    %c0_5 = arith.constant 0 : index
    %4 = vector.load %arg6[%c0_4, %c0_5] : memref<1x128xf32, #tpu.memory_space<vmem>>, vector<1x128xf32>
    %5 = vector.broadcast %4 : vector<1x128xf32> to vector<64x128xf32>
    %6 = arith.addf %3, %5 : vector<64x128xf32>
    %cst_6 = arith.constant 0.000000e+00 : f32
    %7 = vector.broadcast %cst_6 : f32 to vector<64x128xf32>
    %8 = arith.maximumf %6, %7 : vector<64x128xf32>
    %c0_7 = arith.constant 0 : index
    %c0_8 = arith.constant 0 : index
    %c0_9 = arith.constant 0 : index
    %9 = vector.load %arg3[%c0_7, %c0_8, %c0_9] : memref<1x8x32xbf16, #tpu.memory_space<vmem>>, vector<1x8x32xbf16>
    %10 = vector.shape_cast %9 : vector<1x8x32xbf16> to vector<8x32xbf16>
    %c0_10 = arith.constant 0 : index
    %c0_11 = arith.constant 0 : index
    %11 = vector.load %arg8[%c0_10, %c0_11] : memref<32x160xbf16, #tpu.memory_space<vmem>>, vector<32x160xbf16>
    %cst_12 = arith.constant dense<0.000000e+00> : vector<8x160xf32>
    %12 = tpu.matmul %10, %11, %cst_12 {dimension_numbers = #tpu.dot_dimension_numbers<[1], [0], [0], [1], [0, 0, 1, 1], [], []>} : vector<8x32xbf16>, vector<32x160xbf16>, vector<8x160xf32> -> vector<8x160xf32>
    %13 = vector.extract_strided_slice %12 {offsets = [0, 0], sizes = [8, 32], strides = [1, 1]} : vector<8x160xf32> to vector<8x32xf32>
    %14 = arith.truncf %13 : vector<8x32xf32> to vector<8x32xbf16>
    %15 = vector.extract_strided_slice %12 {offsets = [0, 32], sizes = [8, 128], strides = [1, 1]} : vector<8x160xf32> to vector<8x128xf32>
    %16 = arith.truncf %15 : vector<8x128xf32> to vector<8x128xbf16>
    %17 = arith.truncf %8 : vector<64x128xf32> to vector<64x128xbf16>
    %c0_13 = arith.constant 0 : index
    %c0_14 = arith.constant 0 : index
    %18 = vector.load %arg7[%c0_13, %c0_14] : memref<128x32xbf16, #tpu.memory_space<vmem>>, vector<128x32xbf16>
    %cst_15 = arith.constant dense<0.000000e+00> : vector<64x32xf32>
    %19 = tpu.matmul %17, %18, %cst_15 {dimension_numbers = #tpu.dot_dimension_numbers<[1], [0], [0], [1], [0, 0, 1, 1], [], []>} : vector<64x128xbf16>, vector<128x32xbf16>, vector<64x32xf32> -> vector<64x32xf32>
    %20 = arith.truncf %19 : vector<64x32xf32> to vector<64x32xbf16>
    %cst_16 = arith.constant dense<0.000000e+00> : vector<64x8xf32>
    %21 = tpu.matmul %20, %14, %cst_16 {dimension_numbers = #tpu.dot_dimension_numbers<[1], [1], [0], [0], [0, 0, 1, 0], [], []>} : vector<64x32xbf16>, vector<8x32xbf16>, vector<64x8xf32> -> vector<64x8xf32>
    %cst_17 = arith.constant 0.176776692 : f32
    %22 = vector.broadcast %cst_17 : f32 to vector<64x8xf32>
    %23 = arith.mulf %21, %22 : vector<64x8xf32>
    %c0_18 = arith.constant 0 : index
    %c0_19 = arith.constant 0 : index
    %c0_20 = arith.constant 0 : index
    %24 = vector.load %arg4[%c0_18, %c0_19, %c0_20] : memref<1x1x8xf32, #tpu.memory_space<vmem>>, vector<1x1x8xf32>
    %25 = vector.shape_cast %24 : vector<1x1x8xf32> to vector<1x8xf32>
    %26 = vector.broadcast %25 : vector<1x8xf32> to vector<64x8xf32>
    %27 = arith.addf %23, %26 : vector<64x8xf32>
    %cst_21 = arith.constant dense<0xFF800000> : vector<64xf32>
    %28 = vector.multi_reduction <maximumf>, %27, %cst_21 [1] : vector<64x8xf32> to vector<64xf32>
    %29 = vector.shape_cast %28 : vector<64xf32> to vector<64x1xf32>
    %30 = vector.broadcast %29 : vector<64x1xf32> to vector<64x8xf32>
    %31 = arith.subf %27, %30 : vector<64x8xf32>
    %32 = math.exp %31 : vector<64x8xf32>
    %cst_22 = arith.constant dense<0.000000e+00> : vector<64xf32>
    %33 = vector.multi_reduction <add>, %32, %cst_22 [1] : vector<64x8xf32> to vector<64xf32>
    %34 = vector.shape_cast %33 : vector<64xf32> to vector<64x1xf32>
    %35 = tpu.reciprocal %34 {approx = true} : vector<64x1xf32> -> vector<64x1xf32>
    %36 = vector.broadcast %35 : vector<64x1xf32> to vector<64x8xf32>
    %37 = arith.mulf %32, %36 : vector<64x8xf32>
    %38 = arith.truncf %37 : vector<64x8xf32> to vector<64x8xbf16>
    %cst_23 = arith.constant dense<0.000000e+00> : vector<64x128xf32>
    %39 = tpu.matmul %38, %16, %cst_23 {dimension_numbers = #tpu.dot_dimension_numbers<[1], [0], [0], [1], [0, 0, 1, 1], [], []>} : vector<64x8xbf16>, vector<8x128xbf16>, vector<64x128xf32> -> vector<64x128xf32>
    %40 = arith.truncf %39 : vector<64x128xf32> to vector<64x128xbf16>
    %c0_24 = arith.constant 0 : index
    %c0_25 = arith.constant 0 : index
    %41 = vector.load %arg9[%c0_24, %c0_25] : memref<128x128xbf16, #tpu.memory_space<vmem>>, vector<128x128xbf16>
    %cst_26 = arith.constant dense<0.000000e+00> : vector<64x128xf32>
    %42 = tpu.matmul %40, %41, %cst_26 {dimension_numbers = #tpu.dot_dimension_numbers<[1], [0], [0], [1], [0, 0, 1, 1], [], []>} : vector<64x128xbf16>, vector<128x128xbf16>, vector<64x128xf32> -> vector<64x128xf32>
    %43 = math.tanh %42 : vector<64x128xf32>
    %cst_27 = arith.constant 1.000000e+00 : f32
    %44 = vector.broadcast %cst_27 : f32 to vector<64x128xf32>
    %45 = arith.addf %44, %43 : vector<64x128xf32>
    %46 = arith.mulf %8, %45 : vector<64x128xf32>
    %47 = arith.truncf %46 : vector<64x128xf32> to vector<64x128xbf16>
    %c0_28 = arith.constant 0 : index
    %c0_29 = arith.constant 0 : index
    %c0_30 = arith.constant 0 : index
    %48 = vector.load %arg10[%c0_28, %c0_29, %c0_30] : memref<1x64x128xbf16, #tpu.memory_space<vmem>>, vector<1x64x128xbf16>
    %49 = vector.shape_cast %48 : vector<1x64x128xbf16> to vector<64x128xbf16>
    %50 = vector.shape_cast %47 : vector<64x128xbf16> to vector<1x64x128xbf16>
    tpu.vector_store %arg10[%c0_28, %c0_29, %c0_30], %50 {strides = array<i32>} : memref<1x64x128xbf16, #tpu.memory_space<vmem>>, vector<1x64x128xbf16>,
    return
  }
  func.func @transform_0(%arg0: i32, %arg1: i32) -> (i32, i32, i32) {
    %c0_i32 = arith.constant 0 : i32
    %c0_i32_0 = arith.constant 0 : i32
    return %arg0, %arg1, %c0_i32 : i32, i32, i32
  }
  func.func @transform_1(%arg0: i32, %arg1: i32) -> (i32, i32, i32) {
    %c0_i32 = arith.constant 0 : i32
    %c0_i32_0 = arith.constant 0 : i32
    %c0_i32_1 = arith.constant 0 : i32
    return %arg0, %c0_i32, %c0_i32_0 : i32, i32, i32
  }
  func.func @transform_2(%arg0: i32, %arg1: i32) -> (i32, i32, i32) {
    %c0_i32 = arith.constant 0 : i32
    %c0_i32_0 = arith.constant 0 : i32
    %c0_i32_1 = arith.constant 0 : i32
    return %arg0, %c0_i32, %c0_i32_0 : i32, i32, i32
  }
  func.func @transform_3(%arg0: i32, %arg1: i32) -> (i32, i32) {
    %c0_i32 = arith.constant 0 : i32
    %c0_i32_0 = arith.constant 0 : i32
    %c0_i32_1 = arith.constant 0 : i32
    return %c0_i32, %c0_i32_0 : i32, i32
  }
  func.func @transform_4(%arg0: i32, %arg1: i32) -> (i32, i32) {
    %c0_i32 = arith.constant 0 : i32
    %c0_i32_0 = arith.constant 0 : i32
    %c0_i32_1 = arith.constant 0 : i32
    return %c0_i32, %c0_i32_0 : i32, i32
  }
  func.func @transform_5(%arg0: i32, %arg1: i32) -> (i32, i32) {
    %c0_i32 = arith.constant 0 : i32
    %c0_i32_0 = arith.constant 0 : i32
    %c0_i32_1 = arith.constant 0 : i32
    return %c0_i32, %c0_i32_0 : i32, i32
  }
  func.func @transform_6(%arg0: i32, %arg1: i32) -> (i32, i32) {
    %c0_i32 = arith.constant 0 : i32
    %c0_i32_0 = arith.constant 0 : i32
    %c0_i32_1 = arith.constant 0 : i32
    return %c0_i32, %c0_i32_0 : i32, i32
  }
  func.func @transform_7(%arg0: i32, %arg1: i32) -> (i32, i32) {
    %c0_i32 = arith.constant 0 : i32
    %c0_i32_0 = arith.constant 0 : i32
    %c0_i32_1 = arith.constant 0 : i32
    return %c0_i32, %c0_i32_0 : i32, i32
  }
  func.func @transform_8(%arg0: i32, %arg1: i32) -> (i32, i32, i32) {
    %c0_i32 = arith.constant 0 : i32
    %c0_i32_0 = arith.constant 0 : i32
    return %arg0, %arg1, %c0_i32 : i32, i32, i32
  }
}

module attributes {stable_mosaic.version = 11 : i64} {
  func.func @kernel(%arg0: i32, %arg1: i32, %arg2: memref<1x8x4x128xbf16, #tpu.memory_space<vmem>>, %arg3: memref<1x64x128xbf16, #tpu.memory_space<vmem>>, %arg4: memref<8x4xbf16, #tpu.memory_space<vmem>>, %arg5: memref<128x128xbf16, #tpu.memory_space<vmem>>, %arg6: memref<1x128xf32, #tpu.memory_space<vmem>>, %arg7: memref<128x128xbf16, #tpu.memory_space<vmem>>, %arg8: memref<1x64x128xbf16, #tpu.memory_space<vmem>>) attributes {dimension_semantics = [#tpu.dimension_semantics<parallel>, #tpu.dimension_semantics<parallel>], iteration_bounds = array<i64: 2, 1>, scalar_prefetch = 0 : i64, scratch_operands = 0 : i64, tpu.core_type = #tpu.core_type<tc>, window_params = [{transform_indices = @transform_0, window_bounds = array<i64: 1, 8, 4, 128>}, {transform_indices = @transform_1, window_bounds = array<i64: 1, 64, 128>}, {pipeline_mode = #tpu.pipeline_mode<synchronous>, transform_indices = @transform_2, window_bounds = array<i64: 8, 4>}, {pipeline_mode = #tpu.pipeline_mode<synchronous>, transform_indices = @transform_3, window_bounds = array<i64: 128, 128>}, {pipeline_mode = #tpu.pipeline_mode<synchronous>, transform_indices = @transform_4, window_bounds = array<i64: 1, 128>}, {pipeline_mode = #tpu.pipeline_mode<synchronous>, transform_indices = @transform_5, window_bounds = array<i64: 128, 128>}, {transform_indices = @transform_6, window_bounds = array<i64: 1, 64, 128>}]} {
    %c0 = arith.constant 0 : index
    %c0_0 = arith.constant 0 : index
    %c0_1 = arith.constant 0 : index
    %c0_2 = arith.constant 0 : index
    %0 = vector.load %arg2[%c0, %c0_0, %c0_1, %c0_2] : memref<1x8x4x128xbf16, #tpu.memory_space<vmem>>, vector<1x8x4x128xbf16>
    %1 = vector.shape_cast %0 : vector<1x8x4x128xbf16> to vector<8x4x128xbf16>
    %c0_3 = arith.constant 0 : index
    %c0_4 = arith.constant 0 : index
    %2 = vector.load %arg4[%c0_3, %c0_4] : memref<8x4xbf16, #tpu.memory_space<vmem>>, vector<8x4xbf16>
    %3 = vector.shape_cast %2 : vector<8x4xbf16> to vector<1x8x4xbf16>
    %4 = vector.shape_cast %3 : vector<1x8x4xbf16> to vector<1x8x4xbf16>
    %5 = vector.broadcast %4 : vector<1x8x4xbf16> to vector<8x8x4xbf16>
    %cst = arith.constant dense<0.000000e+00> : vector<8x8x128xf32>
    %6 = tpu.matmul %5, %1, %cst {dimension_numbers = #tpu.dot_dimension_numbers<[2], [1], [1], [2], [0, 0, 0, 1, 1, 2], [0], [0]>} : vector<8x8x4xbf16>, vector<8x4x128xbf16>, vector<8x8x128xf32> -> vector<8x8x128xf32>
    %7 = vector.shape_cast %6 : vector<8x8x128xf32> to vector<64x128xf32>
    %c0_5 = arith.constant 0 : index
    %c0_6 = arith.constant 0 : index
    %c0_7 = arith.constant 0 : index
    %8 = vector.load %arg3[%c0_5, %c0_6, %c0_7] : memref<1x64x128xbf16, #tpu.memory_space<vmem>>, vector<1x64x128xbf16>
    %9 = vector.shape_cast %8 : vector<1x64x128xbf16> to vector<64x128xbf16>
    %c0_8 = arith.constant 0 : index
    %c0_9 = arith.constant 0 : index
    %10 = vector.load %arg5[%c0_8, %c0_9] : memref<128x128xbf16, #tpu.memory_space<vmem>>, vector<128x128xbf16>
    %cst_10 = arith.constant dense<0.000000e+00> : vector<64x128xf32>
    %11 = tpu.matmul %9, %10, %cst_10 {dimension_numbers = #tpu.dot_dimension_numbers<[1], [0], [0], [1], [0, 0, 1, 1], [], []>} : vector<64x128xbf16>, vector<128x128xbf16>, vector<64x128xf32> -> vector<64x128xf32>
    %12 = arith.addf %7, %11 : vector<64x128xf32>
    %c0_11 = arith.constant 0 : index
    %c0_12 = arith.constant 0 : index
    %13 = vector.load %arg6[%c0_11, %c0_12] : memref<1x128xf32, #tpu.memory_space<vmem>>, vector<1x128xf32>
    %14 = vector.broadcast %13 : vector<1x128xf32> to vector<64x128xf32>
    %15 = arith.addf %12, %14 : vector<64x128xf32>
    %cst_13 = arith.constant 0.000000e+00 : f32
    %16 = vector.broadcast %cst_13 : f32 to vector<64x128xf32>
    %17 = arith.maximumf %15, %16 : vector<64x128xf32>
    %18 = arith.truncf %17 : vector<64x128xf32> to vector<64x128xbf16>
    %c0_14 = arith.constant 0 : index
    %c0_15 = arith.constant 0 : index
    %19 = vector.load %arg7[%c0_14, %c0_15] : memref<128x128xbf16, #tpu.memory_space<vmem>>, vector<128x128xbf16>
    %cst_16 = arith.constant dense<0.000000e+00> : vector<64x128xf32>
    %20 = tpu.matmul %18, %19, %cst_16 {dimension_numbers = #tpu.dot_dimension_numbers<[1], [0], [0], [1], [0, 0, 1, 1], [], []>} : vector<64x128xbf16>, vector<128x128xbf16>, vector<64x128xf32> -> vector<64x128xf32>
    %21 = arith.truncf %20 : vector<64x128xf32> to vector<64x128xbf16>
    %c0_17 = arith.constant 0 : index
    %c0_18 = arith.constant 0 : index
    %c0_19 = arith.constant 0 : index
    %22 = vector.load %arg8[%c0_17, %c0_18, %c0_19] : memref<1x64x128xbf16, #tpu.memory_space<vmem>>, vector<1x64x128xbf16>
    %23 = vector.shape_cast %22 : vector<1x64x128xbf16> to vector<64x128xbf16>
    %24 = vector.shape_cast %21 : vector<64x128xbf16> to vector<1x64x128xbf16>
    tpu.vector_store %arg8[%c0_17, %c0_18, %c0_19], %24 {strides = array<i32>} : memref<1x64x128xbf16, #tpu.memory_space<vmem>>, vector<1x64x128xbf16>,
    return
  }
  func.func @transform_0(%arg0: i32, %arg1: i32) -> (i32, i32, i32, i32) {
    %c0_i32 = arith.constant 0 : i32
    %c0_i32_0 = arith.constant 0 : i32
    %c0_i32_1 = arith.constant 0 : i32
    return %arg0, %arg1, %c0_i32, %c0_i32_0 : i32, i32, i32, i32
  }
  func.func @transform_1(%arg0: i32, %arg1: i32) -> (i32, i32, i32) {
    %c0_i32 = arith.constant 0 : i32
    %c0_i32_0 = arith.constant 0 : i32
    return %arg0, %arg1, %c0_i32 : i32, i32, i32
  }
  func.func @transform_2(%arg0: i32, %arg1: i32) -> (i32, i32) {
    %c0_i32 = arith.constant 0 : i32
    %c0_i32_0 = arith.constant 0 : i32
    %c0_i32_1 = arith.constant 0 : i32
    return %c0_i32, %c0_i32_0 : i32, i32
  }
  func.func @transform_3(%arg0: i32, %arg1: i32) -> (i32, i32) {
    %c0_i32 = arith.constant 0 : i32
    %c0_i32_0 = arith.constant 0 : i32
    %c0_i32_1 = arith.constant 0 : i32
    return %c0_i32, %c0_i32_0 : i32, i32
  }
  func.func @transform_4(%arg0: i32, %arg1: i32) -> (i32, i32) {
    %c0_i32 = arith.constant 0 : i32
    %c0_i32_0 = arith.constant 0 : i32
    %c0_i32_1 = arith.constant 0 : i32
    return %c0_i32, %c0_i32_0 : i32, i32
  }
  func.func @transform_5(%arg0: i32, %arg1: i32) -> (i32, i32) {
    %c0_i32 = arith.constant 0 : i32
    %c0_i32_0 = arith.constant 0 : i32
    %c0_i32_1 = arith.constant 0 : i32
    return %c0_i32, %c0_i32_0 : i32, i32
  }
  func.func @transform_6(%arg0: i32, %arg1: i32) -> (i32, i32, i32) {
    %c0_i32 = arith.constant 0 : i32
    %c0_i32_0 = arith.constant 0 : i32
    return %arg0, %arg1, %c0_i32 : i32, i32, i32
  }
}

module attributes {stable_mosaic.version = 11 : i64} {
  func.func @kernel(%arg0: i32, %arg1: i32, %arg2: memref<1x8x1024xbf16, #tpu.memory_space<vmem>>, %arg3: memref<16x8xbf16, #tpu.memory_space<vmem>>, %arg4: memref<1x16x1024xbf16, #tpu.memory_space<vmem>>) attributes {dimension_semantics = [#tpu.dimension_semantics<parallel>, #tpu.dimension_semantics<parallel>], iteration_bounds = array<i64: 2, 1>, scalar_prefetch = 0 : i64, scratch_operands = 0 : i64, tpu.core_type = #tpu.core_type<tc>, window_params = [{transform_indices = @transform_0, window_bounds = array<i64: 1, 8, 1024>}, {transform_indices = @transform_1, window_bounds = array<i64: 16, 8>}, {transform_indices = @transform_2, window_bounds = array<i64: 1, 16, 1024>}]} {
    %c0 = arith.constant 0 : index
    %c0_0 = arith.constant 0 : index
    %0 = vector.load %arg3[%c0, %c0_0] : memref<16x8xbf16, #tpu.memory_space<vmem>>, vector<16x8xbf16>
    %c0_1 = arith.constant 0 : index
    %c0_2 = arith.constant 0 : index
    %c0_3 = arith.constant 0 : index
    %1 = vector.load %arg2[%c0_1, %c0_2, %c0_3] : memref<1x8x1024xbf16, #tpu.memory_space<vmem>>, vector<1x8x1024xbf16>
    %2 = vector.shape_cast %1 : vector<1x8x1024xbf16> to vector<8x1024xbf16>
    %cst = arith.constant dense<0.000000e+00> : vector<16x1024xf32>
    %3 = tpu.matmul %0, %2, %cst {dimension_numbers = #tpu.dot_dimension_numbers<[1], [0], [0], [1], [0, 0, 1, 1], [], []>} : vector<16x8xbf16>, vector<8x1024xbf16>, vector<16x1024xf32> -> vector<16x1024xf32>
    %4 = arith.truncf %3 : vector<16x1024xf32> to vector<16x1024xbf16>
    %c0_4 = arith.constant 0 : index
    %c0_5 = arith.constant 0 : index
    %c0_6 = arith.constant 0 : index
    %5 = vector.load %arg4[%c0_4, %c0_5, %c0_6] : memref<1x16x1024xbf16, #tpu.memory_space<vmem>>, vector<1x16x1024xbf16>
    %6 = vector.shape_cast %5 : vector<1x16x1024xbf16> to vector<16x1024xbf16>
    %7 = vector.shape_cast %4 : vector<16x1024xbf16> to vector<1x16x1024xbf16>
    tpu.vector_store %arg4[%c0_4, %c0_5, %c0_6], %7 {strides = array<i32>} : memref<1x16x1024xbf16, #tpu.memory_space<vmem>>, vector<1x16x1024xbf16>,
    return
  }
  func.func @transform_0(%arg0: i32, %arg1: i32) -> (i32, i32, i32) {
    %c0_i32 = arith.constant 0 : i32
    %c0_i32_0 = arith.constant 0 : i32
    %c0_i32_1 = arith.constant 0 : i32
    return %arg0, %c0_i32, %c0_i32_0 : i32, i32, i32
  }
  func.func @transform_1(%arg0: i32, %arg1: i32) -> (i32, i32) {
    %c0_i32 = arith.constant 0 : i32
    %c0_i32_0 = arith.constant 0 : i32
    return %arg1, %c0_i32 : i32, i32
  }
  func.func @transform_2(%arg0: i32, %arg1: i32) -> (i32, i32, i32) {
    %c0_i32 = arith.constant 0 : i32
    %c0_i32_0 = arith.constant 0 : i32
    return %arg0, %arg1, %c0_i32 : i32, i32, i32
  }
}

module attributes {stable_mosaic.version = 11 : i64} {
  func.func @kernel(%arg0: i32, %arg1: i32, %arg2: memref<1x256x12xbf16, #tpu.memory_space<vmem>>, %arg3: memref<1x8x32xbf16, #tpu.memory_space<vmem>>, %arg4: memref<1x1x8xf32, #tpu.memory_space<vmem>>, %arg5: memref<12x128xbf16, #tpu.memory_space<vmem>>, %arg6: memref<1x128xf32, #tpu.memory_space<vmem>>, %arg7: memref<128x32xbf16, #tpu.memory_space<vmem>>, %arg8: memref<32x160xbf16, #tpu.memory_space<vmem>>, %arg9: memref<128x128xbf16, #tpu.memory_space<vmem>>, %arg10: memref<1x256x128xbf16, #tpu.memory_space<vmem>>) attributes {dimension_semantics = [#tpu.dimension_semantics<parallel>, #tpu.dimension_semantics<parallel>], iteration_bounds = array<i64: 2, 1>, scalar_prefetch = 0 : i64, scratch_operands = 0 : i64, tpu.core_type = #tpu.core_type<tc>, window_params = [{transform_indices = @transform_0, window_bounds = array<i64: 1, 256, 12>}, {transform_indices = @transform_1, window_bounds = array<i64: 1, 8, 32>}, {transform_indices = @transform_2, window_bounds = array<i64: 1, 1, 8>}, {pipeline_mode = #tpu.pipeline_mode<synchronous>, transform_indices = @transform_3, window_bounds = array<i64: 12, 128>}, {pipeline_mode = #tpu.pipeline_mode<synchronous>, transform_indices = @transform_4, window_bounds = array<i64: 1, 128>}, {pipeline_mode = #tpu.pipeline_mode<synchronous>, transform_indices = @transform_5, window_bounds = array<i64: 128, 32>}, {pipeline_mode = #tpu.pipeline_mode<synchronous>, transform_indices = @transform_6, window_bounds = array<i64: 32, 160>}, {pipeline_mode = #tpu.pipeline_mode<synchronous>, transform_indices = @transform_7, window_bounds = array<i64: 128, 128>}, {transform_indices = @transform_8, window_bounds = array<i64: 1, 256, 128>}]} {
    %c0 = arith.constant 0 : index
    %c0_0 = arith.constant 0 : index
    %c0_1 = arith.constant 0 : index
    %0 = vector.load %arg2[%c0, %c0_0, %c0_1] : memref<1x256x12xbf16, #tpu.memory_space<vmem>>, vector<1x256x12xbf16>
    %1 = vector.shape_cast %0 : vector<1x256x12xbf16> to vector<256x12xbf16>
    %c0_2 = arith.constant 0 : index
    %c0_3 = arith.constant 0 : index
    %2 = vector.load %arg5[%c0_2, %c0_3] : memref<12x128xbf16, #tpu.memory_space<vmem>>, vector<12x128xbf16>
    %cst = arith.constant dense<0.000000e+00> : vector<256x128xf32>
    %3 = tpu.matmul %1, %2, %cst {dimension_numbers = #tpu.dot_dimension_numbers<[1], [0], [0], [1], [0, 0, 1, 1], [], []>} : vector<256x12xbf16>, vector<12x128xbf16>, vector<256x128xf32> -> vector<256x128xf32>
    %c0_4 = arith.constant 0 : index
    %c0_5 = arith.constant 0 : index
    %4 = vector.load %arg6[%c0_4, %c0_5] : memref<1x128xf32, #tpu.memory_space<vmem>>, vector<1x128xf32>
    %5 = vector.broadcast %4 : vector<1x128xf32> to vector<256x128xf32>
    %6 = arith.addf %3, %5 : vector<256x128xf32>
    %cst_6 = arith.constant 0.000000e+00 : f32
    %7 = vector.broadcast %cst_6 : f32 to vector<256x128xf32>
    %8 = arith.maximumf %6, %7 : vector<256x128xf32>
    %c0_7 = arith.constant 0 : index
    %c0_8 = arith.constant 0 : index
    %c0_9 = arith.constant 0 : index
    %9 = vector.load %arg3[%c0_7, %c0_8, %c0_9] : memref<1x8x32xbf16, #tpu.memory_space<vmem>>, vector<1x8x32xbf16>
    %10 = vector.shape_cast %9 : vector<1x8x32xbf16> to vector<8x32xbf16>
    %c0_10 = arith.constant 0 : index
    %c0_11 = arith.constant 0 : index
    %11 = vector.load %arg8[%c0_10, %c0_11] : memref<32x160xbf16, #tpu.memory_space<vmem>>, vector<32x160xbf16>
    %cst_12 = arith.constant dense<0.000000e+00> : vector<8x160xf32>
    %12 = tpu.matmul %10, %11, %cst_12 {dimension_numbers = #tpu.dot_dimension_numbers<[1], [0], [0], [1], [0, 0, 1, 1], [], []>} : vector<8x32xbf16>, vector<32x160xbf16>, vector<8x160xf32> -> vector<8x160xf32>
    %13 = vector.extract_strided_slice %12 {offsets = [0, 0], sizes = [8, 32], strides = [1, 1]} : vector<8x160xf32> to vector<8x32xf32>
    %14 = arith.truncf %13 : vector<8x32xf32> to vector<8x32xbf16>
    %15 = vector.extract_strided_slice %12 {offsets = [0, 32], sizes = [8, 128], strides = [1, 1]} : vector<8x160xf32> to vector<8x128xf32>
    %16 = arith.truncf %15 : vector<8x128xf32> to vector<8x128xbf16>
    %17 = arith.truncf %8 : vector<256x128xf32> to vector<256x128xbf16>
    %c0_13 = arith.constant 0 : index
    %c0_14 = arith.constant 0 : index
    %18 = vector.load %arg7[%c0_13, %c0_14] : memref<128x32xbf16, #tpu.memory_space<vmem>>, vector<128x32xbf16>
    %cst_15 = arith.constant dense<0.000000e+00> : vector<256x32xf32>
    %19 = tpu.matmul %17, %18, %cst_15 {dimension_numbers = #tpu.dot_dimension_numbers<[1], [0], [0], [1], [0, 0, 1, 1], [], []>} : vector<256x128xbf16>, vector<128x32xbf16>, vector<256x32xf32> -> vector<256x32xf32>
    %20 = arith.truncf %19 : vector<256x32xf32> to vector<256x32xbf16>
    %cst_16 = arith.constant dense<0.000000e+00> : vector<256x8xf32>
    %21 = tpu.matmul %20, %14, %cst_16 {dimension_numbers = #tpu.dot_dimension_numbers<[1], [1], [0], [0], [0, 0, 1, 0], [], []>} : vector<256x32xbf16>, vector<8x32xbf16>, vector<256x8xf32> -> vector<256x8xf32>
    %cst_17 = arith.constant 0.176776692 : f32
    %22 = vector.broadcast %cst_17 : f32 to vector<256x8xf32>
    %23 = arith.mulf %21, %22 : vector<256x8xf32>
    %c0_18 = arith.constant 0 : index
    %c0_19 = arith.constant 0 : index
    %c0_20 = arith.constant 0 : index
    %24 = vector.load %arg4[%c0_18, %c0_19, %c0_20] : memref<1x1x8xf32, #tpu.memory_space<vmem>>, vector<1x1x8xf32>
    %25 = vector.shape_cast %24 : vector<1x1x8xf32> to vector<1x8xf32>
    %26 = vector.broadcast %25 : vector<1x8xf32> to vector<256x8xf32>
    %27 = arith.addf %23, %26 : vector<256x8xf32>
    %cst_21 = arith.constant dense<0xFF800000> : vector<256xf32>
    %28 = vector.multi_reduction <maximumf>, %27, %cst_21 [1] : vector<256x8xf32> to vector<256xf32>
    %29 = vector.shape_cast %28 : vector<256xf32> to vector<256x1xf32>
    %30 = vector.broadcast %29 : vector<256x1xf32> to vector<256x8xf32>
    %31 = arith.subf %27, %30 : vector<256x8xf32>
    %32 = math.exp %31 : vector<256x8xf32>
    %cst_22 = arith.constant dense<0.000000e+00> : vector<256xf32>
    %33 = vector.multi_reduction <add>, %32, %cst_22 [1] : vector<256x8xf32> to vector<256xf32>
    %34 = vector.shape_cast %33 : vector<256xf32> to vector<256x1xf32>
    %35 = tpu.reciprocal %34 {approx = true} : vector<256x1xf32> -> vector<256x1xf32>
    %36 = vector.broadcast %35 : vector<256x1xf32> to vector<256x8xf32>
    %37 = arith.mulf %32, %36 : vector<256x8xf32>
    %38 = arith.truncf %37 : vector<256x8xf32> to vector<256x8xbf16>
    %cst_23 = arith.constant dense<0.000000e+00> : vector<256x128xf32>
    %39 = tpu.matmul %38, %16, %cst_23 {dimension_numbers = #tpu.dot_dimension_numbers<[1], [0], [0], [1], [0, 0, 1, 1], [], []>} : vector<256x8xbf16>, vector<8x128xbf16>, vector<256x128xf32> -> vector<256x128xf32>
    %40 = arith.truncf %39 : vector<256x128xf32> to vector<256x128xbf16>
    %c0_24 = arith.constant 0 : index
    %c0_25 = arith.constant 0 : index
    %41 = vector.load %arg9[%c0_24, %c0_25] : memref<128x128xbf16, #tpu.memory_space<vmem>>, vector<128x128xbf16>
    %cst_26 = arith.constant dense<0.000000e+00> : vector<256x128xf32>
    %42 = tpu.matmul %40, %41, %cst_26 {dimension_numbers = #tpu.dot_dimension_numbers<[1], [0], [0], [1], [0, 0, 1, 1], [], []>} : vector<256x128xbf16>, vector<128x128xbf16>, vector<256x128xf32> -> vector<256x128xf32>
    %43 = math.tanh %42 : vector<256x128xf32>
    %cst_27 = arith.constant 1.000000e+00 : f32
    %44 = vector.broadcast %cst_27 : f32 to vector<256x128xf32>
    %45 = arith.addf %44, %43 : vector<256x128xf32>
    %46 = arith.mulf %8, %45 : vector<256x128xf32>
    %47 = arith.truncf %46 : vector<256x128xf32> to vector<256x128xbf16>
    %c0_28 = arith.constant 0 : index
    %c0_29 = arith.constant 0 : index
    %c0_30 = arith.constant 0 : index
    %48 = vector.load %arg10[%c0_28, %c0_29, %c0_30] : memref<1x256x128xbf16, #tpu.memory_space<vmem>>, vector<1x256x128xbf16>
    %49 = vector.shape_cast %48 : vector<1x256x128xbf16> to vector<256x128xbf16>
    %50 = vector.shape_cast %47 : vector<256x128xbf16> to vector<1x256x128xbf16>
    tpu.vector_store %arg10[%c0_28, %c0_29, %c0_30], %50 {strides = array<i32>} : memref<1x256x128xbf16, #tpu.memory_space<vmem>>, vector<1x256x128xbf16>,
    return
  }
  func.func @transform_0(%arg0: i32, %arg1: i32) -> (i32, i32, i32) {
    %c0_i32 = arith.constant 0 : i32
    %c0_i32_0 = arith.constant 0 : i32
    return %arg0, %arg1, %c0_i32 : i32, i32, i32
  }
  func.func @transform_1(%arg0: i32, %arg1: i32) -> (i32, i32, i32) {
    %c0_i32 = arith.constant 0 : i32
    %c0_i32_0 = arith.constant 0 : i32
    %c0_i32_1 = arith.constant 0 : i32
    return %arg0, %c0_i32, %c0_i32_0 : i32, i32, i32
  }
  func.func @transform_2(%arg0: i32, %arg1: i32) -> (i32, i32, i32) {
    %c0_i32 = arith.constant 0 : i32
    %c0_i32_0 = arith.constant 0 : i32
    %c0_i32_1 = arith.constant 0 : i32
    return %arg0, %c0_i32, %c0_i32_0 : i32, i32, i32
  }
  func.func @transform_3(%arg0: i32, %arg1: i32) -> (i32, i32) {
    %c0_i32 = arith.constant 0 : i32
    %c0_i32_0 = arith.constant 0 : i32
    %c0_i32_1 = arith.constant 0 : i32
    return %c0_i32, %c0_i32_0 : i32, i32
  }
  func.func @transform_4(%arg0: i32, %arg1: i32) -> (i32, i32) {
    %c0_i32 = arith.constant 0 : i32
    %c0_i32_0 = arith.constant 0 : i32
    %c0_i32_1 = arith.constant 0 : i32
    return %c0_i32, %c0_i32_0 : i32, i32
  }
  func.func @transform_5(%arg0: i32, %arg1: i32) -> (i32, i32) {
    %c0_i32 = arith.constant 0 : i32
    %c0_i32_0 = arith.constant 0 : i32
    %c0_i32_1 = arith.constant 0 : i32
    return %c0_i32, %c0_i32_0 : i32, i32
  }
  func.func @transform_6(%arg0: i32, %arg1: i32) -> (i32, i32) {
    %c0_i32 = arith.constant 0 : i32
    %c0_i32_0 = arith.constant 0 : i32
    %c0_i32_1 = arith.constant 0 : i32
    return %c0_i32, %c0_i32_0 : i32, i32
  }
  func.func @transform_7(%arg0: i32, %arg1: i32) -> (i32, i32) {
    %c0_i32 = arith.constant 0 : i32
    %c0_i32_0 = arith.constant 0 : i32
    %c0_i32_1 = arith.constant 0 : i32
    return %c0_i32, %c0_i32_0 : i32, i32
  }
  func.func @transform_8(%arg0: i32, %arg1: i32) -> (i32, i32, i32) {
    %c0_i32 = arith.constant 0 : i32
    %c0_i32_0 = arith.constant 0 : i32
    return %arg0, %arg1, %c0_i32 : i32, i32, i32
  }
}

module attributes {stable_mosaic.version = 11 : i64} {
  func.func @kernel(%arg0: i32, %arg1: i32, %arg2: memref<1x16x8x128xbf16, #tpu.memory_space<vmem>>, %arg3: memref<1x256x128xbf16, #tpu.memory_space<vmem>>, %arg4: memref<16x8xbf16, #tpu.memory_space<vmem>>, %arg5: memref<128x128xbf16, #tpu.memory_space<vmem>>, %arg6: memref<1x128xf32, #tpu.memory_space<vmem>>, %arg7: memref<128x128xbf16, #tpu.memory_space<vmem>>, %arg8: memref<1x128xf32, #tpu.memory_space<vmem>>, %arg9: memref<1x256x128xf32, #tpu.memory_space<vmem>>) attributes {dimension_semantics = [#tpu.dimension_semantics<parallel>, #tpu.dimension_semantics<parallel>], iteration_bounds = array<i64: 2, 1>, scalar_prefetch = 0 : i64, scratch_operands = 0 : i64, tpu.core_type = #tpu.core_type<tc>, window_params = [{transform_indices = @transform_0, window_bounds = array<i64: 1, 16, 8, 128>}, {transform_indices = @transform_1, window_bounds = array<i64: 1, 256, 128>}, {pipeline_mode = #tpu.pipeline_mode<synchronous>, transform_indices = @transform_2, window_bounds = array<i64: 16, 8>}, {pipeline_mode = #tpu.pipeline_mode<synchronous>, transform_indices = @transform_3, window_bounds = array<i64: 128, 128>}, {pipeline_mode = #tpu.pipeline_mode<synchronous>, transform_indices = @transform_4, window_bounds = array<i64: 1, 128>}, {pipeline_mode = #tpu.pipeline_mode<synchronous>, transform_indices = @transform_5, window_bounds = array<i64: 128, 128>}, {pipeline_mode = #tpu.pipeline_mode<synchronous>, transform_indices = @transform_6, window_bounds = array<i64: 1, 128>}, {transform_indices = @transform_7, window_bounds = array<i64: 1, 256, 128>}]} {
    %c0 = arith.constant 0 : index
    %c0_0 = arith.constant 0 : index
    %c0_1 = arith.constant 0 : index
    %c0_2 = arith.constant 0 : index
    %0 = vector.load %arg2[%c0, %c0_0, %c0_1, %c0_2] : memref<1x16x8x128xbf16, #tpu.memory_space<vmem>>, vector<1x16x8x128xbf16>
    %1 = vector.shape_cast %0 : vector<1x16x8x128xbf16> to vector<16x8x128xbf16>
    %c0_3 = arith.constant 0 : index
    %c0_4 = arith.constant 0 : index
    %2 = vector.load %arg4[%c0_3, %c0_4] : memref<16x8xbf16, #tpu.memory_space<vmem>>, vector<16x8xbf16>
    %3 = vector.shape_cast %2 : vector<16x8xbf16> to vector<1x16x8xbf16>
    %4 = vector.shape_cast %3 : vector<1x16x8xbf16> to vector<1x16x8xbf16>
    %5 = vector.broadcast %4 : vector<1x16x8xbf16> to vector<16x16x8xbf16>
    %cst = arith.constant dense<0.000000e+00> : vector<16x16x128xf32>
    %6 = tpu.matmul %5, %1, %cst {dimension_numbers = #tpu.dot_dimension_numbers<[2], [1], [1], [2], [0, 0, 0, 1, 1, 2], [0], [0]>} : vector<16x16x8xbf16>, vector<16x8x128xbf16>, vector<16x16x128xf32> -> vector<16x16x128xf32>
    %7 = vector.shape_cast %6 : vector<16x16x128xf32> to vector<256x128xf32>
    %c0_5 = arith.constant 0 : index
    %c0_6 = arith.constant 0 : index
    %c0_7 = arith.constant 0 : index
    %8 = vector.load %arg3[%c0_5, %c0_6, %c0_7] : memref<1x256x128xbf16, #tpu.memory_space<vmem>>, vector<1x256x128xbf16>
    %9 = vector.shape_cast %8 : vector<1x256x128xbf16> to vector<256x128xbf16>
    %c0_8 = arith.constant 0 : index
    %c0_9 = arith.constant 0 : index
    %10 = vector.load %arg5[%c0_8, %c0_9] : memref<128x128xbf16, #tpu.memory_space<vmem>>, vector<128x128xbf16>
    %cst_10 = arith.constant dense<0.000000e+00> : vector<256x128xf32>
    %11 = tpu.matmul %9, %10, %cst_10 {dimension_numbers = #tpu.dot_dimension_numbers<[1], [0], [0], [1], [0, 0, 1, 1], [], []>} : vector<256x128xbf16>, vector<128x128xbf16>, vector<256x128xf32> -> vector<256x128xf32>
    %12 = arith.addf %7, %11 : vector<256x128xf32>
    %c0_11 = arith.constant 0 : index
    %c0_12 = arith.constant 0 : index
    %13 = vector.load %arg6[%c0_11, %c0_12] : memref<1x128xf32, #tpu.memory_space<vmem>>, vector<1x128xf32>
    %14 = vector.broadcast %13 : vector<1x128xf32> to vector<256x128xf32>
    %15 = arith.addf %12, %14 : vector<256x128xf32>
    %cst_13 = arith.constant 0.000000e+00 : f32
    %16 = vector.broadcast %cst_13 : f32 to vector<256x128xf32>
    %17 = arith.maximumf %15, %16 : vector<256x128xf32>
    %18 = arith.truncf %17 : vector<256x128xf32> to vector<256x128xbf16>
    %c0_14 = arith.constant 0 : index
    %c0_15 = arith.constant 0 : index
    %19 = vector.load %arg7[%c0_14, %c0_15] : memref<128x128xbf16, #tpu.memory_space<vmem>>, vector<128x128xbf16>
    %cst_16 = arith.constant dense<0.000000e+00> : vector<256x128xf32>
    %20 = tpu.matmul %18, %19, %cst_16 {dimension_numbers = #tpu.dot_dimension_numbers<[1], [0], [0], [1], [0, 0, 1, 1], [], []>} : vector<256x128xbf16>, vector<128x128xbf16>, vector<256x128xf32> -> vector<256x128xf32>
    %c0_17 = arith.constant 0 : index
    %c0_18 = arith.constant 0 : index
    %21 = vector.load %arg8[%c0_17, %c0_18] : memref<1x128xf32, #tpu.memory_space<vmem>>, vector<1x128xf32>
    %22 = vector.broadcast %21 : vector<1x128xf32> to vector<256x128xf32>
    %23 = arith.addf %20, %22 : vector<256x128xf32>
    %c0_19 = arith.constant 0 : index
    %c0_20 = arith.constant 0 : index
    %c0_21 = arith.constant 0 : index
    %24 = vector.load %arg9[%c0_19, %c0_20, %c0_21] : memref<1x256x128xf32, #tpu.memory_space<vmem>>, vector<1x256x128xf32>
    %25 = vector.shape_cast %24 : vector<1x256x128xf32> to vector<256x128xf32>
    %26 = vector.shape_cast %23 : vector<256x128xf32> to vector<1x256x128xf32>
    tpu.vector_store %arg9[%c0_19, %c0_20, %c0_21], %26 {strides = array<i32>} : memref<1x256x128xf32, #tpu.memory_space<vmem>>, vector<1x256x128xf32>,
    return
  }
  func.func @transform_0(%arg0: i32, %arg1: i32) -> (i32, i32, i32, i32) {
    %c0_i32 = arith.constant 0 : i32
    %c0_i32_0 = arith.constant 0 : i32
    %c0_i32_1 = arith.constant 0 : i32
    return %arg0, %arg1, %c0_i32, %c0_i32_0 : i32, i32, i32, i32
  }
  func.func @transform_1(%arg0: i32, %arg1: i32) -> (i32, i32, i32) {
    %c0_i32 = arith.constant 0 : i32
    %c0_i32_0 = arith.constant 0 : i32
    return %arg0, %arg1, %c0_i32 : i32, i32, i32
  }
  func.func @transform_2(%arg0: i32, %arg1: i32) -> (i32, i32) {
    %c0_i32 = arith.constant 0 : i32
    %c0_i32_0 = arith.constant 0 : i32
    %c0_i32_1 = arith.constant 0 : i32
    return %c0_i32, %c0_i32_0 : i32, i32
  }
  func.func @transform_3(%arg0: i32, %arg1: i32) -> (i32, i32) {
    %c0_i32 = arith.constant 0 : i32
    %c0_i32_0 = arith.constant 0 : i32
    %c0_i32_1 = arith.constant 0 : i32
    return %c0_i32, %c0_i32_0 : i32, i32
  }
  func.func @transform_4(%arg0: i32, %arg1: i32) -> (i32, i32) {
    %c0_i32 = arith.constant 0 : i32
    %c0_i32_0 = arith.constant 0 : i32
    %c0_i32_1 = arith.constant 0 : i32
    return %c0_i32, %c0_i32_0 : i32, i32
  }
  func.func @transform_5(%arg0: i32, %arg1: i32) -> (i32, i32) {
    %c0_i32 = arith.constant 0 : i32
    %c0_i32_0 = arith.constant 0 : i32
    %c0_i32_1 = arith.constant 0 : i32
    return %c0_i32, %c0_i32_0 : i32, i32
  }
  func.func @transform_6(%arg0: i32, %arg1: i32) -> (i32, i32) {
    %c0_i32 = arith.constant 0 : i32
    %c0_i32_0 = arith.constant 0 : i32
    %c0_i32_1 = arith.constant 0 : i32
    return %c0_i32, %c0_i32_0 : i32, i32
  }
  func.func @transform_7(%arg0: i32, %arg1: i32) -> (i32, i32, i32) {
    %c0_i32 = arith.constant 0 : i32
    %c0_i32_0 = arith.constant 0 : i32
    return %arg0, %arg1, %c0_i32 : i32, i32, i32
  }
}

module attributes {stable_mosaic.version = 11 : i64} {
  func.func @kernel(%arg0: i32, %arg1: i32, %arg2: memref<1x16x16xf32, #tpu.memory_space<vmem>>, %arg3: memref<32x16xbf16, #tpu.memory_space<vmem>>, %arg4: memref<16x32xbf16, #tpu.memory_space<vmem>>, %arg5: memref<1x32x32xf32, #tpu.memory_space<vmem>>) attributes {dimension_semantics = [#tpu.dimension_semantics<parallel>, #tpu.dimension_semantics<parallel>], iteration_bounds = array<i64: 4, 1>, scalar_prefetch = 0 : i64, scratch_operands = 0 : i64, tpu.core_type = #tpu.core_type<tc>, window_params = [{transform_indices = @transform_0, window_bounds = array<i64: 1, 16, 16>}, {transform_indices = @transform_1, window_bounds = array<i64: 32, 16>}, {pipeline_mode = #tpu.pipeline_mode<synchronous>, transform_indices = @transform_2, window_bounds = array<i64: 16, 32>}, {transform_indices = @transform_3, window_bounds = array<i64: 1, 32, 32>}]} {
    %c0 = arith.constant 0 : index
    %c0_0 = arith.constant 0 : index
    %c0_1 = arith.constant 0 : index
    %0 = vector.load %arg2[%c0, %c0_0, %c0_1] : memref<1x16x16xf32, #tpu.memory_space<vmem>>, vector<1x16x16xf32>
    %1 = vector.shape_cast %0 : vector<1x16x16xf32> to vector<16x16xf32>
    %2 = arith.truncf %1 : vector<16x16xf32> to vector<16x16xbf16>
    %c0_2 = arith.constant 0 : index
    %c0_3 = arith.constant 0 : index
    %3 = vector.load %arg3[%c0_2, %c0_3] : memref<32x16xbf16, #tpu.memory_space<vmem>>, vector<32x16xbf16>
    %cst = arith.constant dense<0.000000e+00> : vector<32x16xf32>
    %4 = tpu.matmul %3, %2, %cst {dimension_numbers = #tpu.dot_dimension_numbers<[1], [0], [0], [1], [0, 0, 1, 1], [], []>} : vector<32x16xbf16>, vector<16x16xbf16>, vector<32x16xf32> -> vector<32x16xf32>
    %5 = arith.truncf %4 : vector<32x16xf32> to vector<32x16xbf16>
    %c0_4 = arith.constant 0 : index
    %c0_5 = arith.constant 0 : index
    %6 = vector.load %arg4[%c0_4, %c0_5] : memref<16x32xbf16, #tpu.memory_space<vmem>>, vector<16x32xbf16>
    %cst_6 = arith.constant dense<0.000000e+00> : vector<32x32xf32>
    %7 = tpu.matmul %5, %6, %cst_6 {dimension_numbers = #tpu.dot_dimension_numbers<[1], [0], [0], [1], [0, 0, 1, 1], [], []>} : vector<32x16xbf16>, vector<16x32xbf16>, vector<32x32xf32> -> vector<32x32xf32>
    %c0_7 = arith.constant 0 : index
    %c0_8 = arith.constant 0 : index
    %c0_9 = arith.constant 0 : index
    %8 = vector.load %arg5[%c0_7, %c0_8, %c0_9] : memref<1x32x32xf32, #tpu.memory_space<vmem>>, vector<1x32x32xf32>
    %9 = vector.shape_cast %8 : vector<1x32x32xf32> to vector<32x32xf32>
    %10 = vector.shape_cast %7 : vector<32x32xf32> to vector<1x32x32xf32>
    tpu.vector_store %arg5[%c0_7, %c0_8, %c0_9], %10 {strides = array<i32>} : memref<1x32x32xf32, #tpu.memory_space<vmem>>, vector<1x32x32xf32>,
    return
  }
  func.func @transform_0(%arg0: i32, %arg1: i32) -> (i32, i32, i32) {
    %c0_i32 = arith.constant 0 : i32
    %c0_i32_0 = arith.constant 0 : i32
    %c0_i32_1 = arith.constant 0 : i32
    return %arg0, %c0_i32, %c0_i32_0 : i32, i32, i32
  }
  func.func @transform_1(%arg0: i32, %arg1: i32) -> (i32, i32) {
    %c0_i32 = arith.constant 0 : i32
    %c0_i32_0 = arith.constant 0 : i32
    return %arg1, %c0_i32 : i32, i32
  }
  func.func @transform_2(%arg0: i32, %arg1: i32) -> (i32, i32) {
    %c0_i32 = arith.constant 0 : i32
    %c0_i32_0 = arith.constant 0 : i32
    %c0_i32_1 = arith.constant 0 : i32
    return %c0_i32, %c0_i32_0 : i32, i32
  }
  func.func @transform_3(%arg0: i32, %arg1: i32) -> (i32, i32, i32) {
    %c0_i32 = arith.constant 0 : i32
    %c0_i32_0 = arith.constant 0 : i32
    return %arg0, %arg1, %c0_i32 : i32, i32, i32
  }
}

</mosaic_0001>

<bundles_post_ra>
// kernel: lavt_one_forward.12
= control target key start
LH: loop header
LB: loop body
LE: loop exit
PB: predicated region body
PF: predicated region fallthrough
CT: control target
= control target key end

     0   :  { %v223_v0 = vmov 0.0   ;;  %vm224_vm0 = vmmov 0   ;;  %vm51_vm1 = vcmask 261120   ;;  %vm174_vm2 = vcmask 257024   ;;  %s284_s1 = inlined_call_operand.vmem [shape: bf16[32,32], index: 1, kind: input, shape index: {}]   ;;  %s285_s0 = inlined_call_operand.vmem [shape: bf16[16,32], index: 0, kind: input, shape index: {}]   ;;  %s286_s3 = inlined_call_operand.vmem [shape: bf16[32,32], index: 3, kind: input, shape index: {}]   ;;  %s287_s2 = inlined_call_operand.vmem [shape: f32[1,32], index: 2, kind: input, shape index: {}]   ;;  %s288_s4 = inlined_call_operand.vmem [shape: f32[1,32], index: 4, kind: input, shape index: {}]   ;;  %s289_s5 = inlined_call_operand.vmem [shape: bf16[16,32], index: 5, kind: output, shape index: {}]  }
   0x1   :  { %200 = vmatprep.subr.bf16.mxu0 %v223_v0  ;;  %v218_v1 = vld [vmem:[%s284_s1] sm:$0xff]   ;;  %204 = vmatprep.mubr.msk.bf16.mxu0 %vm224_vm0, %v223_v0  ;;  %v219_v2 = vld [vmem:[%s284_s1 + $0x8] sm:$0xff]  }
   0x2   :  { %208 = vmatprep.subr.bf16.mxu1 %v223_v0  ;;  %212 = vmatprep.mubr.msk.bf16.mxu1 %vm224_vm0, %v223_v0  ;;  %v220_v3 = vld [vmem:[%s285_s0] sm:$0xff]   ;;  %v222_v5 = vld [vmem:[%s286_s3 + $0x8] sm:$0xff]  }
   0x3   :  { %201 = vmatpush3.bf16.msra.mxu0 %v218_v1  ;;  %v221_v4 = vld [vmem:[%s286_s3] sm:$0xff]  }
   0x4   :  { %202 = vmatprep.subr.bf16.mxu0 %v223_v0  ;;  %209 = vmatpush3.bf16.msra.mxu1 %v221_v4  ;;  %v181_v6 = vld [vmem:[%s287_s2] ss:$0 sm:$0xff] }
   0x5   :  { %210 = vmatprep.subr.bf16.mxu1 %v223_v0  ;;  %v186_v16 = vld [vmem:[%s288_s4] ss:$0 sm:$0xff] }
   0x7   :  { %203 = vmatpush3.bf16.msra.mxu0 %v219_v2 }
   0x8   :  { %211 = vmatpush3.bf16.msra.mxu1 %v222_v5 }
   0xa   :  { %205 = vmatmul.mubr.msk.bf16.vlgmr.msra.gmra.mrb[0].mxu0 %vm51_vm1, %v220_v3 }
  0xdd   :  { %v89_v7 = vpop.f32.mrb[0].mxu0 }
  0xde   :  { %v90_v8 = vadd.f32 %v181_v6, %v89_v7  ;;  %v206_v9 = vpop.f32.mrb[1].mxu0 }
  0xdf   :  { %v92_v10 = vpop.f32.mrb[2].mxu0 }
  0xe0   :  { %v93_v11 = vadd.f32 %v181_v6, %v92_v10  ;;  %v207_v12 = vpop.f32.mrb[3].mxu0  ;;  %v96_v13 = vmax.f32 %v90_v8, 0.0 }
  0xe2   :  { %v97_v14 = vmax.f32 %v93_v11, 0.0 }
  0xe4   :  { %v98_v15 = vpack.c.bf16 %v97_v14, %v96_v13 }
  0xe6   :  { %213 = vmatmul.mubr.msk.bf16.vlgmr.msra.gmra.mrb[0].mxu1 %vm51_vm1, %v98_v15 }
 0x1b9   :  { %v159_v17 = vpop.f32.mrb[0].mxu1 }
 0x1ba   :  { %v160_v18 = vadd.f32 %v186_v16, %v159_v17  ;;  %v214_v19 = vpop.f32.mrb[1].mxu1 }
 0x1bb   :  { %v162_v20 = vpop.f32.mrb[2].mxu1 }
 0x1bc   :  { %v192_v21 = vpack.c.bf16 %v160_v18, %v160_v18  ;;  %v163_v22 = vadd.f32 %v186_v16, %v162_v20  ;;  %v215_v23 = vpop.f32.mrb[3].mxu1 }
 0x1be   :  { %175 = vst.msk [vmem:[%s289_s5] sm:$0xf] %vm174_vm2, %v192_v21  ;;  %v193_v24 = vpack.c.bf16 %v163_v22, %v163_v22 }
 0x1c0   :  { %176 = vst.msk [vmem:[%s289_s5 + $0x4] sm:$0xf] %vm174_vm2, %v193_v24 }

// kernel: lavt_one_forward.17
= control target key start
LH: loop header
LB: loop body
LE: loop exit
PB: predicated region body
PF: predicated region fallthrough
CT: control target
= control target key end

     0   :  { %s455_s9 = smov 0   ;;  %s457_s10 = smov 0   ;;  %s491_s0 = inlined_call_operand.vmem [shape: bf16[2,2,256], index: 0, kind: input, shape index: {}]   ;;  %s492_s1 = inlined_call_operand.vmem [shape: bf16[4,2], index: 1, kind: input, shape index: {}]   ;;  %s493_s2 = inlined_call_operand.vmem [shape: bf16[2,4,256], index: 2, kind: output, shape index: {}]  }
   0x1   :  { %s459_s11 = smov 0  }
   0x2 LB: > { %s24_s12 = sadd.s32 1, %s432_s10  ;;  %p376_p0 = scmp.ge.s32.totalorder %s436_s11, 1  ;;  %s436_s11 = sphi %s459_s11, %s12_s11   ;;  %s432_s10 = sphi %s457_s10, %s495_s10   ;;  %s428_s9 = sphi %s455_s9, %s494_s9  }
   0x3   : > { %p26_p1 = scmp.ge.s32.totalorder %s24_s12, 2  ;;  %p134_p2 = scmp.lt.s32.totalorder %s436_s11, 3 }
   0x5   : > { %s497_s12 = smov (%p26_p1, %s24_s12), 0  ;;  %p135_p3 = pnand %p376_p0, %p134_p2 }
   0x6   : > { %p163_p4 = scmp.lt.s32.totalorder (!%p135_p3), %s428_s9, 1  ;;  %v195_v0 = vlaneseq (!%p135_p3)  ;;  %v438_v1 = vmov (!%p135_p3), 1966171168   ;;  %v439_v3 = vmov (!%p135_p3), 0   ;;  %vm210_vm0 = vcmask (!%p135_p3), 1040384  }
   0x7   : > { %138 = sbr.rel (%p135_p3) target bundleno = 242 (0xf2), region = 28  ;;  %v193_v2 = vunpack.c.l.s4 (!%p135_p3), %v438_v1  ;;  %249 = vmatprep.mubr.bf16.mxu0 (!%p135_p3), %v439_v3  ;;  %v181_v12 = vld [vmem:[%s492_s1] sm:$0x3] (!%p135_p3)  ;;  %vm206_vm1 = vcmask (!%p135_p3), 15360  }
   0x8   : > { %v196_v4 = vshrl.u32 (!%p135_p3), %v195_v0, 7 }
   0x9   : > { %v194_v5 = vunpack.c.0.s8 (!%p135_p3), %v193_v2 }
   0xb   : > { %v197_v6 = vsub.s32 (!%p135_p3), %v194_v5, %v196_v4 }
   0xe   : > { %s499_s9 = smov (!%p163_p4, %s428_s9), 1 }
   0xf   : > { %s377_s13 = sshll.u32 %s499_s9, 1  ;;  %s387_s19 = sshll.u32 %s499_s9, 2 }
  0x10   : > { %s166_s16 = scalar_lea.vmem %s491_s0, %s377_s13  ;;  %s179_s22 = scalar_lea.vmem %s493_s2, %s387_s19 }
  0x11   : > { %v380_v7 = vld.sshfl [vmem:[%s166_s16] sm:$0x11 pattern:$0x75316420] }
  0x12   : > { %v191_v8 = vcombine.high %v380_v7, %v380_v7  ;;  %v198_v9 = vrot.slane %v380_v7, %v197_v6 }
  0x14   : > { %v205_v10 = vrot.slane %v191_v8, %v197_v6  ;;  %v212_v11 = vsel %vm210_vm0, %v198_v9, 0 }
  0x16   : > { %381 = vmatprep.subr.msk.bf16.mxu0 %vm210_vm0, %v205_v10 }
  0x17   : > { %218 = vmatpush1.bf16.msra.mxu0 %v212_v11 }
  0x1a   : > { %382 = vmatmul.mubr.msk.bf16.vlgmr.msra.gmra.mrb[0].mxu0 %vm206_vm1, %v181_v12 }
  0xed   : > { %v251_v13 = vpop.f32.mrb[0].mxu0 }
  0xee   : > { %v253_v14 = vpop.f32.mrb[1].mxu0 }
  0xef   : > { %v383_v15 = vpack.c.bf16 %v253_v14, %v251_v13  ;;  %v255_v16 = vpop.f32.mrb[2].mxu0 }
  0xf0   : > { %v256_v17 = vpop.f32.mrb[3].mxu0 }
  0xf1   : > { %384 = vst.sshfl [vmem:[%s179_s22] sm:$0x33 pattern:$0x76325410] %v383_v15 }
  0xf2 PF: > { %s12_s11 = sadd.s32 1, %s436_s11   ;;  %s494_s9 = smov %s432_s10 }
  0xf3   : > { %p9_p5 = scmp.ge.s32.totalorder %s12_s11, 4   ;;  %s495_s10 = smov %s497_s12 }
  0xf5   :  { %11 = sbr.rel (!%p9_p5) target bundleno = 2 (0x2), region = 61 }

// kernel: lavt_one_forward.16
= control target key start
LH: loop header
LB: loop body
LE: loop exit
PB: predicated region body
PF: predicated region fallthrough
CT: control target
= control target key end

     0   :  { %s2240_s17 = smov 0   ;;  %s2242_s18 = smov 0   ;;  %s2605_s0 = inlined_call_operand.vmem [shape: bf16[2,4,768], index: 0, kind: input, shape index: {}]   ;;  %s2606_s1 = inlined_call_operand.vmem [shape: bf16[2,8,32], index: 1, kind: input, shape index: {}]   ;;  %s2607_s2 = inlined_call_operand.vmem [shape: f32[2,1,8], index: 2, kind: input, shape index: {}]   ;;  %s2608_s3 = inlined_call_operand.vmem [shape: bf16[768,128], index: 3, kind: input, shape index: {}]   ;;  %s2609_s4 = inlined_call_operand.vmem [shape: f32[1,128], index: 4, kind: input, shape index: {}]   ;;  %s2610_s5 = inlined_call_operand.vmem [shape: bf16[128,32], index: 5, kind: input, shape index: {}]   ;;  %s2611_s6 = inlined_call_operand.vmem [shape: bf16[32,160], index: 6, kind: input, shape index: {}]   ;;  %s2612_s7 = inlined_call_operand.vmem [shape: bf16[128,128], index: 7, kind: input, shape index: {}]   ;;  %s2613_s8 = inlined_call_operand.vmem [shape: bf16[128,128], index: 8, kind: input, shape index: {}]   ;;  %s2614_s9 = inlined_call_operand.vmem [shape: f32[1,128], index: 9, kind: input, shape index: {}]   ;;  %s2615_s10 = inlined_call_operand.vmem [shape: bf16[128,128], index: 10, kind: input, shape index: {}]   ;;  %s2616_s11 = inlined_call_operand.vmem [shape: bf16[2,4,128], index: 11, kind: output, shape index: {}]  }
   0x1   :  { %s2244_s19 = smov 0  }
   0x2 LB: > { %s33_s20 = sadd.s32 1, %s2169_s18  ;;  %p1733_p0 = scmp.ge.s32.totalorder %s2173_s19, 1  ;;  %s2173_s19 = sphi %s2244_s19, %s21_s19   ;;  %s2169_s18 = sphi %s2242_s18, %s2618_s18   ;;  %s2165_s17 = sphi %s2240_s17, %s2617_s17  }
   0x3   : > { %p35_p1 = scmp.ge.s32.totalorder %s33_s20, 2  ;;  %p374_p2 = scmp.lt.s32.totalorder %s2173_s19, 3 }
   0x5   : > { %s2620_s20 = smov (%p35_p1, %s33_s20), 0  ;;  %p375_p3 = pnand %p1733_p0, %p374_p2 }
   0x6   : > { %v2058_v0 = vld [vmem:[%s2608_s3 + $0x40] sm:$0xff] (!%p375_p3)   ;;  %v2062_v4 = vld [vmem:[%s2608_s3 + $0x48] sm:$0xff] (!%p375_p3)   ;;  %v2066_v8 = vld [vmem:[%s2608_s3 + $0x50] sm:$0xff] (!%p375_p3)   ;;  %p427_p4 = scmp.lt.s32.totalorder (!%p375_p3), %s2165_s17, 1  ;;  %v562_v27 = vlaneseq (!%p375_p3)  ;;  %v2175_v35 = vmov (!%p375_p3), 1983009808  }
   0x7   : > { %378 = sbr.rel (%p375_p3) target bundleno = 1914 (0x77a), region = 64  ;;  %v2059_v1 = vld [vmem:[%s2608_s3] sm:$0xff] (!%p375_p3)   ;;  %1830 = vmatprep.subr.bf16.mxu0 (!%p375_p3), %v2058_v0  ;;  %v2063_v5 = vld [vmem:[%s2608_s3 + $0x8] sm:$0xff] (!%p375_p3)   ;;  %v2067_v9 = vld [vmem:[%s2608_s3 + $0x10] sm:$0xff] (!%p375_p3)   ;;  %v560_v36 = vunpack.c.l.s4 (!%p375_p3), %v2175_v35  ;;  %v2176_v63 = vmov (!%p375_p3), 0.0   ;;  %vm1023_vm0 = vcmask (!%p375_p3), 261120  }
   0x8   : > { %v2060_v2 = vld [vmem:[%s2608_s3 + $0xc0] sm:$0xff] (!%p375_p3)   ;;  %1831 = vmatpush3.bf16.msra.mxu0 (!%p375_p3), %v2059_v1  ;;  %v2064_v6 = vld [vmem:[%s2608_s3 + $0xc8] sm:$0xff] (!%p375_p3)   ;;  %v2068_v10 = vld [vmem:[%s2608_s3 + $0xd0] sm:$0xff] (!%p375_p3)   ;;  %v563_v32 = vshrl.u32 (!%p375_p3), %v562_v27, 7  ;;  %vm2178_vm1 = vmmov (!%p375_p3), 0   ;;  %vm1250_vm2 = vcmask (!%p375_p3), 785408  }
   0x9   : > { %v2061_v3 = vld [vmem:[%s2608_s3 + $0x80] sm:$0xff] (!%p375_p3)   ;;  %1852 = vmatprep.subr.bf16.mxu1 (!%p375_p3), %v2060_v2  ;;  %1832 = vmatprep.subr.bf16.mxu0 (!%p375_p3), %v2062_v4  ;;  %v2065_v7 = vld [vmem:[%s2608_s3 + $0x88] sm:$0xff] (!%p375_p3)   ;;  %v2069_v11 = vld [vmem:[%s2608_s3 + $0x90] sm:$0xff] (!%p375_p3)   ;;  %v561_v38 = vunpack.c.0.s8 (!%p375_p3), %v560_v36  ;;  %v2177_v2 = vmov (!%p375_p3), 0   ;;  %vm1256_vm3 = vcmask (!%p375_p3), 1043456   ;;  %vm1231_vm4 = vcmask (!%p375_p3), 60416  }
   0xa   : > { %1853 = vmatpush3.bf16.msra.mxu1 (!%p375_p3), %v2061_v3  ;;  %v2070_v12 = vld [vmem:[%s2608_s3 + $0x58] sm:$0xff] (!%p375_p3)   ;;  %v2074_v16 = vld [vmem:[%s2608_s3 + $0x60] sm:$0xff] (!%p375_p3)   ;;  %v2078_v20 = vld [vmem:[%s2608_s3 + $0x68] sm:$0xff] (!%p375_p3)   ;;  %vm1252_vm5 = vcmask (!%p375_p3), 64512  }
   0xb   : > { %1854 = vmatprep.subr.bf16.mxu1 (!%p375_p3), %v2064_v6  ;;  %v2071_v13 = vld [vmem:[%s2608_s3 + $0x18] sm:$0xff] (!%p375_p3)   ;;  %v2075_v17 = vld [vmem:[%s2608_s3 + $0x20] sm:$0xff] (!%p375_p3)   ;;  %v2079_v21 = vld [vmem:[%s2608_s3 + $0x28] sm:$0xff] (!%p375_p3)   ;;  %v564_v40 = vsub.s32 (!%p375_p3), %v561_v38, %v563_v32 }
   0xc   : > { %1833 = vmatpush3.bf16.msra.mxu0 (!%p375_p3), %v2063_v5  ;;  %v2072_v14 = vld [vmem:[%s2608_s3 + $0xd8] sm:$0xff] (!%p375_p3)   ;;  %v2076_v18 = vld [vmem:[%s2608_s3 + $0xe0] sm:$0xff] (!%p375_p3)   ;;  %v2080_v22 = vld [vmem:[%s2608_s3 + $0xe8] sm:$0xff] (!%p375_p3)  }
   0xd   : > { %1834 = vmatprep.subr.bf16.mxu0 (!%p375_p3), %v2066_v8  ;;  %v2073_v15 = vld [vmem:[%s2608_s3 + $0x98] sm:$0xff] (!%p375_p3)   ;;  %v2077_v19 = vld [vmem:[%s2608_s3 + $0xa0] sm:$0xff] (!%p375_p3)   ;;  %v2081_v23 = vld [vmem:[%s2608_s3 + $0xa8] sm:$0xff] (!%p375_p3)  }
   0xe   : > { %1855 = vmatpush3.bf16.msra.mxu1 %v2065_v7  ;;  %s2622_s17 = smov (!%p427_p4, %s2165_s17), 1  ;;  %v2082_v24 = vld [vmem:[%s2608_s3 + $0x70] sm:$0xff]   ;;  %v2086_v29 = vld [vmem:[%s2608_s3 + $0x78] sm:$0xff]   ;;  %v2090_v37 = vld [vmem:[%s2608_s3 + $0x140] sm:$0xff]  }
   0xf   : > { %1856 = vmatprep.subr.bf16.mxu1 %v2068_v10  ;;  %s2028_s26 = smul.u32 12, %s2622_s17  ;;  %v2083_v25 = vld [vmem:[%s2608_s3 + $0x30] sm:$0xff]   ;;  %v2087_v30 = vld [vmem:[%s2608_s3 + $0x38] sm:$0xff]   ;;  %v2092_v45 = vld [vmem:[%s2608_s3 + $0x100] sm:$0xff]   ;;  %s1735_s28 = sshll.u32 %s2622_s17, 2 }
  0x10   : > { %1835 = vmatpush3.bf16.msra.mxu0 %v2067_v9  ;;  %v2084_v26 = vld [vmem:[%s2608_s3 + $0xf0] sm:$0xff]   ;;  %v2088_v31 = vld [vmem:[%s2608_s3 + $0xf8] sm:$0xff]   ;;  %v2093_v46 = vld [vmem:[%s2608_s3 + $0x148] sm:$0xff]   ;;  %s439_s13 = scalar_lea.vmem %s2606_s1, %s1735_s28  ;;  %s442_s16 = scalar_lea.vmem %s2607_s2, %s2622_s17 }
  0x11   : > { %1836 = vmatprep.subr.bf16.mxu0 %v2070_v12  ;;  %v2085_v28 = vld [vmem:[%s2608_s3 + $0xb0] sm:$0xff]   ;;  %s2355_s22 = scalar_lea.vmem %s2605_s0, %s2028_s26  ;;  %v2089_v34 = vld [vmem:[%s2608_s3 + $0xb8] sm:$0xff]   ;;  %v2094_v47 = vld [vmem:[%s2608_s3 + $0x108] sm:$0xff]   ;;  %s1736_s27 = sshll.u32 %s2622_s17, 1 }
  0x12   : > { %1857 = vmatpush3.bf16.msra.mxu1 %v2069_v11  ;;  %v451_v33 = vld [vmem:[%s2355_s22] sm:$0xff]  ;;  %v2095_v48 = vld [vmem:[%s2608_s3 + $0x150] sm:$0xff]   ;;  %v2097_v50 = vld [vmem:[%s2608_s3 + $0x158] sm:$0xff]   ;;  %s449_s26 = scalar_lea.vmem %s2616_s11, %s1736_s27 }
  0x13   : > { %1858 = vmatprep.subr.bf16.mxu1 %v2072_v14  ;;  %v558_v39 = vcombine.high %v451_v33, %v451_v33  ;;  %v565_v41 = vrot.slane %v451_v33, %v564_v40  ;;  %v2096_v49 = vld [vmem:[%s2608_s3 + $0x110] sm:$0xff]   ;;  %v1738_v51 = vld.sshfl [vmem:[%s2355_s22 + $0x8] sm:$0x33 pattern:$0x76325410]  ;;  %v2098_v53 = vld [vmem:[%s2608_s3 + $0x118] sm:$0xff]  }
  0x14   : > { %1837 = vmatpush3.bf16.msra.mxu0 %v2071_v13  ;;  %v582_v52 = vcombine.high %v1738_v51, %v1738_v51  ;;  %v2099_v54 = vld [vmem:[%s2608_s3 + $0x160] sm:$0xff]   ;;  %v2101_v56 = vld [vmem:[%s2608_s3 + $0x168] sm:$0xff]   ;;  %v2103_v58 = vld [vmem:[%s2608_s3 + $0x170] sm:$0xff]  }
  0x15   : > { %1838 = vmatprep.subr.bf16.mxu0 %v2074_v16  ;;  %v572_v42 = vrot.slane %v558_v39, %v564_v40  ;;  %v573_v43 = vcombine.high %v565_v41, %v565_v41  ;;  %v2100_v55 = vld [vmem:[%s2608_s3 + $0x120] sm:$0xff]   ;;  %v2102_v57 = vld [vmem:[%s2608_s3 + $0x128] sm:$0xff]   ;;  %v2104_v59 = vld [vmem:[%s2608_s3 + $0x130] sm:$0xff]  }
  0x16   : > { %1859 = vmatpush3.bf16.msra.mxu1 %v2073_v15  ;;  %v2105_v60 = vld [vmem:[%s2608_s3 + $0x178] sm:$0xff]   ;;  %v2107_v62 = vld [vmem:[%s2610_s5] sm:$0xff]   ;;  %v2108_v3 = vld [vmem:[%s2610_s5 + $0x8] sm:$0xff]  }
  0x17   : > { %1860 = vmatprep.subr.bf16.mxu1 %v2076_v18  ;;  %v574_v44 = vcombine.high %v572_v42, %v572_v42  ;;  %909 = vmatprep.mubr.bf16.mxu0 %v573_v43  ;;  %v2106_v61 = vld [vmem:[%s2608_s3 + $0x138] sm:$0xff]   ;;  %v2110_v0 = vld [vmem:[%s2611_s6] ss:$8 sps:$4 sm:$0xff]   ;;  %v2112_v1 = vld [vmem:[%s2611_s6 + $0x4] ss:$8 sps:$4 sm:$0xff]  }
  0x18   : > { %1839 = vmatpush3.bf16.msra.mxu0 %v2075_v17  ;;  %v2116_v4 = vld [vmem:[%s2611_s6 + $0x14] ss:$8 sps:$4 sm:$0xff]   ;;  %v2114_v5 = vld [vmem:[%s2611_s6 + $0x10] ss:$8 sps:$4 sm:$0xff]   ;;  %v998_v7 = vld [vmem:[%s439_s13] sm:$0xf] }
  0x19   : > { %1840 = vmatprep.subr.bf16.mxu0 %v2078_v20  ;;  %949 = vmatprep.mubr.bf16.mxu1 %v574_v44  ;;  %v2109_v6 = vld [vmem:[%s2610_s5 + $0x10] sm:$0xff]   ;;  %v2113_v8 = vld [vmem:[%s2610_s5 + $0x18] sm:$0xff]   ;;  %v2117_v9 = vld [vmem:[%s2610_s5 + $0x20] sm:$0xff]   ;;  %s2179_s13 = smov 96  }
  0x1a   : > { %1861 = vmatpush3.bf16.msra.mxu1 %v2077_v19  ;;  %v2118_v10 = vld [vmem:[%s2610_s5 + $0x28] sm:$0xff]   ;;  %v2119_v11 = vld [vmem:[%s2610_s5 + $0x30] sm:$0xff]   ;;  %v2120_v12 = vld [vmem:[%s2610_s5 + $0x38] sm:$0xff]  }
  0x1b   : > { %1862 = vmatprep.subr.bf16.mxu1 %v2080_v22  ;;  %v1737_v15 = vld [vmem:[%s2609_s4] ss:$0 sm:$0xff] }
  0x1c   : > { %1841 = vmatpush3.bf16.msra.mxu0 %v2079_v21 }
  0x1d   : > { %1842 = vmatprep.subr.bf16.mxu0 %v2082_v24 }
  0x1e   : > { %1863 = vmatpush3.bf16.msra.mxu1 %v2081_v23 }
  0x1f   : > { %1864 = vmatprep.subr.bf16.mxu1 %v2084_v26 }
  0x20   : > { %1843 = vmatpush3.bf16.msra.mxu0 %v2083_v25 }
  0x21   : > { %1844 = vmatprep.subr.bf16.mxu0 %v2086_v29 }
  0x22   : > { %1865 = vmatpush3.bf16.msra.mxu1 %v2085_v28 }
  0x23   : > { %1866 = vmatprep.subr.bf16.mxu1 %v2088_v31 }
  0x24   : > { %1845 = vmatpush3.bf16.msra.mxu0 %v2087_v30 }
  0x25   : > { %1874 = vmatprep.subr.bf16.mxu0 %v2090_v37 }
  0x26   : > { %1867 = vmatpush3.bf16.msra.mxu1 %v2089_v34 }
  0x27   : > { %910 = vmatmul.mubr.bf16.vlgmr.msra.gmra.mrb[0].mxu0 %v565_v41  ;;  %1936 = vmatprep.subr.bf16.mxu1 %v2176_v63 }
  0x28   : > { %1875 = vmatpush3.bf16.msra.mxu0 %v2092_v45  ;;  %989 = vmatprep.mubr.bf16.mxu0 %v582_v52 }
  0x29   : > { %950 = vmatmul.mubr.bf16.vlgmr.msra.gmra.mrb[0].mxu1 %v572_v42  ;;  %1876 = vmatprep.subr.bf16.mxu0 %v2093_v46 }
  0x2a   : > { %1937 = vmatpush3.bf16.msra.mxu1 %v2107_v62  ;;  %1952 = vmatprep.mubr.msk.bf16.mxu1 %vm2178_vm1, %v2176_v63 }
  0x2b   : > { %1938 = vmatprep.subr.bf16.mxu1 %v2176_v63 }
  0x2c   : > { %1877 = vmatpush3.bf16.msra.mxu0 %v2094_v47 }
  0x2d   : > { %1878 = vmatprep.subr.bf16.mxu0 %v2095_v48 }
  0x2e   : > { %1939 = vmatpush3.bf16.msra.mxu1 %v2108_v3  ;;  %v2124_v3 = vld [vmem:[%s2612_s7 + $0x18] sm:$0xff]  }
  0x2f   : > { %1940 = vmatprep.subr.bf16.mxu1 %v2176_v63 }
  0x30   : > { %1879 = vmatpush3.bf16.msra.mxu0 %v2096_v49 }
  0x31   : > { %1880 = vmatprep.subr.bf16.mxu0 %v2097_v50 }
  0x32   : > { %1941 = vmatpush3.bf16.msra.mxu1 %v2109_v6  ;;  %v2127_v6 = vld [vmem:[%s2612_s7 + $0x30] sm:$0xff]  }
  0x33   : > { %1942 = vmatprep.subr.bf16.mxu1 %v2176_v63 }
  0x34   : > { %1881 = vmatpush3.bf16.msra.mxu0 %v2098_v53 }
  0x35   : > { %1882 = vmatprep.subr.bf16.mxu0 %v2099_v54 }
  0x36   : > { %1943 = vmatpush3.bf16.msra.mxu1 %v2113_v8 }
  0x37   : > { %1944 = vmatprep.subr.bf16.mxu1 %v2176_v63 }
  0x38   : > { %1883 = vmatpush3.bf16.msra.mxu0 %v2100_v55 }
  0x39   : > { %1884 = vmatprep.subr.bf16.mxu0 %v2101_v56 }
  0x3a   : > { %1945 = vmatpush3.bf16.msra.mxu1 %v2117_v9 }
  0x3b   : > { %1946 = vmatprep.subr.bf16.mxu1 %v2176_v63 }
  0x3c   : > { %1885 = vmatpush3.bf16.msra.mxu0 %v2102_v57 }
  0x3d   : > { %1886 = vmatprep.subr.bf16.mxu0 %v2103_v58 }
  0x3e   : > { %1947 = vmatpush3.bf16.msra.mxu1 %v2118_v10 }
  0x3f   : > { %1948 = vmatprep.subr.bf16.mxu1 %v2176_v63 }
  0x40   : > { %1887 = vmatpush3.bf16.msra.mxu0 %v2104_v59 }
  0x41   : > { %1888 = vmatprep.subr.bf16.mxu0 %v2105_v60 }
  0x42   : > { %1949 = vmatpush3.bf16.msra.mxu1 %v2119_v11  ;;  %v2128_v11 = vld [vmem:[%s2612_s7 + $0x38] sm:$0xff]  }
  0x43   : > { %1950 = vmatprep.subr.bf16.mxu1 %v2176_v63 }
  0x44   : > { %1889 = vmatpush3.bf16.msra.mxu0 %v2106_v61 }
  0x45   : > { %1027 = vmatprep.subr.bf16.mxu0 %v2112_v1  ;;  %v2122_v1 = vld [vmem:[%s2612_s7 + $0x8] sm:$0xff]  }
  0x46   : > { %1951 = vmatpush3.bf16.msra.mxu1 %v2120_v12  ;;  %v2129_v12 = vld [vmem:[%s2613_s8] sm:$0xff]  }
  0x47   : > { %990 = vmatmul.mubr.bf16.vlgmr.msra.gmra.mrb[4].mxu0 %v1738_v51  ;;  %1968 = vmatprep.subr.bf16.mxu1 %v2176_v63  ;;  %v1801_v51 = vld [vmem:[%s442_s16] ss:$0 sm:$0xff] }
  0x48   : > { %1059 = vmatprep.mubr.bf16.mxu0 %v2177_v2  ;;  %1028 = vmatpush1.bf16.msra.mxu0 %v2110_v0  ;;  %v2121_v0 = vld [vmem:[%s2612_s7] sm:$0xff]   ;;  %v2123_v2 = vld [vmem:[%s2612_s7 + $0x10] sm:$0xff]  }
  0x49   : > { %1029 = vmatprep.subr.bf16.mxu0 %v2116_v4  ;;  %v2125_v4 = vld [vmem:[%s2612_s7 + $0x20] sm:$0xff]  }
  0x4c   : > { %1030 = vmatpush1.bf16.msra.mxu0 %v2114_v5  ;;  %v2126_v5 = vld [vmem:[%s2612_s7 + $0x28] sm:$0xff]  }
  0x4d   : > { %1956 = vmatprep.subr.bf16.mxu0 %v2176_v63 }
  0x4f   : > { %1791 = vmatmul.mubr.msk.bf16.vlgmr.msra.gmra.mrb[8].mxu0 %vm1023_vm0, %v998_v7 }
  0x50   : > { %1958 = vmatprep.mubr.msk.bf16.mxu0 %vm2178_vm1, %v2176_v63 }
  0xfa   : > { %v1846_v13 = vpop.f32.mrb[0].mxu0 }
  0xfb   : > { %v1847_v16 = vpop.f32.mrb[1].mxu0 }
  0xfc   : > { %v1868_v14 = vpop.f32.mrb[0].mxu1  ;;  %v1848_v18 = vadd.f32 %v1847_v16, %v1846_v13  ;;  %v1849_v19 = vpop.f32.mrb[2].mxu0  ;;  %v2130_v13 = vld [vmem:[%s2613_s8 + $0x8] sm:$0xff]  }
  0xfd   : > { %v1869_v17 = vpop.f32.mrb[1].mxu1  ;;  %v1850_v22 = vpop.f32.mrb[3].mxu0 }
  0xfe   : > { %v1870_v20 = vadd.f32 %v1869_v17, %v1868_v14  ;;  %v1871_v21 = vpop.f32.mrb[2].mxu1  ;;  %v912_v24 = vadd.f32 %v1848_v18, %v1737_v15  ;;  %v2131_v14 = vld [vmem:[%s2613_s8 + $0x10] sm:$0xff]   ;;  %v2132_v15 = vld [vmem:[%s2613_s8 + $0x18] sm:$0xff]   ;;  %v2134_v22 = vld [vmem:[%s2613_s8 + $0x28] sm:$0xff]  }
  0xff   : > { %v1872_v23 = vpop.f32.mrb[3].mxu1  ;;  %v2133_v21 = vld [vmem:[%s2613_s8 + $0x20] sm:$0xff]  }
 0x100   : > { %v952_v25 = vadd.f32 %v1870_v20, %v912_v24  ;;  %v2135_v23 = vld [vmem:[%s2613_s8 + $0x30] sm:$0xff]   ;;  %v2136_v24 = vld [vmem:[%s2613_s8 + $0x38] sm:$0xff]  }
 0x11a   : > { %v1890_v26 = vpop.f32.mrb[4].mxu0 }
 0x11b   : > { %v1891_v27 = vpop.f32.mrb[5].mxu0 }
 0x11c   : > { %v1892_v28 = vadd.f32 %v1891_v27, %v1890_v26  ;;  %v1893_v29 = vpop.f32.mrb[6].mxu0  ;;  %v2138_v26 = vld [vmem:[%s2615_s10 + $0x8] sm:$0xff]   ;;  %v2139_v27 = vld [vmem:[%s2615_s10 + $0x10] sm:$0xff]  }
 0x11d   : > { %v1894_v30 = vpop.f32.mrb[7].mxu0  ;;  %v2141_v29 = vld [vmem:[%s2615_s10 + $0x20] sm:$0xff]  }
 0x11e   : > { %v992_v31 = vadd.f32 %v1892_v28, %v952_v25  ;;  %v2137_v25 = vld [vmem:[%s2615_s10] sm:$0xff]   ;;  %v2140_v28 = vld [vmem:[%s2615_s10 + $0x18] sm:$0xff]   ;;  %v2142_v30 = vld [vmem:[%s2615_s10 + $0x28] sm:$0xff]  }
 0x120   : > { %v2474_v32 = vmax.f32 %v992_v31, 0.0 }
 0x122   : > { %v1070_v33 = vpack.c.bf16 %v2474_v32, %v2474_v32  ;;  %v1061_v34 = vpop.f32.mrb[8].mxu0 }
 0x123   : > { %v1068_v35 = vpack.c.bf16 %v1061_v34, %v1061_v34  ;;  %v1063_v36 = vpop.f32.mrb[9].mxu0 }
 0x124   : > { %1953 = vmatmul.mubr.bf16.vlgmr.msra.gmra.mrb[4].mxu1 %v1070_v33  ;;  %v1065_v37 = vpop.f32.mrb[10].mxu0  ;;  %v1069_v39 = vpack.c.bf16 %v1063_v36, %v1063_v36 }
 0x125   : > { %1984 = vmatprep.mubr.msk.bf16.mxu1 %vm2178_vm1, %v2176_v63  ;;  %v1180_v38 = vsel %vm1023_vm0, %v1068_v35, 0  ;;  %1246 = vrot.lane.b32.xlu1 %v1068_v35, %s2179_s13  ;;  %v1066_v40 = vpop.f32.mrb[11].mxu0 }
 0x126   : > { %1957 = vmatpush3.bf16.xpose.msra.mxu0 %v1180_v38  ;;  %1969 = vmatpush3.bf16.msra.mxu1 %v2121_v0  ;;  %v2143_v40 = vld [vmem:[%s2615_s10 + $0x30] sm:$0xff]  }
 0x127   : > { %1962 = vmatprep.subr.bf16.mxu0 %v2176_v63  ;;  %1970 = vmatprep.subr.bf16.mxu1 %v2176_v63 }
 0x129   : > { %1248 = vrot.lane.b32.xlu1 %v1069_v39, %s2179_s13 }
 0x12a   : > { %1971 = vmatpush3.bf16.msra.mxu1 %v2122_v1 }
 0x12b   : > { %1972 = vmatprep.subr.bf16.mxu1 %v2176_v63 }
 0x12e   : > { %1973 = vmatpush3.bf16.msra.mxu1 %v2123_v2 }
 0x12f   : > { %1974 = vmatprep.subr.bf16.mxu1 %v2176_v63 }
 0x132   : > { %1975 = vmatpush3.bf16.msra.mxu1 %v2124_v3 }
 0x133   : > { %1976 = vmatprep.subr.bf16.mxu1 %v2176_v63 }
 0x136   : > { %1977 = vmatpush3.bf16.msra.mxu1 %v2125_v4 }
 0x137   : > { %1978 = vmatprep.subr.bf16.mxu1 %v2176_v63 }
 0x13a   : > { %1979 = vmatpush3.bf16.msra.mxu1 %v2126_v5 }
 0x13b   : > { %1980 = vmatprep.subr.bf16.mxu1 %v2176_v63 }
 0x13e   : > { %1981 = vmatpush3.bf16.msra.mxu1 %v2127_v6 }
 0x13f   : > { %1982 = vmatprep.subr.bf16.mxu1 %v2176_v63 }
 0x142   : > { %1983 = vmatpush3.bf16.msra.mxu1 %v2128_v11 }
 0x143   : > { %2008 = vmatprep.subr.bf16.mxu1 %v2176_v63 }
 0x197   : > { %v1247_v41 = vpop.permute.xlu1 %1246 }
 0x19b   : > { %v1249_v42 = vpop.permute.xlu1 %1248 }
 0x19c   : > { %v1251_v43 = vsel %vm1250_vm2, %v1247_v41, %v1249_v42  ;;  %v2144_v41 = vld [vmem:[%s2615_s10 + $0x38] sm:$0xff]   ;;  %v1811_v42 = vld [vmem:[%s2614_s9] ss:$0 sm:$0xff] }
 0x19d   : > { %v1258_v47 = vsel %vm1256_vm3, %v1251_v43, 0 }
 0x1f7   : > { %v1169_v44 = vpop.f32.mrb[4].mxu1 }
 0x1f8   : > { %v1175_v45 = vpack.c.bf16 %v1169_v44, %v1169_v44  ;;  %v1954_v46 = vpop.f32.mrb[5].mxu1 }
 0x1f9   : > { %v1172_v48 = vpop.f32.mrb[6].mxu1 }
 0x1fa   : > { %v1955_v49 = vpop.f32.mrb[7].mxu1  ;;  %1959 = vmatmul.mubr.msk.bf16.vlgmr.msra.gmra.mrb[12].mxu0 %vm1023_vm0, %v1175_v45 }
 0x1fb   : > { %1963 = vmatpush3.bf16.msra.mxu0 %v1258_v47  ;;  %1964 = vmatprep.mubr.msk.bf16.mxu0 %vm2178_vm1, %v2176_v63 }
 0x1fc   : > { %1988 = vmatprep.subr.bf16.mxu0 %v2176_v63 }
 0x2cd   : > { %v1216_v50 = vpop.f32.mrb[12].mxu0 }
 0x2ce   : > { %v1222_v52 = vmul.f32 0.17677669, %v1216_v50  ;;  %v1960_v53 = vpop.f32.mrb[13].mxu0 }
 0x2cf   : > { %v1219_v54 = vpop.f32.mrb[14].mxu0 }
 0x2d0   : > { %v1961_v55 = vpop.f32.mrb[15].mxu0  ;;  %v1230_v56 = vadd.f32 %v1801_v51, %v1222_v52 }
 0x2d2   : > { %v1232_v57 = vsel %vm1231_vm4, %v1230_v56, -inf }
 0x2d3   : > { %1233 = vmax.xlane.f32.xlu0 %v1232_v57 }
 0x360   : > { %v1234_v58 = vpop.xlane.xlu0 %1233 }
 0x361   : > { %v1235_v59 = vsub.f32 %v1230_v56, %v1234_v58 }
 0x363   : > { %v1236_v60 = vmul.f32 1.442695, %v1235_v59 }
 0x365   : > { %2145 = vpow2.f32 %v1236_v60 }
 0x36f   : > { %v2146_v61 = vpop.eup %2145 }
 0x370   : > { %v1238_v62 = vsel %vm1231_vm4, %v2146_v61, 0.0 }
 0x371   : > { %1239 = vadd.xlane.f32.xlu0 %v1238_v62 }
 0x3fe   : > { %v1240_v7 = vpop.xlane.xlu0 %1239 }
 0x3ff   : > { %2147 = vrcp.f32 %v1240_v7 }
 0x409   : > { %v2148_v8 = vpop.eup %2147 }
 0x40a   : > { %v1242_v9 = vmul.f32 %v2148_v8, %v2146_v61 }
 0x40c   : > { %v1243_v10 = vpack.c.bf16 %v1242_v9, %v1242_v9 }
 0x40e   : > { %1965 = vmatmul.mubr.msk.bf16.vlgmr.msra.gmra.mrb[16].mxu0 %vm1252_vm5, %v1243_v10 }
 0x40f   : > { %2004 = vmatprep.mubr.msk.bf16.mxu0 %vm2178_vm1, %v2176_v63  ;;  %1989 = vmatpush3.bf16.msra.mxu0 %v2129_v12 }
 0x410   : > { %1990 = vmatprep.subr.bf16.mxu0 %v2176_v63 }
 0x413   : > { %1991 = vmatpush3.bf16.msra.mxu0 %v2130_v13 }
 0x414   : > { %1992 = vmatprep.subr.bf16.mxu0 %v2176_v63 }
 0x417   : > { %1993 = vmatpush3.bf16.msra.mxu0 %v2131_v14 }
 0x418   : > { %1994 = vmatprep.subr.bf16.mxu0 %v2176_v63 }
 0x41b   : > { %1995 = vmatpush3.bf16.msra.mxu0 %v2132_v15 }
 0x41c   : > { %1996 = vmatprep.subr.bf16.mxu0 %v2176_v63 }
 0x41f   : > { %1997 = vmatpush3.bf16.msra.mxu0 %v2133_v21 }
 0x420   : > { %1998 = vmatprep.subr.bf16.mxu0 %v2176_v63 }
 0x423   : > { %1999 = vmatpush3.bf16.msra.mxu0 %v2134_v22 }
 0x424   : > { %2000 = vmatprep.subr.bf16.mxu0 %v2176_v63 }
 0x427   : > { %2001 = vmatpush3.bf16.msra.mxu0 %v2135_v23 }
 0x428   : > { %2002 = vmatprep.subr.bf16.mxu0 %v2176_v63 }
 0x42b   : > { %2003 = vmatpush3.bf16.msra.mxu0 %v2136_v24 }
 0x4e1   : > { %v1294_v16 = vpop.f32.mrb[16].mxu0 }
 0x4e2   : > { %v1300_v17 = vpack.c.bf16 %v1294_v16, %v1294_v16  ;;  %v1966_v18 = vpop.f32.mrb[17].mxu0 }
 0x4e3   : > { %v1297_v19 = vpop.f32.mrb[18].mxu0 }
 0x4e4   : > { %v1967_v20 = vpop.f32.mrb[19].mxu0  ;;  %1985 = vmatmul.mubr.bf16.vlgmr.msra.gmra.mrb[8].mxu1 %v1300_v17 }
 0x4e5   : > { %2024 = vmatprep.mubr.msk.bf16.mxu1 %vm2178_vm1, %v2176_v63  ;;  %2009 = vmatpush3.bf16.msra.mxu1 %v2137_v25 }
 0x4e6   : > { %2010 = vmatprep.subr.bf16.mxu1 %v2176_v63 }
 0x4e9   : > { %2011 = vmatpush3.bf16.msra.mxu1 %v2138_v26 }
 0x4ea   : > { %2012 = vmatprep.subr.bf16.mxu1 %v2176_v63 }
 0x4ed   : > { %2013 = vmatpush3.bf16.msra.mxu1 %v2139_v27 }
 0x4ee   : > { %2014 = vmatprep.subr.bf16.mxu1 %v2176_v63 }
 0x4f1   : > { %2015 = vmatpush3.bf16.msra.mxu1 %v2140_v28 }
 0x4f2   : > { %2016 = vmatprep.subr.bf16.mxu1 %v2176_v63 }
 0x4f5   : > { %2017 = vmatpush3.bf16.msra.mxu1 %v2141_v29 }
 0x4f6   : > { %2018 = vmatprep.subr.bf16.mxu1 %v2176_v63 }
 0x4f9   : > { %2019 = vmatpush3.bf16.msra.mxu1 %v2142_v30 }
 0x4fa   : > { %2020 = vmatprep.subr.bf16.mxu1 %v2176_v63 }
 0x4fd   : > { %2021 = vmatpush3.bf16.msra.mxu1 %v2143_v40 }
 0x4fe   : > { %2022 = vmatprep.subr.bf16.mxu1 %v2176_v63 }
 0x501   : > { %2023 = vmatpush3.bf16.msra.mxu1 %v2144_v41 }
 0x5b7   : > { %v1399_v31 = vpop.f32.mrb[8].mxu1 }
 0x5b8   : > { %2149 = vtanh.f32 %v1399_v31  ;;  %v1986_v33 = vpop.f32.mrb[9].mxu1 }
 0x5b9   : > { %v1402_v34 = vpop.f32.mrb[10].mxu1 }
 0x5ba   : > { %v1987_v35 = vpop.f32.mrb[11].mxu1 }
 0x5c2   : > { %v2150_v36 = vpop.eup %2149 }
 0x5c3   : > { %v1406_v37 = vadd.f32 1.0, %v2150_v36 }
 0x5c5   : > { %v1407_v38 = vmul.f32 %v1406_v37, %v2474_v32 }
 0x5c7   : > { %v1408_v39 = vpack.c.bf16 %v1407_v38, %v1407_v38 }
 0x5c9   : > { %2005 = vmatmul.mubr.bf16.vlgmr.msra.gmra.mrb[20].mxu0 %v1408_v39 }
 0x69c   : > { %v1514_v32 = vpop.f32.mrb[20].mxu0 }
 0x69d   : > { %v1515_v43 = vadd.f32 %v1811_v42, %v1514_v32  ;;  %v2006_v44 = vpop.f32.mrb[21].mxu0 }
 0x69e   : > { %v1517_v45 = vpop.f32.mrb[22].mxu0 }
 0x69f   : > { %v1520_v46 = vmax.f32 %v1515_v43, 0.0  ;;  %v2007_v47 = vpop.f32.mrb[23].mxu0 }
 0x6a1   : > { %v1521_v48 = vpack.c.bf16 %v1520_v46, %v1520_v46 }
 0x6a3   : > { %2025 = vmatmul.mubr.bf16.vlgmr.msra.gmra.mrb[12].mxu1 %v1521_v48 }
 0x776   : > { %v1620_v63 = vpop.f32.mrb[12].mxu1 }
 0x777   : > { %v1626_v49 = vpack.c.bf16 %v1620_v63, %v1620_v63  ;;  %v2026_v50 = vpop.f32.mrb[13].mxu1 }
 0x778   : > { %v1623_v51 = vpop.f32.mrb[14].mxu1 }
 0x779   : > { %1627 = vst [vmem:[%s449_s26] sm:$0x3] %v1626_v49  ;;  %v2027_v52 = vpop.f32.mrb[15].mxu1 }
 0x77a PF: > { %s21_s19 = sadd.s32 1, %s2173_s19   ;;  %s2617_s17 = smov %s2169_s18 }
 0x77b   : > { %p18_p5 = scmp.ge.s32.totalorder %s21_s19, 4   ;;  %s2618_s18 = smov %s2620_s20 }
 0x77d   :  { %20 = sbr.rel (!%p18_p5) target bundleno = 2 (0x2), region = 100 }

// kernel: lavt_one_forward.15
= control target key start
LH: loop header
LB: loop body
LE: loop exit
PB: predicated region body
PF: predicated region fallthrough
CT: control target
= control target key end

     0   :  { %s1378_s27 = smov 0   ;;  %s1380_s28 = smov 0   ;;  %s1587_s0 = inlined_call_operand.vmem [shape: bf16[2,16,192], index: 0, kind: input, shape index: {}]   ;;  %s1588_s1 = inlined_call_operand.vmem [shape: bf16[2,8,32], index: 1, kind: input, shape index: {}]   ;;  %s1589_s2 = inlined_call_operand.vmem [shape: f32[2,1,8], index: 2, kind: input, shape index: {}]   ;;  %s1590_s3 = inlined_call_operand.vmem [shape: bf16[192,128], index: 3, kind: input, shape index: {}]   ;;  %s1591_s4 = inlined_call_operand.vmem [shape: f32[1,128], index: 4, kind: input, shape index: {}]   ;;  %s1592_s5 = inlined_call_operand.vmem [shape: bf16[128,32], index: 5, kind: input, shape index: {}]   ;;  %s1593_s6 = inlined_call_operand.vmem [shape: bf16[32,160], index: 6, kind: input, shape index: {}]   ;;  %s1594_s7 = inlined_call_operand.vmem [shape: bf16[128,128], index: 7, kind: input, shape index: {}]   ;;  %s1595_s8 = inlined_call_operand.vmem [shape: bf16[2,16,128], index: 8, kind: output, shape index: {}]  }
   0x1   :  { %s1382_s29 = smov 0  }
   0x2 LB: > { %s30_s30 = sadd.s32 1, %s1323_s28  ;;  %p1095_p0 = scmp.ge.s32.totalorder %s1327_s29, 1  ;;  %s1327_s29 = sphi %s1382_s29, %s18_s29   ;;  %s1323_s28 = sphi %s1380_s28, %s1597_s28   ;;  %s1319_s27 = sphi %s1378_s27, %s1596_s27  }
   0x3   : > { %p32_p1 = scmp.ge.s32.totalorder %s30_s30, 2  ;;  %p301_p2 = scmp.lt.s32.totalorder %s1327_s29, 3 }
   0x5   : > { %s1599_s30 = smov (%p32_p1, %s30_s30), 0  ;;  %p302_p3 = pnand %p1095_p0, %p301_p2 }
   0x6   : > { %v1256_v0 = vld [vmem:[%s1590_s3] sm:$0xff] (!%p302_p3)   ;;  %v1329_v1 = vmov (!%p302_p3), 0   ;;  %p352_p4 = scmp.lt.s32.totalorder (!%p302_p3), %s1319_s27, 1  ;;  %v1257_v2 = vld [vmem:[%s1590_s3 + $0x8] sm:$0xff] (!%p302_p3)   ;;  %v1330_v3 = vmov (!%p302_p3), 0.0   ;;  %v1258_v4 = vld [vmem:[%s1590_s3 + $0x10] sm:$0xff] (!%p302_p3)  }
   0x7   : > { %305 = sbr.rel (%p302_p3) target bundleno = 1475 (0x5c3), region = 52  ;;  %498 = vmatprep.subr.bf16.mxu0 (!%p302_p3), %v1329_v1  ;;  %1176 = vmatprep.subr.bf16.mxu1 (!%p302_p3), %v1330_v3  ;;  %v1259_v5 = vld [vmem:[%s1590_s3 + $0x18] sm:$0xff] (!%p302_p3)   ;;  %v1260_v6 = vld [vmem:[%s1590_s3 + $0x20] sm:$0xff] (!%p302_p3)   ;;  %vm494_vm0 = vcmask (!%p302_p3), 523264   ;;  %v1272_v9 = vld [vmem:[%s1592_s5 + $0x8] sm:$0xff] (!%p302_p3)   ;;  %vm566_vm1 = vcmask (!%p302_p3), 261120  }
   0x8   : > { %499 = vmatpush1.bf16.msra.mxu0 (!%p302_p3), %v1256_v0  ;;  %v1271_v8 = vld [vmem:[%s1592_s5] sm:$0xff] (!%p302_p3)   ;;  %v1261_v10 = vld [vmem:[%s1590_s3 + $0x28] sm:$0xff] (!%p302_p3)   ;;  %v1273_v11 = vld [vmem:[%s1592_s5 + $0x10] sm:$0xff] (!%p302_p3)   ;;  %vm1331_vm2 = vmmov (!%p302_p3), 0   ;;  %vm778_vm3 = vcmask (!%p302_p3), 64512   ;;  %s1332_s17 = smov (!%p302_p3), 96  }
   0x9   : > { %500 = vmatprep.subr.bf16.mxu0 (!%p302_p3), %v1329_v1  ;;  %1177 = vmatpush3.bf16.msra.mxu1 (!%p302_p3), %v1271_v8  ;;  %v1262_v12 = vld [vmem:[%s1590_s3 + $0x30] sm:$0xff] (!%p302_p3)   ;;  %v1274_v13 = vld [vmem:[%s1592_s5 + $0x18] sm:$0xff] (!%p302_p3)   ;;  %v1278_v15 = vld [vmem:[%s1592_s5 + $0x20] sm:$0xff] (!%p302_p3)   ;;  %vm808_vm4 = vcmask (!%p302_p3), 785408   ;;  %vm813_vm5 = vcmask (!%p302_p3), 1043456  }
   0xa   : > { %1178 = vmatprep.subr.bf16.mxu1 (!%p302_p3), %v1330_v3  ;;  %v1263_v14 = vld [vmem:[%s1590_s3 + $0x38] sm:$0xff] (!%p302_p3)   ;;  %v1264_v16 = vld [vmem:[%s1590_s3 + $0x40] sm:$0xff] (!%p302_p3)   ;;  %v1282_v17 = vld [vmem:[%s1592_s5 + $0x28] sm:$0xff] (!%p302_p3)   ;;  %1192 = vmatprep.mubr.msk.bf16.mxu1 (!%p302_p3), %vm1331_vm2, %v1330_v3 }
   0xb   : > { %v1265_v18 = vld [vmem:[%s1590_s3 + $0x48] sm:$0xff] (!%p302_p3)   ;;  %v1266_v19 = vld [vmem:[%s1590_s3 + $0x50] sm:$0xff] (!%p302_p3)   ;;  %v1267_v20 = vld [vmem:[%s1590_s3 + $0x58] sm:$0xff] (!%p302_p3)  }
   0xc   : > { %501 = vmatpush1.bf16.msra.mxu0 (!%p302_p3), %v1257_v2  ;;  %v1277_v21 = vld [vmem:[%s1593_s6 + $0x4] ss:$8 sps:$4 sm:$0xff] (!%p302_p3)   ;;  %v1275_v23 = vld [vmem:[%s1593_s6] ss:$8 sps:$4 sm:$0xff] (!%p302_p3)   ;;  %v1281_v24 = vld [vmem:[%s1593_s6 + $0x14] ss:$8 sps:$4 sm:$0xff] (!%p302_p3)  }
   0xd   : > { %502 = vmatprep.subr.bf16.mxu0 (!%p302_p3), %v1329_v1  ;;  %1179 = vmatpush3.bf16.msra.mxu1 (!%p302_p3), %v1272_v9  ;;  %v1279_v25 = vld [vmem:[%s1593_s6 + $0x10] ss:$8 sps:$4 sm:$0xff] (!%p302_p3)   ;;  %v1101_v29 = vld [vmem:[%s1591_s4] ss:$0 sm:$0xff] (!%p302_p3) }
   0xe   : > { %s1601_s27 = smov (!%p352_p4, %s1319_s27), 1  ;;  %1180 = vmatprep.subr.bf16.mxu1 %v1330_v3  ;;  %v1283_v27 = vld [vmem:[%s1592_s5 + $0x30] sm:$0xff]   ;;  %v1284_v28 = vld [vmem:[%s1592_s5 + $0x38] sm:$0xff]   ;;  %v1285_v9 = vld [vmem:[%s1594_s7] sm:$0xff]  }
   0xf   : > { %s1145_s15 = sshll.u32 %s1601_s27, 4  ;;  %s1098_s21 = sshll.u32 %s1601_s27, 2 }
  0x10   : > { %503 = vmatpush1.bf16.msra.mxu0 %v1258_v4  ;;  %s1418_s20 = scalar_lea.vmem %s1587_s0, %s1145_s15  ;;  %s365_s25 = scalar_lea.vmem %s1588_s1, %s1098_s21 }
  0x11   : > { %504 = vmatprep.subr.bf16.mxu0 %v1329_v1  ;;  %v1270_v7 = vld [vmem:[%s1418_s20 + $0x4] ss:$8 sps:$4 sm:$0xff]   ;;  %1181 = vmatpush3.bf16.msra.mxu1 %v1273_v11  ;;  %v1268_v22 = vld [vmem:[%s1418_s20] ss:$8 sps:$4 sm:$0xff]   ;;  %s368_s16 = scalar_lea.vmem %s1589_s2, %s1601_s27  ;;  %v1287_v11 = vld [vmem:[%s1594_s7 + $0x10] sm:$0xff]  }
  0x12   : > { %1116 = vmatprep.mubr.msk.bf16.mxu0 %vm494_vm0, %v1270_v7  ;;  %1182 = vmatprep.subr.bf16.mxu1 %v1330_v3  ;;  %v541_v26 = vld [vmem:[%s365_s25] sm:$0xf] }
  0x13   : > { %v1131_v51 = vld [vmem:[%s368_s16] ss:$0 sm:$0xff]  ;;  %s1146_s16 = sshll.u32 %s1601_s27, 3 }
  0x14   : > { %505 = vmatpush1.bf16.msra.mxu0 %v1259_v5  ;;  %s377_s19 = scalar_lea.vmem %s1595_s8, %s1146_s16 }
  0x15   : > { %506 = vmatprep.subr.bf16.mxu0 %v1329_v1  ;;  %1183 = vmatpush3.bf16.msra.mxu1 %v1274_v13  ;;  %v1289_v13 = vld [vmem:[%s1594_s7 + $0x20] sm:$0xff]  }
  0x16   : > { %1184 = vmatprep.subr.bf16.mxu1 %v1330_v3 }
  0x18   : > { %507 = vmatpush1.bf16.msra.mxu0 %v1260_v6 }
  0x19   : > { %508 = vmatprep.subr.bf16.mxu0 %v1329_v1  ;;  %1185 = vmatpush3.bf16.msra.mxu1 %v1278_v15  ;;  %v1291_v15 = vld [vmem:[%s1594_s7 + $0x30] sm:$0xff]  }
  0x1a   : > { %1186 = vmatprep.subr.bf16.mxu1 %v1330_v3 }
  0x1c   : > { %509 = vmatpush1.bf16.msra.mxu0 %v1261_v10  ;;  %v1286_v10 = vld [vmem:[%s1594_s7 + $0x8] sm:$0xff]  }
  0x1d   : > { %510 = vmatprep.subr.bf16.mxu0 %v1329_v1  ;;  %1187 = vmatpush3.bf16.msra.mxu1 %v1282_v17 }
  0x1e   : > { %1188 = vmatprep.subr.bf16.mxu1 %v1330_v3 }
  0x20   : > { %511 = vmatpush1.bf16.msra.mxu0 %v1262_v12  ;;  %v1288_v12 = vld [vmem:[%s1594_s7 + $0x18] sm:$0xff]  }
  0x21   : > { %512 = vmatprep.subr.bf16.mxu0 %v1329_v1  ;;  %1189 = vmatpush3.bf16.msra.mxu1 %v1283_v27 }
  0x22   : > { %1190 = vmatprep.subr.bf16.mxu1 %v1330_v3 }
  0x24   : > { %513 = vmatpush1.bf16.msra.mxu0 %v1263_v14  ;;  %v1290_v14 = vld [vmem:[%s1594_s7 + $0x28] sm:$0xff]  }
  0x25   : > { %514 = vmatprep.subr.bf16.mxu0 %v1329_v1  ;;  %1191 = vmatpush3.bf16.msra.mxu1 %v1284_v28 }
  0x26   : > { %1196 = vmatprep.subr.bf16.mxu1 %v1330_v3 }
  0x28   : > { %515 = vmatpush1.bf16.msra.mxu0 %v1264_v16 }
  0x29   : > { %516 = vmatprep.subr.bf16.mxu0 %v1329_v1 }
  0x2c   : > { %517 = vmatpush1.bf16.msra.mxu0 %v1265_v18 }
  0x2d   : > { %518 = vmatprep.subr.bf16.mxu0 %v1329_v1 }
  0x30   : > { %519 = vmatpush1.bf16.msra.mxu0 %v1266_v19 }
  0x31   : > { %520 = vmatprep.subr.bf16.mxu0 %v1329_v1 }
  0x34   : > { %521 = vmatpush1.bf16.msra.mxu0 %v1267_v20 }
  0x35   : > { %570 = vmatprep.subr.bf16.mxu0 %v1277_v21 }
  0x37   : > { %531 = vmatmul.mubr.bf16.vlgmr.msra.gmra.mrb[0].mxu0 %v1268_v22 }
  0x38   : > { %571 = vmatpush1.bf16.msra.mxu0 %v1275_v23  ;;  %602 = vmatprep.mubr.bf16.mxu0 %v1329_v1 }
  0x39   : > { %572 = vmatprep.subr.bf16.mxu0 %v1281_v24 }
  0x3c   : > { %573 = vmatpush1.bf16.msra.mxu0 %v1279_v25 }
  0x3d   : > { %1202 = vmatprep.subr.bf16.mxu0 %v1330_v3 }
  0x3f   : > { %1121 = vmatmul.mubr.msk.bf16.vlgmr.msra.gmra.mrb[4].mxu0 %vm566_vm1, %v541_v26 }
  0x40   : > { %1204 = vmatprep.mubr.msk.bf16.mxu0 %vm1331_vm2, %v1330_v3 }
 0x10a   : > { %v532_v30 = vpop.f32.mrb[0].mxu0 }
 0x10b   : > { %v1513_v31 = vadd.f32 %v1101_v29, %v532_v30  ;;  %v534_v32 = vpop.f32.mrb[1].mxu0 }
 0x10c   : > { %v535_v33 = vpop.f32.mrb[2].mxu0 }
 0x10d   : > { %v1515_v34 = vadd.f32 %v1101_v29, %v535_v33  ;;  %v537_v35 = vpop.f32.mrb[3].mxu0  ;;  %v539_v36 = vmax.f32 %v1513_v31, 0.0 }
 0x10f   : > { %v540_v37 = vmax.f32 %v1515_v34, 0.0 }
 0x111   : > { %v613_v38 = vpack.c.bf16 %v540_v37, %v539_v36 }
 0x112   : > { %v604_v39 = vpop.f32.mrb[4].mxu0 }
 0x113   : > { %1193 = vmatmul.mubr.bf16.vlgmr.msra.gmra.mrb[0].mxu1 %v613_v38  ;;  %v611_v40 = vpack.c.bf16 %v604_v39, %v604_v39  ;;  %v606_v41 = vpop.f32.mrb[5].mxu0 }
 0x114   : > { %v608_v42 = vpop.f32.mrb[6].mxu0  ;;  %1198 = vmatprep.mubr.msk.bf16.mxu1 %vm1331_vm2, %v1330_v3  ;;  %v612_v8 = vpack.c.bf16 %v606_v41, %v606_v41 }
 0x115   : > { %v724_v43 = vsel %vm566_vm1, %v611_v40, 0  ;;  %v609_v44 = vpop.f32.mrb[7].mxu0 }
 0x116   : > { %1197 = vmatpush3.bf16.xpose.msra.mxu1 %v724_v43 }
 0x117   : > { %1208 = vmatprep.subr.bf16.mxu1 %v1330_v3 }
 0x1e6   : > { %v712_v45 = vpop.f32.mrb[0].mxu1 }
 0x1e7   : > { %v1194_v46 = vpop.f32.mrb[1].mxu1 }
 0x1e8   : > { %v715_v47 = vpop.f32.mrb[2].mxu1 }
 0x1e9   : > { %v719_v48 = vpack.c.bf16 %v715_v47, %v712_v45  ;;  %v1195_v49 = vpop.f32.mrb[3].mxu1 }
 0x1eb   : > { %1199 = vmatmul.mubr.msk.bf16.vlgmr.msra.gmra.mrb[4].mxu1 %vm566_vm1, %v719_v48 }
 0x1ec   : > { %1224 = vmatprep.mubr.msk.bf16.mxu1 %vm1331_vm2, %v1330_v3  ;;  %1209 = vmatpush3.bf16.msra.mxu1 %v1285_v9 }
 0x1ed   : > { %1210 = vmatprep.subr.bf16.mxu1 %v1330_v3 }
 0x1f0   : > { %1211 = vmatpush3.bf16.msra.mxu1 %v1286_v10 }
 0x1f1   : > { %1212 = vmatprep.subr.bf16.mxu1 %v1330_v3 }
 0x1f4   : > { %1213 = vmatpush3.bf16.msra.mxu1 %v1287_v11 }
 0x1f5   : > { %1214 = vmatprep.subr.bf16.mxu1 %v1330_v3 }
 0x1f8   : > { %1215 = vmatpush3.bf16.msra.mxu1 %v1288_v12 }
 0x1f9   : > { %1216 = vmatprep.subr.bf16.mxu1 %v1330_v3 }
 0x1fc   : > { %1217 = vmatpush3.bf16.msra.mxu1 %v1289_v13 }
 0x1fd   : > { %1218 = vmatprep.subr.bf16.mxu1 %v1330_v3 }
 0x200   : > { %1219 = vmatpush3.bf16.msra.mxu1 %v1290_v14 }
 0x201   : > { %1220 = vmatprep.subr.bf16.mxu1 %v1330_v3 }
 0x204   : > { %1221 = vmatpush3.bf16.msra.mxu1 %v1291_v15 }
 0x205   : > { %1222 = vmatprep.subr.bf16.mxu1 %v1330_v3  ;;  %v1292_v3 = vld [vmem:[%s1594_s7 + $0x38] sm:$0xff]  }
 0x208   : > { %1223 = vmatpush3.bf16.msra.mxu1 %v1292_v3 }
 0x2be   : > { %v760_v50 = vpop.f32.mrb[4].mxu1 }
 0x2bf   : > { %v767_v52 = vmul.f32 0.17677669, %v760_v50  ;;  %v1200_v53 = vpop.f32.mrb[5].mxu1 }
 0x2c0   : > { %v763_v54 = vpop.f32.mrb[6].mxu1 }
 0x2c1   : > { %v768_v55 = vmul.f32 0.17677669, %v763_v54  ;;  %v1201_v56 = vpop.f32.mrb[7].mxu1  ;;  %v776_v57 = vadd.f32 %v1131_v51, %v767_v52 }
 0x2c3   : > { %v779_v58 = vsel %vm778_vm3, %v776_v57, -inf  ;;  %v777_v59 = vadd.f32 %v1131_v51, %v768_v55 }
 0x2c4   : > { %780 = vmax.xlane.f32.xlu0 %v779_v58 }
 0x2c5   : > { %v782_v60 = vsel %vm778_vm3, %v777_v59, -inf }
 0x2c8   : > { %783 = vmax.xlane.f32.xlu0 %v782_v60 }
 0x2de   : > { %804 = vrot.lane.b32.xlu0 %v611_v40, %s1332_s17 }
 0x351   : > { %v781_v61 = vpop.xlane.xlu0 %780 }
 0x352   : > { %v785_v62 = vsub.f32 %v776_v57, %v781_v61 }
 0x354   : > { %v787_v63 = vmul.f32 1.442695, %v785_v62 }
 0x355   : > { %v784_v0 = vpop.xlane.xlu0 %783 }
 0x356   : > { %1293 = vpow2.f32 %v787_v63  ;;  %v786_v1 = vsub.f32 %v777_v59, %v784_v0 }
 0x358   : > { %v789_v2 = vmul.f32 1.442695, %v786_v1 }
 0x359   : > { %v805_v18 = vpop.permute.xlu0 %804 }
 0x35a   : > { %1295 = vpow2.f32 %v789_v2 }
 0x360   : > { %v1294_v4 = vpop.eup %1293 }
 0x361   : > { %v791_v5 = vsel %vm778_vm3, %v1294_v4, 0.0 }
 0x362   : > { %792 = vadd.xlane.f32.xlu1 %v791_v5 }
 0x364   : > { %v1296_v6 = vpop.eup %1295 }
 0x365   : > { %v794_v7 = vsel %vm778_vm3, %v1296_v6, 0.0 }
 0x366   : > { %795 = vadd.xlane.f32.xlu1 %v794_v7 }
 0x377   : > { %806 = vrot.lane.b32.xlu1 %v612_v8, %s1332_s17 }
 0x3ef   : > { %v793_v16 = vpop.xlane.xlu1 %792 }
 0x3f0   : > { %1297 = vrcp.f32 %v793_v16 }
 0x3f3   : > { %v796_v17 = vpop.xlane.xlu1 %795 }
 0x3f4   : > { %1299 = vrcp.f32 %v796_v17 }
 0x3f7   : > { %v807_v19 = vpop.permute.xlu1 %806 }
 0x3f8   : > { %v809_v20 = vsel %vm808_vm4, %v805_v18, %v807_v19 }
 0x3f9   : > { %v815_v21 = vsel %vm813_vm5, %v809_v20, 0 }
 0x3fa   : > { %1203 = vmatpush3.bf16.msra.mxu0 %v815_v21  ;;  %v1298_v22 = vpop.eup %1297 }
 0x3fb   : > { %v799_v24 = vmul.f32 %v1298_v22, %v1294_v4 }
 0x3fe   : > { %v1300_v23 = vpop.eup %1299 }
 0x3ff   : > { %v800_v25 = vmul.f32 %v1300_v23, %v1296_v6 }
 0x401   : > { %v801_v26 = vpack.c.bf16 %v800_v25, %v799_v24 }
 0x403   : > { %1205 = vmatmul.mubr.msk.bf16.vlgmr.msra.gmra.mrb[8].mxu0 %vm778_vm3, %v801_v26 }
 0x4d6   : > { %v851_v27 = vpop.f32.mrb[8].mxu0 }
 0x4d7   : > { %v1206_v28 = vpop.f32.mrb[9].mxu0 }
 0x4d8   : > { %v854_v29 = vpop.f32.mrb[10].mxu0 }
 0x4d9   : > { %v858_v30 = vpack.c.bf16 %v854_v29, %v851_v27  ;;  %v1207_v32 = vpop.f32.mrb[11].mxu0 }
 0x4db   : > { %1225 = vmatmul.mubr.bf16.vlgmr.msra.gmra.mrb[8].mxu1 %v858_v30 }
 0x5ae   : > { %v957_v33 = vpop.f32.mrb[8].mxu1 }
 0x5af   : > { %1301 = vtanh.f32 %v957_v33  ;;  %v1226_v35 = vpop.f32.mrb[9].mxu1 }
 0x5b0   : > { %v960_v38 = vpop.f32.mrb[10].mxu1 }
 0x5b1   : > { %1303 = vtanh.f32 %v960_v38  ;;  %v1227_v39 = vpop.f32.mrb[11].mxu1 }
 0x5b9   : > { %v1302_v40 = vpop.eup %1301 }
 0x5ba   : > { %v966_v41 = vadd.f32 1.0, %v1302_v40 }
 0x5bb   : > { %v1304_v42 = vpop.eup %1303 }
 0x5bc   : > { %v967_v43 = vadd.f32 1.0, %v1304_v42  ;;  %v968_v44 = vmul.f32 %v966_v41, %v539_v36 }
 0x5be   : > { %v969_v45 = vmul.f32 %v967_v43, %v540_v37 }
 0x5c0   : > { %v1152_v46 = vpack.c.bf16 %v969_v45, %v968_v44 }
 0x5c2   : > { %1153 = vst [vmem:[%s377_s19] sm:$0xff] %v1152_v46  }
 0x5c3 PF: > { %s18_s29 = sadd.s32 1, %s1327_s29   ;;  %s1596_s27 = smov %s1323_s28 }
 0x5c4   : > { %p15_p5 = scmp.ge.s32.totalorder %s18_s29, 4   ;;  %s1597_s28 = smov %s1599_s30 }
 0x5c6   :  { %17 = sbr.rel (!%p15_p5) target bundleno = 2 (0x2), region = 88 }

// kernel: lavt_one_forward.18
= control target key start
LH: loop header
LB: loop body
LE: loop exit
PB: predicated region body
PF: predicated region fallthrough
CT: control target
= control target key end

     0   :  { %s1112_s21 = smov 0   ;;  %s1114_s22 = smov 0   ;;  %s1253_s0 = inlined_call_operand.vmem [shape: bf16[2,4,2,128], index: 0, kind: input, shape index: {}]   ;;  %s1254_s1 = inlined_call_operand.vmem [shape: bf16[2,16,128], index: 1, kind: input, shape index: {}]   ;;  %s1255_s2 = inlined_call_operand.vmem [shape: bf16[4,2], index: 2, kind: input, shape index: {}]   ;;  %s1256_s3 = inlined_call_operand.vmem [shape: bf16[128,128], index: 3, kind: input, shape index: {}]   ;;  %s1257_s4 = inlined_call_operand.vmem [shape: f32[1,128], index: 4, kind: input, shape index: {}]   ;;  %s1258_s5 = inlined_call_operand.vmem [shape: bf16[128,128], index: 5, kind: input, shape index: {}]   ;;  %s1259_s6 = inlined_call_operand.vmem [shape: bf16[2,16,128], index: 6, kind: output, shape index: {}]  }
   0x1   :  { %s1116_s23 = smov 0  }
   0x2 LB: > { %s28_s24 = sadd.s32 1, %s1069_s22  ;;  %p877_p0 = scmp.ge.s32.totalorder %s1073_s23, 1  ;;  %s1073_s23 = sphi %s1116_s23, %s16_s23   ;;  %s1069_s22 = sphi %s1114_s22, %s1261_s22   ;;  %s1065_s21 = sphi %s1112_s21, %s1260_s21  }
   0x3   : > { %p30_p1 = scmp.ge.s32.totalorder %s28_s24, 2  ;;  %p249_p2 = scmp.lt.s32.totalorder %s1073_s23, 3 }
   0x5   : > { %s1263_s24 = smov (%p30_p1, %s28_s24), 0  ;;  %p250_p3 = pnand %p877_p0, %p249_p2 }
   0x6   : > { %p296_p4 = scmp.lt.s32.totalorder (!%p250_p3), %s1065_s21, 1  ;;  %v1075_v0 = vmov (!%p250_p3), 0.0   ;;  %vm1076_vm0 = vmmov (!%p250_p3), 0   ;;  %vm334_vm1 = vcmask (!%p250_p3), 1040384   ;;  %v329_v2 = vld [vmem:[%s1255_s2] sm:$0x3] (!%p250_p3) }
   0x7   : > { %253 = sbr.rel (%p250_p3) target bundleno = 505 (0x1f9), region = 44  ;;  %944 = vmatprep.subr.bf16.mxu0 (!%p250_p3), %v1075_v0  ;;  %946 = vmatprep.mubr.msk.bf16.mxu0 (!%p250_p3), %vm1076_vm0, %v1075_v0  ;;  %vm330_vm2 = vcmask (!%p250_p3), 15360   ;;  %v1034_v10 = vld [vmem:[%s1256_s3] sm:$0xff] (!%p250_p3)   ;;  %v1035_v11 = vld [vmem:[%s1256_s3 + $0x8] sm:$0xff] (!%p250_p3)   ;;  %v1036_v12 = vld [vmem:[%s1256_s3 + $0x10] sm:$0xff] (!%p250_p3)  }
   0x8   : > { %950 = vmatprep.subr.bf16.mxu1 (!%p250_p3), %v1075_v0  ;;  %952 = vmatprep.mubr.msk.bf16.mxu1 (!%p250_p3), %vm1076_vm0, %v1075_v0  ;;  %v1037_v13 = vld [vmem:[%s1256_s3 + $0x18] sm:$0xff] (!%p250_p3)   ;;  %v1038_v14 = vld [vmem:[%s1256_s3 + $0x20] sm:$0xff] (!%p250_p3)   ;;  %v1039_v15 = vld [vmem:[%s1256_s3 + $0x28] sm:$0xff] (!%p250_p3)  }
   0x9   : > { %v1040_v16 = vld [vmem:[%s1256_s3 + $0x30] sm:$0xff] (!%p250_p3)   ;;  %v1041_v17 = vld [vmem:[%s1256_s3 + $0x38] sm:$0xff] (!%p250_p3)   ;;  %v1043_v19 = vld [vmem:[%s1258_s5] sm:$0xff] (!%p250_p3)  }
   0xa   : > { %v1044_v20 = vld [vmem:[%s1258_s5 + $0x8] sm:$0xff] (!%p250_p3)   ;;  %v1045_v21 = vld [vmem:[%s1258_s5 + $0x10] sm:$0xff] (!%p250_p3)   ;;  %v1046_v22 = vld [vmem:[%s1258_s5 + $0x18] sm:$0xff] (!%p250_p3)  }
   0xb   : > { %v1047_v23 = vld [vmem:[%s1258_s5 + $0x20] sm:$0xff] (!%p250_p3)   ;;  %v1048_v24 = vld [vmem:[%s1258_s5 + $0x28] sm:$0xff] (!%p250_p3)   ;;  %v1049_v25 = vld [vmem:[%s1258_s5 + $0x30] sm:$0xff] (!%p250_p3)  }
   0xc   : > { %v1050_v26 = vld [vmem:[%s1258_s5 + $0x38] sm:$0xff] (!%p250_p3)   ;;  %v896_v43 = vld [vmem:[%s1257_s4] ss:$0 sm:$0xff] (!%p250_p3) }
   0xd   : > { %v637_v47 = vcombine.high (!%p250_p3), %v896_v43, %v896_v43 }
   0xe   : > { %s1265_s21 = smov (!%p296_p4, %s1065_s21), 1 }
   0xf   : > { %s878_s25 = sshll.u32 %s1265_s21, 2  ;;  %s909_s7 = sshll.u32 %s1265_s21, 3 }
  0x10   : > { %s302_s28 = scalar_lea.vmem %s1253_s0, %s878_s25  ;;  %s1155_s10 = scalar_lea.vmem %s1254_s1, %s909_s7 }
  0x11   : > { %v325_v1 = vld [vmem:[%s302_s28] sm:$0x1]  ;;  %v327_v3 = vld [vmem:[%s302_s28 + $0x2] sm:$0x1]  ;;  %v326_v5 = vld [vmem:[%s302_s28 + $0x1] sm:$0x1]  ;;  %s322_s9 = scalar_lea.vmem %s1259_s6, %s909_s7 }
  0x12   : > { %v336_v4 = vsel %vm334_vm1, %v325_v1, 0  ;;  %v422_v6 = vsel %vm334_vm1, %v327_v3, 0  ;;  %v379_v7 = vsel %vm334_vm1, %v326_v5, 0  ;;  %v328_v8 = vld [vmem:[%s302_s28 + $0x3] sm:$0x1] }
  0x13   : > { %945 = vmatpush3.bf16.msra.mxu0 %v336_v4  ;;  %951 = vmatpush3.bf16.msra.mxu1 %v379_v7  ;;  %v465_v9 = vsel %vm334_vm1, %v328_v8, 0  ;;  %v1042_v18 = vld [vmem:[%s1155_s10] sm:$0xff]  }
  0x14   : > { %956 = vmatprep.subr.bf16.mxu0 %v1075_v0  ;;  %962 = vmatprep.subr.bf16.mxu1 %v1075_v0 }
  0x16   : > { %947 = vmatmul.mubr.msk.bf16.vlgmr.msra.gmra.mrb[0].mxu0 %vm330_vm2, %v329_v2  ;;  %953 = vmatmul.mubr.msk.bf16.vlgmr.msra.gmra.mrb[0].mxu1 %vm330_vm2, %v329_v2 }
  0x17   : > { %957 = vmatpush3.bf16.msra.mxu0 %v422_v6  ;;  %958 = vmatprep.mubr.msk.bf16.mxu0 %vm1076_vm0, %v1075_v0 }
  0x18   : > { %968 = vmatprep.subr.bf16.mxu0 %v1075_v0  ;;  %963 = vmatpush3.bf16.msra.mxu1 %v465_v9 }
  0x19   : > { %964 = vmatprep.mubr.msk.bf16.mxu1 %vm1076_vm0, %v1075_v0  ;;  %988 = vmatprep.subr.bf16.mxu1 %v1075_v0 }
  0x1e   : > { %959 = vmatmul.mubr.msk.bf16.vlgmr.msra.gmra.mrb[4].mxu0 %vm330_vm2, %v329_v2  ;;  %965 = vmatmul.mubr.msk.bf16.vlgmr.msra.gmra.mrb[4].mxu1 %vm330_vm2, %v329_v2 }
  0x1f   : > { %969 = vmatpush3.bf16.msra.mxu0 %v1034_v10  ;;  %984 = vmatprep.mubr.msk.bf16.mxu0 %vm1076_vm0, %v1075_v0 }
  0x20   : > { %970 = vmatprep.subr.bf16.mxu0 %v1075_v0  ;;  %1004 = vmatprep.mubr.msk.bf16.mxu1 %vm1076_vm0, %v1075_v0 }
  0x21   : > { %989 = vmatpush3.bf16.msra.mxu1 %v1043_v19 }
  0x22   : > { %990 = vmatprep.subr.bf16.mxu1 %v1075_v0 }
  0x23   : > { %971 = vmatpush3.bf16.msra.mxu0 %v1035_v11 }
  0x24   : > { %972 = vmatprep.subr.bf16.mxu0 %v1075_v0 }
  0x25   : > { %991 = vmatpush3.bf16.msra.mxu1 %v1044_v20 }
  0x26   : > { %992 = vmatprep.subr.bf16.mxu1 %v1075_v0 }
  0x27   : > { %973 = vmatpush3.bf16.msra.mxu0 %v1036_v12 }
  0x28   : > { %974 = vmatprep.subr.bf16.mxu0 %v1075_v0 }
  0x29   : > { %993 = vmatpush3.bf16.msra.mxu1 %v1045_v21 }
  0x2a   : > { %994 = vmatprep.subr.bf16.mxu1 %v1075_v0 }
  0x2b   : > { %975 = vmatpush3.bf16.msra.mxu0 %v1037_v13 }
  0x2c   : > { %976 = vmatprep.subr.bf16.mxu0 %v1075_v0 }
  0x2d   : > { %995 = vmatpush3.bf16.msra.mxu1 %v1046_v22 }
  0x2e   : > { %996 = vmatprep.subr.bf16.mxu1 %v1075_v0 }
  0x2f   : > { %977 = vmatpush3.bf16.msra.mxu0 %v1038_v14 }
  0x30   : > { %978 = vmatprep.subr.bf16.mxu0 %v1075_v0 }
  0x31   : > { %997 = vmatpush3.bf16.msra.mxu1 %v1047_v23 }
  0x32   : > { %998 = vmatprep.subr.bf16.mxu1 %v1075_v0 }
  0x33   : > { %979 = vmatpush3.bf16.msra.mxu0 %v1039_v15 }
  0x34   : > { %980 = vmatprep.subr.bf16.mxu0 %v1075_v0 }
  0x35   : > { %999 = vmatpush3.bf16.msra.mxu1 %v1048_v24 }
  0x36   : > { %1000 = vmatprep.subr.bf16.mxu1 %v1075_v0 }
  0x37   : > { %981 = vmatpush3.bf16.msra.mxu0 %v1040_v16 }
  0x38   : > { %982 = vmatprep.subr.bf16.mxu0 %v1075_v0 }
  0x39   : > { %1001 = vmatpush3.bf16.msra.mxu1 %v1049_v25 }
  0x3a   : > { %1002 = vmatprep.subr.bf16.mxu1 %v1075_v0 }
  0x3b   : > { %983 = vmatpush3.bf16.msra.mxu0 %v1041_v17 }
  0x3d   : > { %1003 = vmatpush3.bf16.msra.mxu1 %v1050_v26 }
  0x3e   : > { %985 = vmatmul.mubr.bf16.vlgmr.msra.gmra.mrb[8].mxu0 %v1042_v18 }
  0xe9   : > { %v372_v27 = vpop.f32.mrb[0].mxu0  ;;  %v415_v30 = vpop.f32.mrb[0].mxu1 }
  0xea   : > { %v948_v28 = vpop.f32.mrb[1].mxu0  ;;  %v954_v32 = vpop.f32.mrb[1].mxu1 }
  0xeb   : > { %v375_v29 = vpop.f32.mrb[2].mxu0  ;;  %v418_v33 = vpop.f32.mrb[2].mxu1 }
  0xec   : > { %v949_v31 = vpop.f32.mrb[3].mxu0  ;;  %v955_v34 = vpop.f32.mrb[3].mxu1 }
  0xf1   : > { %v458_v35 = vpop.f32.mrb[4].mxu0  ;;  %v501_v38 = vpop.f32.mrb[4].mxu1 }
  0xf2   : > { %v960_v36 = vpop.f32.mrb[5].mxu0  ;;  %v966_v40 = vpop.f32.mrb[5].mxu1 }
  0xf3   : > { %v461_v37 = vpop.f32.mrb[6].mxu0  ;;  %v504_v41 = vpop.f32.mrb[6].mxu1 }
  0xf4   : > { %v961_v39 = vpop.f32.mrb[7].mxu0  ;;  %v967_v42 = vpop.f32.mrb[7].mxu1 }
 0x111   : > { %v613_v44 = vpop.f32.mrb[8].mxu0 }
 0x112   : > { %v622_v45 = vcombine.high %v613_v44, %v613_v44  ;;  %v626_v46 = vadd.f32 %v613_v44, %v372_v27  ;;  %v986_v48 = vpop.f32.mrb[9].mxu0 }
 0x113   : > { %v616_v49 = vpop.f32.mrb[10].mxu0 }
 0x114   : > { %v627_v50 = vadd.f32 %v622_v45, %v415_v30  ;;  %v639_v51 = vadd.f32 %v896_v43, %v626_v46  ;;  %v623_v52 = vcombine.high %v616_v49, %v616_v49  ;;  %v628_v53 = vadd.f32 %v616_v49, %v458_v35  ;;  %v987_v54 = vpop.f32.mrb[11].mxu0 }
 0x116   : > { %v640_v55 = vadd.f32 %v637_v47, %v627_v50  ;;  %v629_v56 = vadd.f32 %v623_v52, %v501_v38  ;;  %v641_v57 = vadd.f32 %v896_v43, %v628_v53  ;;  %v643_v58 = vmax.f32 %v639_v51, 0.0 }
 0x118   : > { %v644_v59 = vmax.f32 %v640_v55, 0.0  ;;  %v642_v60 = vadd.f32 %v637_v47, %v629_v56  ;;  %v645_v62 = vmax.f32 %v641_v57, 0.0 }
 0x11a   : > { %v651_v61 = vcombine.low %v643_v58, %v644_v59  ;;  %v646_v63 = vmax.f32 %v642_v60, 0.0 }
 0x11c   : > { %v652_v0 = vcombine.low %v645_v62, %v646_v63 }
 0x11e   : > { %v655_v1 = vpack.c.bf16 %v652_v0, %v651_v61 }
 0x120   : > { %1005 = vmatmul.mubr.bf16.vlgmr.msra.gmra.mrb[8].mxu1 %v655_v1 }
 0x1f3   : > { %v754_v2 = vpop.f32.mrb[8].mxu1 }
 0x1f4   : > { %v1006_v3 = vpop.f32.mrb[9].mxu1 }
 0x1f5   : > { %v757_v4 = vpop.f32.mrb[10].mxu1 }
 0x1f6   : > { %v916_v5 = vpack.c.bf16 %v757_v4, %v754_v2  ;;  %v1007_v6 = vpop.f32.mrb[11].mxu1 }
 0x1f8   : > { %917 = vst [vmem:[%s322_s9] sm:$0xff] %v916_v5  }
 0x1f9 PF: > { %s16_s23 = sadd.s32 1, %s1073_s23   ;;  %s1260_s21 = smov %s1069_s22 }
 0x1fa   : > { %p13_p5 = scmp.ge.s32.totalorder %s16_s23, 4   ;;  %s1261_s22 = smov %s1263_s24 }
 0x1fc   :  { %15 = sbr.rel (!%p13_p5) target bundleno = 2 (0x2), region = 77 }

// kernel: lavt_one_forward.19
= control target key start
LH: loop header
LB: loop body
LE: loop exit
PB: predicated region body
PF: predicated region fallthrough
CT: control target
= control target key end

     0   :  { %s510_s9 = smov 0   ;;  %s512_s10 = smov 0   ;;  %s546_s0 = inlined_call_operand.vmem [shape: bf16[2,4,512], index: 0, kind: input, shape index: {}]   ;;  %s547_s1 = inlined_call_operand.vmem [shape: bf16[8,4], index: 1, kind: input, shape index: {}]   ;;  %s548_s2 = inlined_call_operand.vmem [shape: bf16[2,8,512], index: 2, kind: output, shape index: {}]  }
   0x1   :  { %s514_s11 = smov 0  }
   0x2 LB: > { %s24_s12 = sadd.s32 1, %s487_s10  ;;  %p425_p0 = scmp.ge.s32.totalorder %s491_s11, 1  ;;  %s491_s11 = sphi %s514_s11, %s12_s11   ;;  %s487_s10 = sphi %s512_s10, %s550_s10   ;;  %s483_s9 = sphi %s510_s9, %s549_s9  }
   0x3   : > { %p26_p1 = scmp.ge.s32.totalorder %s24_s12, 2  ;;  %p135_p2 = scmp.lt.s32.totalorder %s491_s11, 3 }
   0x5   : > { %s552_s12 = smov (%p26_p1, %s24_s12), 0  ;;  %p136_p3 = pnand %p425_p0, %p135_p2 }
   0x6   : > { %p165_p4 = scmp.lt.s32.totalorder (!%p136_p3), %s483_s9, 1  ;;  %v191_v0 = vlaneseq (!%p136_p3)  ;;  %v493_v1 = vmov (!%p136_p3), 1983009808   ;;  %v494_v3 = vmov (!%p136_p3), 0   ;;  %vm208_vm0 = vcmask (!%p136_p3), 1041408  }
   0x7   : > { %139 = sbr.rel (%p136_p3) target bundleno = 244 (0xf4), region = 28  ;;  %v189_v2 = vunpack.c.l.s4 (!%p136_p3), %v493_v1  ;;  %253 = vmatprep.mubr.bf16.mxu0 (!%p136_p3), %v494_v3  ;;  %294 = vmatprep.mubr.bf16.mxu1 (!%p136_p3), %v494_v3  ;;  %v184_v15 = vld [vmem:[%s547_s1] sm:$0xf] (!%p136_p3)  ;;  %vm204_vm1 = vcmask (!%p136_p3), 31744  }
   0x8   : > { %v192_v4 = vshrl.u32 (!%p136_p3), %v191_v0, 7 }
   0x9   : > { %v190_v5 = vunpack.c.0.s8 (!%p136_p3), %v189_v2 }
   0xb   : > { %v193_v6 = vsub.s32 (!%p136_p3), %v190_v5, %v192_v4 }
   0xe   : > { %s554_s9 = smov (!%p165_p4, %s483_s9), 1 }
   0xf   : > { %s438_s13 = sshll.u32 %s554_s9, 3  ;;  %s439_s19 = sshll.u32 %s554_s9, 4 }
  0x10   : > { %s169_s16 = scalar_lea.vmem %s546_s0, %s438_s13  ;;  %s182_s22 = scalar_lea.vmem %s548_s2, %s439_s19 }
  0x11   : > { %v185_v7 = vld [vmem:[%s169_s16] sm:$0xff] }
  0x12   : > { %v194_v8 = vrot.slane %v185_v7, %v193_v6  ;;  %v187_v9 = vcombine.high %v185_v7, %v185_v7 }
  0x14   : > { %v202_v10 = vcombine.high %v194_v8, %v194_v8  ;;  %v210_v11 = vsel %vm208_vm0, %v194_v8, 0  ;;  %v201_v12 = vrot.slane %v187_v9, %v193_v6 }
  0x16   : > { %430 = vmatprep.subr.msk.bf16.mxu0 %vm208_vm0, %v202_v10  ;;  %v203_v13 = vcombine.high %v201_v12, %v201_v12  ;;  %v216_v14 = vsel %vm208_vm0, %v201_v12, 0 }
  0x17   : > { %222 = vmatpush1.bf16.msra.mxu0 %v210_v11 }
  0x18   : > { %432 = vmatprep.subr.msk.bf16.mxu1 %vm208_vm0, %v203_v13 }
  0x19   : > { %263 = vmatpush1.bf16.msra.mxu1 %v216_v14 }
  0x1a   : > { %431 = vmatmul.mubr.msk.bf16.vlgmr.msra.gmra.mrb[0].mxu0 %vm204_vm1, %v184_v15 }
  0x1c   : > { %433 = vmatmul.mubr.msk.bf16.vlgmr.msra.gmra.mrb[0].mxu1 %vm204_vm1, %v184_v15 }
  0xed   : > { %v255_v16 = vpop.f32.mrb[0].mxu0 }
  0xee   : > { %v257_v17 = vpop.f32.mrb[1].mxu0 }
  0xef   : > { %v440_v18 = vpack.c.bf16 %v257_v17, %v255_v16  ;;  %v259_v19 = vpop.f32.mrb[2].mxu0  ;;  %v296_v20 = vpop.f32.mrb[0].mxu1 }
  0xf0   : > { %v260_v21 = vpop.f32.mrb[3].mxu0  ;;  %v298_v22 = vpop.f32.mrb[1].mxu1 }
  0xf1   : > { %319 = vst [vmem:[%s182_s22] sm:$0xff] %v440_v18  ;;  %v441_v23 = vpack.c.bf16 %v298_v22, %v296_v20  ;;  %v300_v24 = vpop.f32.mrb[2].mxu1 }
  0xf2   : > { %v301_v25 = vpop.f32.mrb[3].mxu1 }
  0xf3   : > { %320 = vst [vmem:[%s182_s22 + $0x8] sm:$0xff] %v441_v23 }
  0xf4 PF: > { %s12_s11 = sadd.s32 1, %s491_s11   ;;  %s549_s9 = smov %s487_s10 }
  0xf5   : > { %p9_p5 = scmp.ge.s32.totalorder %s12_s11, 4   ;;  %s550_s10 = smov %s552_s12 }
  0xf7   :  { %11 = sbr.rel (!%p9_p5) target bundleno = 2 (0x2), region = 61 }

// kernel: lavt_one_forward.14
= control target key start
LH: loop header
LB: loop body
LE: loop exit
PB: predicated region body
PF: predicated region fallthrough
CT: control target
= control target key end

     0   :  { %s1715_s27 = smov 0   ;;  %s1717_s28 = smov 0   ;;  %s1963_s0 = inlined_call_operand.vmem [shape: bf16[2,64,48], index: 0, kind: input, shape index: {}]   ;;  %s1964_s1 = inlined_call_operand.vmem [shape: bf16[2,8,32], index: 1, kind: input, shape index: {}]   ;;  %s1965_s2 = inlined_call_operand.vmem [shape: f32[2,1,8], index: 2, kind: input, shape index: {}]   ;;  %s1966_s3 = inlined_call_operand.vmem [shape: bf16[48,128], index: 3, kind: input, shape index: {}]   ;;  %s1967_s4 = inlined_call_operand.vmem [shape: f32[1,128], index: 4, kind: input, shape index: {}]   ;;  %s1968_s5 = inlined_call_operand.vmem [shape: bf16[128,32], index: 5, kind: input, shape index: {}]   ;;  %s1969_s6 = inlined_call_operand.vmem [shape: bf16[32,160], index: 6, kind: input, shape index: {}]   ;;  %s1970_s7 = inlined_call_operand.vmem [shape: bf16[128,128], index: 7, kind: input, shape index: {}]   ;;  %s1971_s8 = inlined_call_operand.vmem [shape: bf16[2,64,128], index: 8, kind: output, shape index: {}]  }
   0x1   :  { %s1719_s29 = smov 0  }
   0x2 LB: > { %s30_s30 = sadd.s32 1, %s1662_s28  ;;  %p1325_p0 = scmp.ge.s32.totalorder %s1666_s29, 1  ;;  %s1666_s29 = sphi %s1719_s29, %s18_s29   ;;  %s1662_s28 = sphi %s1717_s28, %s1973_s28   ;;  %s1658_s27 = sphi %s1715_s27, %s1972_s27  }
   0x3   : > { %p32_p1 = scmp.ge.s32.totalorder %s30_s30, 2  ;;  %p300_p2 = scmp.lt.s32.totalorder %s1666_s29, 3 }
   0x5   : > { %s1975_s30 = smov (%p32_p1, %s30_s30), 0  ;;  %p301_p3 = pnand %p1325_p0, %p300_p2 }
   0x6   : > { %v1567_v0 = vld [vmem:[%s1966_s3] sm:$0xff] (!%p301_p3)   ;;  %p350_p4 = scmp.lt.s32.totalorder (!%p301_p3), %s1658_s27, 1  ;;  %v1568_v1 = vld [vmem:[%s1966_s3 + $0x8] sm:$0xff] (!%p301_p3)   ;;  %v1569_v2 = vld [vmem:[%s1966_s3 + $0x10] sm:$0xff] (!%p301_p3)   ;;  %vm436_vm0 = vcmask (!%p301_p3), 392192   ;;  %v1668_v18 = vmov (!%p301_p3), 0  }
   0x7   : > { %304 = sbr.rel (%p301_p3) target bundleno = 1463 (0x5b7), region = 52  ;;  %1457 = vmatprep.subr.bf16.mxu0 (!%p301_p3), %v1567_v0  ;;  %v1574_v3 = vld [vmem:[%s1968_s5] sm:$0xff] (!%p301_p3)   ;;  %v1575_v4 = vld [vmem:[%s1968_s5 + $0x8] sm:$0xff] (!%p301_p3)   ;;  %v1576_v6 = vld [vmem:[%s1968_s5 + $0x10] sm:$0xff] (!%p301_p3)   ;;  %vm547_vm1 = vcmask (!%p301_p3), 261120   ;;  %vm834_vm2 = vcmask (!%p301_p3), 64512  }
   0x8   : > { %1458 = vmatpush3.bf16.msra.mxu0 (!%p301_p3), %v1567_v0  ;;  %1471 = vmatprep.subr.bf16.mxu1 (!%p301_p3), %v1574_v3  ;;  %v1577_v9 = vld [vmem:[%s1968_s5 + $0x18] sm:$0xff] (!%p301_p3)   ;;  %v1579_v10 = vld [vmem:[%s1969_s6] ss:$8 sps:$4 sm:$0xff] (!%p301_p3)   ;;  %v1581_v11 = vld [vmem:[%s1969_s6 + $0x4] ss:$8 sps:$4 sm:$0xff] (!%p301_p3)   ;;  %s1669_s18 = smov (!%p301_p3), 96  }
   0x9   : > { %1459 = vmatprep.subr.bf16.mxu0 (!%p301_p3), %v1568_v1  ;;  %1472 = vmatpush3.bf16.msra.mxu1 (!%p301_p3), %v1574_v3  ;;  %v1578_v12 = vld [vmem:[%s1968_s5 + $0x20] sm:$0xff] (!%p301_p3)   ;;  %v1582_v14 = vld [vmem:[%s1968_s5 + $0x28] sm:$0xff] (!%p301_p3)   ;;  %v1585_v15 = vld [vmem:[%s1969_s6 + $0x14] ss:$8 sps:$4 sm:$0xff] (!%p301_p3)   ;;  %vm933_vm3 = vcmask (!%p301_p3), 785408   ;;  %vm947_vm4 = vcmask (!%p301_p3), 1043456  }
   0xa   : > { %1473 = vmatprep.subr.bf16.mxu1 (!%p301_p3), %v1575_v4  ;;  %v1583_v16 = vld [vmem:[%s1969_s6 + $0x10] ss:$8 sps:$4 sm:$0xff] (!%p301_p3)   ;;  %v1331_v21 = vld [vmem:[%s1967_s4] ss:$0 sm:$0xff] (!%p301_p3) }
   0xb   : > { %v1586_v17 = vld [vmem:[%s1968_s5 + $0x30] sm:$0xff] (!%p301_p3)   ;;  %v1587_v20 = vld [vmem:[%s1968_s5 + $0x38] sm:$0xff] (!%p301_p3)  }
   0xc   : > { %1460 = vmatpush3.bf16.msra.mxu0 (!%p301_p3), %v1568_v1 }
   0xd   : > { %1461 = vmatprep.subr.bf16.mxu0 (!%p301_p3), %v1569_v2  ;;  %1474 = vmatpush3.bf16.msra.mxu1 (!%p301_p3), %v1575_v4 }
   0xe   : > { %s1977_s27 = smov (!%p350_p4, %s1658_s27), 1  ;;  %1475 = vmatprep.subr.bf16.mxu1 %v1576_v6 }
   0xf   : > { %s1383_s17 = sshll.u32 %s1977_s27, 5  ;;  %s1328_s24 = sshll.u32 %s1977_s27, 2 }
  0x10   : > { %s357_s22 = scalar_lea.vmem %s1963_s0, %s1383_s17  ;;  %1462 = vmatpush3.bf16.msra.mxu0 %v1569_v2  ;;  %s362_s9 = scalar_lea.vmem %s1964_s1, %s1328_s24 }
  0x11   : > { %v1570_v5 = vld [vmem:[%s357_s22] sm:$0xff]   ;;  %v1571_v7 = vld [vmem:[%s357_s22 + $0x8] sm:$0xff]   ;;  %v1572_v8 = vld [vmem:[%s357_s22 + $0x10] sm:$0xff]   ;;  %1476 = vmatpush3.bf16.msra.mxu1 %v1576_v6  ;;  %551 = vmatprep.subr.bf16.mxu0 %v1581_v11  ;;  %s365_s16 = scalar_lea.vmem %s1965_s2, %s1977_s27  ;;  %s374_s20 = scalar_lea.vmem %s1971_s8, %s1383_s17 }
  0x12   : > { %1463 = vmatprep.mubr.msk.bf16.mxu0 %vm436_vm0, %v1570_v5  ;;  %1477 = vmatprep.subr.bf16.mxu1 %v1577_v9  ;;  %v1573_v13 = vld [vmem:[%s357_s22 + $0x18] sm:$0xff]   ;;  %v522_v19 = vld [vmem:[%s362_s9] sm:$0xf] }
  0x13   : > { %1464 = vmatmul.mubr.msk.bf16.vlgmr.msra.gmra.mrb[0].mxu0 %vm436_vm0, %v1571_v7  ;;  %v1360_v5 = vld [vmem:[%s365_s16] ss:$0 sm:$0xff] }
  0x14   : > { %1467 = vmatprep.mubr.msk.bf16.mxu0 %vm436_vm0, %v1572_v8  ;;  %552 = vmatpush1.bf16.msra.mxu0 %v1579_v10 }
  0x15   : > { %1478 = vmatpush3.bf16.msra.mxu1 %v1577_v9  ;;  %553 = vmatprep.subr.bf16.mxu0 %v1585_v15 }
  0x16   : > { %1479 = vmatprep.subr.bf16.mxu1 %v1578_v12 }
  0x18   : > { %554 = vmatpush1.bf16.msra.mxu0 %v1583_v16 }
  0x19   : > { %1480 = vmatpush3.bf16.msra.mxu1 %v1578_v12 }
  0x1a   : > { %1481 = vmatprep.subr.bf16.mxu1 %v1582_v14 }
  0x1b   : > { %1468 = vmatmul.mubr.msk.bf16.gmra.mrb[4].mxu0 %vm436_vm0, %v1573_v13 }
  0x1c   : > { %583 = vmatprep.mubr.bf16.mxu0 %v1668_v18 }
  0x1d   : > { %1482 = vmatpush3.bf16.msra.mxu1 %v1582_v14 }
  0x1e   : > { %1483 = vmatprep.subr.bf16.mxu1 %v1586_v17 }
  0x21   : > { %1484 = vmatpush3.bf16.msra.mxu1 %v1586_v17 }
  0x22   : > { %1485 = vmatprep.subr.bf16.mxu1 %v1587_v20 }
  0x23   : > { %1347 = vmatmul.mubr.msk.bf16.vlgmr.msra.gmra.mrb[8].mxu0 %vm547_vm1, %v522_v19 }
  0x25   : > { %1486 = vmatpush3.bf16.msra.mxu1 %v1587_v20 }
  0xe6   : > { %v1465_v22 = vpop.f32.mrb[0].mxu0 }
  0xe7   : > { %v483_v23 = vpop.f32.mrb[1].mxu0  ;;  %v1800_v26 = vadd.f32 %v1465_v22, %v1331_v21 }
  0xe8   : > { %v1798_v24 = vadd.f32 %v1331_v21, %v483_v23  ;;  %v1466_v25 = vpop.f32.mrb[2].mxu0 }
  0xe9   : > { %v1802_v27 = vadd.f32 %v1466_v25, %v1331_v21  ;;  %v486_v28 = vpop.f32.mrb[3].mxu0  ;;  %v516_v33 = vmax.f32 %v1800_v26, 0.0 }
  0xea   : > { %v1804_v29 = vadd.f32 %v1331_v21, %v486_v28  ;;  %v514_v31 = vmax.f32 %v1798_v24, 0.0 }
  0xeb   : > { %v517_v30 = vmax.f32 %v1802_v27, 0.0 }
  0xec   : > { %v515_v32 = vmax.f32 %v1804_v29, 0.0 }
  0xed   : > { %v595_v36 = vpack.c.bf16 %v517_v30, %v516_v33 }
  0xee   : > { %v1469_v34 = vpop.f32.mrb[4].mxu0  ;;  %v594_v35 = vpack.c.bf16 %v515_v32, %v514_v31 }
  0xef   : > { %v499_v37 = vpop.f32.mrb[5].mxu0  ;;  %v1820_v40 = vadd.f32 %v1469_v34, %v1331_v21 }
  0xf0   : > { %v1818_v38 = vadd.f32 %v1331_v21, %v499_v37  ;;  %v1470_v39 = vpop.f32.mrb[6].mxu0  ;;  %1487 = vmatprep.mubr.bf16.mxu1 %v594_v35 }
  0xf1   : > { %v1822_v41 = vadd.f32 %v1470_v39, %v1331_v21  ;;  %v502_v42 = vpop.f32.mrb[7].mxu0  ;;  %1488 = vmatmul.mubr.bf16.vlgmr.msra.gmra.mrb[0].mxu1 %v595_v36  ;;  %v520_v47 = vmax.f32 %v1820_v40, 0.0 }
  0xf2   : > { %v1824_v43 = vadd.f32 %v1331_v21, %v502_v42  ;;  %v518_v45 = vmax.f32 %v1818_v38, 0.0 }
  0xf3   : > { %v521_v44 = vmax.f32 %v1822_v41, 0.0 }
  0xf4   : > { %v519_v46 = vmax.f32 %v1824_v43, 0.0 }
  0xf5   : > { %v597_v49 = vpack.c.bf16 %v521_v44, %v520_v47 }
  0xf6   : > { %v596_v48 = vpack.c.bf16 %v519_v46, %v518_v45  ;;  %v585_v50 = vpop.f32.mrb[8].mxu0 }
  0xf7   : > { %v1838_v51 = vpack.c.bf16 %v585_v50, %v585_v50  ;;  %v1840_v52 = vpop.f32.mrb[9].mxu0 }
  0xf8   : > { %1491 = vmatprep.mubr.bf16.mxu1 %v596_v48  ;;  %v589_v53 = vpop.f32.mrb[10].mxu0 }
  0xf9   : > { %1492 = vmatmul.mubr.bf16.gmra.mrb[4].mxu1 %v597_v49  ;;  %v590_v54 = vpop.f32.mrb[11].mxu0  ;;  %1539 = vmatprep.subr.msk.bf16.mxu0 %vm547_vm1, %v1838_v51  ;;  %v744_v55 = vsel %vm547_vm1, %v1838_v51, 0 }
  0xfa   : > { %1496 = vmatpush3.bf16.xpose.msra.mxu0 %v744_v55 }
 0x1c4   : > { %v1489_v56 = vpop.f32.mrb[0].mxu1 }
 0x1c5   : > { %v696_v57 = vpop.f32.mrb[1].mxu1 }
 0x1c6   : > { %v1490_v58 = vpop.f32.mrb[2].mxu1 }
 0x1c7   : > { %v728_v59 = vpack.c.bf16 %v1490_v58, %v1489_v56  ;;  %v699_v60 = vpop.f32.mrb[3].mxu1 }
 0x1c8   : > { %v727_v61 = vpack.c.bf16 %v699_v60, %v696_v57 }
 0x1ca   : > { %1497 = vmatprep.mubr.msk.bf16.mxu0 %vm547_vm1, %v727_v61 }
 0x1cb   : > { %1498 = vmatmul.mubr.msk.bf16.vlgmr.msra.gmra.mrb[12].mxu0 %vm547_vm1, %v728_v59 }
 0x1cc   : > { %v1493_v62 = vpop.f32.mrb[4].mxu1 }
 0x1cd   : > { %v712_v63 = vpop.f32.mrb[5].mxu1 }
 0x1ce   : > { %v1494_v0 = vpop.f32.mrb[6].mxu1 }
 0x1cf   : > { %v730_v1 = vpack.c.bf16 %v1494_v0, %v1493_v62  ;;  %v715_v2 = vpop.f32.mrb[7].mxu1 }
 0x1d0   : > { %v729_v3 = vpack.c.bf16 %v715_v2, %v712_v63 }
 0x1d2   : > { %1501 = vmatprep.mubr.msk.bf16.mxu0 %vm547_vm1, %v729_v3 }
 0x1d3   : > { %1502 = vmatmul.mubr.msk.bf16.gmra.mrb[16].mxu0 %vm547_vm1, %v730_v1 }
 0x29e   : > { %v1499_v4 = vpop.f32.mrb[12].mxu0 }
 0x29f   : > { %v813_v6 = vmul.f32 0.17677669, %v1499_v4  ;;  %v780_v7 = vpop.f32.mrb[13].mxu0 }
 0x2a0   : > { %v811_v8 = vmul.f32 0.17677669, %v780_v7  ;;  %v1500_v9 = vpop.f32.mrb[14].mxu0 }
 0x2a1   : > { %v814_v10 = vmul.f32 0.17677669, %v1500_v9  ;;  %v783_v11 = vpop.f32.mrb[15].mxu0  ;;  %v828_v12 = vadd.f32 %v1360_v5, %v813_v6 }
 0x2a2   : > { %v812_v13 = vmul.f32 0.17677669, %v783_v11  ;;  %v826_v14 = vadd.f32 %v1360_v5, %v811_v8 }
 0x2a3   : > { %v841_v15 = vsel %vm834_vm2, %v828_v12, -inf  ;;  %v829_v16 = vadd.f32 %v1360_v5, %v814_v10 }
 0x2a4   : > { %842 = vmax.xlane.f32.xlu1 %v841_v15  ;;  %v835_v17 = vsel %vm834_vm2, %v826_v14, -inf  ;;  %v827_v18 = vadd.f32 %v1360_v5, %v812_v13 }
 0x2a5   : > { %836 = vmax.xlane.f32.xlu0 %v835_v17  ;;  %v844_v21 = vsel %vm834_vm2, %v829_v16, -inf }
 0x2a6   : > { %v1503_v19 = vpop.f32.mrb[16].mxu0  ;;  %v838_v28 = vsel %vm834_vm2, %v827_v18, -inf }
 0x2a7   : > { %v796_v20 = vpop.f32.mrb[17].mxu0  ;;  %v817_v22 = vmul.f32 0.17677669, %v1503_v19 }
 0x2a8   : > { %v815_v23 = vmul.f32 0.17677669, %v796_v20  ;;  %845 = vmax.xlane.f32.xlu1 %v844_v21  ;;  %v1504_v25 = vpop.f32.mrb[18].mxu0 }
 0x2a9   : > { %839 = vmax.xlane.f32.xlu0 %v838_v28  ;;  %v799_v34 = vpop.f32.mrb[19].mxu0  ;;  %v818_v35 = vmul.f32 0.17677669, %v1504_v25  ;;  %v832_v48 = vadd.f32 %v1360_v5, %v817_v22 }
 0x2aa   : > { %v816_v36 = vmul.f32 0.17677669, %v799_v34  ;;  %v830_v37 = vadd.f32 %v1360_v5, %v815_v23 }
 0x2ab   : > { %v833_v50 = vadd.f32 %v1360_v5, %v818_v35  ;;  %v853_v53 = vsel %vm834_vm2, %v832_v48, -inf }
 0x2ac   : > { %v847_v39 = vsel %vm834_vm2, %v830_v37, -inf  ;;  %v831_v42 = vadd.f32 %v1360_v5, %v816_v36 }
 0x2ad   : > { %848 = vmax.xlane.f32.xlu0 %v847_v39  ;;  %v856_v54 = vsel %vm834_vm2, %v833_v50, -inf }
 0x2ae   : > { %v850_v49 = vsel %vm834_vm2, %v831_v42, -inf }
 0x2af   : > { %851 = vmax.xlane.f32.xlu1 %v850_v49  ;;  %v1589_v49 = vld [vmem:[%s1970_s7 + $0x8] sm:$0xff]  }
 0x2b1   : > { %854 = vmax.xlane.f32.xlu0 %v853_v53  ;;  %v1593_v53 = vld [vmem:[%s1970_s7 + $0x28] sm:$0xff]  }
 0x2b3   : > { %857 = vmax.xlane.f32.xlu1 %v856_v54  ;;  %v1594_v54 = vld [vmem:[%s1970_s7 + $0x30] sm:$0xff]  }
 0x331   : > { %v843_v55 = vpop.xlane.xlu1 %842 }
 0x332   : > { %v861_v56 = vsub.f32 %v828_v12, %v843_v55  ;;  %v837_v57 = vpop.xlane.xlu0 %836 }
 0x333   : > { %v859_v58 = vsub.f32 %v826_v14, %v837_v57 }
 0x334   : > { %v871_v59 = vmul.f32 1.442695, %v861_v56 }
 0x335   : > { %v867_v60 = vmul.f32 1.442695, %v859_v58  ;;  %v846_v61 = vpop.xlane.xlu1 %845 }
 0x336   : > { %1596 = vpow2.f32 %v871_v59  ;;  %v862_v62 = vsub.f32 %v829_v16, %v846_v61  ;;  %v840_v63 = vpop.xlane.xlu0 %839 }
 0x337   : > { %v860_v0 = vsub.f32 %v827_v18, %v840_v63  ;;  %1598 = vpow2.f32 %v867_v60 }
 0x338   : > { %v873_v1 = vmul.f32 1.442695, %v862_v62 }
 0x339   : > { %v869_v2 = vmul.f32 1.442695, %v860_v0 }
 0x33a   : > { %1600 = vpow2.f32 %v873_v1  ;;  %v849_v3 = vpop.xlane.xlu0 %848 }
 0x33b   : > { %1602 = vpow2.f32 %v869_v2  ;;  %v863_v4 = vsub.f32 %v830_v37, %v849_v3 }
 0x33c   : > { %v852_v5 = vpop.xlane.xlu1 %851 }
 0x33d   : > { %v864_v7 = vsub.f32 %v831_v42, %v852_v5  ;;  %v875_v10 = vmul.f32 1.442695, %v863_v4  ;;  %v593_v42 = vpack.c.bf16 %v1840_v52, %v1840_v52  ;;  %v1592_v52 = vld [vmem:[%s1970_s7 + $0x20] sm:$0xff]  }
 0x33e   : > { %v855_v6 = vpop.xlane.xlu0 %854 }
 0x33f   : > { %v865_v8 = vsub.f32 %v832_v48, %v855_v6  ;;  %v877_v16 = vmul.f32 1.442695, %v864_v7  ;;  %v1588_v48 = vld [vmem:[%s1970_s7] sm:$0xff]  }
 0x340   : > { %v1862_v9 = vpop.eup %1596  ;;  %v858_v11 = vpop.xlane.xlu1 %857  ;;  %1515 = vmatprep.subr.bf16.mxu1 %v1588_v48 }
 0x341   : > { %v879_v12 = vmul.f32 1.442695, %v865_v8  ;;  %v866_v13 = vsub.f32 %v833_v50, %v858_v11  ;;  %v889_v14 = vsel %vm834_vm2, %v1862_v9, 0.0  ;;  %v1866_v15 = vpop.eup %1598  ;;  %1516 = vmatpush3.bf16.msra.mxu1 %v1588_v48  ;;  %v1590_v50 = vld [vmem:[%s1970_s7 + $0x10] sm:$0xff]  }
 0x342   : > { %890 = vadd.xlane.f32.xlu0 %v889_v14  ;;  %v883_v19 = vsel %vm834_vm2, %v1866_v15, 0.0  ;;  %1517 = vmatprep.subr.bf16.mxu1 %v1589_v49 }
 0x343   : > { %1604 = vpow2.f32 %v879_v12  ;;  %v881_v17 = vmul.f32 1.442695, %v866_v13 }
 0x344   : > { %v1868_v18 = vpop.eup %1600  ;;  %1606 = vpow2.f32 %v875_v10 }
 0x345   : > { %1608 = vpow2.f32 %v881_v17  ;;  %v892_v20 = vsel %vm834_vm2, %v1868_v18, 0.0  ;;  %v1874_v21 = vpop.eup %1602  ;;  %1518 = vmatpush3.bf16.msra.mxu1 %v1589_v49 }
 0x346   : > { %884 = vadd.xlane.f32.xlu0 %v883_v19  ;;  %893 = vadd.xlane.f32.xlu1 %v892_v20  ;;  %1610 = vpow2.f32 %v877_v16  ;;  %v886_v22 = vsel %vm834_vm2, %v1874_v21, 0.0 }
 0x347   : > { %1519 = vmatprep.subr.bf16.mxu1 %v1590_v50 }
 0x349   : > { %1520 = vmatpush3.bf16.msra.mxu1 %v1590_v50 }
 0x34a   : > { %887 = vadd.xlane.f32.xlu1 %v886_v22 }
 0x34d   : > { %v1878_v23 = vpop.eup %1604 }
 0x34e   : > { %v1880_v25 = vpop.eup %1606  ;;  %v901_v28 = vsel %vm834_vm2, %v1878_v23, 0.0 }
 0x34f   : > { %v1884_v34 = vpop.eup %1608  ;;  %902 = vadd.xlane.f32.xlu0 %v901_v28  ;;  %v895_v37 = vsel %vm834_vm2, %v1880_v25, 0.0  ;;  %v1595_v28 = vld [vmem:[%s1970_s7 + $0x38] sm:$0xff]  }
 0x350   : > { %v904_v35 = vsel %vm834_vm2, %v1884_v34, 0.0  ;;  %v1888_v36 = vpop.eup %1610 }
 0x351   : > { %905 = vadd.xlane.f32.xlu1 %v904_v35  ;;  %v898_v39 = vsel %vm834_vm2, %v1888_v36, 0.0 }
 0x353   : > { %896 = vadd.xlane.f32.xlu0 %v895_v37 }
 0x355   : > { %899 = vadd.xlane.f32.xlu1 %v898_v39 }
 0x366   : > { %931 = vrot.lane.b32.xlu1 %v593_v42, %s1669_s18 }
 0x369   : > { %929 = vrot.lane.b32.xlu0 %v1838_v51, %s1669_s18  ;;  %v1591_v51 = vld [vmem:[%s1970_s7 + $0x18] sm:$0xff]  }
 0x36a   : > { %1521 = vmatprep.subr.bf16.mxu1 %v1591_v51 }
 0x36b   : > { %1522 = vmatpush3.bf16.msra.mxu1 %v1591_v51 }
 0x36c   : > { %1523 = vmatprep.subr.bf16.mxu1 %v1592_v52 }
 0x36f   : > { %1524 = vmatpush3.bf16.msra.mxu1 %v1592_v52 }
 0x370   : > { %1525 = vmatprep.subr.bf16.mxu1 %v1593_v53 }
 0x373   : > { %1526 = vmatpush3.bf16.msra.mxu1 %v1593_v53 }
 0x374   : > { %1527 = vmatprep.subr.bf16.mxu1 %v1594_v54 }
 0x377   : > { %1528 = vmatpush3.bf16.msra.mxu1 %v1594_v54 }
 0x378   : > { %1529 = vmatprep.subr.bf16.mxu1 %v1595_v28 }
 0x37b   : > { %1530 = vmatpush3.bf16.msra.mxu1 %v1595_v28 }
 0x3cf   : > { %v891_v55 = vpop.xlane.xlu0 %890 }
 0x3d3   : > { %v885_v56 = vpop.xlane.xlu0 %884  ;;  %v894_v57 = vpop.xlane.xlu1 %893 }
 0x3d4   : > { %1612 = vrcp.f32 %v885_v56 }
 0x3d7   : > { %v888_v58 = vpop.xlane.xlu1 %887 }
 0x3d8   : > { %1614 = vrcp.f32 %v888_v58 }
 0x3d9   : > { %1616 = vrcp.f32 %v894_v57 }
 0x3da   : > { %1618 = vrcp.f32 %v891_v55 }
 0x3dc   : > { %v903_v59 = vpop.xlane.xlu0 %902 }
 0x3de   : > { %v906_v60 = vpop.xlane.xlu1 %905  ;;  %v1613_v61 = vpop.eup %1612 }
 0x3df   : > { %1620 = vrcp.f32 %v906_v60  ;;  %v915_v2 = vmul.f32 %v1613_v61, %v1866_v15 }
 0x3e0   : > { %v897_v62 = vpop.xlane.xlu0 %896 }
 0x3e1   : > { %1622 = vrcp.f32 %v897_v62 }
 0x3e2   : > { %v1615_v63 = vpop.eup %1614  ;;  %1624 = vrcp.f32 %v903_v59  ;;  %v900_v0 = vpop.xlane.xlu1 %899 }
 0x3e3   : > { %v1617_v1 = vpop.eup %1616  ;;  %1626 = vrcp.f32 %v900_v0  ;;  %v916_v3 = vmul.f32 %v1615_v63, %v1874_v21 }
 0x3e4   : > { %v1619_v4 = vpop.eup %1618  ;;  %v918_v6 = vmul.f32 %v1617_v1, %v1868_v18  ;;  %v930_v7 = vpop.permute.xlu0 %929 }
 0x3e5   : > { %v923_v5 = vpack.c.bf16 %v916_v3, %v915_v2  ;;  %v917_v11 = vmul.f32 %v1619_v4, %v1862_v9 }
 0x3e6   : > { %v932_v8 = vpop.permute.xlu1 %931 }
 0x3e7   : > { %v934_v10 = vsel %vm933_vm3, %v930_v7, %v932_v8  ;;  %1507 = vmatprep.mubr.msk.bf16.mxu0 %vm834_vm2, %v923_v5  ;;  %v924_v14 = vpack.c.bf16 %v918_v6, %v917_v11 }
 0x3e8   : > { %v949_v12 = vsel %vm947_vm4, %v934_v10, 0  ;;  %1540 = vmatprep.subr.msk.bf16.mxu0 %vm947_vm4, %v934_v10 }
 0x3e9   : > { %1506 = vmatpush3.bf16.msra.mxu0 %v949_v12  ;;  %v1621_v13 = vpop.eup %1620 }
 0x3ea   : > { %v922_v20 = vmul.f32 %v1621_v13, %v1884_v34 }
 0x3eb   : > { %v1623_v15 = vpop.eup %1622 }
 0x3ec   : > { %v1625_v16 = vpop.eup %1624  ;;  %1508 = vmatmul.mubr.msk.bf16.vlgmr.msra.gmra.mrb[20].mxu0 %vm834_vm2, %v924_v14  ;;  %v919_v19 = vmul.f32 %v1623_v15, %v1880_v25 }
 0x3ed   : > { %v1627_v17 = vpop.eup %1626  ;;  %v921_v22 = vmul.f32 %v1625_v16, %v1878_v23 }
 0x3ee   : > { %v920_v18 = vmul.f32 %v1627_v17, %v1888_v36 }
 0x3ef   : > { %v926_v9 = vpack.c.bf16 %v922_v20, %v921_v22 }
 0x3f0   : > { %v925_v21 = vpack.c.bf16 %v920_v18, %v919_v19 }
 0x3f2   : > { %1511 = vmatprep.mubr.msk.bf16.mxu0 %vm834_vm2, %v925_v21 }
 0x3f4   : > { %1512 = vmatmul.mubr.msk.bf16.gmra.mrb[24].mxu0 %vm834_vm2, %v926_v9 }
 0x4bf   : > { %v1509_v35 = vpop.f32.mrb[20].mxu0 }
 0x4c0   : > { %v985_v25 = vpop.f32.mrb[21].mxu0 }
 0x4c1   : > { %v1510_v37 = vpop.f32.mrb[22].mxu0 }
 0x4c2   : > { %v1017_v36 = vpack.c.bf16 %v1510_v37, %v1509_v35  ;;  %v988_v39 = vpop.f32.mrb[23].mxu0 }
 0x4c3   : > { %v1016_v34 = vpack.c.bf16 %v988_v39, %v985_v25 }
 0x4c5   : > { %1531 = vmatprep.mubr.bf16.mxu1 %v1016_v34 }
 0x4c6   : > { %1532 = vmatmul.mubr.bf16.vlgmr.msra.gmra.mrb[8].mxu1 %v1017_v36 }
 0x4c7   : > { %v1513_v23 = vpop.f32.mrb[24].mxu0 }
 0x4c8   : > { %v1001_v42 = vpop.f32.mrb[25].mxu0 }
 0x4c9   : > { %v1514_v48 = vpop.f32.mrb[26].mxu0 }
 0x4ca   : > { %v1019_v49 = vpack.c.bf16 %v1514_v48, %v1513_v23  ;;  %v1004_v50 = vpop.f32.mrb[27].mxu0 }
 0x4cb   : > { %v1018_v51 = vpack.c.bf16 %v1004_v50, %v1001_v42 }
 0x4cd   : > { %1535 = vmatprep.mubr.bf16.mxu1 %v1018_v51 }
 0x4ce   : > { %1536 = vmatmul.mubr.bf16.gmra.mrb[12].mxu1 %v1019_v49 }
 0x599   : > { %v1533_v52 = vpop.f32.mrb[8].mxu1 }
 0x59a   : > { %1628 = vtanh.f32 %v1533_v52  ;;  %v1118_v53 = vpop.f32.mrb[9].mxu1 }
 0x59b   : > { %1630 = vtanh.f32 %v1118_v53  ;;  %v1534_v54 = vpop.f32.mrb[10].mxu1 }
 0x59c   : > { %1632 = vtanh.f32 %v1534_v54  ;;  %v1121_v55 = vpop.f32.mrb[11].mxu1 }
 0x59d   : > { %1634 = vtanh.f32 %v1121_v55 }
 0x5a1   : > { %v1537_v56 = vpop.f32.mrb[12].mxu1 }
 0x5a2   : > { %1636 = vtanh.f32 %v1537_v56  ;;  %v1134_v57 = vpop.f32.mrb[13].mxu1 }
 0x5a3   : > { %1638 = vtanh.f32 %v1134_v57  ;;  %v1538_v58 = vpop.f32.mrb[14].mxu1 }
 0x5a4   : > { %v1629_v59 = vpop.eup %1628  ;;  %1640 = vtanh.f32 %v1538_v58  ;;  %v1137_v60 = vpop.f32.mrb[15].mxu1 }
 0x5a5   : > { %v1631_v61 = vpop.eup %1630  ;;  %v1159_v62 = vadd.f32 1.0, %v1629_v59  ;;  %1642 = vtanh.f32 %v1137_v60 }
 0x5a6   : > { %v1633_v63 = vpop.eup %1632  ;;  %v1157_v0 = vadd.f32 1.0, %v1631_v61 }
 0x5a7   : > { %v1635_v1 = vpop.eup %1634  ;;  %v1160_v2 = vadd.f32 1.0, %v1633_v63  ;;  %v1167_v4 = vmul.f32 %v1159_v62, %v516_v33 }
 0x5a8   : > { %v1158_v3 = vadd.f32 1.0, %v1635_v1  ;;  %v1165_v6 = vmul.f32 %v1157_v0, %v514_v31 }
 0x5a9   : > { %v1168_v5 = vmul.f32 %v1160_v2, %v517_v30 }
 0x5aa   : > { %v1166_v7 = vmul.f32 %v1158_v3, %v515_v32 }
 0x5ab   : > { %v1401_v8 = vpack.c.bf16 %v1168_v5, %v1167_v4 }
 0x5ac   : > { %v1637_v10 = vpop.eup %1636  ;;  %v1396_v11 = vpack.c.bf16 %v1166_v7, %v1165_v6 }
 0x5ad   : > { %v1639_v12 = vpop.eup %1638  ;;  %1413 = vst [vmem:[%s374_s20 + $0x8] sm:$0xff] %v1401_v8   ;;  %v1163_v26 = vadd.f32 1.0, %v1637_v10 }
 0x5ae   : > { %v1641_v33 = vpop.eup %1640  ;;  %1397 = vst [vmem:[%s374_s20] sm:$0xff] %v1396_v11   ;;  %v1161_v27 = vadd.f32 1.0, %v1639_v12 }
 0x5af   : > { %v1643_v30 = vpop.eup %1642  ;;  %v1164_v24 = vadd.f32 1.0, %v1641_v33  ;;  %v1171_v13 = vmul.f32 %v1163_v26, %v520_v47 }
 0x5b0   : > { %v1162_v31 = vadd.f32 1.0, %v1643_v30  ;;  %v1169_v29 = vmul.f32 %v1161_v27, %v518_v45 }
 0x5b1   : > { %v1172_v14 = vmul.f32 %v1164_v24, %v521_v44 }
 0x5b2   : > { %v1170_v32 = vmul.f32 %v1162_v31, %v519_v46 }
 0x5b3   : > { %v1411_v15 = vpack.c.bf16 %v1172_v14, %v1171_v13 }
 0x5b4   : > { %v1406_v16 = vpack.c.bf16 %v1170_v32, %v1169_v29 }
 0x5b5   : > { %1415 = vst [vmem:[%s374_s20 + $0x18] sm:$0xff] %v1411_v15  }
 0x5b6   : > { %1414 = vst [vmem:[%s374_s20 + $0x10] sm:$0xff] %v1406_v16  }
 0x5b7 PF: > { %s18_s29 = sadd.s32 1, %s1666_s29   ;;  %s1972_s27 = smov %s1662_s28 }
 0x5b8   : > { %p15_p5 = scmp.ge.s32.totalorder %s18_s29, 4   ;;  %s1973_s28 = smov %s1975_s30 }
 0x5ba   :  { %17 = sbr.rel (!%p15_p5) target bundleno = 2 (0x2), region = 88 }

// kernel: lavt_one_forward.20
= control target key start
LH: loop header
LB: loop body
LE: loop exit
PB: predicated region body
PF: predicated region fallthrough
CT: control target
= control target key end

     0   :  { %s1483_s21 = smov 0   ;;  %s1485_s22 = smov 0   ;;  %s1621_s0 = inlined_call_operand.vmem [shape: bf16[2,8,4,128], index: 0, kind: input, shape index: {}]   ;;  %s1622_s1 = inlined_call_operand.vmem [shape: bf16[2,64,128], index: 1, kind: input, shape index: {}]   ;;  %s1623_s2 = inlined_call_operand.vmem [shape: bf16[8,4], index: 2, kind: input, shape index: {}]   ;;  %s1624_s3 = inlined_call_operand.vmem [shape: bf16[128,128], index: 3, kind: input, shape index: {}]   ;;  %s1625_s4 = inlined_call_operand.vmem [shape: f32[1,128], index: 4, kind: input, shape index: {}]   ;;  %s1626_s5 = inlined_call_operand.vmem [shape: bf16[128,128], index: 5, kind: input, shape index: {}]   ;;  %s1627_s6 = inlined_call_operand.vmem [shape: bf16[2,64,128], index: 6, kind: output, shape index: {}]  }
   0x1   :  { %s1487_s23 = smov 0  }
   0x2 LB: > { %s28_s24 = sadd.s32 1, %s1440_s22  ;;  %p1160_p0 = scmp.ge.s32.totalorder %s1444_s23, 1  ;;  %s1444_s23 = sphi %s1487_s23, %s16_s23   ;;  %s1440_s22 = sphi %s1485_s22, %s1629_s22   ;;  %s1436_s21 = sphi %s1483_s21, %s1628_s21  }
   0x3   : > { %p30_p1 = scmp.ge.s32.totalorder %s28_s24, 2  ;;  %p250_p2 = scmp.lt.s32.totalorder %s1444_s23, 3 }
   0x5   : > { %s1631_s24 = smov (%p30_p1, %s28_s24), 0  ;;  %p251_p3 = pnand %p1160_p0, %p250_p2 }
   0x6   : > { %p298_p4 = scmp.lt.s32.totalorder (!%p251_p3), %s1436_s21, 1  ;;  %v1446_v0 = vmov (!%p251_p3), 0.0   ;;  %vm1447_vm0 = vmmov (!%p251_p3), 0   ;;  %vm341_vm1 = vcmask (!%p251_p3), 1041408   ;;  %v336_v4 = vld [vmem:[%s1623_s2] sm:$0xf] (!%p251_p3) }
   0x7   : > { %254 = sbr.rel (%p251_p3) target bundleno = 528 (0x210), region = 44  ;;  %1280 = vmatprep.subr.bf16.mxu0 (!%p251_p3), %v1446_v0  ;;  %1282 = vmatprep.mubr.msk.bf16.mxu0 (!%p251_p3), %vm1447_vm0, %v1446_v0  ;;  %vm337_vm2 = vcmask (!%p251_p3), 31744   ;;  %v1402_v17 = vld [vmem:[%s1624_s3] sm:$0xff] (!%p251_p3)   ;;  %v1403_v20 = vld [vmem:[%s1624_s3 + $0x8] sm:$0xff] (!%p251_p3)   ;;  %v1404_v21 = vld [vmem:[%s1624_s3 + $0x10] sm:$0xff] (!%p251_p3)  }
   0x8   : > { %1286 = vmatprep.subr.bf16.mxu1 (!%p251_p3), %v1446_v0  ;;  %1288 = vmatprep.mubr.msk.bf16.mxu1 (!%p251_p3), %vm1447_vm0, %v1446_v0  ;;  %v1405_v22 = vld [vmem:[%s1624_s3 + $0x18] sm:$0xff] (!%p251_p3)   ;;  %v1406_v23 = vld [vmem:[%s1624_s3 + $0x20] sm:$0xff] (!%p251_p3)   ;;  %v1407_v24 = vld [vmem:[%s1624_s3 + $0x28] sm:$0xff] (!%p251_p3)  }
   0x9   : > { %v1408_v25 = vld [vmem:[%s1624_s3 + $0x30] sm:$0xff] (!%p251_p3)   ;;  %v1409_v26 = vld [vmem:[%s1624_s3 + $0x38] sm:$0xff] (!%p251_p3)   ;;  %v1414_v30 = vld [vmem:[%s1626_s5] sm:$0xff] (!%p251_p3)  }
   0xa   : > { %v1415_v31 = vld [vmem:[%s1626_s5 + $0x8] sm:$0xff] (!%p251_p3)   ;;  %v1416_v32 = vld [vmem:[%s1626_s5 + $0x10] sm:$0xff] (!%p251_p3)   ;;  %v1417_v33 = vld [vmem:[%s1626_s5 + $0x18] sm:$0xff] (!%p251_p3)  }
   0xb   : > { %v1418_v34 = vld [vmem:[%s1626_s5 + $0x20] sm:$0xff] (!%p251_p3)   ;;  %v1419_v35 = vld [vmem:[%s1626_s5 + $0x28] sm:$0xff] (!%p251_p3)   ;;  %v1420_v36 = vld [vmem:[%s1626_s5 + $0x30] sm:$0xff] (!%p251_p3)  }
   0xc   : > { %v1421_v37 = vld [vmem:[%s1626_s5 + $0x38] sm:$0xff] (!%p251_p3)  }
   0xe   : > { %s1633_s21 = smov (!%p298_p4, %s1436_s21), 1 }
   0xf   : > { %s1206_s25 = sshll.u32 %s1633_s21, 4  ;;  %s1207_s7 = sshll.u32 %s1633_s21, 5 }
  0x10   : > { %s1509_s28 = scalar_lea.vmem %s1621_s0, %s1206_s25  ;;  %s1529_s10 = scalar_lea.vmem %s1622_s1, %s1207_s7 }
  0x11   : > { %v328_v1 = vld [vmem:[%s1509_s28] sm:$0x3]  ;;  %v330_v2 = vld [vmem:[%s1509_s28 + $0x4] sm:$0x3]  ;;  %v329_v5 = vld [vmem:[%s1509_s28 + $0x2] sm:$0x3]  ;;  %s325_s9 = scalar_lea.vmem %s1627_s6, %s1207_s7 }
  0x12   : > { %v343_v3 = vsel %vm341_vm1, %v328_v1, 0  ;;  %v429_v6 = vsel %vm341_vm1, %v330_v2, 0  ;;  %v386_v7 = vsel %vm341_vm1, %v329_v5, 0  ;;  %v331_v8 = vld [vmem:[%s1509_s28 + $0x6] sm:$0x3]  ;;  %v1411_v27 = vld [vmem:[%s1529_s10 + $0x8] sm:$0xff]  }
  0x13   : > { %1281 = vmatpush3.bf16.msra.mxu0 %v343_v3  ;;  %1287 = vmatpush3.bf16.msra.mxu1 %v386_v7  ;;  %v472_v9 = vsel %vm341_vm1, %v331_v8, 0  ;;  %v332_v10 = vld [vmem:[%s1509_s28 + $0x8] sm:$0x3]  ;;  %v333_v11 = vld [vmem:[%s1509_s28 + $0xa] sm:$0x3]  ;;  %v1410_v19 = vld [vmem:[%s1529_s10] sm:$0xff]  }
  0x14   : > { %1292 = vmatprep.subr.bf16.mxu0 %v1446_v0  ;;  %1298 = vmatprep.subr.bf16.mxu1 %v1446_v0  ;;  %v515_v12 = vsel %vm341_vm1, %v332_v10, 0  ;;  %v558_v13 = vsel %vm341_vm1, %v333_v11, 0  ;;  %v334_v14 = vld [vmem:[%s1509_s28 + $0xc] sm:$0x3]  ;;  %v335_v15 = vld [vmem:[%s1509_s28 + $0xe] sm:$0x3] }
  0x15   : > { %v601_v16 = vsel %vm341_vm1, %v334_v14, 0  ;;  %v644_v18 = vsel %vm341_vm1, %v335_v15, 0  ;;  %v1412_v28 = vld [vmem:[%s1529_s10 + $0x10] sm:$0xff]   ;;  %v1413_v29 = vld [vmem:[%s1529_s10 + $0x18] sm:$0xff]   ;;  %v1187_v7 = vld [vmem:[%s1625_s4] ss:$0 sm:$0xff] }
  0x16   : > { %1283 = vmatmul.mubr.msk.bf16.vlgmr.msra.gmra.mrb[0].mxu0 %vm337_vm2, %v336_v4  ;;  %1289 = vmatmul.mubr.msk.bf16.vlgmr.msra.gmra.mrb[0].mxu1 %vm337_vm2, %v336_v4 }
  0x17   : > { %1293 = vmatpush3.bf16.msra.mxu0 %v429_v6  ;;  %1294 = vmatprep.mubr.msk.bf16.mxu0 %vm1447_vm0, %v1446_v0 }
  0x18   : > { %1304 = vmatprep.subr.bf16.mxu0 %v1446_v0  ;;  %1299 = vmatpush3.bf16.msra.mxu1 %v472_v9 }
  0x19   : > { %1300 = vmatprep.mubr.msk.bf16.mxu1 %vm1447_vm0, %v1446_v0  ;;  %1310 = vmatprep.subr.bf16.mxu1 %v1446_v0 }
  0x1e   : > { %1295 = vmatmul.mubr.msk.bf16.vlgmr.msra.gmra.mrb[4].mxu0 %vm337_vm2, %v336_v4  ;;  %1301 = vmatmul.mubr.msk.bf16.vlgmr.msra.gmra.mrb[4].mxu1 %vm337_vm2, %v336_v4 }
  0x1f   : > { %1305 = vmatpush3.bf16.msra.mxu0 %v515_v12  ;;  %1306 = vmatprep.mubr.msk.bf16.mxu0 %vm1447_vm0, %v1446_v0 }
  0x20   : > { %1316 = vmatprep.subr.bf16.mxu0 %v1446_v0  ;;  %1311 = vmatpush3.bf16.msra.mxu1 %v558_v13 }
  0x21   : > { %1312 = vmatprep.mubr.msk.bf16.mxu1 %vm1447_vm0, %v1446_v0  ;;  %1322 = vmatprep.subr.bf16.mxu1 %v1446_v0 }
  0x26   : > { %1307 = vmatmul.mubr.msk.bf16.vlgmr.msra.gmra.mrb[8].mxu0 %vm337_vm2, %v336_v4  ;;  %1313 = vmatmul.mubr.msk.bf16.vlgmr.msra.gmra.mrb[8].mxu1 %vm337_vm2, %v336_v4 }
  0x27   : > { %1317 = vmatpush3.bf16.msra.mxu0 %v601_v16  ;;  %1318 = vmatprep.mubr.msk.bf16.mxu0 %vm1447_vm0, %v1446_v0 }
  0x28   : > { %1328 = vmatprep.subr.bf16.mxu0 %v1402_v17  ;;  %1323 = vmatpush3.bf16.msra.mxu1 %v644_v18 }
  0x29   : > { %1324 = vmatprep.mubr.msk.bf16.mxu1 %vm1447_vm0, %v1446_v0  ;;  %1352 = vmatprep.subr.bf16.mxu1 %v1414_v30 }
  0x2e   : > { %1319 = vmatmul.mubr.msk.bf16.vlgmr.msra.gmra.mrb[12].mxu0 %vm337_vm2, %v336_v4  ;;  %1325 = vmatmul.mubr.msk.bf16.vlgmr.msra.gmra.mrb[12].mxu1 %vm337_vm2, %v336_v4 }
  0x2f   : > { %1329 = vmatpush3.bf16.msra.mxu0 %v1402_v17  ;;  %1344 = vmatprep.mubr.bf16.mxu0 %v1410_v19 }
  0x30   : > { %1330 = vmatprep.subr.bf16.mxu0 %v1403_v20  ;;  %1353 = vmatpush3.bf16.msra.mxu1 %v1414_v30 }
  0x31   : > { %1354 = vmatprep.subr.bf16.mxu1 %v1415_v31 }
  0x33   : > { %1331 = vmatpush3.bf16.msra.mxu0 %v1403_v20 }
  0x34   : > { %1332 = vmatprep.subr.bf16.mxu0 %v1404_v21  ;;  %1355 = vmatpush3.bf16.msra.mxu1 %v1415_v31 }
  0x35   : > { %1356 = vmatprep.subr.bf16.mxu1 %v1416_v32 }
  0x37   : > { %1333 = vmatpush3.bf16.msra.mxu0 %v1404_v21 }
  0x38   : > { %1334 = vmatprep.subr.bf16.mxu0 %v1405_v22  ;;  %1357 = vmatpush3.bf16.msra.mxu1 %v1416_v32 }
  0x39   : > { %1358 = vmatprep.subr.bf16.mxu1 %v1417_v33 }
  0x3b   : > { %1335 = vmatpush3.bf16.msra.mxu0 %v1405_v22 }
  0x3c   : > { %1336 = vmatprep.subr.bf16.mxu0 %v1406_v23  ;;  %1359 = vmatpush3.bf16.msra.mxu1 %v1417_v33 }
  0x3d   : > { %1360 = vmatprep.subr.bf16.mxu1 %v1418_v34 }
  0x3f   : > { %1337 = vmatpush3.bf16.msra.mxu0 %v1406_v23 }
  0x40   : > { %1338 = vmatprep.subr.bf16.mxu0 %v1407_v24  ;;  %1361 = vmatpush3.bf16.msra.mxu1 %v1418_v34 }
  0x41   : > { %1362 = vmatprep.subr.bf16.mxu1 %v1419_v35 }
  0x43   : > { %1339 = vmatpush3.bf16.msra.mxu0 %v1407_v24 }
  0x44   : > { %1340 = vmatprep.subr.bf16.mxu0 %v1408_v25  ;;  %1363 = vmatpush3.bf16.msra.mxu1 %v1419_v35 }
  0x45   : > { %1364 = vmatprep.subr.bf16.mxu1 %v1420_v36 }
  0x47   : > { %1341 = vmatpush3.bf16.msra.mxu0 %v1408_v25 }
  0x48   : > { %1342 = vmatprep.subr.bf16.mxu0 %v1409_v26  ;;  %1365 = vmatpush3.bf16.msra.mxu1 %v1420_v36 }
  0x49   : > { %1366 = vmatprep.subr.bf16.mxu1 %v1421_v37 }
  0x4b   : > { %1343 = vmatpush3.bf16.msra.mxu0 %v1409_v26 }
  0x4c   : > { %1367 = vmatpush3.bf16.msra.mxu1 %v1421_v37 }
  0x4e   : > { %1345 = vmatmul.mubr.bf16.vlgmr.msra.gmra.mrb[16].mxu0 %v1411_v27 }
  0x4f   : > { %1348 = vmatprep.mubr.bf16.mxu0 %v1412_v28 }
  0x56   : > { %1349 = vmatmul.mubr.bf16.gmra.mrb[20].mxu0 %v1413_v29 }
  0xe9   : > { %v379_v38 = vpop.f32.mrb[0].mxu0  ;;  %v422_v41 = vpop.f32.mrb[0].mxu1 }
  0xea   : > { %v1284_v39 = vpop.f32.mrb[1].mxu0  ;;  %v1290_v43 = vpop.f32.mrb[1].mxu1 }
  0xeb   : > { %v382_v40 = vpop.f32.mrb[2].mxu0  ;;  %v425_v44 = vpop.f32.mrb[2].mxu1 }
  0xec   : > { %v1285_v42 = vpop.f32.mrb[3].mxu0  ;;  %v1291_v45 = vpop.f32.mrb[3].mxu1 }
  0xf1   : > { %v465_v46 = vpop.f32.mrb[4].mxu0  ;;  %v508_v49 = vpop.f32.mrb[4].mxu1 }
  0xf2   : > { %v1296_v47 = vpop.f32.mrb[5].mxu0  ;;  %v1302_v51 = vpop.f32.mrb[5].mxu1 }
  0xf3   : > { %v468_v48 = vpop.f32.mrb[6].mxu0  ;;  %v511_v52 = vpop.f32.mrb[6].mxu1 }
  0xf4   : > { %v1297_v50 = vpop.f32.mrb[7].mxu0  ;;  %v1303_v53 = vpop.f32.mrb[7].mxu1 }
  0xf9   : > { %v551_v54 = vpop.f32.mrb[8].mxu0  ;;  %v594_v57 = vpop.f32.mrb[8].mxu1 }
  0xfa   : > { %v1308_v55 = vpop.f32.mrb[9].mxu0  ;;  %v1314_v59 = vpop.f32.mrb[9].mxu1 }
  0xfb   : > { %v554_v56 = vpop.f32.mrb[10].mxu0  ;;  %v597_v60 = vpop.f32.mrb[10].mxu1 }
  0xfc   : > { %v1309_v58 = vpop.f32.mrb[11].mxu0  ;;  %v1315_v61 = vpop.f32.mrb[11].mxu1 }
 0x101   : > { %v637_v62 = vpop.f32.mrb[12].mxu0  ;;  %v680_v1 = vpop.f32.mrb[12].mxu1 }
 0x102   : > { %v1320_v63 = vpop.f32.mrb[13].mxu0  ;;  %v1326_v3 = vpop.f32.mrb[13].mxu1 }
 0x103   : > { %v640_v0 = vpop.f32.mrb[14].mxu0  ;;  %v683_v4 = vpop.f32.mrb[14].mxu1 }
 0x104   : > { %v1321_v2 = vpop.f32.mrb[15].mxu0  ;;  %v1327_v5 = vpop.f32.mrb[15].mxu1 }
 0x121   : > { %v1346_v6 = vpop.f32.mrb[16].mxu0 }
 0x122   : > { %v849_v8 = vadd.f32 %v1346_v6, %v465_v46  ;;  %v816_v9 = vpop.f32.mrb[17].mxu0 }
 0x123   : > { %v847_v10 = vadd.f32 %v816_v9, %v379_v38  ;;  %v1347_v11 = vpop.f32.mrb[18].mxu0 }
 0x124   : > { %v864_v12 = vadd.f32 %v1187_v7, %v849_v8  ;;  %v850_v13 = vadd.f32 %v1347_v11, %v508_v49  ;;  %v819_v14 = vpop.f32.mrb[19].mxu0 }
 0x125   : > { %v862_v15 = vadd.f32 %v1187_v7, %v847_v10  ;;  %v848_v16 = vadd.f32 %v819_v14, %v422_v41 }
 0x126   : > { %v865_v17 = vadd.f32 %v1187_v7, %v850_v13  ;;  %v872_v19 = vmax.f32 %v864_v12, 0.0 }
 0x127   : > { %v863_v18 = vadd.f32 %v1187_v7, %v848_v16  ;;  %v870_v21 = vmax.f32 %v862_v15, 0.0 }
 0x128   : > { %v873_v20 = vmax.f32 %v865_v17, 0.0 }
 0x129   : > { %v871_v22 = vmax.f32 %v863_v18, 0.0  ;;  %v1350_v23 = vpop.f32.mrb[20].mxu0 }
 0x12a   : > { %v879_v24 = vpack.c.bf16 %v873_v20, %v872_v19  ;;  %v853_v25 = vadd.f32 %v1350_v23, %v637_v62  ;;  %v832_v26 = vpop.f32.mrb[21].mxu0 }
 0x12b   : > { %v851_v27 = vadd.f32 %v832_v26, %v551_v54  ;;  %v1351_v28 = vpop.f32.mrb[22].mxu0  ;;  %v878_v29 = vpack.c.bf16 %v871_v22, %v870_v21 }
 0x12c   : > { %v868_v30 = vadd.f32 %v1187_v7, %v853_v25  ;;  %v854_v31 = vadd.f32 %v1351_v28, %v680_v1  ;;  %v835_v32 = vpop.f32.mrb[23].mxu0 }
 0x12d   : > { %v866_v33 = vadd.f32 %v1187_v7, %v851_v27  ;;  %v852_v34 = vadd.f32 %v835_v32, %v594_v57  ;;  %1368 = vmatprep.mubr.bf16.mxu1 %v878_v29 }
 0x12e   : > { %v869_v35 = vadd.f32 %v1187_v7, %v854_v31  ;;  %1369 = vmatmul.mubr.bf16.vlgmr.msra.gmra.mrb[16].mxu1 %v879_v24  ;;  %v876_v37 = vmax.f32 %v868_v30, 0.0 }
 0x12f   : > { %v867_v36 = vadd.f32 %v1187_v7, %v852_v34  ;;  %v874_v39 = vmax.f32 %v866_v33, 0.0 }
 0x130   : > { %v877_v38 = vmax.f32 %v869_v35, 0.0 }
 0x131   : > { %v875_v40 = vmax.f32 %v867_v36, 0.0 }
 0x132   : > { %v881_v41 = vpack.c.bf16 %v877_v38, %v876_v37 }
 0x133   : > { %v880_v42 = vpack.c.bf16 %v875_v40, %v874_v39 }
 0x135   : > { %1372 = vmatprep.mubr.bf16.mxu1 %v880_v42 }
 0x136   : > { %1373 = vmatmul.mubr.bf16.gmra.mrb[20].mxu1 %v881_v41 }
 0x201   : > { %v1370_v43 = vpop.f32.mrb[16].mxu1 }
 0x202   : > { %v980_v44 = vpop.f32.mrb[17].mxu1 }
 0x203   : > { %v1371_v45 = vpop.f32.mrb[18].mxu1 }
 0x204   : > { %v1225_v46 = vpack.c.bf16 %v1371_v45, %v1370_v43  ;;  %v983_v47 = vpop.f32.mrb[19].mxu1 }
 0x205   : > { %v1220_v48 = vpack.c.bf16 %v983_v47, %v980_v44 }
 0x206   : > { %1237 = vst [vmem:[%s325_s9 + $0x8] sm:$0xff] %v1225_v46  }
 0x207   : > { %1221 = vst [vmem:[%s325_s9] sm:$0xff] %v1220_v48  }
 0x209   : > { %v1374_v49 = vpop.f32.mrb[20].mxu1 }
 0x20a   : > { %v996_v50 = vpop.f32.mrb[21].mxu1 }
 0x20b   : > { %v1375_v51 = vpop.f32.mrb[22].mxu1 }
 0x20c   : > { %v1235_v52 = vpack.c.bf16 %v1375_v51, %v1374_v49  ;;  %v999_v53 = vpop.f32.mrb[23].mxu1 }
 0x20d   : > { %v1230_v54 = vpack.c.bf16 %v999_v53, %v996_v50 }
 0x20e   : > { %1239 = vst [vmem:[%s325_s9 + $0x18] sm:$0xff] %v1235_v52  }
 0x20f   : > { %1238 = vst [vmem:[%s325_s9 + $0x10] sm:$0xff] %v1230_v54  }
 0x210 PF: > { %s16_s23 = sadd.s32 1, %s1444_s23   ;;  %s1628_s21 = smov %s1440_s22 }
 0x211   : > { %p13_p5 = scmp.ge.s32.totalorder %s16_s23, 4   ;;  %s1629_s22 = smov %s1631_s24 }
 0x213   :  { %15 = sbr.rel (!%p13_p5) target bundleno = 2 (0x2), region = 77 }

// kernel: lavt_one_forward.21
= control target key start
LH: loop header
LB: loop body
LE: loop exit
PB: predicated region body
PF: predicated region fallthrough
CT: control target
= control target key end

     0   :  { %s703_s9 = smov 0   ;;  %s705_s10 = smov 0   ;;  %s751_s0 = inlined_call_operand.vmem [shape: bf16[2,8,1024], index: 0, kind: input, shape index: {}]   ;;  %s752_s1 = inlined_call_operand.vmem [shape: bf16[16,8], index: 1, kind: input, shape index: {}]   ;;  %s753_s2 = inlined_call_operand.vmem [shape: bf16[2,16,1024], index: 2, kind: output, shape index: {}]  }
   0x1   :  { %s707_s11 = smov 0  }
   0x2 LB: > { %s24_s12 = sadd.s32 1, %s681_s10  ;;  %p587_p0 = scmp.ge.s32.totalorder %s685_s11, 1  ;;  %s685_s11 = sphi %s707_s11, %s12_s11   ;;  %s681_s10 = sphi %s705_s10, %s755_s10   ;;  %s677_s9 = sphi %s703_s9, %s754_s9  }
   0x3   : > { %p26_p1 = scmp.ge.s32.totalorder %s24_s12, 2  ;;  %p137_p2 = scmp.lt.s32.totalorder %s685_s11, 3 }
   0x5   : > { %s757_s12 = smov (%p26_p1, %s24_s12), 0  ;;  %p138_p3 = pnand %p587_p0, %p137_p2 }
   0x6   : > { %p169_p4 = scmp.lt.s32.totalorder (!%p138_p3), %s677_s9, 1  ;;  %v687_v0 = vmov (!%p138_p3), 0   ;;  %vm227_vm0 = vcmask (!%p138_p3), 1043456   ;;  %v658_v15 = vld [vmem:[%s752_s1] sm:$0xff] (!%p138_p3)   ;;  %vm223_vm1 = vcmask (!%p138_p3), 64512  }
   0x7   : > { %141 = sbr.rel (%p138_p3) target bundleno = 250 (0xfa), region = 28  ;;  %284 = vmatprep.mubr.bf16.mxu0 (!%p138_p3), %v687_v0  ;;  %327 = vmatprep.mubr.bf16.mxu1 (!%p138_p3), %v687_v0 }
   0xe   : > { %s759_s9 = smov (!%p169_p4, %s677_s9), 1 }
   0xf   : > { %s619_s13 = sshll.u32 %s759_s9, 5  ;;  %s620_s19 = sshll.u32 %s759_s9, 6 }
  0x10   : > { %s173_s16 = scalar_lea.vmem %s751_s0, %s619_s13  ;;  %s189_s22 = scalar_lea.vmem %s753_s2, %s620_s19 }
  0x11   : > { %v194_v1 = vld [vmem:[%s173_s16] sm:$0xff]  ;;  %v195_v2 = vld [vmem:[%s173_s16 + $0x8] sm:$0xff]  ;;  %v196_v3 = vld [vmem:[%s173_s16 + $0x10] sm:$0xff] }
  0x12   : > { %v594_v4 = vcombine.high %v194_v1, %v194_v1  ;;  %v596_v5 = vcombine.high %v195_v2, %v195_v2  ;;  %v593_v6 = vcombine.low %v194_v1, %v194_v1  ;;  %v595_v7 = vcombine.low %v195_v2, %v195_v2  ;;  %v197_v8 = vld [vmem:[%s173_s16 + $0x18] sm:$0xff] }
  0x13   : > { %v598_v9 = vcombine.high %v196_v3, %v196_v3  ;;  %v600_v10 = vcombine.high %v197_v8, %v197_v8  ;;  %v597_v11 = vcombine.low %v196_v3, %v196_v3  ;;  %v599_v12 = vcombine.low %v197_v8, %v197_v8 }
  0x14   : > { %601 = vmatprep.subr.msk.bf16.mxu0 %vm227_vm0, %v594_v4  ;;  %603 = vmatprep.subr.msk.bf16.mxu1 %vm227_vm0, %v596_v5  ;;  %v229_v13 = vsel %vm227_vm0, %v593_v6, 0  ;;  %v235_v14 = vsel %vm227_vm0, %v595_v7, 0 }
  0x15   : > { %253 = vmatpush1.bf16.msra.mxu0 %v229_v13  ;;  %296 = vmatpush1.bf16.msra.mxu1 %v235_v14  ;;  %v241_v16 = vsel %vm227_vm0, %v597_v11, 0  ;;  %v247_v17 = vsel %vm227_vm0, %v599_v12, 0 }
  0x16   : > { %605 = vmatprep.subr.msk.bf16.mxu0 %vm227_vm0, %v598_v9  ;;  %607 = vmatprep.subr.msk.bf16.mxu1 %vm227_vm0, %v600_v10 }
  0x18   : > { %602 = vmatmul.mubr.msk.bf16.vlgmr.msra.gmra.mrb[0].mxu0 %vm223_vm1, %v658_v15  ;;  %604 = vmatmul.mubr.msk.bf16.vlgmr.msra.gmra.mrb[0].mxu1 %vm223_vm1, %v658_v15 }
  0x19   : > { %339 = vmatpush1.bf16.msra.mxu0 %v241_v16  ;;  %382 = vmatpush1.bf16.msra.mxu1 %v247_v17 }
  0x1a   : > { %370 = vmatprep.mubr.bf16.mxu0 %v687_v0  ;;  %413 = vmatprep.mubr.bf16.mxu1 %v687_v0 }
  0x20   : > { %606 = vmatmul.mubr.msk.bf16.vlgmr.msra.gmra.mrb[4].mxu0 %vm223_vm1, %v658_v15  ;;  %608 = vmatmul.mubr.msk.bf16.vlgmr.msra.gmra.mrb[4].mxu1 %vm223_vm1, %v658_v15 }
  0xeb   : > { %v286_v18 = vpop.f32.mrb[0].mxu0  ;;  %v329_v19 = vpop.f32.mrb[0].mxu1 }
  0xec   : > { %v288_v20 = vpop.f32.mrb[1].mxu0  ;;  %v331_v21 = vpop.f32.mrb[1].mxu1 }
  0xed   : > { %v621_v22 = vpack.c.bf16 %v288_v20, %v286_v18  ;;  %v622_v23 = vpack.c.bf16 %v331_v21, %v329_v19  ;;  %v290_v24 = vpop.f32.mrb[2].mxu0  ;;  %v333_v25 = vpop.f32.mrb[2].mxu1 }
  0xee   : > { %v292_v26 = vpop.f32.mrb[3].mxu0  ;;  %v335_v27 = vpop.f32.mrb[3].mxu1 }
  0xef   : > { %472 = vst [vmem:[%s189_s22] sm:$0xff] %v621_v22  ;;  %473 = vst [vmem:[%s189_s22 + $0x8] sm:$0xff] %v622_v23  ;;  %v625_v28 = vpack.c.bf16 %v292_v26, %v290_v24  ;;  %v626_v29 = vpack.c.bf16 %v335_v27, %v333_v25 }
  0xf1   : > { %476 = vst [vmem:[%s189_s22 + $0x20] sm:$0xff] %v625_v28  ;;  %477 = vst [vmem:[%s189_s22 + $0x28] sm:$0xff] %v626_v29 }
  0xf3   : > { %v372_v30 = vpop.f32.mrb[4].mxu0  ;;  %v415_v31 = vpop.f32.mrb[4].mxu1 }
  0xf4   : > { %v374_v32 = vpop.f32.mrb[5].mxu0  ;;  %v417_v33 = vpop.f32.mrb[5].mxu1 }
  0xf5   : > { %v623_v34 = vpack.c.bf16 %v374_v32, %v372_v30  ;;  %v624_v35 = vpack.c.bf16 %v417_v33, %v415_v31  ;;  %v376_v36 = vpop.f32.mrb[6].mxu0  ;;  %v419_v37 = vpop.f32.mrb[6].mxu1 }
  0xf6   : > { %v378_v38 = vpop.f32.mrb[7].mxu0  ;;  %v421_v39 = vpop.f32.mrb[7].mxu1 }
  0xf7   : > { %474 = vst [vmem:[%s189_s22 + $0x10] sm:$0xff] %v623_v34  ;;  %475 = vst [vmem:[%s189_s22 + $0x18] sm:$0xff] %v624_v35  ;;  %v627_v40 = vpack.c.bf16 %v378_v38, %v376_v36  ;;  %v628_v41 = vpack.c.bf16 %v421_v39, %v419_v37 }
  0xf9   : > { %478 = vst [vmem:[%s189_s22 + $0x30] sm:$0xff] %v627_v40  ;;  %479 = vst [vmem:[%s189_s22 + $0x38] sm:$0xff] %v628_v41 }
  0xfa PF: > { %s12_s11 = sadd.s32 1, %s685_s11   ;;  %s754_s9 = smov %s681_s10 }
  0xfb   : > { %p9_p5 = scmp.ge.s32.totalorder %s12_s11, 4   ;;  %s755_s10 = smov %s757_s12 }
  0xfd   :  { %11 = sbr.rel (!%p9_p5) target bundleno = 2 (0x2), region = 61 }

// kernel: lavt_one_forward.22
= control target key start
LH: loop header
LB: loop body
LE: loop exit
PB: predicated region body
PF: predicated region fallthrough
CT: control target
= control target key end

     0   :  { %s2392_s24 = smov 0   ;;  %s2394_s25 = smov 0   ;;  %s2819_s0 = inlined_call_operand.vmem [shape: bf16[2,16,8,128], index: 0, kind: input, shape index: {}]   ;;  %s2820_s1 = inlined_call_operand.vmem [shape: bf16[2,256,128], index: 1, kind: input, shape index: {}]   ;;  %s2821_s2 = inlined_call_operand.vmem [shape: bf16[16,8], index: 2, kind: input, shape index: {}]   ;;  %s2822_s3 = inlined_call_operand.vmem [shape: bf16[128,128], index: 3, kind: input, shape index: {}]   ;;  %s2823_s4 = inlined_call_operand.vmem [shape: f32[1,128], index: 4, kind: input, shape index: {}]   ;;  %s2824_s5 = inlined_call_operand.vmem [shape: bf16[128,128], index: 5, kind: input, shape index: {}]   ;;  %s2825_s6 = inlined_call_operand.vmem [shape: f32[1,128], index: 6, kind: input, shape index: {}]   ;;  %s2826_s7 = inlined_call_operand.vmem [shape: f32[2,256,128], index: 7, kind: output, shape index: {}]  }
   0x1   :  { %s2396_s26 = smov 0  }
   0x2 LB: > { %s29_s27 = sadd.s32 1, %s2344_s25  ;;  %p1932_p0 = scmp.ge.s32.totalorder %s2348_s26, 1  ;;  %s2348_s26 = sphi %s2396_s26, %s17_s26   ;;  %s2344_s25 = sphi %s2394_s25, %s2828_s25   ;;  %s2340_s24 = sphi %s2392_s24, %s2827_s24  }
   0x3   : > { %p31_p1 = scmp.ge.s32.totalorder %s29_s27, 2  ;;  %p275_p2 = scmp.lt.s32.totalorder %s2348_s26, 3 }
   0x5   : > { %s2830_s27 = smov (%p31_p1, %s29_s27), 0  ;;  %p276_p3 = pnand %p1932_p0, %p275_p2 }
   0x6   : > { %p325_p4 = scmp.lt.s32.totalorder (!%p276_p3), %s2340_s24, 1  ;;  %v2350_v0 = vmov (!%p276_p3), 0.0   ;;  %vm2351_vm0 = vmmov (!%p276_p3), 0   ;;  %vm382_vm1 = vcmask (!%p276_p3), 1043456   ;;  %v2430_v4 = vld [vmem:[%s2821_s2] sm:$0xff] (!%p276_p3)   ;;  %vm378_vm2 = vcmask (!%p276_p3), 64512  }
   0x7   : > { %279 = sbr.rel (%p276_p3) target bundleno = 608 (0x260), region = 48  ;;  %2075 = vmatprep.subr.bf16.mxu0 (!%p276_p3), %v2350_v0  ;;  %2077 = vmatprep.mubr.msk.bf16.mxu0 (!%p276_p3), %vm2351_vm0, %v2350_v0  ;;  %v2294_v32 = vld [vmem:[%s2822_s3] sm:$0xff] (!%p276_p3)   ;;  %v2295_v36 = vld [vmem:[%s2822_s3 + $0x8] sm:$0xff] (!%p276_p3)   ;;  %v2296_v37 = vld [vmem:[%s2822_s3 + $0x10] sm:$0xff] (!%p276_p3)  }
   0x8   : > { %2081 = vmatprep.subr.bf16.mxu1 (!%p276_p3), %v2350_v0  ;;  %2083 = vmatprep.mubr.msk.bf16.mxu1 (!%p276_p3), %vm2351_vm0, %v2350_v0  ;;  %v2297_v38 = vld [vmem:[%s2822_s3 + $0x18] sm:$0xff] (!%p276_p3)   ;;  %v2298_v39 = vld [vmem:[%s2822_s3 + $0x20] sm:$0xff] (!%p276_p3)   ;;  %v2299_v40 = vld [vmem:[%s2822_s3 + $0x28] sm:$0xff] (!%p276_p3)  }
   0x9   : > { %v2300_v41 = vld [vmem:[%s2822_s3 + $0x30] sm:$0xff] (!%p276_p3)   ;;  %v2301_v42 = vld [vmem:[%s2822_s3 + $0x38] sm:$0xff] (!%p276_p3)   ;;  %v2318_v58 = vld [vmem:[%s2824_s5] sm:$0xff] (!%p276_p3)  }
   0xa   : > { %v2319_v59 = vld [vmem:[%s2824_s5 + $0x8] sm:$0xff] (!%p276_p3)   ;;  %v2320_v60 = vld [vmem:[%s2824_s5 + $0x10] sm:$0xff] (!%p276_p3)   ;;  %v2321_v61 = vld [vmem:[%s2824_s5 + $0x18] sm:$0xff] (!%p276_p3)  }
   0xb   : > { %v2322_v62 = vld [vmem:[%s2824_s5 + $0x20] sm:$0xff] (!%p276_p3)   ;;  %v2323_v63 = vld [vmem:[%s2824_s5 + $0x28] sm:$0xff] (!%p276_p3)  }
   0xe   : > { %s2832_s24 = smov (!%p325_p4, %s2340_s24), 1 }
   0xf   : > { %s1992_s28 = sshll.u32 %s2832_s24, 6  ;;  %s1993_s11 = sshll.u32 %s2832_s24, 7 }
  0x10   : > { %s2422_s8 = scalar_lea.vmem %s2819_s0, %s1992_s28  ;;  %s2442_s14 = scalar_lea.vmem %s2820_s1, %s1993_s11 }
  0x11   : > { %v355_v1 = vld [vmem:[%s2422_s8] sm:$0xf]  ;;  %v357_v2 = vld [vmem:[%s2422_s8 + $0x8] sm:$0xf]  ;;  %v359_v6 = vld [vmem:[%s2422_s8 + $0x10] sm:$0xf] }
  0x12   : > { %v384_v3 = vsel %vm382_vm1, %v355_v1, 0  ;;  %v472_v5 = vsel %vm382_vm1, %v357_v2, 0  ;;  %v356_v7 = vld [vmem:[%s2422_s8 + $0x4] sm:$0xf]  ;;  %v358_v9 = vld [vmem:[%s2422_s8 + $0xc] sm:$0xf] }
  0x13   : > { %2076 = vmatpush3.bf16.msra.mxu0 %v384_v3  ;;  %v428_v8 = vsel %vm382_vm1, %v356_v7, 0  ;;  %v560_v10 = vsel %vm382_vm1, %v359_v6, 0  ;;  %v516_v11 = vsel %vm382_vm1, %v358_v9, 0  ;;  %v360_v12 = vld [vmem:[%s2422_s8 + $0x14] sm:$0xf]  ;;  %v2302_v34 = vld [vmem:[%s2442_s14] sm:$0xff]  }
  0x14   : > { %2087 = vmatprep.subr.bf16.mxu0 %v2350_v0  ;;  %2082 = vmatpush3.bf16.msra.mxu1 %v428_v8  ;;  %v361_v13 = vld [vmem:[%s2422_s8 + $0x18] sm:$0xf]  ;;  %v604_v14 = vsel %vm382_vm1, %v360_v12, 0  ;;  %v363_v16 = vld [vmem:[%s2422_s8 + $0x20] sm:$0xf]  ;;  %v2303_v43 = vld [vmem:[%s2442_s14 + $0x8] sm:$0xff]  }
  0x15   : > { %2093 = vmatprep.subr.bf16.mxu1 %v2350_v0  ;;  %v648_v15 = vsel %vm382_vm1, %v361_v13, 0  ;;  %v362_v17 = vld [vmem:[%s2422_s8 + $0x1c] sm:$0xf]  ;;  %v736_v18 = vsel %vm382_vm1, %v363_v16, 0  ;;  %v364_v20 = vld [vmem:[%s2422_s8 + $0x24] sm:$0xf] }
  0x16   : > { %2078 = vmatmul.mubr.msk.bf16.vlgmr.msra.gmra.mrb[0].mxu0 %vm378_vm2, %v2430_v4  ;;  %v692_v19 = vsel %vm382_vm1, %v362_v17, 0  ;;  %v365_v21 = vld [vmem:[%s2422_s8 + $0x28] sm:$0xf]  ;;  %v780_v22 = vsel %vm382_vm1, %v364_v20, 0  ;;  %v366_v24 = vld [vmem:[%s2422_s8 + $0x2c] sm:$0xf] }
  0x17   : > { %2088 = vmatpush3.bf16.msra.mxu0 %v472_v5  ;;  %2089 = vmatprep.mubr.msk.bf16.mxu0 %vm2351_vm0, %v2350_v0  ;;  %v824_v23 = vsel %vm382_vm1, %v365_v21, 0  ;;  %v367_v25 = vld [vmem:[%s2422_s8 + $0x30] sm:$0xf]  ;;  %v868_v26 = vsel %vm382_vm1, %v366_v24, 0  ;;  %v368_v28 = vld [vmem:[%s2422_s8 + $0x34] sm:$0xf] }
  0x18   : > { %2099 = vmatprep.subr.bf16.mxu0 %v2350_v0  ;;  %2084 = vmatmul.mubr.msk.bf16.vlgmr.msra.gmra.mrb[0].mxu1 %vm378_vm2, %v2430_v4  ;;  %v912_v27 = vsel %vm382_vm1, %v367_v25, 0  ;;  %v369_v29 = vld [vmem:[%s2422_s8 + $0x38] sm:$0xf]  ;;  %v956_v30 = vsel %vm382_vm1, %v368_v28, 0  ;;  %v370_v33 = vld [vmem:[%s2422_s8 + $0x3c] sm:$0xf] }
  0x19   : > { %2094 = vmatpush3.bf16.msra.mxu1 %v516_v11  ;;  %2095 = vmatprep.mubr.msk.bf16.mxu1 %vm2351_vm0, %v2350_v0  ;;  %v1000_v31 = vsel %vm382_vm1, %v369_v29, 0  ;;  %v1044_v35 = vsel %vm382_vm1, %v370_v33, 0  ;;  %v2304_v44 = vld [vmem:[%s2442_s14 + $0x10] sm:$0xff]   ;;  %v2305_v45 = vld [vmem:[%s2442_s14 + $0x18] sm:$0xff]   ;;  %v2306_v46 = vld [vmem:[%s2442_s14 + $0x20] sm:$0xff]   ;;  %s1994_s11 = sshll.u32 %s2832_s24, 8 }
  0x1a   : > { %2105 = vmatprep.subr.bf16.mxu1 %v2350_v0  ;;  %v2307_v47 = vld [vmem:[%s2442_s14 + $0x28] sm:$0xff]   ;;  %v2308_v48 = vld [vmem:[%s2442_s14 + $0x30] sm:$0xff]   ;;  %v2309_v49 = vld [vmem:[%s2442_s14 + $0x38] sm:$0xff]   ;;  %s2744_s17 = scalar_lea.vmem %s2826_s7, %s1994_s11 }
  0x1b   : > { %v2310_v50 = vld [vmem:[%s2442_s14 + $0x40] sm:$0xff]   ;;  %v2311_v51 = vld [vmem:[%s2442_s14 + $0x48] sm:$0xff]   ;;  %v2312_v52 = vld [vmem:[%s2442_s14 + $0x50] sm:$0xff]  }
  0x1c   : > { %v2313_v53 = vld [vmem:[%s2442_s14 + $0x58] sm:$0xff]   ;;  %v2314_v54 = vld [vmem:[%s2442_s14 + $0x60] sm:$0xff]   ;;  %v2315_v55 = vld [vmem:[%s2442_s14 + $0x68] sm:$0xff]  }
  0x1d   : > { %v2316_v56 = vld [vmem:[%s2442_s14 + $0x70] sm:$0xff]   ;;  %v2317_v57 = vld [vmem:[%s2442_s14 + $0x78] sm:$0xff]  }
  0x1e   : > { %2090 = vmatmul.mubr.msk.bf16.vlgmr.msra.gmra.mrb[4].mxu0 %vm378_vm2, %v2430_v4  ;;  %v2325_v1 = vld [vmem:[%s2824_s5 + $0x38] sm:$0xff]  }
  0x1f   : > { %2100 = vmatpush3.bf16.msra.mxu0 %v560_v10  ;;  %2101 = vmatprep.mubr.msk.bf16.mxu0 %vm2351_vm0, %v2350_v0 }
  0x20   : > { %2111 = vmatprep.subr.bf16.mxu0 %v2350_v0  ;;  %2096 = vmatmul.mubr.msk.bf16.vlgmr.msra.gmra.mrb[4].mxu1 %vm378_vm2, %v2430_v4 }
  0x21   : > { %2106 = vmatpush3.bf16.msra.mxu1 %v604_v14  ;;  %2107 = vmatprep.mubr.msk.bf16.mxu1 %vm2351_vm0, %v2350_v0 }
  0x22   : > { %2117 = vmatprep.subr.bf16.mxu1 %v2350_v0 }
  0x26   : > { %2102 = vmatmul.mubr.msk.bf16.vlgmr.msra.gmra.mrb[8].mxu0 %vm378_vm2, %v2430_v4 }
  0x27   : > { %2112 = vmatpush3.bf16.msra.mxu0 %v648_v15  ;;  %2113 = vmatprep.mubr.msk.bf16.mxu0 %vm2351_vm0, %v2350_v0 }
  0x28   : > { %2123 = vmatprep.subr.bf16.mxu0 %v2350_v0  ;;  %2108 = vmatmul.mubr.msk.bf16.vlgmr.msra.gmra.mrb[8].mxu1 %vm378_vm2, %v2430_v4 }
  0x29   : > { %2118 = vmatpush3.bf16.msra.mxu1 %v692_v19  ;;  %2119 = vmatprep.mubr.msk.bf16.mxu1 %vm2351_vm0, %v2350_v0 }
  0x2a   : > { %2129 = vmatprep.subr.bf16.mxu1 %v2350_v0 }
  0x2e   : > { %2114 = vmatmul.mubr.msk.bf16.vlgmr.msra.gmra.mrb[12].mxu0 %vm378_vm2, %v2430_v4 }
  0x2f   : > { %2124 = vmatpush3.bf16.msra.mxu0 %v736_v18  ;;  %2125 = vmatprep.mubr.msk.bf16.mxu0 %vm2351_vm0, %v2350_v0 }
  0x30   : > { %2135 = vmatprep.subr.bf16.mxu0 %v2350_v0  ;;  %2120 = vmatmul.mubr.msk.bf16.vlgmr.msra.gmra.mrb[12].mxu1 %vm378_vm2, %v2430_v4 }
  0x31   : > { %2130 = vmatpush3.bf16.msra.mxu1 %v780_v22  ;;  %2131 = vmatprep.mubr.msk.bf16.mxu1 %vm2351_vm0, %v2350_v0 }
  0x32   : > { %2141 = vmatprep.subr.bf16.mxu1 %v2350_v0 }
  0x36   : > { %2126 = vmatmul.mubr.msk.bf16.vlgmr.msra.gmra.mrb[16].mxu0 %vm378_vm2, %v2430_v4 }
  0x37   : > { %2136 = vmatpush3.bf16.msra.mxu0 %v824_v23  ;;  %2137 = vmatprep.mubr.msk.bf16.mxu0 %vm2351_vm0, %v2350_v0 }
  0x38   : > { %2147 = vmatprep.subr.bf16.mxu0 %v2350_v0  ;;  %2132 = vmatmul.mubr.msk.bf16.vlgmr.msra.gmra.mrb[16].mxu1 %vm378_vm2, %v2430_v4 }
  0x39   : > { %2142 = vmatpush3.bf16.msra.mxu1 %v868_v26  ;;  %2143 = vmatprep.mubr.msk.bf16.mxu1 %vm2351_vm0, %v2350_v0 }
  0x3a   : > { %2153 = vmatprep.subr.bf16.mxu1 %v2350_v0 }
  0x3e   : > { %2138 = vmatmul.mubr.msk.bf16.vlgmr.msra.gmra.mrb[20].mxu0 %vm378_vm2, %v2430_v4 }
  0x3f   : > { %2148 = vmatpush3.bf16.msra.mxu0 %v912_v27  ;;  %2149 = vmatprep.mubr.msk.bf16.mxu0 %vm2351_vm0, %v2350_v0 }
  0x40   : > { %2159 = vmatprep.subr.bf16.mxu0 %v2350_v0  ;;  %2144 = vmatmul.mubr.msk.bf16.vlgmr.msra.gmra.mrb[20].mxu1 %vm378_vm2, %v2430_v4 }
  0x41   : > { %2154 = vmatpush3.bf16.msra.mxu1 %v956_v30  ;;  %2155 = vmatprep.mubr.msk.bf16.mxu1 %vm2351_vm0, %v2350_v0 }
  0x42   : > { %2165 = vmatprep.subr.bf16.mxu1 %v2350_v0 }
  0x46   : > { %2150 = vmatmul.mubr.msk.bf16.vlgmr.msra.gmra.mrb[24].mxu0 %vm378_vm2, %v2430_v4 }
  0x47   : > { %2160 = vmatpush3.bf16.msra.mxu0 %v1000_v31  ;;  %2161 = vmatprep.mubr.msk.bf16.mxu0 %vm2351_vm0, %v2350_v0 }
  0x48   : > { %2171 = vmatprep.subr.bf16.mxu0 %v2294_v32  ;;  %2156 = vmatmul.mubr.msk.bf16.vlgmr.msra.gmra.mrb[24].mxu1 %vm378_vm2, %v2430_v4 }
  0x49   : > { %2166 = vmatpush3.bf16.msra.mxu1 %v1044_v35  ;;  %2167 = vmatprep.mubr.msk.bf16.mxu1 %vm2351_vm0, %v2350_v0  ;;  %v2324_v0 = vld [vmem:[%s2824_s5 + $0x30] sm:$0xff]  }
  0x4a   : > { %2219 = vmatprep.subr.bf16.mxu1 %v2318_v58 }
  0x4e   : > { %2162 = vmatmul.mubr.msk.bf16.vlgmr.msra.gmra.mrb[28].mxu0 %vm378_vm2, %v2430_v4 }
  0x4f   : > { %2172 = vmatpush3.bf16.msra.mxu0 %v2294_v32  ;;  %2187 = vmatprep.mubr.bf16.mxu0 %v2302_v34 }
  0x50   : > { %2173 = vmatprep.subr.bf16.mxu0 %v2295_v36  ;;  %2168 = vmatmul.mubr.msk.bf16.vlgmr.msra.gmra.mrb[28].mxu1 %vm378_vm2, %v2430_v4 }
  0x51   : > { %2220 = vmatpush3.bf16.msra.mxu1 %v2318_v58 }
  0x52   : > { %2221 = vmatprep.subr.bf16.mxu1 %v2319_v59 }
  0x53   : > { %2174 = vmatpush3.bf16.msra.mxu0 %v2295_v36 }
  0x54   : > { %2175 = vmatprep.subr.bf16.mxu0 %v2296_v37 }
  0x55   : > { %2222 = vmatpush3.bf16.msra.mxu1 %v2319_v59 }
  0x56   : > { %2223 = vmatprep.subr.bf16.mxu1 %v2320_v60 }
  0x57   : > { %2176 = vmatpush3.bf16.msra.mxu0 %v2296_v37 }
  0x58   : > { %2177 = vmatprep.subr.bf16.mxu0 %v2297_v38 }
  0x59   : > { %2224 = vmatpush3.bf16.msra.mxu1 %v2320_v60 }
  0x5a   : > { %2225 = vmatprep.subr.bf16.mxu1 %v2321_v61 }
  0x5b   : > { %2178 = vmatpush3.bf16.msra.mxu0 %v2297_v38 }
  0x5c   : > { %2179 = vmatprep.subr.bf16.mxu0 %v2298_v39 }
  0x5d   : > { %2226 = vmatpush3.bf16.msra.mxu1 %v2321_v61 }
  0x5e   : > { %2227 = vmatprep.subr.bf16.mxu1 %v2322_v62 }
  0x5f   : > { %2180 = vmatpush3.bf16.msra.mxu0 %v2298_v39 }
  0x60   : > { %2181 = vmatprep.subr.bf16.mxu0 %v2299_v40 }
  0x61   : > { %2228 = vmatpush3.bf16.msra.mxu1 %v2322_v62 }
  0x62   : > { %2229 = vmatprep.subr.bf16.mxu1 %v2323_v63 }
  0x63   : > { %2182 = vmatpush3.bf16.msra.mxu0 %v2299_v40 }
  0x64   : > { %2183 = vmatprep.subr.bf16.mxu0 %v2300_v41 }
  0x65   : > { %2230 = vmatpush3.bf16.msra.mxu1 %v2323_v63 }
  0x66   : > { %2231 = vmatprep.subr.bf16.mxu1 %v2324_v0 }
  0x67   : > { %2184 = vmatpush3.bf16.msra.mxu0 %v2300_v41 }
  0x68   : > { %2185 = vmatprep.subr.bf16.mxu0 %v2301_v42 }
  0x69   : > { %2232 = vmatpush3.bf16.msra.mxu1 %v2324_v0 }
  0x6a   : > { %2233 = vmatprep.subr.bf16.mxu1 %v2325_v1 }
  0x6b   : > { %2186 = vmatpush3.bf16.msra.mxu0 %v2301_v42 }
  0x6d   : > { %2234 = vmatpush3.bf16.msra.mxu1 %v2325_v1 }
  0x6e   : > { %2188 = vmatmul.mubr.bf16.vlgmr.msra.gmra.mrb[32].mxu0 %v2303_v43 }
  0x6f   : > { %2191 = vmatprep.mubr.bf16.mxu0 %v2304_v44 }
  0x76   : > { %2192 = vmatmul.mubr.bf16.gmra.mrb[36].mxu0 %v2305_v45 }
  0x77   : > { %2195 = vmatprep.mubr.bf16.mxu0 %v2306_v46 }
  0x7e   : > { %2196 = vmatmul.mubr.bf16.gmra.mrb[40].mxu0 %v2307_v47 }
  0x7f   : > { %2199 = vmatprep.mubr.bf16.mxu0 %v2308_v48 }
  0x86   : > { %2200 = vmatmul.mubr.bf16.gmra.mrb[44].mxu0 %v2309_v49 }
  0x87   : > { %2203 = vmatprep.mubr.bf16.mxu0 %v2310_v50 }
  0x8e   : > { %2204 = vmatmul.mubr.bf16.gmra.mrb[48].mxu0 %v2311_v51 }
  0x8f   : > { %2207 = vmatprep.mubr.bf16.mxu0 %v2312_v52 }
  0x96   : > { %2208 = vmatmul.mubr.bf16.gmra.mrb[52].mxu0 %v2313_v53 }
  0x97   : > { %2211 = vmatprep.mubr.bf16.mxu0 %v2314_v54 }
  0x9e   : > { %2212 = vmatmul.mubr.bf16.gmra.mrb[56].mxu0 %v2315_v55 }
  0x9f   : > { %2215 = vmatprep.mubr.bf16.mxu0 %v2316_v56 }
  0xa6   : > { %2216 = vmatmul.mubr.bf16.gmra.mrb[60].mxu0 %v2317_v57 }
  0xe9   : > { %v2605_v2 = vpop.f32.mrb[0].mxu0 }
  0xea   : > { %v2079_v3 = vpop.f32.mrb[1].mxu0 }
  0xeb   : > { %v2607_v4 = vpop.f32.mrb[2].mxu0  ;;  %v464_v6 = vpop.f32.mrb[0].mxu1 }
  0xec   : > { %v2080_v5 = vpop.f32.mrb[3].mxu0  ;;  %v2085_v8 = vpop.f32.mrb[1].mxu1 }
  0xed   : > { %v2611_v10 = vpop.f32.mrb[2].mxu1  ;;  %v2670_v5 = vld [vmem:[%s2823_s4] ss:$0 sm:$0xff] }
  0xee   : > { %v2086_v12 = vpop.f32.mrb[3].mxu1 }
  0xf1   : > { %v2609_v7 = vpop.f32.mrb[4].mxu0 }
  0xf2   : > { %v2091_v9 = vpop.f32.mrb[5].mxu0 }
  0xf3   : > { %v2613_v11 = vpop.f32.mrb[6].mxu0  ;;  %v2615_v14 = vpop.f32.mrb[4].mxu1 }
  0xf4   : > { %v2092_v13 = vpop.f32.mrb[7].mxu0  ;;  %v2097_v16 = vpop.f32.mrb[5].mxu1 }
  0xf5   : > { %v2619_v18 = vpop.f32.mrb[6].mxu1 }
  0xf6   : > { %v2098_v20 = vpop.f32.mrb[7].mxu1 }
  0xf9   : > { %v2617_v15 = vpop.f32.mrb[8].mxu0 }
  0xfa   : > { %v2103_v17 = vpop.f32.mrb[9].mxu0 }
  0xfb   : > { %v2621_v19 = vpop.f32.mrb[10].mxu0  ;;  %v2623_v22 = vpop.f32.mrb[8].mxu1 }
  0xfc   : > { %v2104_v21 = vpop.f32.mrb[11].mxu0  ;;  %v2109_v24 = vpop.f32.mrb[9].mxu1 }
  0xfd   : > { %v2627_v26 = vpop.f32.mrb[10].mxu1 }
  0xfe   : > { %v2110_v28 = vpop.f32.mrb[11].mxu1 }
 0x101   : > { %v2625_v23 = vpop.f32.mrb[12].mxu0 }
 0x102   : > { %v2115_v25 = vpop.f32.mrb[13].mxu0 }
 0x103   : > { %v2629_v27 = vpop.f32.mrb[14].mxu0  ;;  %v2631_v30 = vpop.f32.mrb[12].mxu1 }
 0x104   : > { %v2116_v29 = vpop.f32.mrb[15].mxu0  ;;  %v2121_v32 = vpop.f32.mrb[13].mxu1 }
 0x105   : > { %v2635_v34 = vpop.f32.mrb[14].mxu1 }
 0x106   : > { %v2122_v36 = vpop.f32.mrb[15].mxu1 }
 0x109   : > { %v2633_v31 = vpop.f32.mrb[16].mxu0 }
 0x10a   : > { %v2127_v33 = vpop.f32.mrb[17].mxu0 }
 0x10b   : > { %v2637_v35 = vpop.f32.mrb[18].mxu0  ;;  %v2639_v38 = vpop.f32.mrb[16].mxu1 }
 0x10c   : > { %v2128_v37 = vpop.f32.mrb[19].mxu0  ;;  %v2133_v40 = vpop.f32.mrb[17].mxu1 }
 0x10d   : > { %v2643_v42 = vpop.f32.mrb[18].mxu1 }
 0x10e   : > { %v2134_v44 = vpop.f32.mrb[19].mxu1 }
 0x111   : > { %v2641_v39 = vpop.f32.mrb[20].mxu0 }
 0x112   : > { %v2139_v41 = vpop.f32.mrb[21].mxu0 }
 0x113   : > { %v2645_v43 = vpop.f32.mrb[22].mxu0  ;;  %v2647_v46 = vpop.f32.mrb[20].mxu1 }
 0x114   : > { %v2140_v45 = vpop.f32.mrb[23].mxu0  ;;  %v2145_v48 = vpop.f32.mrb[21].mxu1 }
 0x115   : > { %v2651_v50 = vpop.f32.mrb[22].mxu1 }
 0x116   : > { %v2146_v52 = vpop.f32.mrb[23].mxu1 }
 0x119   : > { %v2649_v47 = vpop.f32.mrb[24].mxu0 }
 0x11a   : > { %v2151_v49 = vpop.f32.mrb[25].mxu0 }
 0x11b   : > { %v2653_v51 = vpop.f32.mrb[26].mxu0  ;;  %v2655_v54 = vpop.f32.mrb[24].mxu1 }
 0x11c   : > { %v2152_v53 = vpop.f32.mrb[27].mxu0  ;;  %v2157_v56 = vpop.f32.mrb[25].mxu1 }
 0x11d   : > { %v2659_v58 = vpop.f32.mrb[26].mxu1 }
 0x11e   : > { %v2158_v60 = vpop.f32.mrb[27].mxu1 }
 0x121   : > { %v2657_v55 = vpop.f32.mrb[28].mxu0 }
 0x122   : > { %v2163_v57 = vpop.f32.mrb[29].mxu0 }
 0x123   : > { %v2661_v59 = vpop.f32.mrb[30].mxu0  ;;  %v2663_v62 = vpop.f32.mrb[28].mxu1 }
 0x124   : > { %v2164_v61 = vpop.f32.mrb[31].mxu0  ;;  %v2169_v63 = vpop.f32.mrb[29].mxu1 }
 0x125   : > { %v2665_v0 = vpop.f32.mrb[30].mxu1 }
 0x126   : > { %v2170_v1 = vpop.f32.mrb[31].mxu1 }
 0x141   : > { %v2189_v3 = vpop.f32.mrb[32].mxu0 }
 0x142   : > { %v1442_v8 = vadd.f32 %v2189_v3, %v464_v6  ;;  %v1313_v9 = vpop.f32.mrb[33].mxu0 }
 0x143   : > { %v1440_v12 = vadd.f32 %v1313_v9, %v2605_v2  ;;  %v2190_v13 = vpop.f32.mrb[34].mxu0 }
 0x144   : > { %v1481_v16 = vadd.f32 %v2670_v5, %v1442_v8  ;;  %v1443_v17 = vadd.f32 %v2190_v13, %v2611_v10  ;;  %v1316_v20 = vpop.f32.mrb[35].mxu0 }
 0x145   : > { %v1479_v21 = vadd.f32 %v2670_v5, %v1440_v12  ;;  %v1441_v24 = vadd.f32 %v1316_v20, %v2607_v4 }
 0x146   : > { %v1482_v25 = vadd.f32 %v2670_v5, %v1443_v17  ;;  %v1513_v29 = vmax.f32 %v1481_v16, 0.0 }
 0x147   : > { %v1480_v28 = vadd.f32 %v2670_v5, %v1441_v24  ;;  %v1511_v6 = vmax.f32 %v1479_v21, 0.0 }
 0x148   : > { %v1514_v32 = vmax.f32 %v1482_v25, 0.0 }
 0x149   : > { %v1512_v33 = vmax.f32 %v1480_v28, 0.0  ;;  %v2193_v36 = vpop.f32.mrb[36].mxu0 }
 0x14a   : > { %v1544_v2 = vpack.c.bf16 %v1514_v32, %v1513_v29  ;;  %v1446_v37 = vadd.f32 %v2193_v36, %v2615_v14  ;;  %v1329_v40 = vpop.f32.mrb[37].mxu0 }
 0x14b   : > { %v1444_v10 = vadd.f32 %v1329_v40, %v2609_v7  ;;  %v2194_v41 = vpop.f32.mrb[38].mxu0  ;;  %v1543_v44 = vpack.c.bf16 %v1512_v33, %v1511_v6 }
 0x14c   : > { %v1485_v45 = vadd.f32 %v2670_v5, %v1446_v37  ;;  %v1447_v4 = vadd.f32 %v2194_v41, %v2619_v18  ;;  %v1332_v48 = vpop.f32.mrb[39].mxu0 }
 0x14d   : > { %v1483_v49 = vadd.f32 %v2670_v5, %v1444_v10  ;;  %v1445_v52 = vadd.f32 %v1332_v48, %v2613_v11  ;;  %2235 = vmatprep.mubr.bf16.mxu1 %v1543_v44 }
 0x14e   : > { %v1486_v53 = vadd.f32 %v2670_v5, %v1447_v4  ;;  %2236 = vmatmul.mubr.bf16.vlgmr.msra.gmra.mrb[32].mxu1 %v1544_v2  ;;  %v1517_v56 = vmax.f32 %v1485_v45, 0.0 }
 0x14f   : > { %v1484_v14 = vadd.f32 %v2670_v5, %v1445_v52  ;;  %v1515_v7 = vmax.f32 %v1483_v49, 0.0 }
 0x150   : > { %v1518_v57 = vmax.f32 %v1486_v53, 0.0 }
 0x151   : > { %v1516_v60 = vmax.f32 %v1484_v14, 0.0  ;;  %v2197_v61 = vpop.f32.mrb[40].mxu0 }
 0x152   : > { %v1450_v63 = vadd.f32 %v2197_v61, %v2623_v22  ;;  %v1345_v1 = vpop.f32.mrb[41].mxu0  ;;  %v1546_v18 = vpack.c.bf16 %v1518_v57, %v1517_v56 }
 0x153   : > { %v1448_v3 = vadd.f32 %v1345_v1, %v2617_v15  ;;  %v2198_v8 = vpop.f32.mrb[42].mxu0  ;;  %v1545_v9 = vpack.c.bf16 %v1516_v60, %v1515_v7 }
 0x154   : > { %v1489_v11 = vadd.f32 %v2670_v5, %v1450_v63  ;;  %v1451_v12 = vadd.f32 %v2198_v8, %v2627_v26  ;;  %v1348_v13 = vpop.f32.mrb[43].mxu0 }
 0x155   : > { %v1487_v16 = vadd.f32 %v2670_v5, %v1448_v3  ;;  %v1449_v17 = vadd.f32 %v1348_v13, %v2621_v19  ;;  %2239 = vmatprep.mubr.bf16.mxu1 %v1545_v9 }
 0x156   : > { %v1490_v20 = vadd.f32 %v2670_v5, %v1451_v12  ;;  %2240 = vmatmul.mubr.bf16.gmra.mrb[36].mxu1 %v1546_v18  ;;  %v1521_v21 = vmax.f32 %v1489_v11, 0.0 }
 0x157   : > { %v1488_v22 = vadd.f32 %v2670_v5, %v1449_v17  ;;  %v1519_v15 = vmax.f32 %v1487_v16, 0.0 }
 0x158   : > { %v1522_v24 = vmax.f32 %v1490_v20, 0.0 }
 0x159   : > { %v1520_v25 = vmax.f32 %v1488_v22, 0.0  ;;  %v2201_v28 = vpop.f32.mrb[44].mxu0 }
 0x15a   : > { %v1454_v29 = vadd.f32 %v2201_v28, %v2631_v30  ;;  %v1361_v32 = vpop.f32.mrb[45].mxu0  ;;  %v1548_v26 = vpack.c.bf16 %v1522_v24, %v1521_v21 }
 0x15b   : > { %v1452_v6 = vadd.f32 %v1361_v32, %v2625_v23  ;;  %v2202_v33 = vpop.f32.mrb[46].mxu0  ;;  %v1547_v36 = vpack.c.bf16 %v1520_v25, %v1519_v15 }
 0x15c   : > { %v1493_v19 = vadd.f32 %v2670_v5, %v1454_v29  ;;  %v1455_v2 = vadd.f32 %v2202_v33, %v2635_v34  ;;  %v1364_v37 = vpop.f32.mrb[47].mxu0 }
 0x15d   : > { %v1491_v40 = vadd.f32 %v2670_v5, %v1452_v6  ;;  %v1453_v10 = vadd.f32 %v1364_v37, %v2629_v27  ;;  %2243 = vmatprep.mubr.bf16.mxu1 %v1547_v36 }
 0x15e   : > { %v1494_v41 = vadd.f32 %v2670_v5, %v1455_v2  ;;  %2244 = vmatmul.mubr.bf16.gmra.mrb[40].mxu1 %v1548_v26  ;;  %v1525_v44 = vmax.f32 %v1493_v19, 0.0 }
 0x15f   : > { %v1492_v30 = vadd.f32 %v2670_v5, %v1453_v10  ;;  %v1523_v23 = vmax.f32 %v1491_v40, 0.0 }
 0x160   : > { %v1526_v45 = vmax.f32 %v1494_v41, 0.0 }
 0x161   : > { %v1524_v4 = vmax.f32 %v1492_v30, 0.0  ;;  %v2205_v48 = vpop.f32.mrb[48].mxu0 }
 0x162   : > { %v1458_v49 = vadd.f32 %v2205_v48, %v2639_v38  ;;  %v1377_v52 = vpop.f32.mrb[49].mxu0  ;;  %v1550_v34 = vpack.c.bf16 %v1526_v45, %v1525_v44 }
 0x163   : > { %v1456_v53 = vadd.f32 %v1377_v52, %v2633_v31  ;;  %v2206_v14 = vpop.f32.mrb[50].mxu0  ;;  %v1549_v56 = vpack.c.bf16 %v1524_v4, %v1523_v23 }
 0x164   : > { %v1497_v27 = vadd.f32 %v2670_v5, %v1458_v49  ;;  %v1459_v57 = vadd.f32 %v2206_v14, %v2643_v42  ;;  %v1380_v7 = vpop.f32.mrb[51].mxu0 }
 0x165   : > { %v1495_v60 = vadd.f32 %v2670_v5, %v1456_v53  ;;  %v1457_v61 = vadd.f32 %v1380_v7, %v2637_v35  ;;  %2247 = vmatprep.mubr.bf16.mxu1 %v1549_v56 }
 0x166   : > { %v1498_v63 = vadd.f32 %v2670_v5, %v1459_v57  ;;  %2248 = vmatmul.mubr.bf16.gmra.mrb[44].mxu1 %v1550_v34  ;;  %v1529_v1 = vmax.f32 %v1497_v27, 0.0 }
 0x167   : > { %v1496_v38 = vadd.f32 %v2670_v5, %v1457_v61  ;;  %v1527_v31 = vmax.f32 %v1495_v60, 0.0 }
 0x168   : > { %v1530_v18 = vmax.f32 %v1498_v63, 0.0 }
 0x169   : > { %v1528_v3 = vmax.f32 %v1496_v38, 0.0  ;;  %v2209_v8 = vpop.f32.mrb[52].mxu0 }
 0x16a   : > { %v1462_v9 = vadd.f32 %v2209_v8, %v2647_v46  ;;  %v1393_v11 = vpop.f32.mrb[53].mxu0  ;;  %v1552_v42 = vpack.c.bf16 %v1530_v18, %v1529_v1 }
 0x16b   : > { %v1460_v12 = vadd.f32 %v1393_v11, %v2641_v39  ;;  %v2210_v13 = vpop.f32.mrb[54].mxu0  ;;  %v1551_v16 = vpack.c.bf16 %v1528_v3, %v1527_v31 }
 0x16c   : > { %v1501_v35 = vadd.f32 %v2670_v5, %v1462_v9  ;;  %v1463_v17 = vadd.f32 %v2210_v13, %v2651_v50  ;;  %v1396_v20 = vpop.f32.mrb[55].mxu0 }
 0x16d   : > { %v1499_v22 = vadd.f32 %v2670_v5, %v1460_v12  ;;  %v1461_v21 = vadd.f32 %v1396_v20, %v2645_v43  ;;  %2251 = vmatprep.mubr.bf16.mxu1 %v1551_v16 }
 0x16e   : > { %v1502_v24 = vadd.f32 %v2670_v5, %v1463_v17  ;;  %2252 = vmatmul.mubr.bf16.gmra.mrb[48].mxu1 %v1552_v42  ;;  %v1533_v15 = vmax.f32 %v1501_v35, 0.0 }
 0x16f   : > { %v1500_v46 = vadd.f32 %v2670_v5, %v1461_v21  ;;  %v1531_v39 = vmax.f32 %v1499_v22, 0.0 }
 0x170   : > { %v1534_v25 = vmax.f32 %v1502_v24, 0.0 }
 0x171   : > { %v1532_v28 = vmax.f32 %v1500_v46, 0.0  ;;  %v2213_v29 = vpop.f32.mrb[56].mxu0 }
 0x172   : > { %v1466_v32 = vadd.f32 %v2213_v29, %v2655_v54  ;;  %v1409_v26 = vpop.f32.mrb[57].mxu0  ;;  %v1554_v50 = vpack.c.bf16 %v1534_v25, %v1533_v15 }
 0x173   : > { %v1464_v6 = vadd.f32 %v1409_v26, %v2649_v47  ;;  %v2214_v33 = vpop.f32.mrb[58].mxu0  ;;  %v1553_v36 = vpack.c.bf16 %v1532_v28, %v1531_v39 }
 0x174   : > { %v1505_v43 = vadd.f32 %v2670_v5, %v1466_v32  ;;  %v1467_v19 = vadd.f32 %v2214_v33, %v2659_v58  ;;  %v1412_v2 = vpop.f32.mrb[59].mxu0 }
 0x175   : > { %v1503_v37 = vadd.f32 %v2670_v5, %v1464_v6  ;;  %v1465_v40 = vadd.f32 %v1412_v2, %v2653_v51  ;;  %2255 = vmatprep.mubr.bf16.mxu1 %v1553_v36 }
 0x176   : > { %v1506_v10 = vadd.f32 %v2670_v5, %v1467_v19  ;;  %2256 = vmatmul.mubr.bf16.gmra.mrb[52].mxu1 %v1554_v50  ;;  %v1537_v41 = vmax.f32 %v1505_v43, 0.0 }
 0x177   : > { %v1504_v54 = vadd.f32 %v2670_v5, %v1465_v40  ;;  %v1535_v47 = vmax.f32 %v1503_v37, 0.0 }
 0x178   : > { %v1538_v30 = vmax.f32 %v1506_v10, 0.0 }
 0x179   : > { %v1536_v44 = vmax.f32 %v1504_v54, 0.0  ;;  %v2217_v45 = vpop.f32.mrb[60].mxu0 }
 0x17a   : > { %v1470_v23 = vadd.f32 %v2217_v45, %v2663_v62  ;;  %v1425_v4 = vpop.f32.mrb[61].mxu0  ;;  %v1556_v58 = vpack.c.bf16 %v1538_v30, %v1537_v41 }
 0x17b   : > { %v1468_v48 = vadd.f32 %v1425_v4, %v2657_v55  ;;  %v2218_v49 = vpop.f32.mrb[62].mxu0  ;;  %v1555_v52 = vpack.c.bf16 %v1536_v44, %v1535_v47 }
 0x17c   : > { %v1509_v51 = vadd.f32 %v2670_v5, %v1470_v23  ;;  %v1471_v34 = vadd.f32 %v2218_v49, %v2665_v0  ;;  %v1428_v53 = vpop.f32.mrb[63].mxu0  ;;  %v2739_v0 = vld [vmem:[%s2825_s6] ss:$0 sm:$0xff] }
 0x17d   : > { %v1507_v14 = vadd.f32 %v2670_v5, %v1468_v48  ;;  %v1469_v56 = vadd.f32 %v1428_v53, %v2661_v59  ;;  %2259 = vmatprep.mubr.bf16.mxu1 %v1555_v52 }
 0x17e   : > { %v1510_v27 = vadd.f32 %v2670_v5, %v1471_v34  ;;  %2260 = vmatmul.mubr.bf16.gmra.mrb[56].mxu1 %v1556_v58  ;;  %v1541_v57 = vmax.f32 %v1509_v51, 0.0 }
 0x17f   : > { %v1508_v62 = vadd.f32 %v2670_v5, %v1469_v56  ;;  %v1539_v7 = vmax.f32 %v1507_v14, 0.0 }
 0x180   : > { %v1542_v55 = vmax.f32 %v1510_v27, 0.0 }
 0x181   : > { %v1540_v60 = vmax.f32 %v1508_v62, 0.0 }
 0x182   : > { %v1558_v61 = vpack.c.bf16 %v1542_v55, %v1541_v57 }
 0x183   : > { %v1557_v63 = vpack.c.bf16 %v1540_v60, %v1539_v7 }
 0x185   : > { %2263 = vmatprep.mubr.bf16.mxu1 %v1557_v63 }
 0x186   : > { %2264 = vmatmul.mubr.bf16.gmra.mrb[60].mxu1 %v1558_v61 }
 0x221   : > { %v2237_v59 = vpop.f32.mrb[32].mxu1 }
 0x222   : > { %v1673_v5 = vadd.f32 %v2237_v59, %v2739_v0  ;;  %v1664_v38 = vpop.f32.mrb[33].mxu1 }
 0x223   : > { %v1665_v1 = vadd.f32 %v2739_v0, %v1664_v38  ;;  %v2238_v18 = vpop.f32.mrb[34].mxu1 }
 0x224   : > { %1793 = vst [vmem:[%s2744_s17 + $0x10] sm:$0xff] %v1673_v5  ;;  %v1676_v31 = vadd.f32 %v2238_v18, %v2739_v0  ;;  %v1667_v3 = vpop.f32.mrb[35].mxu1 }
 0x225   : > { %1791 = vst [vmem:[%s2744_s17] sm:$0xff] %v1665_v1  ;;  %v1668_v8 = vadd.f32 %v2739_v0, %v1667_v3 }
 0x226   : > { %1794 = vst [vmem:[%s2744_s17 + $0x18] sm:$0xff] %v1676_v31 }
 0x227   : > { %1792 = vst [vmem:[%s2744_s17 + $0x8] sm:$0xff] %v1668_v8 }
 0x229   : > { %v2241_v9 = vpop.f32.mrb[36].mxu1 }
 0x22a   : > { %v1689_v11 = vadd.f32 %v2241_v9, %v2739_v0  ;;  %v1680_v42 = vpop.f32.mrb[37].mxu1 }
 0x22b   : > { %v1681_v12 = vadd.f32 %v2739_v0, %v1680_v42  ;;  %v2242_v13 = vpop.f32.mrb[38].mxu1 }
 0x22c   : > { %1797 = vst [vmem:[%s2744_s17 + $0x30] sm:$0xff] %v1689_v11  ;;  %v1692_v16 = vadd.f32 %v2242_v13, %v2739_v0  ;;  %v1683_v35 = vpop.f32.mrb[39].mxu1 }
 0x22d   : > { %1795 = vst [vmem:[%s2744_s17 + $0x20] sm:$0xff] %v1681_v12  ;;  %v1684_v17 = vadd.f32 %v2739_v0, %v1683_v35 }
 0x22e   : > { %1798 = vst [vmem:[%s2744_s17 + $0x38] sm:$0xff] %v1692_v16 }
 0x22f   : > { %1796 = vst [vmem:[%s2744_s17 + $0x28] sm:$0xff] %v1684_v17 }
 0x231   : > { %v2245_v20 = vpop.f32.mrb[40].mxu1 }
 0x232   : > { %v1705_v22 = vadd.f32 %v2245_v20, %v2739_v0  ;;  %v1696_v21 = vpop.f32.mrb[41].mxu1 }
 0x233   : > { %v1697_v24 = vadd.f32 %v2739_v0, %v1696_v21  ;;  %v2246_v46 = vpop.f32.mrb[42].mxu1 }
 0x234   : > { %1801 = vst [vmem:[%s2744_s17 + $0x50] sm:$0xff] %v1705_v22  ;;  %v1708_v15 = vadd.f32 %v2246_v46, %v2739_v0  ;;  %v1699_v25 = vpop.f32.mrb[43].mxu1 }
 0x235   : > { %1799 = vst [vmem:[%s2744_s17 + $0x40] sm:$0xff] %v1697_v24  ;;  %v1700_v39 = vadd.f32 %v2739_v0, %v1699_v25 }
 0x236   : > { %1802 = vst [vmem:[%s2744_s17 + $0x58] sm:$0xff] %v1708_v15 }
 0x237   : > { %1800 = vst [vmem:[%s2744_s17 + $0x48] sm:$0xff] %v1700_v39 }
 0x239   : > { %v2249_v28 = vpop.f32.mrb[44].mxu1 }
 0x23a   : > { %v1721_v29 = vadd.f32 %v2249_v28, %v2739_v0  ;;  %v1712_v32 = vpop.f32.mrb[45].mxu1 }
 0x23b   : > { %v1713_v26 = vadd.f32 %v2739_v0, %v1712_v32  ;;  %v2250_v50 = vpop.f32.mrb[46].mxu1 }
 0x23c   : > { %1805 = vst [vmem:[%s2744_s17 + $0x70] sm:$0xff] %v1721_v29  ;;  %v1724_v6 = vadd.f32 %v2250_v50, %v2739_v0  ;;  %v1715_v33 = vpop.f32.mrb[47].mxu1 }
 0x23d   : > { %1803 = vst [vmem:[%s2744_s17 + $0x60] sm:$0xff] %v1713_v26  ;;  %v1716_v36 = vadd.f32 %v2739_v0, %v1715_v33 }
 0x23e   : > { %1806 = vst [vmem:[%s2744_s17 + $0x78] sm:$0xff] %v1724_v6 }
 0x23f   : > { %1804 = vst [vmem:[%s2744_s17 + $0x68] sm:$0xff] %v1716_v36 }
 0x241   : > { %v2253_v43 = vpop.f32.mrb[48].mxu1 }
 0x242   : > { %v1737_v19 = vadd.f32 %v2253_v43, %v2739_v0  ;;  %v1728_v2 = vpop.f32.mrb[49].mxu1 }
 0x243   : > { %v1729_v37 = vadd.f32 %v2739_v0, %v1728_v2  ;;  %v2254_v40 = vpop.f32.mrb[50].mxu1 }
 0x244   : > { %1809 = vst [vmem:[%s2744_s17 + $0x90] sm:$0xff] %v1737_v19  ;;  %v1740_v10 = vadd.f32 %v2254_v40, %v2739_v0  ;;  %v1731_v54 = vpop.f32.mrb[51].mxu1 }
 0x245   : > { %1807 = vst [vmem:[%s2744_s17 + $0x80] sm:$0xff] %v1729_v37  ;;  %v1732_v41 = vadd.f32 %v2739_v0, %v1731_v54 }
 0x246   : > { %1810 = vst [vmem:[%s2744_s17 + $0x98] sm:$0xff] %v1740_v10 }
 0x247   : > { %1808 = vst [vmem:[%s2744_s17 + $0x88] sm:$0xff] %v1732_v41 }
 0x249   : > { %v2257_v30 = vpop.f32.mrb[52].mxu1 }
 0x24a   : > { %v1753_v47 = vadd.f32 %v2257_v30, %v2739_v0  ;;  %v1744_v44 = vpop.f32.mrb[53].mxu1 }
 0x24b   : > { %v1745_v45 = vadd.f32 %v2739_v0, %v1744_v44  ;;  %v2258_v23 = vpop.f32.mrb[54].mxu1 }
 0x24c   : > { %1813 = vst [vmem:[%s2744_s17 + $0xb0] sm:$0xff] %v1753_v47  ;;  %v1756_v4 = vadd.f32 %v2258_v23, %v2739_v0  ;;  %v1747_v58 = vpop.f32.mrb[55].mxu1 }
 0x24d   : > { %1811 = vst [vmem:[%s2744_s17 + $0xa0] sm:$0xff] %v1745_v45  ;;  %v1748_v48 = vadd.f32 %v2739_v0, %v1747_v58 }
 0x24e   : > { %1814 = vst [vmem:[%s2744_s17 + $0xb8] sm:$0xff] %v1756_v4 }
 0x24f   : > { %1812 = vst [vmem:[%s2744_s17 + $0xa8] sm:$0xff] %v1748_v48 }
 0x251   : > { %v2261_v49 = vpop.f32.mrb[56].mxu1 }
 0x252   : > { %v1769_v52 = vadd.f32 %v2261_v49, %v2739_v0  ;;  %v1760_v51 = vpop.f32.mrb[57].mxu1 }
 0x253   : > { %v1761_v34 = vadd.f32 %v2739_v0, %v1760_v51  ;;  %v2262_v53 = vpop.f32.mrb[58].mxu1 }
 0x254   : > { %1817 = vst [vmem:[%s2744_s17 + $0xd0] sm:$0xff] %v1769_v52  ;;  %v1772_v14 = vadd.f32 %v2262_v53, %v2739_v0  ;;  %v1763_v56 = vpop.f32.mrb[59].mxu1 }
 0x255   : > { %1815 = vst [vmem:[%s2744_s17 + $0xc0] sm:$0xff] %v1761_v34  ;;  %v1764_v27 = vadd.f32 %v2739_v0, %v1763_v56 }
 0x256   : > { %1818 = vst [vmem:[%s2744_s17 + $0xd8] sm:$0xff] %v1772_v14 }
 0x257   : > { %1816 = vst [vmem:[%s2744_s17 + $0xc8] sm:$0xff] %v1764_v27 }
 0x259   : > { %v2265_v62 = vpop.f32.mrb[60].mxu1 }
 0x25a   : > { %v1785_v57 = vadd.f32 %v2265_v62, %v2739_v0  ;;  %v1776_v55 = vpop.f32.mrb[61].mxu1 }
 0x25b   : > { %v1777_v7 = vadd.f32 %v2739_v0, %v1776_v55  ;;  %v2266_v60 = vpop.f32.mrb[62].mxu1 }
 0x25c   : > { %1821 = vst [vmem:[%s2744_s17 + $0xf0] sm:$0xff] %v1785_v57  ;;  %v1788_v61 = vadd.f32 %v2266_v60, %v2739_v0  ;;  %v1779_v63 = vpop.f32.mrb[63].mxu1 }
 0x25d   : > { %1819 = vst [vmem:[%s2744_s17 + $0xe0] sm:$0xff] %v1777_v7  ;;  %v1780_v59 = vadd.f32 %v2739_v0, %v1779_v63 }
 0x25e   : > { %1822 = vst [vmem:[%s2744_s17 + $0xf8] sm:$0xff] %v1788_v61 }
 0x25f   : > { %1820 = vst [vmem:[%s2744_s17 + $0xe8] sm:$0xff] %v1780_v59 }
 0x260 PF: > { %s17_s26 = sadd.s32 1, %s2348_s26   ;;  %s2827_s24 = smov %s2344_s25 }
 0x261   : > { %p14_p5 = scmp.ge.s32.totalorder %s17_s26, 4   ;;  %s2828_s25 = smov %s2830_s27 }
 0x263   :  { %16 = sbr.rel (!%p14_p5) target bundleno = 2 (0x2), region = 81 }

// kernel: lavt_one_forward.13
= control target key start
LH: loop header
LB: loop body
LE: loop exit
PB: predicated region body
PF: predicated region fallthrough
CT: control target
= control target key end

     0   :  { %s3448_s27 = smov 0   ;;  %s3450_s28 = smov 0   ;;  %s4294_s0 = inlined_call_operand.vmem [shape: bf16[2,256,12], index: 0, kind: input, shape index: {}]   ;;  %s4295_s1 = inlined_call_operand.vmem [shape: bf16[2,8,32], index: 1, kind: input, shape index: {}]   ;;  %s4296_s2 = inlined_call_operand.vmem [shape: f32[2,1,8], index: 2, kind: input, shape index: {}]   ;;  %s4297_s3 = inlined_call_operand.vmem [shape: bf16[12,128], index: 3, kind: input, shape index: {}]   ;;  %s4298_s4 = inlined_call_operand.vmem [shape: f32[1,128], index: 4, kind: input, shape index: {}]   ;;  %s4299_s5 = inlined_call_operand.vmem [shape: bf16[128,32], index: 5, kind: input, shape index: {}]   ;;  %s4300_s6 = inlined_call_operand.vmem [shape: bf16[32,160], index: 6, kind: input, shape index: {}]   ;;  %s4301_s7 = inlined_call_operand.vmem [shape: bf16[128,128], index: 7, kind: input, shape index: {}]   ;;  %s4302_s8 = inlined_call_operand.vmem [shape: bf16[2,256,128], index: 8, kind: output, shape index: {}]  }
   0x1   :  { %s3452_s29 = smov 0  }
   0x2 LB: > { %s30_s30 = sadd.s32 1, %s3395_s28  ;;  %p2560_p0 = scmp.ge.s32.totalorder %s3399_s29, 1  ;;  %s3399_s29 = sphi %s3452_s29, %s18_s29   ;;  %s3395_s28 = sphi %s3450_s28, %s4428_s28   ;;  %s3391_s27 = sphi %s3448_s27, %s4427_s27  }
   0x3   : > { %p32_p1 = scmp.ge.s32.totalorder %s30_s30, 2  ;;  %p300_p2 = scmp.lt.s32.totalorder %s3399_s29, 3 }
   0x5   : > { %s4430_s30 = smov (%p32_p1, %s30_s30), 0  ;;  %p301_p3 = pnand %p2560_p0, %p300_p2 }
   0x7   : > { %304 = sbr.rel (%p301_p3) target bundleno = 1557 (0x615), region = 52 }
   0xe   : > { %v3146_v0 = vld [vmem:[%s4297_s3] sm:$0x3f]   ;;  %vm552_vm0 = vcmask 1045504   ;;  %p350_p4 = scmp.lt.s32.totalorder %s3391_s27, 1  ;;  %vm503_vm1 = vcmask 97280   ;;  %v3401_v20 = vmov 0  }
   0xf   : > { %3116 = vmatprep.subr.msk.bf16.mxu0 %vm552_vm0, %v3146_v0  ;;  %v554_v1 = vsel %vm552_vm0, %v3146_v0, 0  ;;  %3117 = vmatprep.subr.msk.bf16.mxu1 %vm552_vm0, %v3146_v0  ;;  %v3165_v2 = vld [vmem:[%s4300_s6 + $0x4] ss:$8 sps:$4 sm:$0xff]   ;;  %v3163_v8 = vld [vmem:[%s4300_s6] ss:$8 sps:$4 sm:$0xff]   ;;  %vm774_vm2 = vcmask 261120  }
  0x10   : > { %2917 = vmatpush3.bf16.msra.mxu0 %v554_v1  ;;  %s4432_s27 = smov (!%p350_p4, %s3391_s27), 1  ;;  %3115 = vmatpush3.bf16.msra.mxu1 %v554_v1  ;;  %v3168_v9 = vld [vmem:[%s4300_s6 + $0x14] ss:$8 sps:$4 sm:$0xff]   ;;  %v3166_v15 = vld [vmem:[%s4300_s6 + $0x10] ss:$8 sps:$4 sm:$0xff]   ;;  %v3169_v16 = vld [vmem:[%s4299_s5] sm:$0xff]  }
  0x11   : > { %778 = vmatprep.subr.bf16.mxu1 %v3165_v2  ;;  %s2688_s13 = sshll.u32 %s4432_s27, 7  ;;  %s2563_s25 = sshll.u32 %s4432_s27, 2  ;;  %v3170_v22 = vld [vmem:[%s4299_s5 + $0x8] sm:$0xff]   ;;  %v3171_v25 = vld [vmem:[%s4299_s5 + $0x10] sm:$0xff]   ;;  %v3172_v26 = vld [vmem:[%s4299_s5 + $0x18] sm:$0xff]   ;;  %vm1361_vm3 = vcmask 64512  }
  0x12   : > { %s3480_s16 = scalar_lea.vmem %s4294_s0, %s2688_s13  ;;  %s362_s10 = scalar_lea.vmem %s4295_s1, %s2563_s25  ;;  %v3173_v28 = vld [vmem:[%s4299_s5 + $0x20] sm:$0xff]   ;;  %v3174_v29 = vld [vmem:[%s4299_s5 + $0x28] sm:$0xff]   ;;  %v3175_v30 = vld [vmem:[%s4299_s5 + $0x30] sm:$0xff]   ;;  %vm1736_vm4 = vcmask 785408   ;;  %vm1786_vm5 = vcmask 1043456  }
  0x13   : > { %v3147_v3 = vld [vmem:[%s3480_s16] sm:$0xff]   ;;  %v3148_v4 = vld [vmem:[%s3480_s16 + $0x8] sm:$0xff]   ;;  %v3149_v5 = vld [vmem:[%s3480_s16 + $0x10] sm:$0xff]   ;;  %s365_s12 = scalar_lea.vmem %s4296_s2, %s4432_s27  ;;  %s3402_s14 = smov 96  }
  0x14   : > { %2918 = vmatprep.mubr.msk.bf16.mxu0 %vm503_vm1, %v3147_v3  ;;  %v3150_v6 = vld [vmem:[%s3480_s16 + $0x18] sm:$0xff]   ;;  %v3151_v7 = vld [vmem:[%s3480_s16 + $0x20] sm:$0xff]   ;;  %v3160_v11 = vld [vmem:[%s3480_s16 + $0x68] sm:$0xff]   ;;  %s4209_s17 = scalar_lea.vmem %s4302_s8, %s2688_s13 }
  0x15   : > { %2919 = vmatmul.mubr.msk.bf16.vlgmr.msra.gmra.mrb[0].mxu0 %vm503_vm1, %v3148_v4  ;;  %v3159_v10 = vld [vmem:[%s3480_s16 + $0x60] sm:$0xff]   ;;  %v3161_v12 = vld [vmem:[%s3480_s16 + $0x70] sm:$0xff]   ;;  %v3152_v13 = vld [vmem:[%s3480_s16 + $0x28] sm:$0xff]  }
  0x16   : > { %2922 = vmatprep.mubr.msk.bf16.mxu0 %vm503_vm1, %v3149_v5  ;;  %2942 = vmatprep.mubr.msk.bf16.mxu1 %vm503_vm1, %v3159_v10  ;;  %v3153_v14 = vld [vmem:[%s3480_s16 + $0x30] sm:$0xff]   ;;  %v3162_v17 = vld [vmem:[%s3480_s16 + $0x78] sm:$0xff]   ;;  %v3155_v19 = vld [vmem:[%s3480_s16 + $0x40] sm:$0xff]  }
  0x17   : > { %2943 = vmatmul.mubr.msk.bf16.vlgmr.msra.gmra.mrb[0].mxu1 %vm503_vm1, %v3160_v11  ;;  %v3154_v18 = vld [vmem:[%s3480_s16 + $0x38] sm:$0xff]   ;;  %v749_v21 = vld [vmem:[%s362_s10] sm:$0xf]  ;;  %v3156_v23 = vld [vmem:[%s3480_s16 + $0x48] sm:$0xff]  }
  0x18   : > { %2946 = vmatprep.mubr.msk.bf16.mxu1 %vm503_vm1, %v3161_v12  ;;  %779 = vmatpush1.bf16.msra.mxu1 %v3163_v8  ;;  %v3157_v24 = vld [vmem:[%s3480_s16 + $0x50] sm:$0xff]   ;;  %v3158_v27 = vld [vmem:[%s3480_s16 + $0x58] sm:$0xff]   ;;  %v3555_v32 = vld [vmem:[%s4298_s4] ss:$0 sm:$0xff] }
  0x19   : > { %780 = vmatprep.subr.bf16.mxu1 %v3168_v9  ;;  %v3176_v31 = vld [vmem:[%s4299_s5 + $0x38] sm:$0xff]  }
  0x1c   : > { %781 = vmatpush1.bf16.msra.mxu1 %v3166_v15 }
  0x1d   : > { %2923 = vmatmul.mubr.msk.bf16.gmra.mrb[4].mxu0 %vm503_vm1, %v3150_v6  ;;  %2950 = vmatprep.subr.bf16.mxu1 %v3169_v16 }
  0x1e   : > { %2926 = vmatprep.mubr.msk.bf16.mxu0 %vm503_vm1, %v3151_v7 }
  0x1f   : > { %2947 = vmatmul.mubr.msk.bf16.gmra.mrb[4].mxu1 %vm503_vm1, %v3162_v17 }
  0x20   : > { %810 = vmatprep.mubr.bf16.mxu1 %v3401_v20 }
  0x25   : > { %2927 = vmatmul.mubr.msk.bf16.gmra.mrb[8].mxu0 %vm503_vm1, %v3152_v13 }
  0x26   : > { %2930 = vmatprep.mubr.msk.bf16.mxu0 %vm503_vm1, %v3153_v14 }
  0x27   : > { %2604 = vmatmul.mubr.msk.bf16.vlgmr.msra.gmra.mrb[8].mxu1 %vm774_vm2, %v749_v21 }
  0x28   : > { %2951 = vmatpush3.bf16.msra.mxu1 %v3169_v16 }
  0x29   : > { %2952 = vmatprep.subr.bf16.mxu1 %v3170_v22 }
  0x2c   : > { %2953 = vmatpush3.bf16.msra.mxu1 %v3170_v22 }
  0x2d   : > { %2931 = vmatmul.mubr.msk.bf16.gmra.mrb[12].mxu0 %vm503_vm1, %v3154_v18  ;;  %2954 = vmatprep.subr.bf16.mxu1 %v3171_v25 }
  0x2e   : > { %2934 = vmatprep.mubr.msk.bf16.mxu0 %vm503_vm1, %v3155_v19 }
  0x30   : > { %2955 = vmatpush3.bf16.msra.mxu1 %v3171_v25 }
  0x31   : > { %2956 = vmatprep.subr.bf16.mxu1 %v3172_v26 }
  0x34   : > { %2957 = vmatpush3.bf16.msra.mxu1 %v3172_v26 }
  0x35   : > { %2935 = vmatmul.mubr.msk.bf16.gmra.mrb[16].mxu0 %vm503_vm1, %v3156_v23  ;;  %2958 = vmatprep.subr.bf16.mxu1 %v3173_v28 }
  0x36   : > { %2938 = vmatprep.mubr.msk.bf16.mxu0 %vm503_vm1, %v3157_v24 }
  0x38   : > { %2959 = vmatpush3.bf16.msra.mxu1 %v3173_v28 }
  0x39   : > { %2960 = vmatprep.subr.bf16.mxu1 %v3174_v29 }
  0x3c   : > { %2961 = vmatpush3.bf16.msra.mxu1 %v3174_v29 }
  0x3d   : > { %2939 = vmatmul.mubr.msk.bf16.gmra.mrb[20].mxu0 %vm503_vm1, %v3158_v27  ;;  %2962 = vmatprep.subr.bf16.mxu1 %v3175_v30 }
  0x40   : > { %2963 = vmatpush3.bf16.msra.mxu1 %v3175_v30 }
  0x41   : > { %2964 = vmatprep.subr.bf16.mxu1 %v3176_v31 }
  0x44   : > { %2965 = vmatpush3.bf16.msra.mxu1 %v3176_v31 }
  0xe8   : > { %v2920_v33 = vpop.f32.mrb[0].mxu0 }
  0xe9   : > { %v590_v34 = vpop.f32.mrb[1].mxu0  ;;  %v3561_v37 = vadd.f32 %v2920_v33, %v3555_v32 }
  0xea   : > { %v3558_v35 = vadd.f32 %v3555_v32, %v590_v34  ;;  %v2921_v36 = vpop.f32.mrb[2].mxu0  ;;  %v3594_v56 = vpop.f32.mrb[0].mxu1 }
  0xeb   : > { %v3564_v38 = vadd.f32 %v2921_v36, %v3555_v32  ;;  %v593_v39 = vpop.f32.mrb[3].mxu0  ;;  %v4334_v44 = vmax.f32 %v3561_v37, 0.0  ;;  %v3598_v59 = vpop.f32.mrb[1].mxu1 }
  0xec   : > { %v3567_v40 = vadd.f32 %v3555_v32, %v593_v39  ;;  %v4332_v42 = vmax.f32 %v3558_v35, 0.0  ;;  %v3601_v61 = vpop.f32.mrb[2].mxu1 }
  0xed   : > { %v4333_v41 = vmax.f32 %v3564_v38, 0.0  ;;  %v3603_v62 = vpop.f32.mrb[3].mxu1 }
  0xee   : > { %v4331_v43 = vmax.f32 %v3567_v40, 0.0 }
  0xef   : > { %v822_v47 = vpack.c.bf16 %v4333_v41, %v4334_v44 }
  0xf0   : > { %v821_v45 = vpack.c.bf16 %v4331_v43, %v4332_v42  ;;  %v2924_v46 = vpop.f32.mrb[4].mxu0 }
  0xf1   : > { %v3582_v48 = vadd.f32 %v2924_v46, %v3555_v32  ;;  %v606_v49 = vpop.f32.mrb[5].mxu0 }
  0xf2   : > { %v3585_v50 = vadd.f32 %v3555_v32, %v606_v49  ;;  %v2925_v51 = vpop.f32.mrb[6].mxu0  ;;  %2966 = vmatprep.mubr.bf16.mxu1 %v821_v45  ;;  %v3626_v10 = vpop.f32.mrb[4].mxu1 }
  0xf3   : > { %v3588_v52 = vadd.f32 %v2925_v51, %v3555_v32  ;;  %v609_v53 = vpop.f32.mrb[7].mxu0  ;;  %2967 = vmatmul.mubr.bf16.vlgmr.msra.gmra.mrb[12].mxu1 %v822_v47  ;;  %v4330_v57 = vmax.f32 %v3582_v48, 0.0  ;;  %v3630_v13 = vpop.f32.mrb[5].mxu1 }
  0xf4   : > { %v4328_v54 = vmax.f32 %v3585_v50, 0.0  ;;  %v3592_v55 = vadd.f32 %v3555_v32, %v609_v53  ;;  %v3633_v15 = vpop.f32.mrb[6].mxu1 }
  0xf5   : > { %v4329_v58 = vmax.f32 %v3588_v52, 0.0  ;;  %v3635_v16 = vpop.f32.mrb[7].mxu1 }
  0xf6   : > { %v4327_v60 = vmax.f32 %v3592_v55, 0.0 }
  0xf7   : > { %v824_v1 = vpack.c.bf16 %v4329_v58, %v4330_v57 }
  0xf8   : > { %v823_v63 = vpack.c.bf16 %v4327_v60, %v4328_v54  ;;  %v2928_v0 = vpop.f32.mrb[8].mxu0 }
  0xf9   : > { %v3614_v2 = vadd.f32 %v2928_v0, %v3555_v32  ;;  %v622_v3 = vpop.f32.mrb[9].mxu0 }
  0xfa   : > { %v3617_v4 = vadd.f32 %v3555_v32, %v622_v3  ;;  %v2929_v5 = vpop.f32.mrb[10].mxu0  ;;  %2970 = vmatprep.mubr.bf16.mxu1 %v823_v63  ;;  %v812_v28 = vpop.f32.mrb[8].mxu1 }
  0xfb   : > { %v3620_v6 = vadd.f32 %v2929_v5, %v3555_v32  ;;  %v625_v7 = vpop.f32.mrb[11].mxu0  ;;  %2971 = vmatmul.mubr.bf16.gmra.mrb[16].mxu1 %v824_v1  ;;  %v4326_v11 = vmax.f32 %v3614_v2, 0.0  ;;  %v3660_v31 = vpack.c.bf16 %v812_v28, %v812_v28  ;;  %v3662_v33 = vpop.f32.mrb[9].mxu1  ;;  %v3703_v28 = vadd.f32 %v3555_v32, %v3598_v59 }
  0xfc   : > { %v4324_v8 = vmax.f32 %v3617_v4, 0.0  ;;  %v3624_v9 = vadd.f32 %v3555_v32, %v625_v7  ;;  %v816_v36 = vpop.f32.mrb[10].mxu1 }
  0xfd   : > { %v4325_v12 = vmax.f32 %v3620_v6, 0.0  ;;  %v817_v39 = vpop.f32.mrb[11].mxu1  ;;  %3118 = vmatprep.subr.msk.bf16.mxu0 %vm774_vm2, %v3660_v31  ;;  %v1127_v45 = vsel %vm774_vm2, %v3660_v31, 0  ;;  %4363 = vst [vmem:[#allocation10_spill] sm:$0xff] %v3703_v28  ;;  %v3707_v36 = vadd.f32 %v3555_v32, %v3603_v62 }
  0xfe   : > { %v4323_v14 = vmax.f32 %v3624_v9, 0.0  ;;  %2999 = vmatpush3.bf16.xpose.msra.mxu0 %v1127_v45 }
  0xff   : > { %v826_v19 = vpack.c.bf16 %v4325_v12, %v4326_v11  ;;  %4364 = vst [vmem:[#allocation11_spill] sm:$0xff] %v3707_v36 }
 0x100   : > { %v825_v17 = vpack.c.bf16 %v4323_v14, %v4324_v8  ;;  %v2932_v18 = vpop.f32.mrb[12].mxu0 }
 0x101   : > { %v3646_v20 = vadd.f32 %v2932_v18, %v3555_v32  ;;  %v638_v21 = vpop.f32.mrb[13].mxu0 }
 0x102   : > { %v3649_v22 = vadd.f32 %v3555_v32, %v638_v21  ;;  %v2933_v23 = vpop.f32.mrb[14].mxu0  ;;  %2974 = vmatprep.mubr.bf16.mxu1 %v825_v17 }
 0x103   : > { %4355 = vst [vmem:[#allocation2_spill] sm:$0xff] %v3646_v20  ;;  %v3652_v24 = vadd.f32 %v2933_v23, %v3555_v32  ;;  %v641_v25 = vpop.f32.mrb[15].mxu0  ;;  %2975 = vmatmul.mubr.bf16.gmra.mrb[20].mxu1 %v826_v19  ;;  %v4322_v29 = vmax.f32 %v3646_v20, 0.0 }
 0x104   : > { %4356 = vst [vmem:[#allocation3_spill] sm:$0xff] %v3649_v22  ;;  %v4320_v26 = vmax.f32 %v3649_v22, 0.0  ;;  %v3656_v27 = vadd.f32 %v3555_v32, %v641_v25 }
 0x105   : > { %4357 = vst [vmem:[#allocation4_spill] sm:$0xff] %v3652_v24  ;;  %v4321_v30 = vmax.f32 %v3652_v24, 0.0 }
 0x106   : > { %4358 = vst [vmem:[#allocation5_spill] sm:$0xff] %v3656_v27  ;;  %v4317_v34 = vmax.f32 %v3656_v27, 0.0 }
 0x107   : > { %v828_v49 = vpack.c.bf16 %v4321_v30, %v4322_v29 }
 0x108   : > { %v827_v46 = vpack.c.bf16 %v4317_v34, %v4320_v26  ;;  %v2936_v47 = vpop.f32.mrb[16].mxu0 }
 0x109   : > { %v3678_v51 = vadd.f32 %v2936_v47, %v3555_v32  ;;  %v654_v53 = vpop.f32.mrb[17].mxu0 }
 0x10a   : > { %v3681_v63 = vadd.f32 %v3555_v32, %v654_v53  ;;  %v2937_v0 = vpop.f32.mrb[18].mxu0  ;;  %2978 = vmatprep.mubr.bf16.mxu1 %v827_v46 }
 0x10b   : > { %4359 = vst [vmem:[#allocation6_spill] sm:$0xff] %v3678_v51  ;;  %v4316_v1 = vmax.f32 %v3678_v51, 0.0  ;;  %v3685_v3 = vadd.f32 %v2937_v0, %v3555_v32  ;;  %v657_v5 = vpop.f32.mrb[19].mxu0  ;;  %2979 = vmatmul.mubr.bf16.gmra.mrb[24].mxu1 %v828_v49 }
 0x10c   : > { %4360 = vst [vmem:[#allocation7_spill] sm:$0xff] %v3681_v63  ;;  %v4304_v7 = vmax.f32 %v3681_v63, 0.0  ;;  %v3689_v17 = vadd.f32 %v3555_v32, %v657_v5  ;;  %v4310_v5 = vmax.f32 %v3703_v28, 0.0 }
 0x10d   : > { %4361 = vst [vmem:[#allocation8_spill] sm:$0xff] %v3685_v3  ;;  %v4313_v18 = vmax.f32 %v3685_v3, 0.0 }
 0x10e   : > { %4362 = vst [vmem:[#allocation9_spill] sm:$0xff] %v3689_v17  ;;  %v4303_v19 = vmax.f32 %v3689_v17, 0.0 }
 0x10f   : > { %v830_v21 = vpack.c.bf16 %v4313_v18, %v4316_v1 }
 0x110   : > { %v829_v23 = vpack.c.bf16 %v4303_v19, %v4304_v7  ;;  %v2940_v25 = vpop.f32.mrb[20].mxu0 }
 0x111   : > { %v3710_v39 = vadd.f32 %v2940_v25, %v3555_v32  ;;  %v670_v45 = vpop.f32.mrb[21].mxu0  ;;  %v4309_v25 = vmax.f32 %v3707_v36, 0.0 }
 0x112   : > { %v3713_v46 = vadd.f32 %v3555_v32, %v670_v45  ;;  %v2941_v47 = vpop.f32.mrb[22].mxu0  ;;  %2982 = vmatprep.mubr.bf16.mxu1 %v829_v23 }
 0x113   : > { %4365 = vst [vmem:[#allocation12_spill] sm:$0xff] %v3710_v39  ;;  %v4306_v49 = vmax.f32 %v3710_v39, 0.0  ;;  %v3717_v53 = vadd.f32 %v2941_v47, %v3555_v32  ;;  %v673_v59 = vpop.f32.mrb[23].mxu0  ;;  %2983 = vmatmul.mubr.bf16.gmra.mrb[28].mxu1 %v830_v21  ;;  %v3733_v21 = vadd.f32 %v3594_v56, %v3555_v32  ;;  %v833_v7 = vpack.c.bf16 %v4309_v25, %v4310_v5 }
 0x114   : > { %4366 = vst [vmem:[#allocation13_spill] sm:$0xff] %v3713_v46  ;;  %v4308_v0 = vmax.f32 %v3713_v46, 0.0  ;;  %v3721_v62 = vadd.f32 %v3555_v32, %v673_v59  ;;  %v3737_v59 = vadd.f32 %v3601_v61, %v3555_v32  ;;  %v3753_v56 = vadd.f32 %v3555_v32, %v3635_v16 }
 0x115   : > { %4367 = vst [vmem:[#allocation14_spill] sm:$0xff] %v3717_v53  ;;  %v4305_v45 = vmax.f32 %v3717_v53, 0.0  ;;  %4369 = vst [vmem:[#allocation16_spill] sm:$0xff] %v3733_v21  ;;  %v4312_v61 = vmax.f32 %v3733_v21, 0.0  ;;  %v3765_v16 = vadd.f32 %v3626_v10, %v3555_v32 }
 0x116   : > { %4368 = vst [vmem:[#allocation15_spill] sm:$0xff] %v3721_v62  ;;  %v4307_v23 = vmax.f32 %v3721_v62, 0.0  ;;  %4370 = vst [vmem:[#allocation17_spill] sm:$0xff] %v3737_v59 }
 0x117   : > { %v832_v47 = vpack.c.bf16 %v4305_v45, %v4306_v49  ;;  %v3749_v45 = vadd.f32 %v3555_v32, %v3630_v13  ;;  %4372 = vst [vmem:[#allocation19_spill] sm:$0xff] %v3753_v56  ;;  %v4311_v49 = vmax.f32 %v3737_v59, 0.0  ;;  %4373 = vst [vmem:[#allocation20_spill] sm:$0xff] %v3765_v16 }
 0x118   : > { %v831_v19 = vpack.c.bf16 %v4307_v23, %v4308_v0  ;;  %v4314_v0 = vmax.f32 %v3753_v56, 0.0 }
 0x119   : > { %4371 = vst [vmem:[#allocation18_spill] sm:$0xff] %v3749_v45  ;;  %v4315_v23 = vmax.f32 %v3749_v45, 0.0  ;;  %v834_v13 = vpack.c.bf16 %v4311_v49, %v4312_v61 }
 0x11a   : > { %2986 = vmatprep.mubr.bf16.mxu1 %v831_v19  ;;  %v3769_v19 = vadd.f32 %v3633_v15, %v3555_v32 }
 0x11b   : > { %2987 = vmatmul.mubr.bf16.gmra.mrb[32].mxu1 %v832_v47  ;;  %v4319_v47 = vmax.f32 %v3765_v16, 0.0 }
 0x11c   : > { %2990 = vmatprep.mubr.bf16.mxu1 %v833_v7  ;;  %4374 = vst [vmem:[#allocation21_spill] sm:$0xff] %v3769_v19  ;;  %v835_v7 = vpack.c.bf16 %v4314_v0, %v4315_v23  ;;  %v4318_v25 = vmax.f32 %v3769_v19, 0.0 }
 0x11e   : > { %v836_v10 = vpack.c.bf16 %v4318_v25, %v4319_v47 }
 0x123   : > { %2991 = vmatmul.mubr.bf16.gmra.mrb[36].mxu1 %v834_v13 }
 0x124   : > { %2994 = vmatprep.mubr.bf16.mxu1 %v835_v7 }
 0x12b   : > { %2995 = vmatmul.mubr.bf16.gmra.mrb[40].mxu1 %v836_v10 }
 0x1c6   : > { %v2968_v5 = vpop.f32.mrb[12].mxu1 }
 0x1c7   : > { %v935_v32 = vpop.f32.mrb[13].mxu1 }
 0x1c8   : > { %v2969_v15 = vpop.f32.mrb[14].mxu1 }
 0x1c9   : > { %v1063_v49 = vpack.c.bf16 %v2969_v15, %v2968_v5  ;;  %v938_v61 = vpop.f32.mrb[15].mxu1 }
 0x1ca   : > { %v1062_v18 = vpack.c.bf16 %v938_v61, %v935_v32 }
 0x1cc   : > { %3000 = vmatprep.mubr.msk.bf16.mxu0 %vm774_vm2, %v1062_v18 }
 0x1cd   : > { %3001 = vmatmul.mubr.msk.bf16.vlgmr.msra.gmra.mrb[24].mxu0 %vm774_vm2, %v1063_v49 }
 0x1ce   : > { %v2972_v0 = vpop.f32.mrb[16].mxu1 }
 0x1cf   : > { %v951_v23 = vpop.f32.mrb[17].mxu1 }
 0x1d0   : > { %v2973_v13 = vpop.f32.mrb[18].mxu1 }
 0x1d1   : > { %v1065_v7 = vpack.c.bf16 %v2973_v13, %v2972_v0  ;;  %v954_v1 = vpop.f32.mrb[19].mxu1 }
 0x1d2   : > { %v1064_v34 = vpack.c.bf16 %v954_v1, %v951_v23 }
 0x1d4   : > { %3004 = vmatprep.mubr.msk.bf16.mxu0 %vm774_vm2, %v1064_v34 }
 0x1d5   : > { %3005 = vmatmul.mubr.msk.bf16.gmra.mrb[28].mxu0 %vm774_vm2, %v1065_v7 }
 0x1d6   : > { %v2976_v10 = vpop.f32.mrb[20].mxu1 }
 0x1d7   : > { %v967_v25 = vpop.f32.mrb[21].mxu1 }
 0x1d8   : > { %v2977_v47 = vpop.f32.mrb[22].mxu1 }
 0x1d9   : > { %v1067_v5 = vpack.c.bf16 %v2977_v47, %v2976_v10  ;;  %v970_v15 = vpop.f32.mrb[23].mxu1 }
 0x1da   : > { %v1066_v61 = vpack.c.bf16 %v970_v15, %v967_v25 }
 0x1dc   : > { %3008 = vmatprep.mubr.msk.bf16.mxu0 %vm774_vm2, %v1066_v61 }
 0x1dd   : > { %3009 = vmatmul.mubr.msk.bf16.gmra.mrb[32].mxu0 %vm774_vm2, %v1067_v5 }
 0x1de   : > { %v2980_v18 = vpop.f32.mrb[24].mxu1 }
 0x1df   : > { %v983_v49 = vpop.f32.mrb[25].mxu1 }
 0x1e0   : > { %v2981_v32 = vpop.f32.mrb[26].mxu1 }
 0x1e1   : > { %v1069_v0 = vpack.c.bf16 %v2981_v32, %v2980_v18  ;;  %v986_v13 = vpop.f32.mrb[27].mxu1 }
 0x1e2   : > { %v1068_v1 = vpack.c.bf16 %v986_v13, %v983_v49 }
 0x1e4   : > { %3012 = vmatprep.mubr.msk.bf16.mxu0 %vm774_vm2, %v1068_v1 }
 0x1e5   : > { %3013 = vmatmul.mubr.msk.bf16.gmra.mrb[36].mxu0 %vm774_vm2, %v1069_v0 }
 0x1e6   : > { %v2984_v34 = vpop.f32.mrb[28].mxu1 }
 0x1e7   : > { %v999_v23 = vpop.f32.mrb[29].mxu1 }
 0x1e8   : > { %v2985_v7 = vpop.f32.mrb[30].mxu1 }
 0x1e9   : > { %v1071_v47 = vpack.c.bf16 %v2985_v7, %v2984_v34  ;;  %v1002_v10 = vpop.f32.mrb[31].mxu1 }
 0x1ea   : > { %v1070_v25 = vpack.c.bf16 %v1002_v10, %v999_v23 }
 0x1ec   : > { %3016 = vmatprep.mubr.msk.bf16.mxu0 %vm774_vm2, %v1070_v25 }
 0x1ed   : > { %3017 = vmatmul.mubr.msk.bf16.gmra.mrb[40].mxu0 %vm774_vm2, %v1071_v47 }
 0x1ee   : > { %v2988_v5 = vpop.f32.mrb[32].mxu1 }
 0x1ef   : > { %v1015_v15 = vpop.f32.mrb[33].mxu1 }
 0x1f0   : > { %v2989_v61 = vpop.f32.mrb[34].mxu1 }
 0x1f1   : > { %v1073_v18 = vpack.c.bf16 %v2989_v61, %v2988_v5  ;;  %v1018_v32 = vpop.f32.mrb[35].mxu1 }
 0x1f2   : > { %v1072_v49 = vpack.c.bf16 %v1018_v32, %v1015_v15  ;;  %v3801_v32 = vld [vmem:[%s365_s12] ss:$0 sm:$0xff] }
 0x1f4   : > { %3020 = vmatprep.mubr.msk.bf16.mxu0 %vm774_vm2, %v1072_v49 }
 0x1f5   : > { %3021 = vmatmul.mubr.msk.bf16.gmra.mrb[44].mxu0 %vm774_vm2, %v1073_v18 }
 0x1f6   : > { %v2992_v0 = vpop.f32.mrb[36].mxu1 }
 0x1f7   : > { %v1031_v13 = vpop.f32.mrb[37].mxu1 }
 0x1f8   : > { %v2993_v1 = vpop.f32.mrb[38].mxu1 }
 0x1f9   : > { %v1075_v34 = vpack.c.bf16 %v2993_v1, %v2992_v0  ;;  %v1034_v23 = vpop.f32.mrb[39].mxu1 }
 0x1fa   : > { %v1074_v7 = vpack.c.bf16 %v1034_v23, %v1031_v13 }
 0x1fc   : > { %3024 = vmatprep.mubr.msk.bf16.mxu0 %vm774_vm2, %v1074_v7 }
 0x1fd   : > { %3025 = vmatmul.mubr.msk.bf16.gmra.mrb[48].mxu0 %vm774_vm2, %v1075_v34 }
 0x1fe   : > { %v2996_v47 = vpop.f32.mrb[40].mxu1 }
 0x1ff   : > { %v1047_v10 = vpop.f32.mrb[41].mxu1 }
 0x200   : > { %v2997_v25 = vpop.f32.mrb[42].mxu1 }
 0x201   : > { %v1077_v5 = vpack.c.bf16 %v2997_v25, %v2996_v47  ;;  %v1050_v15 = vpop.f32.mrb[43].mxu1 }
 0x202   : > { %v1076_v61 = vpack.c.bf16 %v1050_v15, %v1047_v10 }
 0x204   : > { %3028 = vmatprep.mubr.msk.bf16.mxu0 %vm774_vm2, %v1076_v61 }
 0x205   : > { %3029 = vmatmul.mubr.msk.bf16.gmra.mrb[52].mxu0 %vm774_vm2, %v1077_v5 }
 0x2a0   : > { %v3002_v18 = vpop.f32.mrb[24].mxu0 }
 0x2a1   : > { %v1292_v49 = vmul.f32 0.17677669, %v3002_v18  ;;  %v1163_v0 = vpop.f32.mrb[25].mxu0 }
 0x2a2   : > { %v1290_v13 = vmul.f32 0.17677669, %v1163_v0  ;;  %v3003_v1 = vpop.f32.mrb[26].mxu0 }
 0x2a3   : > { %v1293_v34 = vmul.f32 0.17677669, %v3003_v1  ;;  %v1166_v23 = vpop.f32.mrb[27].mxu0  ;;  %v3804_v7 = vadd.f32 %v3801_v32, %v1292_v49 }
 0x2a4   : > { %v1291_v47 = vmul.f32 0.17677669, %v1166_v23  ;;  %v3807_v10 = vadd.f32 %v3801_v32, %v1290_v13 }
 0x2a5   : > { %v1368_v25 = vsel %vm1361_vm3, %v3804_v7, -inf  ;;  %v3812_v5 = vadd.f32 %v3801_v32, %v1293_v34 }
 0x2a6   : > { %1369 = vmax.xlane.f32.xlu1 %v1368_v25  ;;  %v1362_v15 = vsel %vm1361_vm3, %v3807_v10, -inf  ;;  %v3817_v61 = vadd.f32 %v3801_v32, %v1291_v47 }
 0x2a7   : > { %1363 = vmax.xlane.f32.xlu0 %v1362_v15  ;;  %v1371_v13 = vsel %vm1361_vm3, %v3812_v5, -inf }
 0x2a8   : > { %v3006_v18 = vpop.f32.mrb[28].mxu0  ;;  %v1365_v34 = vsel %vm1361_vm3, %v3817_v61, -inf }
 0x2a9   : > { %v1296_v49 = vmul.f32 0.17677669, %v3006_v18  ;;  %v1179_v0 = vpop.f32.mrb[29].mxu0 }
 0x2aa   : > { %v1294_v1 = vmul.f32 0.17677669, %v1179_v0  ;;  %1372 = vmax.xlane.f32.xlu1 %v1371_v13  ;;  %v3007_v23 = vpop.f32.mrb[30].mxu0 }
 0x2ab   : > { %v1297_v25 = vmul.f32 0.17677669, %v3007_v23  ;;  %1366 = vmax.xlane.f32.xlu0 %v1365_v34  ;;  %v1182_v26 = vpop.f32.mrb[31].mxu0  ;;  %v3824_v30 = vadd.f32 %v3801_v32, %v1296_v49 }
 0x2ac   : > { %v1295_v47 = vmul.f32 0.17677669, %v1182_v26  ;;  %v3832_v0 = vadd.f32 %v3801_v32, %v1294_v1 }
 0x2ad   : > { %v1380_v15 = vsel %vm1361_vm3, %v3824_v30, -inf  ;;  %v3829_v18 = vadd.f32 %v3801_v32, %v1297_v25 }
 0x2ae   : > { %v3837_v23 = vadd.f32 %v3801_v32, %v1295_v47  ;;  %v1374_v25 = vsel %vm1361_vm3, %v3832_v0, -inf }
 0x2af   : > { %1381 = vmax.xlane.f32.xlu0 %v1380_v15  ;;  %v1383_v13 = vsel %vm1361_vm3, %v3829_v18, -inf }
 0x2b0   : > { %1384 = vmax.xlane.f32.xlu1 %v1383_v13  ;;  %v3010_v49 = vpop.f32.mrb[32].mxu0  ;;  %v1377_v15 = vsel %vm1361_vm3, %v3837_v23, -inf }
 0x2b1   : > { %v1300_v34 = vmul.f32 0.17677669, %v3010_v49  ;;  %v1195_v26 = vpop.f32.mrb[33].mxu0 }
 0x2b2   : > { %v1298_v29 = vmul.f32 0.17677669, %v1195_v26  ;;  %v3011_v14 = vpop.f32.mrb[34].mxu0 }
 0x2b3   : > { %v1301_v8 = vmul.f32 0.17677669, %v3011_v14  ;;  %1375 = vmax.xlane.f32.xlu0 %v1374_v25  ;;  %v1198_v1 = vpop.f32.mrb[35].mxu0  ;;  %v3844_v12 = vadd.f32 %v3801_v32, %v1300_v34 }
 0x2b4   : > { %v1299_v47 = vmul.f32 0.17677669, %v1198_v1  ;;  %1378 = vmax.xlane.f32.xlu1 %v1377_v15  ;;  %v3852_v26 = vadd.f32 %v3801_v32, %v1298_v29 }
 0x2b5   : > { %v1392_v13 = vsel %vm1361_vm3, %v3844_v12, -inf  ;;  %v3849_v49 = vadd.f32 %v3801_v32, %v1301_v8 }
 0x2b6   : > { %v3857_v25 = vadd.f32 %v3801_v32, %v1299_v47  ;;  %v1386_v8 = vsel %vm1361_vm3, %v3852_v26, -inf }
 0x2b7   : > { %1393 = vmax.xlane.f32.xlu0 %v1392_v13  ;;  %v1395_v14 = vsel %vm1361_vm3, %v3849_v49, -inf }
 0x2b8   : > { %1396 = vmax.xlane.f32.xlu1 %v1395_v14  ;;  %v3014_v34 = vpop.f32.mrb[36].mxu0  ;;  %v1389_v13 = vsel %vm1361_vm3, %v3857_v25, -inf }
 0x2b9   : > { %v1304_v1 = vmul.f32 0.17677669, %v3014_v34  ;;  %v1211_v15 = vpop.f32.mrb[37].mxu0 }
 0x2ba   : > { %v1302_v11 = vmul.f32 0.17677669, %v1211_v15  ;;  %v3015_v60 = vpop.f32.mrb[38].mxu0 }
 0x2bb   : > { %v1305_v54 = vmul.f32 0.17677669, %v3015_v60  ;;  %1387 = vmax.xlane.f32.xlu0 %v1386_v8  ;;  %v1214_v29 = vpop.f32.mrb[39].mxu0  ;;  %v3864_v58 = vadd.f32 %v3801_v32, %v1304_v1 }
 0x2bc   : > { %v1303_v47 = vmul.f32 0.17677669, %v1214_v29  ;;  %1390 = vmax.xlane.f32.xlu1 %v1389_v13  ;;  %v3872_v15 = vadd.f32 %v3801_v32, %v1302_v11 }
 0x2bd   : > { %v1404_v14 = vsel %vm1361_vm3, %v3864_v58, -inf  ;;  %v3869_v34 = vadd.f32 %v3801_v32, %v1305_v54 }
 0x2be   : > { %v3877_v8 = vadd.f32 %v3801_v32, %v1303_v47  ;;  %v1398_v54 = vsel %vm1361_vm3, %v3872_v15, -inf }
 0x2bf   : > { %1405 = vmax.xlane.f32.xlu0 %v1404_v14  ;;  %v1407_v60 = vsel %vm1361_vm3, %v3869_v34, -inf }
 0x2c0   : > { %1408 = vmax.xlane.f32.xlu1 %v1407_v60  ;;  %v3018_v1 = vpop.f32.mrb[40].mxu0  ;;  %v1401_v11 = vsel %vm1361_vm3, %v3877_v8, -inf }
 0x2c1   : > { %v1308_v29 = vmul.f32 0.17677669, %v3018_v1  ;;  %v1227_v13 = vpop.f32.mrb[41].mxu0 }
 0x2c2   : > { %v1306_v57 = vmul.f32 0.17677669, %v1227_v13  ;;  %v3019_v43 = vpop.f32.mrb[42].mxu0 }
 0x2c3   : > { %v1309_v42 = vmul.f32 0.17677669, %v3019_v43  ;;  %1399 = vmax.xlane.f32.xlu0 %v1398_v54  ;;  %v1230_v14 = vpop.f32.mrb[43].mxu0  ;;  %v3884_v41 = vadd.f32 %v3801_v32, %v1308_v29 }
 0x2c4   : > { %1402 = vmax.xlane.f32.xlu1 %v1401_v11  ;;  %v1307_v47 = vmul.f32 0.17677669, %v1230_v14  ;;  %v3887_v60 = vadd.f32 %v3801_v32, %v1306_v57 }
 0x2c5   : > { %v1416_v1 = vsel %vm1361_vm3, %v3884_v41, -inf  ;;  %v3892_v13 = vadd.f32 %v3801_v32, %v1309_v42 }
 0x2c6   : > { %v3895_v43 = vadd.f32 %v3801_v32, %v1307_v47  ;;  %v1410_v11 = vsel %vm1361_vm3, %v3887_v60, -inf }
 0x2c7   : > { %1417 = vmax.xlane.f32.xlu0 %v1416_v1  ;;  %v1419_v54 = vsel %vm1361_vm3, %v3892_v13, -inf }
 0x2c8   : > { %1420 = vmax.xlane.f32.xlu1 %v1419_v54  ;;  %v3022_v29 = vpop.f32.mrb[44].mxu0  ;;  %v1413_v44 = vsel %vm1361_vm3, %v3895_v43, -inf }
 0x2c9   : > { %v1312_v57 = vmul.f32 0.17677669, %v3022_v29  ;;  %v1243_v14 = vpop.f32.mrb[45].mxu0 }
 0x2ca   : > { %v1310_v56 = vmul.f32 0.17677669, %v1243_v14  ;;  %v3023_v42 = vpop.f32.mrb[46].mxu0 }
 0x2cb   : > { %v1313_v45 = vmul.f32 0.17677669, %v3023_v42  ;;  %1411 = vmax.xlane.f32.xlu0 %v1410_v11  ;;  %v1246_v47 = vpop.f32.mrb[47].mxu0  ;;  %v3904_v1 = vadd.f32 %v3801_v32, %v1312_v57 }
 0x2cc   : > { %1414 = vmax.xlane.f32.xlu1 %v1413_v44  ;;  %v1311_v19 = vmul.f32 0.17677669, %v1246_v47  ;;  %v3907_v54 = vadd.f32 %v3801_v32, %v1310_v56 }
 0x2cd   : > { %v1428_v29 = vsel %vm1361_vm3, %v3904_v1, -inf  ;;  %v3912_v16 = vadd.f32 %v3801_v32, %v1313_v45 }
 0x2ce   : > { %v3915_v14 = vadd.f32 %v3801_v32, %v1311_v19  ;;  %v1422_v44 = vsel %vm1361_vm3, %v3907_v54, -inf }
 0x2cf   : > { %1429 = vmax.xlane.f32.xlu0 %v1428_v29  ;;  %v1431_v11 = vsel %vm1361_vm3, %v3912_v16, -inf }
 0x2d0   : > { %1432 = vmax.xlane.f32.xlu1 %v1431_v11  ;;  %v3026_v57 = vpop.f32.mrb[48].mxu0  ;;  %v1425_v47 = vsel %vm1361_vm3, %v3915_v14, -inf }
 0x2d1   : > { %v1316_v56 = vmul.f32 0.17677669, %v3026_v57  ;;  %v1259_v42 = vpop.f32.mrb[49].mxu0 }
 0x2d2   : > { %v1314_v36 = vmul.f32 0.17677669, %v1259_v42  ;;  %v3027_v45 = vpop.f32.mrb[50].mxu0 }
 0x2d3   : > { %v1317_v28 = vmul.f32 0.17677669, %v3027_v45  ;;  %1423 = vmax.xlane.f32.xlu0 %v1422_v44  ;;  %v1262_v19 = vpop.f32.mrb[51].mxu0  ;;  %v3924_v29 = vadd.f32 %v3801_v32, %v1316_v56 }
 0x2d4   : > { %1426 = vmax.xlane.f32.xlu1 %v1425_v47  ;;  %v1315_v59 = vmul.f32 0.17677669, %v1262_v19  ;;  %v3927_v11 = vadd.f32 %v3801_v32, %v1314_v36 }
 0x2d5   : > { %v1440_v57 = vsel %vm1361_vm3, %v3924_v29, -inf  ;;  %v3932_v21 = vadd.f32 %v3801_v32, %v1317_v28 }
 0x2d6   : > { %v3935_v42 = vadd.f32 %v3801_v32, %v1315_v59  ;;  %v1434_v47 = vsel %vm1361_vm3, %v3927_v11, -inf }
 0x2d7   : > { %1441 = vmax.xlane.f32.xlu0 %v1440_v57  ;;  %v1443_v44 = vsel %vm1361_vm3, %v3932_v21, -inf }
 0x2d8   : > { %1444 = vmax.xlane.f32.xlu1 %v1443_v44  ;;  %v3030_v56 = vpop.f32.mrb[52].mxu0  ;;  %v1437_v19 = vsel %vm1361_vm3, %v3935_v42, -inf }
 0x2d9   : > { %v1320_v36 = vmul.f32 0.17677669, %v3030_v56  ;;  %v1275_v45 = vpop.f32.mrb[53].mxu0 }
 0x2da   : > { %v1318_v62 = vmul.f32 0.17677669, %v1275_v45  ;;  %v3031_v28 = vpop.f32.mrb[54].mxu0 }
 0x2db   : > { %v1321_v46 = vmul.f32 0.17677669, %v3031_v28  ;;  %1435 = vmax.xlane.f32.xlu0 %v1434_v47  ;;  %v1278_v59 = vpop.f32.mrb[55].mxu0  ;;  %v3944_v57 = vadd.f32 %v3801_v32, %v1320_v36 }
 0x2dc   : > { %1438 = vmax.xlane.f32.xlu1 %v1437_v19  ;;  %v1319_v53 = vmul.f32 0.17677669, %v1278_v59  ;;  %v3947_v44 = vadd.f32 %v3801_v32, %v1318_v62 }
 0x2dd   : > { %v1452_v56 = vsel %vm1361_vm3, %v3944_v57, -inf  ;;  %v3952_v39 = vadd.f32 %v3801_v32, %v1321_v46 }
 0x2de   : > { %v3955_v45 = vadd.f32 %v3801_v32, %v1319_v53  ;;  %v1446_v36 = vsel %vm1361_vm3, %v3947_v44, -inf }
 0x2df   : > { %1453 = vmax.xlane.f32.xlu0 %v1452_v56  ;;  %v1455_v47 = vsel %vm1361_vm3, %v3952_v39, -inf }
 0x2e0   : > { %1456 = vmax.xlane.f32.xlu1 %v1455_v47  ;;  %v1449_v62 = vsel %vm1361_vm3, %v3955_v45, -inf }
 0x2e3   : > { %1447 = vmax.xlane.f32.xlu0 %v1446_v36 }
 0x2e4   : > { %1450 = vmax.xlane.f32.xlu1 %v1449_v62 }
 0x333   : > { %v1370_v19 = vpop.xlane.xlu1 %1369 }
 0x334   : > { %v1460_v46 = vsub.f32 %v3804_v7, %v1370_v19  ;;  %v1364_v28 = vpop.xlane.xlu0 %1363 }
 0x335   : > { %v1458_v53 = vsub.f32 %v3807_v10, %v1364_v28 }
 0x336   : > { %v1494_v32 = vmul.f32 1.442695, %v1460_v46 }
 0x337   : > { %v1490_v59 = vmul.f32 1.442695, %v1458_v53  ;;  %v1373_v56 = vpop.xlane.xlu1 %1372 }
 0x338   : > { %3185 = vpow2.f32 %v1494_v32  ;;  %v1461_v47 = vsub.f32 %v3812_v5, %v1373_v56  ;;  %v1367_v17 = vpop.xlane.xlu0 %1366 }
 0x339   : > { %v1459_v63 = vsub.f32 %v3817_v61, %v1367_v17  ;;  %3187 = vpow2.f32 %v1490_v59 }
 0x33a   : > { %v1496_v3 = vmul.f32 1.442695, %v1461_v47 }
 0x33b   : > { %v1492_v51 = vmul.f32 1.442695, %v1459_v63 }
 0x33c   : > { %3189 = vpow2.f32 %v1496_v3  ;;  %v1382_v36 = vpop.xlane.xlu0 %1381 }
 0x33d   : > { %v1464_v62 = vsub.f32 %v3824_v30, %v1382_v36  ;;  %v1385_v7 = vpop.xlane.xlu1 %1384  ;;  %3191 = vpow2.f32 %v1492_v51 }
 0x33e   : > { %v1465_v10 = vsub.f32 %v3829_v18, %v1385_v7 }
 0x33f   : > { %v1502_v19 = vmul.f32 1.442695, %v1464_v62 }
 0x340   : > { %v1504_v46 = vmul.f32 1.442695, %v1465_v10  ;;  %v1376_v28 = vpop.xlane.xlu0 %1375 }
 0x341   : > { %3193 = vpow2.f32 %v1502_v19  ;;  %v1462_v5 = vsub.f32 %v3832_v0, %v1376_v28  ;;  %v1379_v53 = vpop.xlane.xlu1 %1378 }
 0x342   : > { %v3970_v32 = vpop.eup %3185  ;;  %3195 = vpow2.f32 %v1504_v46  ;;  %v1463_v63 = vsub.f32 %v3837_v23, %v1379_v53 }
 0x343   : > { %v1498_v3 = vmul.f32 1.442695, %v1462_v5  ;;  %v1560_v30 = vsel %vm1361_vm3, %v3970_v32, 0.0  ;;  %v3975_v17 = vpop.eup %3187 }
 0x344   : > { %v1500_v51 = vmul.f32 1.442695, %v1463_v63  ;;  %v1394_v61 = vpop.xlane.xlu0 %1393  ;;  %1561 = vadd.xlane.f32.xlu0 %v1560_v30  ;;  %v1554_v23 = vsel %vm1361_vm3, %v3975_v17, 0.0 }
 0x345   : > { %3197 = vpow2.f32 %v1498_v3  ;;  %v1468_v18 = vsub.f32 %v3844_v12, %v1394_v61  ;;  %v1397_v59 = vpop.xlane.xlu1 %1396 }
 0x346   : > { %v3978_v0 = vpop.eup %3189  ;;  %3199 = vpow2.f32 %v1500_v51  ;;  %v1469_v56 = vsub.f32 %v3849_v49, %v1397_v59 }
 0x347   : > { %v1510_v47 = vmul.f32 1.442695, %v1468_v18  ;;  %v1563_v36 = vsel %vm1361_vm3, %v3978_v0, 0.0  ;;  %v3985_v62 = vpop.eup %3191 }
 0x348   : > { %v1512_v7 = vmul.f32 1.442695, %v1469_v56  ;;  %v1388_v10 = vpop.xlane.xlu0 %1387  ;;  %1555 = vadd.xlane.f32.xlu0 %v1554_v23  ;;  %1564 = vadd.xlane.f32.xlu1 %v1563_v36  ;;  %v1557_v5 = vsel %vm1361_vm3, %v3985_v62, 0.0 }
 0x349   : > { %3201 = vpow2.f32 %v1510_v47  ;;  %v1466_v12 = vsub.f32 %v3852_v26, %v1388_v10  ;;  %v1391_v19 = vpop.xlane.xlu1 %1390 }
 0x34a   : > { %3203 = vpow2.f32 %v1512_v7  ;;  %v1467_v49 = vsub.f32 %v3857_v25, %v1391_v19 }
 0x34b   : > { %v3989_v46 = vpop.eup %3193  ;;  %v1506_v28 = vmul.f32 1.442695, %v1466_v12 }
 0x34c   : > { %v3993_v53 = vpop.eup %3195  ;;  %v1508_v63 = vmul.f32 1.442695, %v1467_v49  ;;  %v1406_v3 = vpop.xlane.xlu0 %1405  ;;  %1558 = vadd.xlane.f32.xlu1 %v1557_v5  ;;  %v1572_v30 = vsel %vm1361_vm3, %v3989_v46, 0.0 }
 0x34d   : > { %3205 = vpow2.f32 %v1506_v28  ;;  %v1472_v26 = vsub.f32 %v3864_v58, %v1406_v3  ;;  %v1409_v51 = vpop.xlane.xlu1 %1408  ;;  %1573 = vadd.xlane.f32.xlu0 %v1572_v30  ;;  %v1575_v59 = vsel %vm1361_vm3, %v3993_v53, 0.0 }
 0x34e   : > { %3207 = vpow2.f32 %v1508_v63  ;;  %v1473_v25 = vsub.f32 %v3869_v34, %v1409_v51 }
 0x34f   : > { %v3999_v61 = vpop.eup %3197  ;;  %v1518_v18 = vmul.f32 1.442695, %v1472_v26 }
 0x350   : > { %v4003_v56 = vpop.eup %3199  ;;  %v1520_v47 = vmul.f32 1.442695, %v1473_v25  ;;  %v1400_v23 = vpop.xlane.xlu0 %1399  ;;  %1576 = vadd.xlane.f32.xlu1 %v1575_v59  ;;  %v1566_v36 = vsel %vm1361_vm3, %v3999_v61, 0.0 }
 0x351   : > { %3209 = vpow2.f32 %v1518_v18  ;;  %v1470_v58 = vsub.f32 %v3872_v15, %v1400_v23  ;;  %v1403_v7 = vpop.xlane.xlu1 %1402  ;;  %1567 = vadd.xlane.f32.xlu0 %v1566_v36  ;;  %v1569_v19 = vsel %vm1361_vm3, %v4003_v56, 0.0 }
 0x352   : > { %3211 = vpow2.f32 %v1520_v47  ;;  %v1471_v34 = vsub.f32 %v3877_v8, %v1403_v7 }
 0x353   : > { %v4009_v10 = vpop.eup %3201  ;;  %v1514_v12 = vmul.f32 1.442695, %v1470_v58 }
 0x354   : > { %v4013_v49 = vpop.eup %3203  ;;  %v1516_v28 = vmul.f32 1.442695, %v1471_v34  ;;  %1570 = vadd.xlane.f32.xlu1 %v1569_v19  ;;  %v1584_v5 = vsel %vm1361_vm3, %v4009_v10, 0.0  ;;  %v1418_v58 = vpop.xlane.xlu0 %1417 }
 0x355   : > { %3213 = vpow2.f32 %v1514_v12  ;;  %1585 = vadd.xlane.f32.xlu0 %v1584_v5  ;;  %v1587_v8 = vsel %vm1361_vm3, %v4013_v49, 0.0  ;;  %v1421_v7 = vpop.xlane.xlu1 %1420  ;;  %v820_v12 = vpack.c.bf16 %v3662_v33, %v3662_v33 }
 0x356   : > { %3215 = vpow2.f32 %v1516_v28  ;;  %v1477_v33 = vsub.f32 %v3892_v13, %v1421_v7 }
 0x357   : > { %v4017_v15 = vpop.eup %3205 }
 0x358   : > { %v4021_v63 = vpop.eup %3207  ;;  %1588 = vadd.xlane.f32.xlu1 %v1587_v8  ;;  %v1578_v3 = vsel %vm1361_vm3, %v4017_v15, 0.0  ;;  %v1412_v34 = vpop.xlane.xlu0 %1411  ;;  %v1528_v20 = vmul.f32 1.442695, %v1477_v33 }
 0x359   : > { %1579 = vadd.xlane.f32.xlu0 %v1578_v3  ;;  %v1581_v26 = vsel %vm1361_vm3, %v4021_v63, 0.0  ;;  %v1415_v19 = vpop.xlane.xlu1 %1414 }
 0x35a   : > { %v1475_v3 = vsub.f32 %v3895_v43, %v1415_v19 }
 0x35b   : > { %v4025_v30 = vpop.eup %3209 }
 0x35c   : > { %v4029_v51 = vpop.eup %3211  ;;  %1582 = vadd.xlane.f32.xlu1 %v1581_v26  ;;  %v1596_v25 = vsel %vm1361_vm3, %v4025_v30, 0.0  ;;  %v1430_v28 = vpop.xlane.xlu0 %1429 }
 0x35d   : > { %1597 = vadd.xlane.f32.xlu0 %v1596_v25  ;;  %v1599_v59 = vsel %vm1361_vm3, %v4029_v51, 0.0  ;;  %v1433_v5 = vpop.xlane.xlu1 %1432  ;;  %v1474_v25 = vsub.f32 %v3887_v60, %v1412_v34  ;;  %v1480_v60 = vsub.f32 %v3904_v1, %v1430_v28 }
 0x35f   : > { %v4033_v18 = vpop.eup %3213  ;;  %v1522_v22 = vmul.f32 1.442695, %v1474_v25  ;;  %v1534_v7 = vmul.f32 1.442695, %v1480_v60 }
 0x360   : > { %v4037_v47 = vpop.eup %3215  ;;  %1600 = vadd.xlane.f32.xlu1 %v1599_v59  ;;  %v1590_v23 = vsel %vm1361_vm3, %v4033_v18, 0.0  ;;  %v1424_v8 = vpop.xlane.xlu0 %1423 }
 0x361   : > { %1591 = vadd.xlane.f32.xlu0 %v1590_v23  ;;  %v1593_v36 = vsel %vm1361_vm3, %v4037_v47, 0.0  ;;  %v1427_v26 = vpop.xlane.xlu1 %1426  ;;  %v1476_v23 = vsub.f32 %v3884_v41, %v1418_v58  ;;  %v1481_v41 = vsub.f32 %v3912_v16, %v1433_v5 }
 0x362   : > { %v1479_v43 = vsub.f32 %v3915_v14, %v1427_v26 }
 0x363   : > { %v1526_v24 = vmul.f32 1.442695, %v1476_v23 }
 0x364   : > { %1594 = vadd.xlane.f32.xlu1 %v1593_v36  ;;  %v1442_v59 = vpop.xlane.xlu0 %1441  ;;  %v1524_v36 = vmul.f32 1.442695, %v1475_v3  ;;  %v1532_v58 = vmul.f32 1.442695, %v1479_v43 }
 0x365   : > { %v1445_v27 = vpop.xlane.xlu1 %1444  ;;  %v1484_v1 = vsub.f32 %v3924_v29, %v1442_v59 }
 0x366   : > { %3217 = vpow2.f32 %v1524_v36 }
 0x367   : > { %3219 = vpow2.f32 %v1522_v22  ;;  %v1536_v22 = vmul.f32 1.442695, %v1481_v41  ;;  %v1542_v25 = vmul.f32 1.442695, %v1484_v1 }
 0x368   : > { %3221 = vpow2.f32 %v1526_v24 }
 0x369   : > { %v1439_v19 = vpop.xlane.xlu1 %1438  ;;  %3223 = vpow2.f32 %v1528_v20 }
 0x36a   : > { %v1483_v24 = vsub.f32 %v3935_v42, %v1439_v19 }
 0x36c   : > { %v1540_v26 = vmul.f32 1.442695, %v1483_v24 }
 0x375   : > { %1734 = vrot.lane.b32.xlu1 %v820_v12, %s3402_s14  ;;  %v1478_v12 = vsub.f32 %v3907_v54, %v1424_v8  ;;  %v4055_v54 = vpop.eup %3217  ;;  %v1457_v8 = vpop.xlane.xlu1 %1456 }
 0x376   : > { %v4059_v20 = vpop.eup %3219  ;;  %v1605_v28 = vsel %vm1361_vm3, %v4055_v54, 0.0  ;;  %v1489_v19 = vsub.f32 %v3952_v39, %v1457_v8 }
 0x377   : > { %1732 = vrot.lane.b32.xlu0 %v3660_v31, %s3402_s14  ;;  %v1436_v31 = vpop.xlane.xlu0 %1435  ;;  %v1530_v34 = vmul.f32 1.442695, %v1478_v12  ;;  %v4063_v5 = vpop.eup %3221  ;;  %v1602_v29 = vsel %vm1361_vm3, %v4059_v20, 0.0 }
 0x378   : > { %v1482_v3 = vsub.f32 %v3927_v11, %v1436_v31  ;;  %v1485_v11 = vsub.f32 %v3932_v21, %v1445_v27  ;;  %v4069_v59 = vpop.eup %3223  ;;  %v1608_v36 = vsel %vm1361_vm3, %v4063_v5, 0.0 }
 0x379   : > { %3225 = vpow2.f32 %v1530_v34  ;;  %v1451_v23 = vpop.xlane.xlu1 %1450  ;;  %v1611_v31 = vsel %vm1361_vm3, %v4069_v59, 0.0 }
 0x37a   : > { %3227 = vpow2.f32 %v1532_v58  ;;  %v1538_v14 = vmul.f32 1.442695, %v1482_v3  ;;  %v1544_v12 = vmul.f32 1.442695, %v1485_v11  ;;  %v1487_v27 = vsub.f32 %v3955_v45, %v1451_v23 }
 0x37b   : > { %v1454_v13 = vpop.xlane.xlu0 %1453  ;;  %3229 = vpow2.f32 %v1534_v7  ;;  %v1552_v3 = vmul.f32 1.442695, %v1489_v19  ;;  %v3179_v19 = vld [vmem:[%s4301_s7 + $0x10] sm:$0xff]  }
 0x37c   : > { %3231 = vpow2.f32 %v1536_v22  ;;  %v1488_v21 = vsub.f32 %v3944_v57, %v1454_v13  ;;  %v1548_v45 = vmul.f32 1.442695, %v1487_v27 }
 0x37d   : > { %3233 = vpow2.f32 %v1538_v14 }
 0x37e   : > { %3235 = vpow2.f32 %v1540_v26  ;;  %v1550_v41 = vmul.f32 1.442695, %v1488_v21  ;;  %v3177_v21 = vld [vmem:[%s4301_s7] sm:$0xff]  }
 0x37f   : > { %v1448_v16 = vpop.xlane.xlu0 %1447  ;;  %3237 = vpow2.f32 %v1542_v25  ;;  %3066 = vmatprep.subr.bf16.mxu0 %v3177_v21 }
 0x380   : > { %v1486_v42 = vsub.f32 %v3947_v44, %v1448_v16  ;;  %3239 = vpow2.f32 %v1544_v12  ;;  %3067 = vmatpush3.bf16.msra.mxu0 %v3177_v21 }
 0x382   : > { %v1546_v44 = vmul.f32 1.442695, %v1486_v42 }
 0x383   : > { %v4073_v33 = vpop.eup %3225 }
 0x384   : > { %v4079_v43 = vpop.eup %3227  ;;  %v1614_v60 = vsel %vm1361_vm3, %v4073_v33, 0.0  ;;  %3241 = vpow2.f32 %v1546_v44  ;;  %v3178_v44 = vld [vmem:[%s4301_s7 + $0x8] sm:$0xff]  }
 0x385   : > { %v4083_v34 = vpop.eup %3229  ;;  %v1617_v57 = vsel %vm1361_vm3, %v4079_v43, 0.0  ;;  %3243 = vpow2.f32 %v1548_v45  ;;  %3068 = vmatprep.subr.bf16.mxu0 %v3178_v44 }
 0x386   : > { %v4088_v58 = vpop.eup %3231  ;;  %v1620_v13 = vsel %vm1361_vm3, %v4083_v34, 0.0  ;;  %3245 = vpow2.f32 %v1550_v41  ;;  %3069 = vmatpush3.bf16.msra.mxu0 %v3178_v44  ;;  %v3183_v44 = vld [vmem:[%s4301_s7 + $0x30] sm:$0xff]  }
 0x387   : > { %v4092_v7 = vpop.eup %3233  ;;  %v1623_v39 = vsel %vm1361_vm3, %v4088_v58, 0.0  ;;  %3247 = vpow2.f32 %v1552_v3  ;;  %3070 = vmatprep.subr.bf16.mxu0 %v3179_v19 }
 0x388   : > { %v4096_v8 = vpop.eup %3235  ;;  %v1626_v22 = vsel %vm1361_vm3, %v4092_v7, 0.0 }
 0x389   : > { %v4100_v24 = vpop.eup %3237  ;;  %v1629_v1 = vsel %vm1361_vm3, %v4096_v8, 0.0 }
 0x38a   : > { %v4104_v14 = vpop.eup %3239  ;;  %v1632_v16 = vsel %vm1361_vm3, %v4100_v24, 0.0  ;;  %3071 = vmatpush3.bf16.msra.mxu0 %v3179_v19 }
 0x38b   : > { %v1635_v11 = vsel %vm1361_vm3, %v4104_v14, 0.0 }
 0x396   : > { %1606 = vadd.xlane.f32.xlu0 %v1605_v28  ;;  %v4108_v28 = vpop.eup %3241 }
 0x397   : > { %v4112_v26 = vpop.eup %3243  ;;  %v1638_v25 = vsel %vm1361_vm3, %v4108_v28, 0.0 }
 0x398   : > { %v4116_v42 = vpop.eup %3245  ;;  %v1641_v23 = vsel %vm1361_vm3, %v4112_v26, 0.0 }
 0x399   : > { %1603 = vadd.xlane.f32.xlu1 %v1602_v29  ;;  %v4120_v29 = vpop.eup %3247 }
 0x39a   : > { %1609 = vadd.xlane.f32.xlu0 %v1608_v36  ;;  %v1644_v36 = vsel %vm1361_vm3, %v4116_v42, 0.0  ;;  %v1647_v12 = vsel %vm1361_vm3, %v4120_v29, 0.0 }
 0x39d   : > { %1612 = vadd.xlane.f32.xlu1 %v1611_v31 }
 0x39e   : > { %1615 = vadd.xlane.f32.xlu0 %v1614_v60 }
 0x3a1   : > { %1618 = vadd.xlane.f32.xlu1 %v1617_v57  ;;  %v3180_v57 = vld [vmem:[%s4301_s7 + $0x18] sm:$0xff]  }
 0x3a2   : > { %1621 = vadd.xlane.f32.xlu0 %v1620_v13  ;;  %3072 = vmatprep.subr.bf16.mxu0 %v3180_v57 }
 0x3a3   : > { %3073 = vmatpush3.bf16.msra.mxu0 %v3180_v57 }
 0x3a5   : > { %1624 = vadd.xlane.f32.xlu1 %v1623_v39  ;;  %v3181_v39 = vld [vmem:[%s4301_s7 + $0x20] sm:$0xff]  }
 0x3a6   : > { %1627 = vadd.xlane.f32.xlu0 %v1626_v22  ;;  %3074 = vmatprep.subr.bf16.mxu0 %v3181_v39 }
 0x3a7   : > { %3075 = vmatpush3.bf16.msra.mxu0 %v3181_v39 }
 0x3a9   : > { %1630 = vadd.xlane.f32.xlu1 %v1629_v1 }
 0x3aa   : > { %1633 = vadd.xlane.f32.xlu0 %v1632_v16 }
 0x3ad   : > { %1636 = vadd.xlane.f32.xlu1 %v1635_v11  ;;  %v3182_v11 = vld [vmem:[%s4301_s7 + $0x28] sm:$0xff]  }
 0x3ae   : > { %1639 = vadd.xlane.f32.xlu0 %v1638_v25  ;;  %3076 = vmatprep.subr.bf16.mxu0 %v3182_v11 }
 0x3af   : > { %3077 = vmatpush3.bf16.msra.mxu0 %v3182_v11 }
 0x3b0   : > { %3078 = vmatprep.subr.bf16.mxu0 %v3183_v44 }
 0x3b1   : > { %1642 = vadd.xlane.f32.xlu1 %v1641_v23 }
 0x3b2   : > { %1645 = vadd.xlane.f32.xlu0 %v1644_v36 }
 0x3b3   : > { %3079 = vmatpush3.bf16.msra.mxu0 %v3183_v44 }
 0x3b5   : > { %1648 = vadd.xlane.f32.xlu1 %v1647_v12 }
 0x3d1   : > { %v1562_v27 = vpop.xlane.xlu0 %1561 }
 0x3d5   : > { %v1556_v31 = vpop.xlane.xlu0 %1555  ;;  %v1565_v60 = vpop.xlane.xlu1 %1564 }
 0x3d6   : > { %3249 = vrcp.f32 %v1556_v31 }
 0x3d9   : > { %v1559_v45 = vpop.xlane.xlu1 %1558 }
 0x3da   : > { %3251 = vrcp.f32 %v1559_v45  ;;  %v1574_v41 = vpop.xlane.xlu0 %1573 }
 0x3db   : > { %3253 = vrcp.f32 %v1565_v60 }
 0x3dd   : > { %v1577_v13 = vpop.xlane.xlu1 %1576 }
 0x3de   : > { %v1568_v3 = vpop.xlane.xlu0 %1567 }
 0x3e0   : > { %v3250_v1 = vpop.eup %3249 }
 0x3e1   : > { %v1571_v22 = vpop.xlane.xlu1 %1570  ;;  %v1682_v36 = vmul.f32 %v3250_v1, %v3975_v17 }
 0x3e2   : > { %v1586_v16 = vpop.xlane.xlu0 %1585  ;;  %3255 = vrcp.f32 %v1571_v22 }
 0x3e3   : > { %3257 = vrcp.f32 %v1562_v27 }
 0x3e4   : > { %v3252_v25 = vpop.eup %3251  ;;  %3259 = vrcp.f32 %v1568_v3 }
 0x3e5   : > { %v1589_v23 = vpop.xlane.xlu1 %1588  ;;  %v1683_v12 = vmul.f32 %v3252_v25, %v3985_v62  ;;  %3261 = vrcp.f32 %v1577_v13  ;;  %v3254_v39 = vpop.eup %3253 }
 0x3e6   : > { %v1580_v21 = vpop.xlane.xlu0 %1579  ;;  %v1685_v11 = vmul.f32 %v3254_v39, %v3978_v0 }
 0x3e7   : > { %v1714_v31 = vpack.c.bf16 %v1683_v12, %v1682_v36 }
 0x3e9   : > { %3034 = vmatprep.mubr.msk.bf16.mxu1 %vm1361_vm3, %v1714_v31  ;;  %v1583_v19 = vpop.xlane.xlu1 %1582 }
 0x3ea   : > { %v1598_v45 = vpop.xlane.xlu0 %1597  ;;  %3263 = vrcp.f32 %v1583_v19 }
 0x3eb   : > { %3265 = vrcp.f32 %v1574_v41 }
 0x3ec   : > { %v3256_v1 = vpop.eup %3255  ;;  %3267 = vrcp.f32 %v1580_v21 }
 0x3ed   : > { %v1601_v17 = vpop.xlane.xlu1 %1600  ;;  %v3258_v60 = vpop.eup %3257  ;;  %v1687_v3 = vmul.f32 %v3256_v1, %v4003_v56  ;;  %3269 = vrcp.f32 %v1589_v23 }
 0x3ee   : > { %v1592_v62 = vpop.xlane.xlu0 %1591  ;;  %v3260_v22 = vpop.eup %3259  ;;  %v1684_v12 = vmul.f32 %v3258_v60, %v3970_v32 }
 0x3ef   : > { %v1686_v41 = vmul.f32 %v3260_v22, %v3999_v61  ;;  %v3262_v44 = vpop.eup %3261 }
 0x3f0   : > { %v1715_v21 = vpack.c.bf16 %v1685_v11, %v1684_v12  ;;  %v1689_v32 = vmul.f32 %v3262_v44, %v3993_v53 }
 0x3f1   : > { %v1595_v57 = vpop.xlane.xlu1 %1594  ;;  %v1716_v31 = vpack.c.bf16 %v1687_v3, %v1686_v41 }
 0x3f2   : > { %v1733_v27 = vpop.permute.xlu0 %1732  ;;  %3271 = vrcp.f32 %v1595_v57 }
 0x3f3   : > { %3273 = vrcp.f32 %v1586_v16 }
 0x3f4   : > { %v3264_v19 = vpop.eup %3263  ;;  %3275 = vrcp.f32 %v1592_v62 }
 0x3f5   : > { %v1735_v25 = vpop.permute.xlu1 %1734  ;;  %v3266_v0 = vpop.eup %3265  ;;  %v1691_v23 = vmul.f32 %v3264_v19, %v4021_v63  ;;  %3277 = vrcp.f32 %v1601_v17 }
 0x3f6   : > { %v1737_v36 = vsel %vm1736_vm4, %v1733_v27, %v1735_v25  ;;  %v3268_v56 = vpop.eup %3267  ;;  %v1688_v39 = vmul.f32 %v3266_v0, %v3989_v46  ;;  %3279 = vrcp.f32 %v1598_v45 }
 0x3f7   : > { %v1788_v13 = vsel %vm1786_vm5, %v1737_v36, 0  ;;  %3119 = vmatprep.subr.msk.bf16.mxu1 %vm1786_vm5, %v1737_v36  ;;  %v1690_v61 = vmul.f32 %v3268_v56, %v4017_v15  ;;  %v3270_v16 = vpop.eup %3269 }
 0x3f8   : > { %3033 = vmatpush3.bf16.msra.mxu1 %v1788_v13  ;;  %v1717_v57 = vpack.c.bf16 %v1689_v32, %v1688_v39  ;;  %v1693_v53 = vmul.f32 %v3270_v16, %v4013_v49 }
 0x3f9   : > { %v1718_v1 = vpack.c.bf16 %v1691_v23, %v1690_v61 }
 0x3fb   : > { %3035 = vmatmul.mubr.msk.bf16.vlgmr.msra.gmra.mrb[44].mxu1 %vm1361_vm3, %v1715_v21 }
 0x3fc   : > { %3038 = vmatprep.mubr.msk.bf16.mxu1 %vm1361_vm3, %v1716_v31  ;;  %v3272_v62 = vpop.eup %3271 }
 0x3fd   : > { %v3274_v60 = vpop.eup %3273  ;;  %v1695_v63 = vmul.f32 %v3272_v62, %v4037_v47 }
 0x3fe   : > { %v3276_v22 = vpop.eup %3275  ;;  %v1692_v46 = vmul.f32 %v3274_v60, %v4009_v10 }
 0x3ff   : > { %v1694_v17 = vmul.f32 %v3276_v22, %v4033_v18  ;;  %v3278_v11 = vpop.eup %3277 }
 0x400   : > { %v1719_v15 = vpack.c.bf16 %v1693_v53, %v1692_v46  ;;  %v3280_v45 = vpop.eup %3279  ;;  %v1697_v25 = vmul.f32 %v3278_v11, %v4029_v51 }
 0x401   : > { %v1720_v27 = vpack.c.bf16 %v1695_v63, %v1694_v17  ;;  %v1696_v36 = vmul.f32 %v3280_v45, %v4025_v30 }
 0x403   : > { %3039 = vmatmul.mubr.msk.bf16.gmra.mrb[48].mxu1 %vm1361_vm3, %v1717_v57  ;;  %v1721_v3 = vpack.c.bf16 %v1697_v25, %v1696_v36 }
 0x404   : > { %3042 = vmatprep.mubr.msk.bf16.mxu1 %vm1361_vm3, %v1718_v1 }
 0x40b   : > { %3043 = vmatmul.mubr.msk.bf16.gmra.mrb[52].mxu1 %vm1361_vm3, %v1719_v15 }
 0x40c   : > { %3046 = vmatprep.mubr.msk.bf16.mxu1 %vm1361_vm3, %v1720_v27 }
 0x413   : > { %3047 = vmatmul.mubr.msk.bf16.gmra.mrb[56].mxu1 %vm1361_vm3, %v1721_v3 }
 0x423   : > { %v1607_v49 = vpop.xlane.xlu0 %1606 }
 0x424   : > { %3281 = vrcp.f32 %v1607_v49 }
 0x426   : > { %v1604_v10 = vpop.xlane.xlu1 %1603 }
 0x427   : > { %3283 = vrcp.f32 %v1604_v10  ;;  %v1610_v18 = vpop.xlane.xlu0 %1609 }
 0x428   : > { %3285 = vrcp.f32 %v1610_v18 }
 0x42a   : > { %v1613_v47 = vpop.xlane.xlu1 %1612 }
 0x42b   : > { %3287 = vrcp.f32 %v1613_v47  ;;  %v1616_v12 = vpop.xlane.xlu0 %1615 }
 0x42c   : > { %3289 = vrcp.f32 %v1616_v12 }
 0x42e   : > { %v1619_v13 = vpop.xlane.xlu1 %1618  ;;  %v3282_v41 = vpop.eup %3281 }
 0x42f   : > { %3291 = vrcp.f32 %v1619_v13  ;;  %v1622_v21 = vpop.xlane.xlu0 %1621  ;;  %v1699_v31 = vmul.f32 %v3282_v41, %v4055_v54 }
 0x430   : > { %3293 = vrcp.f32 %v1622_v21 }
 0x431   : > { %v3284_v51 = vpop.eup %3283 }
 0x432   : > { %v1625_v30 = vpop.xlane.xlu1 %1624  ;;  %v1698_v44 = vmul.f32 %v3284_v51, %v4059_v20  ;;  %v3286_v19 = vpop.eup %3285 }
 0x433   : > { %3295 = vrcp.f32 %v1625_v30  ;;  %v1628_v0 = vpop.xlane.xlu0 %1627  ;;  %v1700_v39 = vmul.f32 %v3286_v19, %v4063_v5 }
 0x434   : > { %v1722_v56 = vpack.c.bf16 %v1699_v31, %v1698_v44  ;;  %3297 = vrcp.f32 %v1628_v0 }
 0x435   : > { %v3288_v32 = vpop.eup %3287 }
 0x436   : > { %3050 = vmatprep.mubr.msk.bf16.mxu1 %vm1361_vm3, %v1722_v56  ;;  %v1631_v23 = vpop.xlane.xlu1 %1630  ;;  %v1701_v61 = vmul.f32 %v3288_v32, %v4069_v59  ;;  %v3290_v57 = vpop.eup %3289 }
 0x437   : > { %3299 = vrcp.f32 %v1631_v23  ;;  %v1634_v16 = vpop.xlane.xlu0 %1633  ;;  %v1702_v62 = vmul.f32 %v3290_v57, %v4073_v33 }
 0x438   : > { %v1723_v1 = vpack.c.bf16 %v1701_v61, %v1700_v39  ;;  %3301 = vrcp.f32 %v1634_v16 }
 0x439   : > { %v3292_v20 = vpop.eup %3291 }
 0x43a   : > { %3051 = vmatmul.mubr.msk.bf16.gmra.mrb[60].mxu1 %vm1361_vm3, %v1723_v1  ;;  %v1637_v54 = vpop.xlane.xlu1 %1636  ;;  %v1703_v60 = vmul.f32 %v3292_v20, %v4079_v43  ;;  %v3294_v22 = vpop.eup %3293 }
 0x43b   : > { %3303 = vrcp.f32 %v1637_v54  ;;  %v1640_v53 = vpop.xlane.xlu0 %1639  ;;  %v1704_v46 = vmul.f32 %v3294_v22, %v4083_v34 }
 0x43c   : > { %v1724_v63 = vpack.c.bf16 %v1703_v60, %v1702_v62  ;;  %3305 = vrcp.f32 %v1640_v53 }
 0x43d   : > { %v3296_v5 = vpop.eup %3295 }
 0x43e   : > { %3054 = vmatprep.mubr.msk.bf16.mxu1 %vm1361_vm3, %v1724_v63  ;;  %v1643_v59 = vpop.xlane.xlu1 %1642  ;;  %v1705_v17 = vmul.f32 %v3296_v5, %v4088_v58  ;;  %v3298_v15 = vpop.eup %3297 }
 0x43f   : > { %3307 = vrcp.f32 %v1643_v59  ;;  %v1646_v11 = vpop.xlane.xlu0 %1645  ;;  %v1706_v45 = vmul.f32 %v3298_v15, %v4092_v7 }
 0x440   : > { %v1725_v27 = vpack.c.bf16 %v1705_v17, %v1704_v46  ;;  %3309 = vrcp.f32 %v1646_v11 }
 0x441   : > { %v3300_v33 = vpop.eup %3299 }
 0x442   : > { %3055 = vmatmul.mubr.msk.bf16.gmra.mrb[64].mxu1 %vm1361_vm3, %v1725_v27  ;;  %v1649_v43 = vpop.xlane.xlu1 %1648  ;;  %v1707_v25 = vmul.f32 %v3300_v33, %v4096_v8  ;;  %v3302_v36 = vpop.eup %3301 }
 0x443   : > { %3311 = vrcp.f32 %v1649_v43  ;;  %v1708_v34 = vmul.f32 %v3302_v36, %v4100_v24 }
 0x444   : > { %v1726_v3 = vpack.c.bf16 %v1707_v25, %v1706_v45 }
 0x445   : > { %v3304_v49 = vpop.eup %3303 }
 0x446   : > { %3058 = vmatprep.mubr.msk.bf16.mxu1 %vm1361_vm3, %v1726_v3  ;;  %v1709_v58 = vmul.f32 %v3304_v49, %v4104_v14  ;;  %v3306_v10 = vpop.eup %3305  ;;  %v3184_v14 = vld [vmem:[%s4301_s7 + $0x38] sm:$0xff]  }
 0x447   : > { %v1710_v12 = vmul.f32 %v3306_v10, %v4108_v28  ;;  %3080 = vmatprep.subr.bf16.mxu0 %v3184_v14 }
 0x448   : > { %v1727_v18 = vpack.c.bf16 %v1709_v58, %v1708_v34  ;;  %3081 = vmatpush3.bf16.msra.mxu0 %v3184_v14 }
 0x449   : > { %v3308_v47 = vpop.eup %3307 }
 0x44a   : > { %3059 = vmatmul.mubr.msk.bf16.gmra.mrb[68].mxu1 %vm1361_vm3, %v1727_v18  ;;  %v1711_v7 = vmul.f32 %v3308_v47, %v4112_v26  ;;  %v3310_v8 = vpop.eup %3309 }
 0x44b   : > { %v1712_v21 = vmul.f32 %v3310_v8, %v4116_v42 }
 0x44c   : > { %v1728_v13 = vpack.c.bf16 %v1711_v7, %v1710_v12 }
 0x44d   : > { %v3312_v41 = vpop.eup %3311 }
 0x44e   : > { %3062 = vmatprep.mubr.msk.bf16.mxu1 %vm1361_vm3, %v1728_v13  ;;  %v1713_v24 = vmul.f32 %v3312_v41, %v4120_v29 }
 0x450   : > { %v1729_v51 = vpack.c.bf16 %v1713_v24, %v1712_v21 }
 0x452   : > { %3063 = vmatmul.mubr.msk.bf16.gmra.mrb[72].mxu1 %vm1361_vm3, %v1729_v51 }
 0x4ce   : > { %v3036_v28 = vpop.f32.mrb[44].mxu1 }
 0x4cf   : > { %v1824_v26 = vpop.f32.mrb[45].mxu1 }
 0x4d0   : > { %v3037_v30 = vpop.f32.mrb[46].mxu1 }
 0x4d1   : > { %v1952_v44 = vpack.c.bf16 %v3037_v30, %v3036_v28  ;;  %v1827_v31 = vpop.f32.mrb[47].mxu1 }
 0x4d2   : > { %v1951_v19 = vpack.c.bf16 %v1827_v31, %v1824_v26 }
 0x4d4   : > { %3082 = vmatprep.mubr.bf16.mxu0 %v1951_v19 }
 0x4d5   : > { %3083 = vmatmul.mubr.bf16.vlgmr.msra.gmra.mrb[56].mxu0 %v1952_v44 }
 0x4d6   : > { %v3040_v42 = vpop.f32.mrb[48].mxu1 }
 0x4d7   : > { %v1840_v0 = vpop.f32.mrb[49].mxu1 }
 0x4d8   : > { %v3041_v29 = vpop.f32.mrb[50].mxu1 }
 0x4d9   : > { %v1954_v56 = vpack.c.bf16 %v3041_v29, %v3040_v42  ;;  %v1843_v32 = vpop.f32.mrb[51].mxu1 }
 0x4da   : > { %v1953_v23 = vpack.c.bf16 %v1843_v32, %v1840_v0 }
 0x4dc   : > { %3086 = vmatprep.mubr.bf16.mxu0 %v1953_v23 }
 0x4dd   : > { %3087 = vmatmul.mubr.bf16.gmra.mrb[60].mxu0 %v1954_v56 }
 0x4de   : > { %v3044_v39 = vpop.f32.mrb[52].mxu1 }
 0x4df   : > { %v1856_v61 = vpop.f32.mrb[53].mxu1 }
 0x4e0   : > { %v3045_v57 = vpop.f32.mrb[54].mxu1 }
 0x4e1   : > { %v1956_v16 = vpack.c.bf16 %v3045_v57, %v3044_v39  ;;  %v1859_v1 = vpop.f32.mrb[55].mxu1  ;;  %v4375_v39 = vmax.f32 %v3561_v37, 0.0  ;;  %v4376_v57 = vmax.f32 %v3564_v38, 0.0 }
 0x4e2   : > { %v1955_v20 = vpack.c.bf16 %v1859_v1, %v1856_v61 }
 0x4e4   : > { %3090 = vmatprep.mubr.bf16.mxu0 %v1955_v20  ;;  %v4377_v20 = vmax.f32 %v3558_v35, 0.0 }
 0x4e5   : > { %3091 = vmatmul.mubr.bf16.gmra.mrb[64].mxu0 %v1956_v16 }
 0x4e6   : > { %v3048_v54 = vpop.f32.mrb[56].mxu1 }
 0x4e7   : > { %v1872_v62 = vpop.f32.mrb[57].mxu1 }
 0x4e8   : > { %v3049_v60 = vpop.f32.mrb[58].mxu1 }
 0x4e9   : > { %v1958_v22 = vpack.c.bf16 %v3049_v60, %v3048_v54  ;;  %v1875_v53 = vpop.f32.mrb[59].mxu1 }
 0x4ea   : > { %v1957_v63 = vpack.c.bf16 %v1875_v53, %v1872_v62  ;;  %v4378_v62 = vmax.f32 %v3567_v40, 0.0 }
 0x4ec   : > { %3094 = vmatprep.mubr.bf16.mxu0 %v1957_v63 }
 0x4ed   : > { %3095 = vmatmul.mubr.bf16.gmra.mrb[68].mxu0 %v1958_v22 }
 0x50d   : > { %v3052_v5 = vpop.f32.mrb[60].mxu1 }
 0x50e   : > { %v1888_v59 = vpop.f32.mrb[61].mxu1 }
 0x50f   : > { %v3053_v46 = vpop.f32.mrb[62].mxu1 }
 0x510   : > { %v1960_v17 = vpack.c.bf16 %v3053_v46, %v3052_v5  ;;  %v1891_v15 = vpop.f32.mrb[63].mxu1 }
 0x511   : > { %v1959_v11 = vpack.c.bf16 %v1891_v15, %v1888_v59 }
 0x513   : > { %3098 = vmatprep.mubr.bf16.mxu0 %v1959_v11 }
 0x514   : > { %3099 = vmatmul.mubr.bf16.gmra.mrb[72].mxu0 %v1960_v17 }
 0x515   : > { %v3056_v27 = vpop.f32.mrb[64].mxu1 }
 0x516   : > { %v1904_v33 = vpop.f32.mrb[65].mxu1 }
 0x517   : > { %v3057_v43 = vpop.f32.mrb[66].mxu1 }
 0x518   : > { %v1962_v45 = vpack.c.bf16 %v3057_v43, %v3056_v27  ;;  %v1907_v25 = vpop.f32.mrb[67].mxu1  ;;  %v4379_v27 = vmax.f32 %v3582_v48, 0.0  ;;  %v4380_v43 = vmax.f32 %v3588_v52, 0.0 }
 0x519   : > { %v1961_v36 = vpack.c.bf16 %v1907_v25, %v1904_v33 }
 0x51b   : > { %3102 = vmatprep.mubr.bf16.mxu0 %v1961_v36  ;;  %v4381_v36 = vmax.f32 %v3585_v50, 0.0 }
 0x51c   : > { %3103 = vmatmul.mubr.bf16.gmra.mrb[76].mxu0 %v1962_v45 }
 0x51d   : > { %v3060_v3 = vpop.f32.mrb[68].mxu1 }
 0x51e   : > { %v1920_v49 = vpop.f32.mrb[69].mxu1 }
 0x51f   : > { %v3061_v34 = vpop.f32.mrb[70].mxu1 }
 0x520   : > { %v1964_v58 = vpack.c.bf16 %v3061_v34, %v3060_v3  ;;  %v1923_v10 = vpop.f32.mrb[71].mxu1 }
 0x521   : > { %v1963_v18 = vpack.c.bf16 %v1923_v10, %v1920_v49  ;;  %v4382_v49 = vmax.f32 %v3592_v55, 0.0 }
 0x523   : > { %3106 = vmatprep.mubr.bf16.mxu0 %v1963_v18 }
 0x524   : > { %3107 = vmatmul.mubr.bf16.gmra.mrb[80].mxu0 %v1964_v58 }
 0x525   : > { %v3064_v47 = vpop.f32.mrb[72].mxu1 }
 0x526   : > { %v1936_v12 = vpop.f32.mrb[73].mxu1 }
 0x527   : > { %v3065_v7 = vpop.f32.mrb[74].mxu1 }
 0x528   : > { %v1966_v8 = vpack.c.bf16 %v3065_v7, %v3064_v47  ;;  %v1939_v13 = vpop.f32.mrb[75].mxu1 }
 0x529   : > { %v1965_v41 = vpack.c.bf16 %v1939_v13, %v1936_v12 }
 0x52b   : > { %3110 = vmatprep.mubr.bf16.mxu0 %v1965_v41 }
 0x52c   : > { %3111 = vmatmul.mubr.bf16.gmra.mrb[84].mxu0 %v1966_v8 }
 0x5a8   : > { %v3084_v21 = vpop.f32.mrb[56].mxu0 }
 0x5a9   : > { %3313 = vtanh.f32 %v3084_v21  ;;  %v2065_v24 = vpop.f32.mrb[57].mxu0  ;;  %v4383_v21 = vmax.f32 %v3614_v2, 0.0 }
 0x5aa   : > { %3315 = vtanh.f32 %v2065_v24  ;;  %v3085_v51 = vpop.f32.mrb[58].mxu0 }
 0x5ab   : > { %3317 = vtanh.f32 %v3085_v51  ;;  %v2068_v14 = vpop.f32.mrb[59].mxu0  ;;  %v4384_v51 = vmax.f32 %v3620_v6, 0.0 }
 0x5ac   : > { %3319 = vtanh.f32 %v2068_v14 }
 0x5b0   : > { %v3088_v28 = vpop.f32.mrb[60].mxu0 }
 0x5b1   : > { %3321 = vtanh.f32 %v3088_v28  ;;  %v2081_v26 = vpop.f32.mrb[61].mxu0  ;;  %v4385_v28 = vmax.f32 %v3617_v4, 0.0 }
 0x5b2   : > { %3323 = vtanh.f32 %v2081_v26  ;;  %v3089_v30 = vpop.f32.mrb[62].mxu0 }
 0x5b3   : > { %v3314_v44 = vpop.eup %3313  ;;  %3325 = vtanh.f32 %v3089_v30  ;;  %v2084_v31 = vpop.f32.mrb[63].mxu0  ;;  %v4386_v30 = vmax.f32 %v3624_v9, 0.0 }
 0x5b4   : > { %v3316_v19 = vpop.eup %3315  ;;  %v2226_v42 = vadd.f32 1.0, %v3314_v44  ;;  %3327 = vtanh.f32 %v2084_v31 }
 0x5b5   : > { %v3318_v0 = vpop.eup %3317  ;;  %v2224_v29 = vadd.f32 1.0, %v3316_v19 }
 0x5b6   : > { %v3320_v56 = vpop.eup %3319  ;;  %v2227_v32 = vadd.f32 1.0, %v3318_v0  ;;  %v2258_v61 = vmul.f32 %v2226_v42, %v4375_v39  ;;  %v4387_v39 = vld [vmem:[#allocation2_spill] sm:$0xff] }
 0x5b7   : > { %v2225_v23 = vadd.f32 1.0, %v3320_v56  ;;  %v2256_v54 = vmul.f32 %v2224_v29, %v4377_v20  ;;  %v4388_v4 = vmax.f32 %v4387_v39, 0.0 }
 0x5b8   : > { %v2259_v16 = vmul.f32 %v2227_v32, %v4376_v57  ;;  %v3092_v1 = vpop.f32.mrb[64].mxu0  ;;  %v4389_v57 = vld [vmem:[#allocation4_spill] sm:$0xff] }
 0x5b9   : > { %v2257_v60 = vmul.f32 %v2225_v23, %v4378_v62  ;;  %3329 = vtanh.f32 %v3092_v1  ;;  %v2097_v37 = vpop.f32.mrb[65].mxu0  ;;  %v4390_v9 = vmax.f32 %v4389_v57, 0.0  ;;  %v4391_v1 = vld [vmem:[#allocation3_spill] sm:$0xff]  ;;  %v4393_v62 = vld [vmem:[#allocation5_spill] sm:$0xff] }
 0x5ba   : > { %v2730_v22 = vpack.c.bf16 %v2259_v16, %v2258_v61  ;;  %3331 = vtanh.f32 %v2097_v37  ;;  %v3093_v38 = vpop.f32.mrb[66].mxu0  ;;  %v4392_v20 = vmax.f32 %v4391_v1, 0.0 }
 0x5bb   : > { %v3322_v53 = vpop.eup %3321  ;;  %v2725_v63 = vpack.c.bf16 %v2257_v60, %v2256_v54  ;;  %3333 = vtanh.f32 %v3093_v38  ;;  %v2100_v35 = vpop.f32.mrb[67].mxu0  ;;  %v4394_v60 = vmax.f32 %v4393_v62, 0.0 }
 0x5bc   : > { %v3324_v5 = vpop.eup %3323  ;;  %2802 = vst [vmem:[%s4209_s17 + $0x8] sm:$0xff] %v2730_v22   ;;  %v2230_v59 = vadd.f32 1.0, %v3322_v53  ;;  %3335 = vtanh.f32 %v2100_v35 }
 0x5bd   : > { %v3326_v46 = vpop.eup %3325  ;;  %2726 = vst [vmem:[%s4209_s17] sm:$0xff] %v2725_v63   ;;  %v2228_v17 = vadd.f32 1.0, %v3324_v5 }
 0x5be   : > { %v3328_v40 = vpop.eup %3327  ;;  %v2231_v15 = vadd.f32 1.0, %v3326_v46  ;;  %v2262_v33 = vmul.f32 %v2230_v59, %v4379_v27 }
 0x5bf   : > { %v2229_v11 = vadd.f32 1.0, %v3328_v40  ;;  %v2260_v3 = vmul.f32 %v2228_v17, %v4381_v36 }
 0x5c0   : > { %v2263_v45 = vmul.f32 %v2231_v15, %v4380_v43  ;;  %v3096_v25 = vpop.f32.mrb[68].mxu0 }
 0x5c1   : > { %v2261_v34 = vmul.f32 %v2229_v11, %v4382_v49  ;;  %3337 = vtanh.f32 %v3096_v25  ;;  %v2113_v58 = vpop.f32.mrb[69].mxu0 }
 0x5c2   : > { %v2740_v10 = vpack.c.bf16 %v2263_v45, %v2262_v33  ;;  %3339 = vtanh.f32 %v2113_v58  ;;  %v3097_v18 = vpop.f32.mrb[70].mxu0  ;;  %v4397_v58 = vld [vmem:[#allocation8_spill] sm:$0xff] }
 0x5c3   : > { %v3330_v47 = vpop.eup %3329  ;;  %v2735_v48 = vpack.c.bf16 %v2261_v34, %v2260_v3  ;;  %3341 = vtanh.f32 %v3097_v18  ;;  %v2116_v12 = vpop.f32.mrb[71].mxu0  ;;  %v4395_v3 = vld [vmem:[#allocation6_spill] sm:$0xff] }
 0x5c4   : > { %v3332_v7 = vpop.eup %3331  ;;  %2804 = vst [vmem:[%s4209_s17 + $0x18] sm:$0xff] %v2740_v10   ;;  %v2234_v52 = vadd.f32 1.0, %v3330_v47  ;;  %3343 = vtanh.f32 %v2116_v12  ;;  %v4396_v49 = vmax.f32 %v4395_v3, 0.0  ;;  %v4398_v10 = vmax.f32 %v4397_v58, 0.0 }
 0x5c5   : > { %v3334_v50 = vpop.eup %3333  ;;  %2803 = vst [vmem:[%s4209_s17 + $0x10] sm:$0xff] %v2735_v48   ;;  %v2232_v55 = vadd.f32 1.0, %v3332_v7  ;;  %v4399_v48 = vld [vmem:[#allocation7_spill] sm:$0xff] }
 0x5c6   : > { %v3336_v8 = vpop.eup %3335  ;;  %v2235_v13 = vadd.f32 1.0, %v3334_v50  ;;  %v2266_v24 = vmul.f32 %v2234_v52, %v4383_v21  ;;  %v4400_v12 = vmax.f32 %v4399_v48, 0.0  ;;  %v4401_v52 = vld [vmem:[#allocation9_spill] sm:$0xff] }
 0x5c7   : > { %v2233_v41 = vadd.f32 1.0, %v3336_v8  ;;  %v2264_v26 = vmul.f32 %v2232_v55, %v4385_v28  ;;  %v4402_v50 = vmax.f32 %v4401_v52, 0.0  ;;  %v4419_v52 = vld [vmem:[#allocation20_spill] sm:$0xff] }
 0x5c8   : > { %v2267_v14 = vmul.f32 %v2235_v13, %v4384_v51 }
 0x5c9   : > { %v2265_v44 = vmul.f32 %v2233_v41, %v4386_v30 }
 0x5ca   : > { %v2750_v31 = vpack.c.bf16 %v2267_v14, %v2266_v24 }
 0x5cb   : > { %v3338_v19 = vpop.eup %3337  ;;  %v2745_v42 = vpack.c.bf16 %v2265_v44, %v2264_v26 }
 0x5cc   : > { %v3340_v0 = vpop.eup %3339  ;;  %2806 = vst [vmem:[%s4209_s17 + $0x28] sm:$0xff] %v2750_v31   ;;  %v2238_v29 = vadd.f32 1.0, %v3338_v19 }
 0x5cd   : > { %v3342_v56 = vpop.eup %3341  ;;  %2805 = vst [vmem:[%s4209_s17 + $0x20] sm:$0xff] %v2745_v42   ;;  %v2236_v2 = vadd.f32 1.0, %v3340_v0  ;;  %v4403_v42 = vld [vmem:[#allocation12_spill] sm:$0xff] }
 0x5ce   : > { %v3344_v32 = vpop.eup %3343  ;;  %v2239_v6 = vadd.f32 1.0, %v3342_v56  ;;  %v2270_v61 = vmul.f32 %v2238_v29, %v4388_v4  ;;  %v4404_v0 = vmax.f32 %v4403_v42, 0.0  ;;  %v4405_v56 = vld [vmem:[#allocation14_spill] sm:$0xff] }
 0x5cf   : > { %v2237_v23 = vadd.f32 1.0, %v3344_v32  ;;  %v2268_v54 = vmul.f32 %v2236_v2, %v4392_v20  ;;  %v4406_v2 = vmax.f32 %v4405_v56, 0.0 }
 0x5d0   : > { %v2271_v16 = vmul.f32 %v2239_v6, %v4390_v9 }
 0x5d1   : > { %v2269_v37 = vmul.f32 %v2237_v23, %v4394_v60  ;;  %v4407_v23 = vld [vmem:[#allocation13_spill] sm:$0xff] }
 0x5d2   : > { %v2760_v22 = vpack.c.bf16 %v2271_v16, %v2270_v61  ;;  %v4408_v39 = vmax.f32 %v4407_v23, 0.0  ;;  %v4409_v61 = vld [vmem:[#allocation15_spill] sm:$0xff] }
 0x5d3   : > { %v2755_v38 = vpack.c.bf16 %v2269_v37, %v2268_v54  ;;  %v4410_v57 = vmax.f32 %v4409_v61, 0.0 }
 0x5d4   : > { %2808 = vst [vmem:[%s4209_s17 + $0x38] sm:$0xff] %v2760_v22  }
 0x5d5   : > { %2807 = vst [vmem:[%s4209_s17 + $0x30] sm:$0xff] %v2755_v38  }
 0x5e7   : > { %v3100_v53 = vpop.f32.mrb[72].mxu0 }
 0x5e8   : > { %3345 = vtanh.f32 %v3100_v53  ;;  %v2129_v63 = vpop.f32.mrb[73].mxu0 }
 0x5e9   : > { %3347 = vtanh.f32 %v2129_v63  ;;  %v3101_v35 = vpop.f32.mrb[74].mxu0 }
 0x5ea   : > { %3349 = vtanh.f32 %v3101_v35  ;;  %v2132_v5 = vpop.f32.mrb[75].mxu0 }
 0x5eb   : > { %3351 = vtanh.f32 %v2132_v5 }
 0x5ef   : > { %v3104_v59 = vpop.f32.mrb[76].mxu0 }
 0x5f0   : > { %3353 = vtanh.f32 %v3104_v59  ;;  %v2145_v46 = vpop.f32.mrb[77].mxu0  ;;  %v4411_v59 = vld [vmem:[#allocation16_spill] sm:$0xff] }
 0x5f1   : > { %3355 = vtanh.f32 %v2145_v46  ;;  %v3105_v17 = vpop.f32.mrb[78].mxu0  ;;  %v4412_v46 = vmax.f32 %v4411_v59, 0.0 }
 0x5f2   : > { %v3346_v40 = vpop.eup %3345  ;;  %3357 = vtanh.f32 %v3105_v17  ;;  %v2148_v15 = vpop.f32.mrb[79].mxu0 }
 0x5f3   : > { %v3348_v11 = vpop.eup %3347  ;;  %v2242_v27 = vadd.f32 1.0, %v3346_v40  ;;  %3359 = vtanh.f32 %v2148_v15  ;;  %v4413_v40 = vld [vmem:[#allocation17_spill] sm:$0xff] }
 0x5f4   : > { %v3350_v33 = vpop.eup %3349  ;;  %v2240_v43 = vadd.f32 1.0, %v3348_v11  ;;  %v4414_v15 = vmax.f32 %v4413_v40, 0.0 }
 0x5f5   : > { %v3352_v45 = vpop.eup %3351  ;;  %v2243_v25 = vadd.f32 1.0, %v3350_v33  ;;  %v2274_v34 = vmul.f32 %v2242_v27, %v4396_v49  ;;  %v4415_v27 = vld [vmem:[#allocation10_spill] sm:$0xff] }
 0x5f6   : > { %v2241_v36 = vadd.f32 1.0, %v3352_v45  ;;  %v2272_v7 = vmul.f32 %v2240_v43, %v4400_v12  ;;  %v4416_v33 = vmax.f32 %v4415_v27, 0.0  ;;  %v4417_v45 = vld [vmem:[#allocation11_spill] sm:$0xff] }
 0x5f7   : > { %v2275_v18 = vmul.f32 %v2243_v25, %v4398_v10  ;;  %v3108_v47 = vpop.f32.mrb[80].mxu0  ;;  %v4418_v25 = vmax.f32 %v4417_v45, 0.0 }
 0x5f8   : > { %v2273_v55 = vmul.f32 %v2241_v36, %v4402_v50  ;;  %3361 = vtanh.f32 %v3108_v47  ;;  %v2161_v8 = vpop.f32.mrb[81].mxu0  ;;  %v4420_v50 = vmax.f32 %v4419_v52, 0.0 }
 0x5f9   : > { %v2770_v13 = vpack.c.bf16 %v2275_v18, %v2274_v34  ;;  %3363 = vtanh.f32 %v2161_v8  ;;  %v3109_v41 = vpop.f32.mrb[82].mxu0  ;;  %v4421_v8 = vld [vmem:[#allocation21_spill] sm:$0xff] }
 0x5fa   : > { %v3354_v21 = vpop.eup %3353  ;;  %v2765_v24 = vpack.c.bf16 %v2273_v55, %v2272_v7  ;;  %3365 = vtanh.f32 %v3109_v41  ;;  %v2164_v51 = vpop.f32.mrb[83].mxu0 }
 0x5fb   : > { %v3356_v14 = vpop.eup %3355  ;;  %2810 = vst [vmem:[%s4209_s17 + $0x48] sm:$0xff] %v2770_v13   ;;  %v2246_v28 = vadd.f32 1.0, %v3354_v21  ;;  %3367 = vtanh.f32 %v2164_v51  ;;  %v4422_v13 = vmax.f32 %v4421_v8, 0.0  ;;  %v4423_v21 = vld [vmem:[#allocation18_spill] sm:$0xff] }
 0x5fc   : > { %v3358_v26 = vpop.eup %3357  ;;  %2809 = vst [vmem:[%s4209_s17 + $0x40] sm:$0xff] %v2765_v24   ;;  %v2244_v30 = vadd.f32 1.0, %v3356_v14  ;;  %v4424_v24 = vmax.f32 %v4423_v21, 0.0  ;;  %v4425_v14 = vld [vmem:[#allocation19_spill] sm:$0xff] }
 0x5fd   : > { %v3360_v44 = vpop.eup %3359  ;;  %v2247_v31 = vadd.f32 1.0, %v3358_v26  ;;  %v2278_v29 = vmul.f32 %v2246_v28, %v4404_v0  ;;  %v4426_v28 = vmax.f32 %v4425_v14, 0.0 }
 0x5fe   : > { %v2245_v19 = vadd.f32 1.0, %v3360_v44  ;;  %v2276_v4 = vmul.f32 %v2244_v30, %v4408_v39 }
 0x5ff   : > { %v2279_v32 = vmul.f32 %v2247_v31, %v4406_v2  ;;  %v3112_v6 = vpop.f32.mrb[84].mxu0 }
 0x600   : > { %v2277_v9 = vmul.f32 %v2245_v19, %v4410_v57  ;;  %3369 = vtanh.f32 %v3112_v6  ;;  %v2177_v16 = vpop.f32.mrb[85].mxu0 }
 0x601   : > { %v2780_v1 = vpack.c.bf16 %v2279_v32, %v2278_v29  ;;  %3371 = vtanh.f32 %v2177_v16  ;;  %v3113_v20 = vpop.f32.mrb[86].mxu0 }
 0x602   : > { %v3362_v54 = vpop.eup %3361  ;;  %v2775_v62 = vpack.c.bf16 %v2277_v9, %v2276_v4  ;;  %3373 = vtanh.f32 %v3113_v20  ;;  %v2180_v60 = vpop.f32.mrb[87].mxu0 }
 0x603   : > { %v3364_v37 = vpop.eup %3363  ;;  %2812 = vst [vmem:[%s4209_s17 + $0x58] sm:$0xff] %v2780_v1   ;;  %v2250_v22 = vadd.f32 1.0, %v3362_v54  ;;  %3375 = vtanh.f32 %v2180_v60 }
 0x604   : > { %v3366_v38 = vpop.eup %3365  ;;  %2811 = vst [vmem:[%s4209_s17 + $0x50] sm:$0xff] %v2775_v62   ;;  %v2248_v53 = vadd.f32 1.0, %v3364_v37 }
 0x605   : > { %v3368_v63 = vpop.eup %3367  ;;  %v2251_v35 = vadd.f32 1.0, %v3366_v38  ;;  %v2282_v17 = vmul.f32 %v2250_v22, %v4412_v46 }
 0x606   : > { %v2249_v5 = vadd.f32 1.0, %v3368_v63  ;;  %v2280_v43 = vmul.f32 %v2248_v53, %v4416_v33 }
 0x607   : > { %v2283_v11 = vmul.f32 %v2251_v35, %v4414_v15 }
 0x608   : > { %v2281_v36 = vmul.f32 %v2249_v5, %v4418_v25 }
 0x609   : > { %v2790_v3 = vpack.c.bf16 %v2283_v11, %v2282_v17 }
 0x60a   : > { %v3370_v49 = vpop.eup %3369  ;;  %v2785_v34 = vpack.c.bf16 %v2281_v36, %v2280_v43 }
 0x60b   : > { %v3372_v58 = vpop.eup %3371  ;;  %2814 = vst [vmem:[%s4209_s17 + $0x68] sm:$0xff] %v2790_v3   ;;  %v2254_v10 = vadd.f32 1.0, %v3370_v49 }
 0x60c   : > { %v3374_v18 = vpop.eup %3373  ;;  %2813 = vst [vmem:[%s4209_s17 + $0x60] sm:$0xff] %v2785_v34   ;;  %v2252_v47 = vadd.f32 1.0, %v3372_v58 }
 0x60d   : > { %v3376_v48 = vpop.eup %3375  ;;  %v2255_v12 = vadd.f32 1.0, %v3374_v18  ;;  %v2286_v55 = vmul.f32 %v2254_v10, %v4420_v50 }
 0x60e   : > { %v2253_v7 = vadd.f32 1.0, %v3376_v48  ;;  %v2284_v51 = vmul.f32 %v2252_v47, %v4424_v24 }
 0x60f   : > { %v2287_v41 = vmul.f32 %v2255_v12, %v4422_v13 }
 0x610   : > { %v2285_v26 = vmul.f32 %v2253_v7, %v4426_v28 }
 0x611   : > { %v2800_v30 = vpack.c.bf16 %v2287_v41, %v2286_v55 }
 0x612   : > { %v2795_v44 = vpack.c.bf16 %v2285_v26, %v2284_v51 }
 0x613   : > { %2816 = vst [vmem:[%s4209_s17 + $0x78] sm:$0xff] %v2800_v30  }
 0x614   : > { %2815 = vst [vmem:[%s4209_s17 + $0x70] sm:$0xff] %v2795_v44  }
 0x615 PF: > { %s18_s29 = sadd.s32 1, %s3399_s29   ;;  %s4427_s27 = smov %s3395_s28 }
 0x616   : > { %p15_p5 = scmp.ge.s32.totalorder %s18_s29, 4   ;;  %s4428_s28 = smov %s4430_s30 }
 0x618   :  { %17 = sbr.rel (!%p15_p5) target bundleno = 2 (0x2), region = 88 }

// kernel: lavt_one_forward.23
= control target key start
LH: loop header
LB: loop body
LE: loop exit
PB: predicated region body
PF: predicated region fallthrough
CT: control target
= control target key end

     0   :  { %8 = vsyncpa [#allocation3], 0  ;;  %s786_s0 = inlined_call_operand.vmem [shape: f32[4,16,16], index: 0, kind: input, shape index: {}]   ;;  %s787_s1 = inlined_call_operand.vmem [shape: bf16[32,16], index: 1, kind: input, shape index: {}]   ;;  %s788_s2 = inlined_call_operand.vmem [shape: bf16[16,32], index: 2, kind: input, shape index: {}]   ;;  %s789_s3 = inlined_call_operand.hbm [shape: f32[4,32,32], index: 3, kind: output, shape index: {}]  }
   0x1   :  { %10 = vsyncpa [#allocation3 + $0x1], 0  ;;  %s658_s12 = smov 0   ;;  %s660_s13 = smov 0  }
   0x2   :  { %s662_s14 = smov 0   ;;  %s664_s15 = smov 0  }
   0x3   :  { %s666_s16 = smov 0   ;;  %s668_s17 = smov 0  }
   0x4 LB: > { %s454_s18 = sadd.s32 4294967295, %s633_s17   ;;  %s455_s19 = sadd.s32 4294967294, %s633_s17   ;;  %s633_s17 = sphi %s668_s17, %s16_s17   ;;  %s629_s16 = sphi %s666_s16, %s796_s16   ;;  %s625_s15 = sphi %s664_s15, %s795_s15   ;;  %s621_s14 = sphi %s662_s14, %s794_s14   ;;  %s617_s13 = sphi %s660_s13, %s793_s13   ;;  %s613_s12 = sphi %s658_s12, %s792_s12  }
   0x5   : > { %s28_s20 = sadd.s32 1, %s629_s16  ;;  %s110_s21 = sadd.s32 1, %s621_s14 }
   0x6   : > { %p30_p0 = scmp.ge.s32.totalorder %s28_s20, 4  ;;  %p120_p1 = scmp.ne.s32.totalorder %s621_s14, %s617_s13 }
   0x7   : > { %p121_p2 = scmp.eq.s32.totalorder %s454_s18, 3  ;;  %p126_p3 = scmp.ne.s32.totalorder %s617_s13, %s613_s12 }
   0x8   : > { %s798_s20 = smov (%p30_p0, %s28_s20), 0  ;;  %p127_p5 = scmp.eq.s32.totalorder %s455_s19, 3 }
   0x9   : > { %p698_p4 = por %p121_p2, %p120_p1  ;;  %s105_s23 = ssub.s32 %s629_s16, %s798_s20 }
   0xa   : > { %p459_p6 = scmp.ge.s32.totalorder %s633_s17, 1  ;;  %p108_p7 = scmp.eq.s32.totalorder %s105_s23, 0 }
   0xb   : > { %p705_p8 = por %p127_p5, %p126_p3  ;;  %p165_p9 = scmp.lt.s32.totalorder %s633_s17, 5 }
   0xc   : > { %s711_s25 = scalar_select %p108_p7, %s621_s14, %s110_s21  }
   0xd   : > { %p166_p10 = pnand %p459_p6, %p165_p9 }
   0xe   : > { %p194_p11 = scmp.lt.s32.totalorder (!%p166_p10), %s625_s15, 3  ;;  %v552_v0 = vld [vmem:[%s787_s1] sm:$0xff] (!%p166_p10)   ;;  %vm224_vm0 = vcmask (!%p166_p10), 130048   ;;  %v553_v4 = vld [vmem:[%s787_s1 + $0x8] sm:$0xff] (!%p166_p10)   ;;  %s191_s10 = sand.u32 (!%p166_p10), 1, %s617_s13   ;;  %vm345_vm1 = vcmask (!%p166_p10), 261120  }
   0xf   : > { %169 = sbr.rel (%p166_p10) target bundleno = 481 (0x1e1), region = 32  ;;  %485 = vmatprep.mubr.msk.bf16.mxu0 (!%p166_p10), %vm224_vm0, %v552_v0  ;;  %v554_v5 = vld [vmem:[%s788_s2] sm:$0xff] (!%p166_p10)   ;;  %s460_s11 = sshll.u32 (!%p166_p10), %s191_s10, 5 }
  0x10   : > { %489 = vmatprep.subr.bf16.mxu1 (!%p166_p10), %v554_v5  ;;  %s193_s18 = scalar_lea.vmem (!%p166_p10), [#allocation2], %s460_s11  ;;  %s476_s21 = sshll.u32 (!%p166_p10), %s625_s15, 9 }
  0x11   : > { %490 = vmatpush3.bf16.msra.mxu1 (!%p166_p10), %v554_v5  ;;  %s366_s19 = sshll.u32 (!%p166_p10), %s193_s18, 4  ;;  %s738_s27 = scalar_lea.hbm (!%p166_p10), %s789_s3, %s476_s21  ;;  %s733_s19 = int_to_ptr.vmem [resolvable:$true] %s366_s19 }
  0x16   : > { %s195_s28 = scalar_select %p194_p11, %s625_s15, 3 }
  0x17   : > { %s555_s15 = scalar_lea.vmem %s733_s19, 512 }
  0x18   : > { %s475_s29 = sshll.u32 %s195_s28, 4  ;;  %s740_s28 = scalar_lea.sflag [#allocation3], %s191_s10 }
  0x19   : > { %s198_s5 = scalar_lea.vmem %s786_s0, %s475_s29  ;;  %p556_p12 = scmp.ne.s32.totalorder %s733_s19, %s555_s15 }
  0x1a   : > { %v207_v1 = vld [vmem:[%s198_s5] sm:$0xff]  ;;  %v208_v2 = vld [vmem:[%s198_s5 + $0x8] sm:$0xff]  ;;  %s635_s29 = smov [#allocation2]  }
  0x1b   : > { %v209_v3 = vpack.c.bf16 %v208_v2, %v207_v1  ;;  %p557_p13 = pnand %p556_p12, %p698_p4  ;;  %s559_s30 = sshll.u32 %s635_s29, 4  ;;  %s560_s30 = int_to_ptr.vmem [resolvable:$false] %s559_s30 }
  0x1c   : > { %s561_s4 = scalar_lea.vmem %s560_s30, 1024  ;;  %p562_p1 = scmp.lt.s32.totalorder %s733_s19, %s560_s30 }
  0x1d   : > { %483 = vmatprep.subr.bf16.mxu0 %v209_v3  ;;  %p558_p0 = pneg %p557_p13  ;;  %p563_p2 = scmp.lt.s32.totalorder %s561_s4, %s555_s15 }
  0x1e   : > { %484 = vmatpush3.bf16.msra.mxu0 %v209_v3 }
  0x1f   : > { %p564_p3 = por %p563_p2, %p562_p1 }
  0x21   : > { %486 = vmatmul.mubr.msk.bf16.vlgmr.msra.gmra.mrb[0].mxu0 %vm224_vm0, %v553_v4  ;;  %p565_p5 = pnand %p564_p3, %p558_p0 }
  0xf4   : > { %v487_v6 = vpop.f32.mrb[0].mxu0 }
  0xf5   : > { %v265_v7 = vpop.f32.mrb[1].mxu0 }
  0xf6   : > { %v488_v8 = vpop.f32.mrb[2].mxu0 }
  0xf7   : > { %v281_v9 = vpack.c.bf16 %v488_v8, %v487_v6  ;;  %v268_v10 = vpop.f32.mrb[3].mxu0 }
  0xf8   : > { %v280_v11 = vpack.c.bf16 %v268_v10, %v265_v7 }
  0xfa   : > { %491 = vmatprep.mubr.msk.bf16.mxu1 %vm224_vm0, %v280_v11 }
  0xfb   : > { %492 = vmatmul.mubr.msk.bf16.vlgmr.msra.gmra.mrb[0].mxu1 %vm224_vm0, %v281_v9 }
 0x1ce   : > { %v493_v12 = vpop.f32.mrb[0].mxu1 }
 0x1cf   : > { %348 = vst.msk [vmem:[%s193_s18 + $0x10] sm:$0xff] %vm345_vm1, %v493_v12  ;;  %v330_v13 = vpop.f32.mrb[1].mxu1 }
 0x1d0   : > { %346 = vst.msk [vmem:[%s193_s18] sm:$0xff] %vm345_vm1, %v330_v13  ;;  %v494_v14 = vpop.f32.mrb[2].mxu1 }
 0x1d1   : > { %349 = vst.msk [vmem:[%s193_s18 + $0x18] sm:$0xff] %vm345_vm1, %v494_v14  ;;  %v333_v15 = vpop.f32.mrb[3].mxu1 }
 0x1d2   : > { %347 = vst.msk [vmem:[%s193_s18 + $0x8] sm:$0xff] %vm345_vm1, %v333_v15 }
 0x1d3   : > { %568 = shalt.err (!%p565_p5)
}
 0x1d4   : > { %s569_s5 = scalar_lea.hbm %s738_s27, 512  ;;  %s573_s8 = scalar_lea.hbm %s789_s3, 2048 }
 0x1d5   : > { %p570_p6 = scmp.ne.s32.totalorder %s738_s27, %s569_s5  ;;  %p574_p10 = scmp.lt.u32.totalorder %s738_s27, %s789_s3 }
 0x1d6   : > { %p575_p11 = scmp.lt.u32.totalorder %s573_s8, %s569_s5  ;;  %p577_p13 = scmp.lt.u32.totalorder %s569_s5, %s738_s27 }
 0x1d7   : > { %p571_p7 = pnand %p570_p6, %p698_p4 }
 0x1d8   : > { %p576_p12 = por %p575_p11, %p574_p10 }
 0x1d9   : > { %p572_p9 = pneg %p571_p7 }
 0x1da   : > { %p578_p0 = por %p577_p13, %p576_p12 }
 0x1dc   : > { %p579_p1 = pnand %p578_p0, %p572_p9 }
 0x1de   : > { %582 = shalt.err (!%p579_p1)
}
 0x1df   : > { %s636_s11 = smov 128   ;;  %s637_s18 = smov 8  }
 0x1e0   : > { %495 = dma.vmem_to_hbm [thread:$0]  (%p698_p4), %s733_s19, 512, %s738_s27, %s740_s28, %s636_s11, %s636_s11, %s637_s18  }
 0x1e1 PF: > { %p501_p2 = scmp.ge.s32.totalorder %s633_s17, 2  ;;  %s381_s21 = sand.u32 1, %s613_s12  }
 0x1e2   : > { %s382_s23 = scalar_lea.sflag [#allocation3], %s381_s21 }
 0x1e3   : > { %p498_p3 = pnand %p501_p2, %p705_p8 }
 0x1e5   : > { %608 = dma.done.wait (!%p498_p3), %s382_s23, 512  }
 0x1e6   : > { %610 = vsyncadd (!%p498_p3), %s382_s23, 4294966784  ;;  %s16_s17 = sadd.s32 1, %s633_s17   ;;  %s792_s12 = smov %s617_s13 }
 0x1e7   : > { %p13_p5 = scmp.ge.s32.totalorder %s16_s17, 6   ;;  %s793_s13 = smov %s621_s14 }
 0x1e8   : > { %s794_s14 = smov %s711_s25  ;;  %s795_s15 = smov %s629_s16 }
 0x1e9   : > { %s796_s16 = smov %s798_s20  ;;  %15 = sbr.rel (!%p13_p5) target bundleno = 4 (0x4), region = 70 }
 0x1f0   :  { %387 = vsyncpa [#allocation3], 1 }
 0x1f1   :  { %389 = vsyncpa [#allocation3 + $0x1], 1 }

</bundles_post_ra>
